<compile_context>
chip_gen: v5e
topology: v5e:2x2
jax: 0.10.0
libtpu: 0.0.40
codegen_flags: <defaults>
</compile_context>

<pallas_src>
import functools

import jax
import jax.numpy as jnp
from jax.experimental import pallas as pl
from jax.experimental.pallas import tpu as pltpu

EPS = 1e-5


def _round_up(x, m):
    return (x + m - 1) // m * m


def _vmem_limit_bytes():
    """Chip-aware scoped-VMEM limit: ~half of physical, never below the default."""
    try:
        cap = int(pltpu.get_tpu_info().vmem_capacity_bytes)
    except Exception:  # older jax / interpret mode: assume v7x (64 MiB per core)
        cap = 64 * 1024 * 1024
    return int(min(max(cap // 2, 32 * 1024 * 1024), 112 * 1024 * 1024))


# ---------------------------------------------------------------------------
# Fused wide_basic kernel (one image per grid step)
# ---------------------------------------------------------------------------
def _wide_basic_kernel(x_ref, s1_ref, t1_ref, w1_ref, s2_ref, t2_ref,
                       w2_ref, b2_ref, *rest,
                       H, W, Cin, P, Wa, Rt, res_mode, use_im2col):
    """bn1+relu -> conv1 -> (dropout=id) -> bn2+relu -> conv2 (+shortcut).

    x_ref  : (1, H, W, Cin) f32   unpadded input image
    s?,t?  : (1, C)         f32   folded BatchNorm scale / shift (t2 holds conv1 bias)
    w1     : (9*Cin, P)     bf16  conv1 taps, row index = (ky*3+kx)*Cin + c
    w2     : (9*P,  P)      bf16
    b2     : (1, P)         f32   conv2 bias (+ shortcut bias in 'project')
    ws     : (Cin, P)       bf16  only in 'project' mode
    o_ref  : (1, H, W, P)   f32
    scratch: a1 (H+2, Wa, Cin) f32, a2 (H+2, Wa, P) f32 — padded activations
    """
    if res_mode == "project":
        ws_ref, o_ref, a1_ref, a2_ref = rest
    else:
        o_ref, a1_ref, a2_ref = rest

    f32 = jnp.float32
    Hp = H + 2

    # ---- zero the 1-wide conv halos of the persistent scratch ---------------
    def zero_halo(ref, C):
        zrow = jnp.zeros((1, Wa, C), f32)
        ref[0:1, :, :] = zrow
        ref[H + 1:H + 2, :, :] = zrow
        ref[:, 0:1, :] = jnp.zeros((Hp, 1, C), f32)
        ref[:, W + 1:Wa, :] = jnp.zeros((Hp, Wa - (W + 1), C), f32)

    zero_halo(a1_ref, Cin)
    zero_halo(a2_ref, P)

    # ---- bn1 + relu into the interior of the padded a1 scratch --------------
    xin = x_ref[0]                                           # (H, W, Cin) f32
    a1_ref[1:H + 1, 1:W + 1, :] = jnp.maximum(
        xin * s1_ref[...] + t1_ref[...], 0.0)

    # ---- one 3x3 conv chunk = one im2col matmul (K = 9*C) -------------------
    def conv3x3_chunk(src_ref, w_ref, C, r0, rc):
        taps = [src_ref[r0 + ky:r0 + ky + rc, kx:kx + W, :].reshape(rc * W, C)
                for ky in range(3) for kx in range(3)]
        if use_im2col:
            lhs = jnp.concatenate(taps, axis=-1).astype(jnp.bfloat16)
            return jnp.dot(lhs, w_ref[...], preferred_element_type=f32)
        # fallback: chained dots into one f32 accumulator (same weight layout)
        acc = None
        for j, tap in enumerate(taps):
            d = jnp.dot(tap.astype(jnp.bfloat16), w_ref[j * C:(j + 1) * C, :],
                        preferred_element_type=f32)
            acc = d if acc is None else acc + d
        return acc

    # conv1 -> (dropout = identity in eval) -> bn2 + relu, written into a2
    # TODO(synk): train-mode dropout would use pltpu.prng_random_bits here.
    for r0 in range(0, H, Rt):
        rc = min(Rt, H - r0)
        y1 = conv3x3_chunk(a1_ref, w1_ref, Cin, r0, rc)          # (rc*W, P) f32
        a2 = jnp.maximum(y1 * s2_ref[...] + t2_ref[...], 0.0)    # conv1 bias in t2
        a2_ref[1 + r0:1 + r0 + rc, 1:W + 1, :] = a2.reshape(rc, W, P)

    # conv2 + bias + shortcut, straight to the output block
    # TODO(synk): for stride != 1, compute only every stride-th row/col here.
    for r0 in range(0, H, Rt):
        rc = min(Rt, H - r0)
        y2 = conv3x3_chunk(a2_ref, w2_ref, P, r0, rc) + b2_ref[...]
        if res_mode == "identity":
            y2 = y2 + x_ref[0, r0:r0 + rc, :, :].reshape(rc * W, Cin)  # Cin == P
        elif res_mode == "project":
            xi = x_ref[0, r0:r0 + rc, :, :].reshape(rc * W, Cin)
            y2 = y2 + jnp.dot(xi.astype(jnp.bfloat16), ws_ref[...],
                              preferred_element_type=f32)
        o_ref[:, r0:r0 + rc, :, :] = y2.reshape(1, rc, W, P)


def _fused_block_call(x, s1, t1, w1col, s2, t2f, w2col, b2f, ws, *,
                      H, W, Cin, P, Wa, Rt, res_mode, use_im2col):
    N = x.shape[0]
    kernel = functools.partial(
        _wide_basic_kernel, H=H, W=W, Cin=Cin, P=P, Wa=Wa, Rt=Rt,
        res_mode=res_mode, use_im2col=use_im2col)

    def cvec(c):
        return pl.BlockSpec((1, c), lambda n: (0, 0))

    # TODO(synk): at 640-channel WRN widths, mark the grid-invariant weight
    # blocks pipeline_mode=pl.Buffered(1) (v7x, 64 MiB VMEM) and block several
    # images / row tiles per grid step for better DMA/compute overlap.
    in_specs = [
        pl.BlockSpec((1, H, W, Cin), lambda n: (n, 0, 0, 0)),
        cvec(Cin), cvec(Cin),
        pl.BlockSpec((9 * Cin, P), lambda n: (0, 0)),
        cvec(P), cvec(P),
        pl.BlockSpec((9 * P, P), lambda n: (0, 0)),
        cvec(P),
    ]
    args = [x, s1.reshape(1, Cin), t1.reshape(1, Cin), w1col,
            s2.reshape(1, P), t2f.reshape(1, P), w2col, b2f.reshape(1, P)]
    if res_mode == "project":
        in_specs.append(pl.BlockSpec((Cin, P), lambda n: (0, 0)))
        args.append(ws)

    return pl.pallas_call(
        kernel,
        out_shape=jax.ShapeDtypeStruct((N, H, W, P), jnp.float32),
        grid_spec=pltpu.PrefetchScalarGridSpec(
            num_scalar_prefetch=0,
            grid=(N,),                                   # megacore splits images
            in_specs=in_specs,
            out_specs=pl.BlockSpec((1, H, W, P), lambda n: (n, 0, 0, 0)),
            scratch_shapes=[pltpu.VMEM((H + 2, Wa, Cin), jnp.float32),
                            pltpu.VMEM((H + 2, Wa, P), jnp.float32)],
        ),
        compiler_params=pltpu.CompilerParams(
            dimension_semantics=("parallel",),
            vmem_limit_bytes=_vmem_limit_bytes(),
        ),
    )(*args)


# ---------------------------------------------------------------------------
# wide_basic forward (wrapper / glue)
# ---------------------------------------------------------------------------
def wide_basic_forward(x_nchw, params, stride=1):
    N, Cin, H, W = x_nchw.shape
    P = params['conv1_w'].shape[0]
    assert W % 8 == 0, "width must be sublane-aligned for the in-kernel reshapes"

    # NHWC activations for the kernel.
    # TODO(synk): in a full WRN, keep activations NHWC between blocks and hoist
    # these two transposes to the network boundary.
    x = jnp.transpose(x_nchw, (0, 2, 3, 1)).astype(jnp.float32)

    # fold BatchNorm (eval mode, running stats) into per-channel scale / shift
    s1 = params['bn1_gamma'] / jnp.sqrt(params['bn1_var'] + EPS)
    t1 = params['bn1_beta'] - params['bn1_mean'] * s1
    s2 = params['bn2_gamma'] / jnp.sqrt(params['bn2_var'] + EPS)
    t2 = params['bn2_beta'] - params['bn2_mean'] * s2
    t2 = t2 + s2 * params['conv1_b']             # fold conv1 bias into bn2 shift

    # conv taps, tap-major: (O, I, 3, 3) -> (9*I, O), bf16 for the MXU
    w1col = jnp.transpose(params['conv1_w'], (2, 3, 1, 0)).reshape(9 * Cin, P)
    w1col = w1col.astype(jnp.bfloat16)
    w2col = jnp.transpose(params['conv2_w'], (2, 3, 1, 0)).reshape(9 * P, P)
    w2col = w2col.astype(jnp.bfloat16)

    Wa = _round_up(W + 2, 8)                     # padded scratch width
    Rt = max(1, min(H, max(1, 256 // W)))        # ~256 matmul rows per chunk
                                                 # (128 may suit v5e's MXU better)

    use_projection = (stride != 1) or (Cin != P)
    if use_projection:
        ws = jnp.transpose(params['short_w'].reshape(P, Cin)).astype(jnp.bfloat16)
        b2f = params['conv2_b'] + params['short_b']        # fold shortcut bias
        res_mode = "project"
    else:
        assert Cin == P, "identity shortcut requires in_planes == planes"
        ws = None
        b2f = params['conv2_b']
        res_mode = "identity"

    call = functools.partial(
        _fused_block_call, x, s1, t1, w1col, s2, t2, w2col, b2f, ws,
        H=H, W=W, Cin=Cin, P=P, Wa=Wa, Rt=Rt, res_mode=res_mode)
    try:
        out = call(use_im2col=True)
        jax.block_until_ready(out)
    except Exception:
        # TODO(synk): drop once minor-dim concatenate (im2col LHS build) lowers
        # on every deployed Mosaic version.
        out = call(use_im2col=False)

    if stride != 1:
        # 1x1 projection commutes with subsampling, so the fused stride-1
        # result (with the projection already added) is simply subsampled.
        out = out[:, ::stride, ::stride, :]

    return jnp.transpose(out, (0, 3, 1, 2))      # NHWC -> NCHW


# ---------------------------------------------------------------------------
# Pure-JAX reference (for correctness check)
# ---------------------------------------------------------------------------
def _reference_forward(x, p, stride):
    def bn(x, g, b, m, v):
        return ((x - m[None, :, None, None]) / jnp.sqrt(v[None, :, None, None] + EPS)
                * g[None, :, None, None] + b[None, :, None, None])

    def conv(x, w, b, s, pad):
        y = jax.lax.conv_general_dilated(
            x, w, (s, s), [(pad, pad), (pad, pad)],
            dimension_numbers=('NCHW', 'OIHW', 'NCHW'))
        return y + b[None, :, None, None]

    out = conv(jax.nn.relu(bn(x, p['bn1_gamma'], p['bn1_beta'], p['bn1_mean'], p['bn1_var'])),
               p['conv1_w'], p['conv1_b'], 1, 1)
    out = conv(jax.nn.relu(bn(out, p['bn2_gamma'], p['bn2_beta'], p['bn2_mean'], p['bn2_var'])),
               p['conv2_w'], p['conv2_b'], stride, 1)
    in_planes, planes = x.shape[1], p['conv1_w'].shape[0]
    if stride != 1 or in_planes != planes:
        sc = conv(x, p['short_w'], p['short_b'], stride, 0)
    else:
        sc = x
    return out + sc


# ---------------------------------------------------------------------------
if __name__ == "__main__":
    key = jax.random.PRNGKey(0)

    def make_params(key, in_planes, planes, with_shortcut):
        ks = jax.random.split(key, 14)
        p = {
            'bn1_gamma': jax.random.uniform(ks[0], (in_planes,), jnp.float32, 0.5, 1.5),
            'bn1_beta':  0.1 * jax.random.normal(ks[1], (in_planes,), jnp.float32),
            'bn1_mean':  0.1 * jax.random.normal(ks[2], (in_planes,), jnp.float32),
            'bn1_var':   jax.random.uniform(ks[3], (in_planes,), jnp.float32, 0.5, 1.5),
            'conv1_w':   0.1 * jax.random.normal(ks[4], (planes, in_planes, 3, 3), jnp.float32),
            'conv1_b':   0.1 * jax.random.normal(ks[5], (planes,), jnp.float32),
            'bn2_gamma': jax.random.uniform(ks[6], (planes,), jnp.float32, 0.5, 1.5),
            'bn2_beta':  0.1 * jax.random.normal(ks[7], (planes,), jnp.float32),
            'bn2_mean':  0.1 * jax.random.normal(ks[8], (planes,), jnp.float32),
            'bn2_var':   jax.random.uniform(ks[9], (planes,), jnp.float32, 0.5, 1.5),
            'conv2_w':   0.1 * jax.random.normal(ks[10], (planes, planes, 3, 3), jnp.float32),
            'conv2_b':   0.1 * jax.random.normal(ks[11], (planes,), jnp.float32),
        }
        if with_shortcut:
            p['short_w'] = 0.1 * jax.random.normal(ks[12], (planes, in_planes, 1, 1), jnp.float32)
            p['short_b'] = 0.1 * jax.random.normal(ks[13], (planes,), jnp.float32)
        return p

    def check(name, N, in_planes, planes, H, W, stride, k):
        kp, kx = jax.random.split(k)
        with_shortcut = (stride != 1) or (in_planes != planes)
        params = make_params(kp, in_planes, planes, with_shortcut)
        x = jax.random.normal(kx, (N, in_planes, H, W), dtype=jnp.float32)
        out = jax.block_until_ready(wide_basic_forward(x, params, stride=stride))
        ref = jax.block_until_ready(_reference_forward(x, params, stride))
        assert out.shape == ref.shape, (name, out.shape, ref.shape)
        assert jnp.allclose(out, ref, rtol=2e-2, atol=2e-2), f"{name}: mismatch vs reference"

    k1, k2, k3 = jax.random.split(key, 3)
    check("project_stride1", 2, 4, 8, 16, 16, 1, k1)    # primary: x = (2, 4, 16, 16)
    check("identity_stride1", 2, 8, 8, 16, 16, 1, k2)   # identity shortcut
    check("project_stride2", 2, 4, 8, 16, 16, 2, k3)    # strided path

    print("KERNEL_OK")
</pallas_src>

<mosaic_0001>
module attributes {stable_mosaic.version = 11 : i64} {
  func.func @_wide_basic_kernel(%arg0: i32, %arg1: memref<1x16x16x4xf32, #tpu.memory_space<vmem>>, %arg2: memref<1x4xf32, #tpu.memory_space<vmem>>, %arg3: memref<1x4xf32, #tpu.memory_space<vmem>>, %arg4: memref<36x8xbf16, #tpu.memory_space<vmem>>, %arg5: memref<1x8xf32, #tpu.memory_space<vmem>>, %arg6: memref<1x8xf32, #tpu.memory_space<vmem>>, %arg7: memref<72x8xbf16, #tpu.memory_space<vmem>>, %arg8: memref<1x8xf32, #tpu.memory_space<vmem>>, %arg9: memref<4x8xbf16, #tpu.memory_space<vmem>>, %arg10: memref<1x16x16x8xf32, #tpu.memory_space<vmem>>, %arg11: memref<18x24x4xf32, #tpu.memory_space<vmem>>, %arg12: memref<18x24x8xf32, #tpu.memory_space<vmem>>) attributes {dimension_semantics = [#tpu.dimension_semantics<parallel>], iteration_bounds = array<i64: 2>, scalar_prefetch = 0 : i64, scratch_operands = 2 : i64, tpu.core_type = #tpu.core_type<tc>, window_params = [{transform_indices = @transform_0, window_bounds = array<i64: 1, 16, 16, 4>}, {pipeline_mode = #tpu.pipeline_mode<synchronous>, transform_indices = @transform_1, window_bounds = array<i64: 1, 4>}, {pipeline_mode = #tpu.pipeline_mode<synchronous>, transform_indices = @transform_2, window_bounds = array<i64: 1, 4>}, {pipeline_mode = #tpu.pipeline_mode<synchronous>, transform_indices = @transform_3, window_bounds = array<i64: 36, 8>}, {pipeline_mode = #tpu.pipeline_mode<synchronous>, transform_indices = @transform_4, window_bounds = array<i64: 1, 8>}, {pipeline_mode = #tpu.pipeline_mode<synchronous>, transform_indices = @transform_5, window_bounds = array<i64: 1, 8>}, {pipeline_mode = #tpu.pipeline_mode<synchronous>, transform_indices = @transform_6, window_bounds = array<i64: 72, 8>}, {pipeline_mode = #tpu.pipeline_mode<synchronous>, transform_indices = @transform_7, window_bounds = array<i64: 1, 8>}, {pipeline_mode = #tpu.pipeline_mode<synchronous>, transform_indices = @transform_8, window_bounds = array<i64: 4, 8>}, {transform_indices = @transform_9, window_bounds = array<i64: 1, 16, 16, 8>}]} {
    %cst = arith.constant 0.000000e+00 : f32
    %0 = vector.broadcast %cst : f32 to vector<1x24x4xf32>
    %c0 = arith.constant 0 : index
    %c0_0 = arith.constant 0 : index
    %c0_1 = arith.constant 0 : index
    %1 = vector.load %arg11[%c0, %c0_0, %c0_1] : memref<18x24x4xf32, #tpu.memory_space<vmem>>, vector<1x24x4xf32>
    tpu.vector_store %arg11[%c0, %c0_0, %c0_1], %0 {strides = array<i32>} : memref<18x24x4xf32, #tpu.memory_space<vmem>>, vector<1x24x4xf32>,
    %c17 = arith.constant 17 : index
    %c0_2 = arith.constant 0 : index
    %c0_3 = arith.constant 0 : index
    %2 = vector.load %arg11[%c17, %c0_2, %c0_3] : memref<18x24x4xf32, #tpu.memory_space<vmem>>, vector<1x24x4xf32>
    tpu.vector_store %arg11[%c17, %c0_2, %c0_3], %0 {strides = array<i32>} : memref<18x24x4xf32, #tpu.memory_space<vmem>>, vector<1x24x4xf32>,
    %cst_4 = arith.constant 0.000000e+00 : f32
    %3 = vector.broadcast %cst_4 : f32 to vector<18x1x4xf32>
    %c0_5 = arith.constant 0 : index
    %c0_6 = arith.constant 0 : index
    %c0_7 = arith.constant 0 : index
    %4 = vector.load %arg11[%c0_5, %c0_6, %c0_7] : memref<18x24x4xf32, #tpu.memory_space<vmem>>, vector<18x1x4xf32>
    tpu.vector_store %arg11[%c0_5, %c0_6, %c0_7], %3 {strides = array<i32>} : memref<18x24x4xf32, #tpu.memory_space<vmem>>, vector<18x1x4xf32>,
    %cst_8 = arith.constant 0.000000e+00 : f32
    %5 = vector.broadcast %cst_8 : f32 to vector<18x7x4xf32>
    %c0_9 = arith.constant 0 : index
    %c17_10 = arith.constant 17 : index
    %c0_11 = arith.constant 0 : index
    %6 = vector.load %arg11[%c0_9, %c17_10, %c0_11] : memref<18x24x4xf32, #tpu.memory_space<vmem>>, vector<18x7x4xf32>
    tpu.vector_store %arg11[%c0_9, %c17_10, %c0_11], %5 {strides = array<i32>} : memref<18x24x4xf32, #tpu.memory_space<vmem>>, vector<18x7x4xf32>,
    %cst_12 = arith.constant 0.000000e+00 : f32
    %7 = vector.broadcast %cst_12 : f32 to vector<1x24x8xf32>
    %c0_13 = arith.constant 0 : index
    %c0_14 = arith.constant 0 : index
    %c0_15 = arith.constant 0 : index
    %8 = vector.load %arg12[%c0_13, %c0_14, %c0_15] : memref<18x24x8xf32, #tpu.memory_space<vmem>>, vector<1x24x8xf32>
    tpu.vector_store %arg12[%c0_13, %c0_14, %c0_15], %7 {strides = array<i32>} : memref<18x24x8xf32, #tpu.memory_space<vmem>>, vector<1x24x8xf32>,
    %c17_16 = arith.constant 17 : index
    %c0_17 = arith.constant 0 : index
    %c0_18 = arith.constant 0 : index
    %9 = vector.load %arg12[%c17_16, %c0_17, %c0_18] : memref<18x24x8xf32, #tpu.memory_space<vmem>>, vector<1x24x8xf32>
    tpu.vector_store %arg12[%c17_16, %c0_17, %c0_18], %7 {strides = array<i32>} : memref<18x24x8xf32, #tpu.memory_space<vmem>>, vector<1x24x8xf32>,
    %cst_19 = arith.constant 0.000000e+00 : f32
    %10 = vector.broadcast %cst_19 : f32 to vector<18x1x8xf32>
    %c0_20 = arith.constant 0 : index
    %c0_21 = arith.constant 0 : index
    %c0_22 = arith.constant 0 : index
    %11 = vector.load %arg12[%c0_20, %c0_21, %c0_22] : memref<18x24x8xf32, #tpu.memory_space<vmem>>, vector<18x1x8xf32>
    tpu.vector_store %arg12[%c0_20, %c0_21, %c0_22], %10 {strides = array<i32>} : memref<18x24x8xf32, #tpu.memory_space<vmem>>, vector<18x1x8xf32>,
    %cst_23 = arith.constant 0.000000e+00 : f32
    %12 = vector.broadcast %cst_23 : f32 to vector<18x7x8xf32>
    %c0_24 = arith.constant 0 : index
    %c17_25 = arith.constant 17 : index
    %c0_26 = arith.constant 0 : index
    %13 = vector.load %arg12[%c0_24, %c17_25, %c0_26] : memref<18x24x8xf32, #tpu.memory_space<vmem>>, vector<18x7x8xf32>
    tpu.vector_store %arg12[%c0_24, %c17_25, %c0_26], %12 {strides = array<i32>} : memref<18x24x8xf32, #tpu.memory_space<vmem>>, vector<18x7x8xf32>,
    %c0_27 = arith.constant 0 : index
    %c0_28 = arith.constant 0 : index
    %c0_29 = arith.constant 0 : index
    %c0_30 = arith.constant 0 : index
    %14 = vector.load %arg1[%c0_27, %c0_28, %c0_29, %c0_30] : memref<1x16x16x4xf32, #tpu.memory_space<vmem>>, vector<1x16x16x4xf32>
    %15 = vector.shape_cast %14 : vector<1x16x16x4xf32> to vector<16x16x4xf32>
    %c0_31 = arith.constant 0 : index
    %c0_32 = arith.constant 0 : index
    %16 = vector.load %arg2[%c0_31, %c0_32] : memref<1x4xf32, #tpu.memory_space<vmem>>, vector<1x4xf32>
    %17 = vector.shape_cast %16 : vector<1x4xf32> to vector<1x1x4xf32>
    %18 = vector.broadcast %17 : vector<1x1x4xf32> to vector<16x16x4xf32>
    %19 = arith.mulf %15, %18 : vector<16x16x4xf32>
    %c0_33 = arith.constant 0 : index
    %c0_34 = arith.constant 0 : index
    %20 = vector.load %arg3[%c0_33, %c0_34] : memref<1x4xf32, #tpu.memory_space<vmem>>, vector<1x4xf32>
    %21 = vector.shape_cast %20 : vector<1x4xf32> to vector<1x1x4xf32>
    %22 = vector.broadcast %21 : vector<1x1x4xf32> to vector<16x16x4xf32>
    %23 = arith.addf %19, %22 : vector<16x16x4xf32>
    %cst_35 = arith.constant 0.000000e+00 : f32
    %24 = vector.broadcast %cst_35 : f32 to vector<16x16x4xf32>
    %25 = arith.maximumf %23, %24 : vector<16x16x4xf32>
    %c1 = arith.constant 1 : index
    %c1_36 = arith.constant 1 : index
    %c0_37 = arith.constant 0 : index
    %26 = vector.load %arg11[%c1, %c1_36, %c0_37] : memref<18x24x4xf32, #tpu.memory_space<vmem>>, vector<16x16x4xf32>
    tpu.vector_store %arg11[%c1, %c1_36, %c0_37], %25 {strides = array<i32>} : memref<18x24x4xf32, #tpu.memory_space<vmem>>, vector<16x16x4xf32>,
    %c0_38 = arith.constant 0 : index
    %c0_39 = arith.constant 0 : index
    %c0_40 = arith.constant 0 : index
    %27 = vector.load %arg11[%c0_38, %c0_39, %c0_40] : memref<18x24x4xf32, #tpu.memory_space<vmem>>, vector<16x16x4xf32>
    %28 = vector.shape_cast %27 : vector<16x16x4xf32> to vector<256x4xf32>
    %c0_41 = arith.constant 0 : index
    %c1_42 = arith.constant 1 : index
    %c0_43 = arith.constant 0 : index
    %29 = vector.load %arg11[%c0_41, %c1_42, %c0_43] : memref<18x24x4xf32, #tpu.memory_space<vmem>>, vector<16x16x4xf32>
    %30 = vector.shape_cast %29 : vector<16x16x4xf32> to vector<256x4xf32>
    %c0_44 = arith.constant 0 : index
    %c2 = arith.constant 2 : index
    %c0_45 = arith.constant 0 : index
    %31 = vector.load %arg11[%c0_44, %c2, %c0_45] : memref<18x24x4xf32, #tpu.memory_space<vmem>>, vector<16x16x4xf32>
    %32 = vector.shape_cast %31 : vector<16x16x4xf32> to vector<256x4xf32>
    %c1_46 = arith.constant 1 : index
    %c0_47 = arith.constant 0 : index
    %c0_48 = arith.constant 0 : index
    %33 = vector.load %arg11[%c1_46, %c0_47, %c0_48] : memref<18x24x4xf32, #tpu.memory_space<vmem>>, vector<16x16x4xf32>
    %34 = vector.shape_cast %33 : vector<16x16x4xf32> to vector<256x4xf32>
    %c1_49 = arith.constant 1 : index
    %c1_50 = arith.constant 1 : index
    %c0_51 = arith.constant 0 : index
    %35 = vector.load %arg11[%c1_49, %c1_50, %c0_51] : memref<18x24x4xf32, #tpu.memory_space<vmem>>, vector<16x16x4xf32>
    %36 = vector.shape_cast %35 : vector<16x16x4xf32> to vector<256x4xf32>
    %c1_52 = arith.constant 1 : index
    %c2_53 = arith.constant 2 : index
    %c0_54 = arith.constant 0 : index
    %37 = vector.load %arg11[%c1_52, %c2_53, %c0_54] : memref<18x24x4xf32, #tpu.memory_space<vmem>>, vector<16x16x4xf32>
    %38 = vector.shape_cast %37 : vector<16x16x4xf32> to vector<256x4xf32>
    %c2_55 = arith.constant 2 : index
    %c0_56 = arith.constant 0 : index
    %c0_57 = arith.constant 0 : index
    %39 = vector.load %arg11[%c2_55, %c0_56, %c0_57] : memref<18x24x4xf32, #tpu.memory_space<vmem>>, vector<16x16x4xf32>
    %40 = vector.shape_cast %39 : vector<16x16x4xf32> to vector<256x4xf32>
    %c2_58 = arith.constant 2 : index
    %c1_59 = arith.constant 1 : index
    %c0_60 = arith.constant 0 : index
    %41 = vector.load %arg11[%c2_58, %c1_59, %c0_60] : memref<18x24x4xf32, #tpu.memory_space<vmem>>, vector<16x16x4xf32>
    %42 = vector.shape_cast %41 : vector<16x16x4xf32> to vector<256x4xf32>
    %c2_61 = arith.constant 2 : index
    %c2_62 = arith.constant 2 : index
    %c0_63 = arith.constant 0 : index
    %43 = vector.load %arg11[%c2_61, %c2_62, %c0_63] : memref<18x24x4xf32, #tpu.memory_space<vmem>>, vector<16x16x4xf32>
    %44 = vector.shape_cast %43 : vector<16x16x4xf32> to vector<256x4xf32>
    %45 = tpu.concatenate %28, %30, %32, %34, %36, %38, %40, %42, %44 in 1 : vector<256x4xf32>, vector<256x4xf32>, vector<256x4xf32>, vector<256x4xf32>, vector<256x4xf32>, vector<256x4xf32>, vector<256x4xf32>, vector<256x4xf32>, vector<256x4xf32> -> vector<256x36xf32>
    %46 = arith.truncf %45 : vector<256x36xf32> to vector<256x36xbf16>
    %c0_64 = arith.constant 0 : index
    %c0_65 = arith.constant 0 : index
    %47 = vector.load %arg4[%c0_64, %c0_65] : memref<36x8xbf16, #tpu.memory_space<vmem>>, vector<36x8xbf16>
    %cst_66 = arith.constant dense<0.000000e+00> : vector<256x8xf32>
    %48 = tpu.matmul %46, %47, %cst_66 {dimension_numbers = #tpu.dot_dimension_numbers<[1], [0], [0], [1], [0, 0, 1, 1], [], []>} : vector<256x36xbf16>, vector<36x8xbf16>, vector<256x8xf32> -> vector<256x8xf32>
    %c0_67 = arith.constant 0 : index
    %c0_68 = arith.constant 0 : index
    %49 = vector.load %arg5[%c0_67, %c0_68] : memref<1x8xf32, #tpu.memory_space<vmem>>, vector<1x8xf32>
    %50 = vector.broadcast %49 : vector<1x8xf32> to vector<256x8xf32>
    %51 = arith.mulf %48, %50 : vector<256x8xf32>
    %c0_69 = arith.constant 0 : index
    %c0_70 = arith.constant 0 : index
    %52 = vector.load %arg6[%c0_69, %c0_70] : memref<1x8xf32, #tpu.memory_space<vmem>>, vector<1x8xf32>
    %53 = vector.broadcast %52 : vector<1x8xf32> to vector<256x8xf32>
    %54 = arith.addf %51, %53 : vector<256x8xf32>
    %cst_71 = arith.constant 0.000000e+00 : f32
    %55 = vector.broadcast %cst_71 : f32 to vector<256x8xf32>
    %56 = arith.maximumf %54, %55 : vector<256x8xf32>
    %57 = vector.shape_cast %56 : vector<256x8xf32> to vector<16x16x8xf32>
    %c1_72 = arith.constant 1 : index
    %c1_73 = arith.constant 1 : index
    %c0_74 = arith.constant 0 : index
    %58 = vector.load %arg12[%c1_72, %c1_73, %c0_74] : memref<18x24x8xf32, #tpu.memory_space<vmem>>, vector<16x16x8xf32>
    tpu.vector_store %arg12[%c1_72, %c1_73, %c0_74], %57 {strides = array<i32>} : memref<18x24x8xf32, #tpu.memory_space<vmem>>, vector<16x16x8xf32>,
    %c0_75 = arith.constant 0 : index
    %c0_76 = arith.constant 0 : index
    %c0_77 = arith.constant 0 : index
    %59 = vector.load %arg12[%c0_75, %c0_76, %c0_77] : memref<18x24x8xf32, #tpu.memory_space<vmem>>, vector<16x16x8xf32>
    %60 = vector.shape_cast %59 : vector<16x16x8xf32> to vector<256x8xf32>
    %c0_78 = arith.constant 0 : index
    %c1_79 = arith.constant 1 : index
    %c0_80 = arith.constant 0 : index
    %61 = vector.load %arg12[%c0_78, %c1_79, %c0_80] : memref<18x24x8xf32, #tpu.memory_space<vmem>>, vector<16x16x8xf32>
    %62 = vector.shape_cast %61 : vector<16x16x8xf32> to vector<256x8xf32>
    %c0_81 = arith.constant 0 : index
    %c2_82 = arith.constant 2 : index
    %c0_83 = arith.constant 0 : index
    %63 = vector.load %arg12[%c0_81, %c2_82, %c0_83] : memref<18x24x8xf32, #tpu.memory_space<vmem>>, vector<16x16x8xf32>
    %64 = vector.shape_cast %63 : vector<16x16x8xf32> to vector<256x8xf32>
    %c1_84 = arith.constant 1 : index
    %c0_85 = arith.constant 0 : index
    %c0_86 = arith.constant 0 : index
    %65 = vector.load %arg12[%c1_84, %c0_85, %c0_86] : memref<18x24x8xf32, #tpu.memory_space<vmem>>, vector<16x16x8xf32>
    %66 = vector.shape_cast %65 : vector<16x16x8xf32> to vector<256x8xf32>
    %c1_87 = arith.constant 1 : index
    %c1_88 = arith.constant 1 : index
    %c0_89 = arith.constant 0 : index
    %67 = vector.load %arg12[%c1_87, %c1_88, %c0_89] : memref<18x24x8xf32, #tpu.memory_space<vmem>>, vector<16x16x8xf32>
    %68 = vector.shape_cast %67 : vector<16x16x8xf32> to vector<256x8xf32>
    %c1_90 = arith.constant 1 : index
    %c2_91 = arith.constant 2 : index
    %c0_92 = arith.constant 0 : index
    %69 = vector.load %arg12[%c1_90, %c2_91, %c0_92] : memref<18x24x8xf32, #tpu.memory_space<vmem>>, vector<16x16x8xf32>
    %70 = vector.shape_cast %69 : vector<16x16x8xf32> to vector<256x8xf32>
    %c2_93 = arith.constant 2 : index
    %c0_94 = arith.constant 0 : index
    %c0_95 = arith.constant 0 : index
    %71 = vector.load %arg12[%c2_93, %c0_94, %c0_95] : memref<18x24x8xf32, #tpu.memory_space<vmem>>, vector<16x16x8xf32>
    %72 = vector.shape_cast %71 : vector<16x16x8xf32> to vector<256x8xf32>
    %c2_96 = arith.constant 2 : index
    %c1_97 = arith.constant 1 : index
    %c0_98 = arith.constant 0 : index
    %73 = vector.load %arg12[%c2_96, %c1_97, %c0_98] : memref<18x24x8xf32, #tpu.memory_space<vmem>>, vector<16x16x8xf32>
    %74 = vector.shape_cast %73 : vector<16x16x8xf32> to vector<256x8xf32>
    %c2_99 = arith.constant 2 : index
    %c2_100 = arith.constant 2 : index
    %c0_101 = arith.constant 0 : index
    %75 = vector.load %arg12[%c2_99, %c2_100, %c0_101] : memref<18x24x8xf32, #tpu.memory_space<vmem>>, vector<16x16x8xf32>
    %76 = vector.shape_cast %75 : vector<16x16x8xf32> to vector<256x8xf32>
    %77 = tpu.concatenate %60, %62, %64, %66, %68, %70, %72, %74, %76 in 1 : vector<256x8xf32>, vector<256x8xf32>, vector<256x8xf32>, vector<256x8xf32>, vector<256x8xf32>, vector<256x8xf32>, vector<256x8xf32>, vector<256x8xf32>, vector<256x8xf32> -> vector<256x72xf32>
    %78 = arith.truncf %77 : vector<256x72xf32> to vector<256x72xbf16>
    %c0_102 = arith.constant 0 : index
    %c0_103 = arith.constant 0 : index
    %79 = vector.load %arg7[%c0_102, %c0_103] : memref<72x8xbf16, #tpu.memory_space<vmem>>, vector<72x8xbf16>
    %cst_104 = arith.constant dense<0.000000e+00> : vector<256x8xf32>
    %80 = tpu.matmul %78, %79, %cst_104 {dimension_numbers = #tpu.dot_dimension_numbers<[1], [0], [0], [1], [0, 0, 1, 1], [], []>} : vector<256x72xbf16>, vector<72x8xbf16>, vector<256x8xf32> -> vector<256x8xf32>
    %c0_105 = arith.constant 0 : index
    %c0_106 = arith.constant 0 : index
    %81 = vector.load %arg8[%c0_105, %c0_106] : memref<1x8xf32, #tpu.memory_space<vmem>>, vector<1x8xf32>
    %82 = vector.broadcast %81 : vector<1x8xf32> to vector<256x8xf32>
    %83 = arith.addf %80, %82 : vector<256x8xf32>
    %c0_107 = arith.constant 0 : index
    %c0_108 = arith.constant 0 : index
    %c0_109 = arith.constant 0 : index
    %c0_110 = arith.constant 0 : index
    %84 = vector.load %arg1[%c0_107, %c0_108, %c0_109, %c0_110] : memref<1x16x16x4xf32, #tpu.memory_space<vmem>>, vector<1x16x16x4xf32>
    %85 = vector.shape_cast %84 : vector<1x16x16x4xf32> to vector<16x16x4xf32>
    %86 = vector.shape_cast %85 : vector<16x16x4xf32> to vector<256x4xf32>
    %87 = arith.truncf %86 : vector<256x4xf32> to vector<256x4xbf16>
    %c0_111 = arith.constant 0 : index
    %c0_112 = arith.constant 0 : index
    %88 = vector.load %arg9[%c0_111, %c0_112] : memref<4x8xbf16, #tpu.memory_space<vmem>>, vector<4x8xbf16>
    %cst_113 = arith.constant dense<0.000000e+00> : vector<256x8xf32>
    %89 = tpu.matmul %87, %88, %cst_113 {dimension_numbers = #tpu.dot_dimension_numbers<[1], [0], [0], [1], [0, 0, 1, 1], [], []>} : vector<256x4xbf16>, vector<4x8xbf16>, vector<256x8xf32> -> vector<256x8xf32>
    %90 = arith.addf %83, %89 : vector<256x8xf32>
    %91 = vector.shape_cast %90 : vector<256x8xf32> to vector<1x16x16x8xf32>
    %c0_114 = arith.constant 0 : index
    %c0_115 = arith.constant 0 : index
    %c0_116 = arith.constant 0 : index
    %c0_117 = arith.constant 0 : index
    %92 = vector.load %arg10[%c0_114, %c0_115, %c0_116, %c0_117] : memref<1x16x16x8xf32, #tpu.memory_space<vmem>>, vector<1x16x16x8xf32>
    tpu.vector_store %arg10[%c0_114, %c0_115, %c0_116, %c0_117], %91 {strides = array<i32>} : memref<1x16x16x8xf32, #tpu.memory_space<vmem>>, vector<1x16x16x8xf32>,
    return
  }
  func.func @transform_0(%arg0: i32) -> (i32, i32, i32, i32) {
    %c0_i32 = arith.constant 0 : i32
    %c0_i32_0 = arith.constant 0 : i32
    %c0_i32_1 = arith.constant 0 : i32
    %c0_i32_2 = arith.constant 0 : i32
    return %arg0, %c0_i32, %c0_i32_0, %c0_i32_1 : i32, i32, i32, i32
  }
  func.func @transform_1(%arg0: i32) -> (i32, i32) {
    %c0_i32 = arith.constant 0 : i32
    %c0_i32_0 = arith.constant 0 : i32
    %c0_i32_1 = arith.constant 0 : i32
    return %c0_i32, %c0_i32_0 : i32, i32
  }
  func.func @transform_2(%arg0: i32) -> (i32, i32) {
    %c0_i32 = arith.constant 0 : i32
    %c0_i32_0 = arith.constant 0 : i32
    %c0_i32_1 = arith.constant 0 : i32
    return %c0_i32, %c0_i32_0 : i32, i32
  }
  func.func @transform_3(%arg0: i32) -> (i32, i32) {
    %c0_i32 = arith.constant 0 : i32
    %c0_i32_0 = arith.constant 0 : i32
    %c0_i32_1 = arith.constant 0 : i32
    return %c0_i32, %c0_i32_0 : i32, i32
  }
  func.func @transform_4(%arg0: i32) -> (i32, i32) {
    %c0_i32 = arith.constant 0 : i32
    %c0_i32_0 = arith.constant 0 : i32
    %c0_i32_1 = arith.constant 0 : i32
    return %c0_i32, %c0_i32_0 : i32, i32
  }
  func.func @transform_5(%arg0: i32) -> (i32, i32) {
    %c0_i32 = arith.constant 0 : i32
    %c0_i32_0 = arith.constant 0 : i32
    %c0_i32_1 = arith.constant 0 : i32
    return %c0_i32, %c0_i32_0 : i32, i32
  }
  func.func @transform_6(%arg0: i32) -> (i32, i32) {
    %c0_i32 = arith.constant 0 : i32
    %c0_i32_0 = arith.constant 0 : i32
    %c0_i32_1 = arith.constant 0 : i32
    return %c0_i32, %c0_i32_0 : i32, i32
  }
  func.func @transform_7(%arg0: i32) -> (i32, i32) {
    %c0_i32 = arith.constant 0 : i32
    %c0_i32_0 = arith.constant 0 : i32
    %c0_i32_1 = arith.constant 0 : i32
    return %c0_i32, %c0_i32_0 : i32, i32
  }
  func.func @transform_8(%arg0: i32) -> (i32, i32) {
    %c0_i32 = arith.constant 0 : i32
    %c0_i32_0 = arith.constant 0 : i32
    %c0_i32_1 = arith.constant 0 : i32
    return %c0_i32, %c0_i32_0 : i32, i32
  }
  func.func @transform_9(%arg0: i32) -> (i32, i32, i32, i32) {
    %c0_i32 = arith.constant 0 : i32
    %c0_i32_0 = arith.constant 0 : i32
    %c0_i32_1 = arith.constant 0 : i32
    %c0_i32_2 = arith.constant 0 : i32
    return %arg0, %c0_i32, %c0_i32_0, %c0_i32_1 : i32, i32, i32, i32
  }
}

module attributes {stable_mosaic.version = 11 : i64} {
  func.func @_wide_basic_kernel(%arg0: i32, %arg1: memref<1x16x16x4xf32, #tpu.memory_space<vmem>>, %arg2: memref<1x4xf32, #tpu.memory_space<vmem>>, %arg3: memref<1x4xf32, #tpu.memory_space<vmem>>, %arg4: memref<36x8xbf16, #tpu.memory_space<vmem>>, %arg5: memref<1x8xf32, #tpu.memory_space<vmem>>, %arg6: memref<1x8xf32, #tpu.memory_space<vmem>>, %arg7: memref<72x8xbf16, #tpu.memory_space<vmem>>, %arg8: memref<1x8xf32, #tpu.memory_space<vmem>>, %arg9: memref<4x8xbf16, #tpu.memory_space<vmem>>, %arg10: memref<1x16x16x8xf32, #tpu.memory_space<vmem>>, %arg11: memref<18x24x4xf32, #tpu.memory_space<vmem>>, %arg12: memref<18x24x8xf32, #tpu.memory_space<vmem>>) attributes {dimension_semantics = [#tpu.dimension_semantics<parallel>], iteration_bounds = array<i64: 2>, scalar_prefetch = 0 : i64, scratch_operands = 2 : i64, tpu.core_type = #tpu.core_type<tc>, window_params = [{transform_indices = @transform_0, window_bounds = array<i64: 1, 16, 16, 4>}, {pipeline_mode = #tpu.pipeline_mode<synchronous>, transform_indices = @transform_1, window_bounds = array<i64: 1, 4>}, {pipeline_mode = #tpu.pipeline_mode<synchronous>, transform_indices = @transform_2, window_bounds = array<i64: 1, 4>}, {pipeline_mode = #tpu.pipeline_mode<synchronous>, transform_indices = @transform_3, window_bounds = array<i64: 36, 8>}, {pipeline_mode = #tpu.pipeline_mode<synchronous>, transform_indices = @transform_4, window_bounds = array<i64: 1, 8>}, {pipeline_mode = #tpu.pipeline_mode<synchronous>, transform_indices = @transform_5, window_bounds = array<i64: 1, 8>}, {pipeline_mode = #tpu.pipeline_mode<synchronous>, transform_indices = @transform_6, window_bounds = array<i64: 72, 8>}, {pipeline_mode = #tpu.pipeline_mode<synchronous>, transform_indices = @transform_7, window_bounds = array<i64: 1, 8>}, {pipeline_mode = #tpu.pipeline_mode<synchronous>, transform_indices = @transform_8, window_bounds = array<i64: 4, 8>}, {transform_indices = @transform_9, window_bounds = array<i64: 1, 16, 16, 8>}]} {
    %cst = arith.constant 0.000000e+00 : f32
    %0 = vector.broadcast %cst : f32 to vector<1x24x4xf32>
    %c0 = arith.constant 0 : index
    %c0_0 = arith.constant 0 : index
    %c0_1 = arith.constant 0 : index
    %1 = vector.load %arg11[%c0, %c0_0, %c0_1] : memref<18x24x4xf32, #tpu.memory_space<vmem>>, vector<1x24x4xf32>
    tpu.vector_store %arg11[%c0, %c0_0, %c0_1], %0 {strides = array<i32>} : memref<18x24x4xf32, #tpu.memory_space<vmem>>, vector<1x24x4xf32>,
    %c17 = arith.constant 17 : index
    %c0_2 = arith.constant 0 : index
    %c0_3 = arith.constant 0 : index
    %2 = vector.load %arg11[%c17, %c0_2, %c0_3] : memref<18x24x4xf32, #tpu.memory_space<vmem>>, vector<1x24x4xf32>
    tpu.vector_store %arg11[%c17, %c0_2, %c0_3], %0 {strides = array<i32>} : memref<18x24x4xf32, #tpu.memory_space<vmem>>, vector<1x24x4xf32>,
    %cst_4 = arith.constant 0.000000e+00 : f32
    %3 = vector.broadcast %cst_4 : f32 to vector<18x1x4xf32>
    %c0_5 = arith.constant 0 : index
    %c0_6 = arith.constant 0 : index
    %c0_7 = arith.constant 0 : index
    %4 = vector.load %arg11[%c0_5, %c0_6, %c0_7] : memref<18x24x4xf32, #tpu.memory_space<vmem>>, vector<18x1x4xf32>
    tpu.vector_store %arg11[%c0_5, %c0_6, %c0_7], %3 {strides = array<i32>} : memref<18x24x4xf32, #tpu.memory_space<vmem>>, vector<18x1x4xf32>,
    %cst_8 = arith.constant 0.000000e+00 : f32
    %5 = vector.broadcast %cst_8 : f32 to vector<18x7x4xf32>
    %c0_9 = arith.constant 0 : index
    %c17_10 = arith.constant 17 : index
    %c0_11 = arith.constant 0 : index
    %6 = vector.load %arg11[%c0_9, %c17_10, %c0_11] : memref<18x24x4xf32, #tpu.memory_space<vmem>>, vector<18x7x4xf32>
    tpu.vector_store %arg11[%c0_9, %c17_10, %c0_11], %5 {strides = array<i32>} : memref<18x24x4xf32, #tpu.memory_space<vmem>>, vector<18x7x4xf32>,
    %cst_12 = arith.constant 0.000000e+00 : f32
    %7 = vector.broadcast %cst_12 : f32 to vector<1x24x8xf32>
    %c0_13 = arith.constant 0 : index
    %c0_14 = arith.constant 0 : index
    %c0_15 = arith.constant 0 : index
    %8 = vector.load %arg12[%c0_13, %c0_14, %c0_15] : memref<18x24x8xf32, #tpu.memory_space<vmem>>, vector<1x24x8xf32>
    tpu.vector_store %arg12[%c0_13, %c0_14, %c0_15], %7 {strides = array<i32>} : memref<18x24x8xf32, #tpu.memory_space<vmem>>, vector<1x24x8xf32>,
    %c17_16 = arith.constant 17 : index
    %c0_17 = arith.constant 0 : index
    %c0_18 = arith.constant 0 : index
    %9 = vector.load %arg12[%c17_16, %c0_17, %c0_18] : memref<18x24x8xf32, #tpu.memory_space<vmem>>, vector<1x24x8xf32>
    tpu.vector_store %arg12[%c17_16, %c0_17, %c0_18], %7 {strides = array<i32>} : memref<18x24x8xf32, #tpu.memory_space<vmem>>, vector<1x24x8xf32>,
    %cst_19 = arith.constant 0.000000e+00 : f32
    %10 = vector.broadcast %cst_19 : f32 to vector<18x1x8xf32>
    %c0_20 = arith.constant 0 : index
    %c0_21 = arith.constant 0 : index
    %c0_22 = arith.constant 0 : index
    %11 = vector.load %arg12[%c0_20, %c0_21, %c0_22] : memref<18x24x8xf32, #tpu.memory_space<vmem>>, vector<18x1x8xf32>
    tpu.vector_store %arg12[%c0_20, %c0_21, %c0_22], %10 {strides = array<i32>} : memref<18x24x8xf32, #tpu.memory_space<vmem>>, vector<18x1x8xf32>,
    %cst_23 = arith.constant 0.000000e+00 : f32
    %12 = vector.broadcast %cst_23 : f32 to vector<18x7x8xf32>
    %c0_24 = arith.constant 0 : index
    %c17_25 = arith.constant 17 : index
    %c0_26 = arith.constant 0 : index
    %13 = vector.load %arg12[%c0_24, %c17_25, %c0_26] : memref<18x24x8xf32, #tpu.memory_space<vmem>>, vector<18x7x8xf32>
    tpu.vector_store %arg12[%c0_24, %c17_25, %c0_26], %12 {strides = array<i32>} : memref<18x24x8xf32, #tpu.memory_space<vmem>>, vector<18x7x8xf32>,
    %c0_27 = arith.constant 0 : index
    %c0_28 = arith.constant 0 : index
    %c0_29 = arith.constant 0 : index
    %c0_30 = arith.constant 0 : index
    %14 = vector.load %arg1[%c0_27, %c0_28, %c0_29, %c0_30] : memref<1x16x16x4xf32, #tpu.memory_space<vmem>>, vector<1x16x16x4xf32>
    %15 = vector.shape_cast %14 : vector<1x16x16x4xf32> to vector<16x16x4xf32>
    %c0_31 = arith.constant 0 : index
    %c0_32 = arith.constant 0 : index
    %16 = vector.load %arg2[%c0_31, %c0_32] : memref<1x4xf32, #tpu.memory_space<vmem>>, vector<1x4xf32>
    %17 = vector.shape_cast %16 : vector<1x4xf32> to vector<1x1x4xf32>
    %18 = vector.broadcast %17 : vector<1x1x4xf32> to vector<16x16x4xf32>
    %19 = arith.mulf %15, %18 : vector<16x16x4xf32>
    %c0_33 = arith.constant 0 : index
    %c0_34 = arith.constant 0 : index
    %20 = vector.load %arg3[%c0_33, %c0_34] : memref<1x4xf32, #tpu.memory_space<vmem>>, vector<1x4xf32>
    %21 = vector.shape_cast %20 : vector<1x4xf32> to vector<1x1x4xf32>
    %22 = vector.broadcast %21 : vector<1x1x4xf32> to vector<16x16x4xf32>
    %23 = arith.addf %19, %22 : vector<16x16x4xf32>
    %cst_35 = arith.constant 0.000000e+00 : f32
    %24 = vector.broadcast %cst_35 : f32 to vector<16x16x4xf32>
    %25 = arith.maximumf %23, %24 : vector<16x16x4xf32>
    %c1 = arith.constant 1 : index
    %c1_36 = arith.constant 1 : index
    %c0_37 = arith.constant 0 : index
    %26 = vector.load %arg11[%c1, %c1_36, %c0_37] : memref<18x24x4xf32, #tpu.memory_space<vmem>>, vector<16x16x4xf32>
    tpu.vector_store %arg11[%c1, %c1_36, %c0_37], %25 {strides = array<i32>} : memref<18x24x4xf32, #tpu.memory_space<vmem>>, vector<16x16x4xf32>,
    %c0_38 = arith.constant 0 : index
    %c0_39 = arith.constant 0 : index
    %c0_40 = arith.constant 0 : index
    %27 = vector.load %arg11[%c0_38, %c0_39, %c0_40] : memref<18x24x4xf32, #tpu.memory_space<vmem>>, vector<16x16x4xf32>
    %28 = vector.shape_cast %27 : vector<16x16x4xf32> to vector<256x4xf32>
    %c0_41 = arith.constant 0 : index
    %c1_42 = arith.constant 1 : index
    %c0_43 = arith.constant 0 : index
    %29 = vector.load %arg11[%c0_41, %c1_42, %c0_43] : memref<18x24x4xf32, #tpu.memory_space<vmem>>, vector<16x16x4xf32>
    %30 = vector.shape_cast %29 : vector<16x16x4xf32> to vector<256x4xf32>
    %c0_44 = arith.constant 0 : index
    %c2 = arith.constant 2 : index
    %c0_45 = arith.constant 0 : index
    %31 = vector.load %arg11[%c0_44, %c2, %c0_45] : memref<18x24x4xf32, #tpu.memory_space<vmem>>, vector<16x16x4xf32>
    %32 = vector.shape_cast %31 : vector<16x16x4xf32> to vector<256x4xf32>
    %c1_46 = arith.constant 1 : index
    %c0_47 = arith.constant 0 : index
    %c0_48 = arith.constant 0 : index
    %33 = vector.load %arg11[%c1_46, %c0_47, %c0_48] : memref<18x24x4xf32, #tpu.memory_space<vmem>>, vector<16x16x4xf32>
    %34 = vector.shape_cast %33 : vector<16x16x4xf32> to vector<256x4xf32>
    %c1_49 = arith.constant 1 : index
    %c1_50 = arith.constant 1 : index
    %c0_51 = arith.constant 0 : index
    %35 = vector.load %arg11[%c1_49, %c1_50, %c0_51] : memref<18x24x4xf32, #tpu.memory_space<vmem>>, vector<16x16x4xf32>
    %36 = vector.shape_cast %35 : vector<16x16x4xf32> to vector<256x4xf32>
    %c1_52 = arith.constant 1 : index
    %c2_53 = arith.constant 2 : index
    %c0_54 = arith.constant 0 : index
    %37 = vector.load %arg11[%c1_52, %c2_53, %c0_54] : memref<18x24x4xf32, #tpu.memory_space<vmem>>, vector<16x16x4xf32>
    %38 = vector.shape_cast %37 : vector<16x16x4xf32> to vector<256x4xf32>
    %c2_55 = arith.constant 2 : index
    %c0_56 = arith.constant 0 : index
    %c0_57 = arith.constant 0 : index
    %39 = vector.load %arg11[%c2_55, %c0_56, %c0_57] : memref<18x24x4xf32, #tpu.memory_space<vmem>>, vector<16x16x4xf32>
    %40 = vector.shape_cast %39 : vector<16x16x4xf32> to vector<256x4xf32>
    %c2_58 = arith.constant 2 : index
    %c1_59 = arith.constant 1 : index
    %c0_60 = arith.constant 0 : index
    %41 = vector.load %arg11[%c2_58, %c1_59, %c0_60] : memref<18x24x4xf32, #tpu.memory_space<vmem>>, vector<16x16x4xf32>
    %42 = vector.shape_cast %41 : vector<16x16x4xf32> to vector<256x4xf32>
    %c2_61 = arith.constant 2 : index
    %c2_62 = arith.constant 2 : index
    %c0_63 = arith.constant 0 : index
    %43 = vector.load %arg11[%c2_61, %c2_62, %c0_63] : memref<18x24x4xf32, #tpu.memory_space<vmem>>, vector<16x16x4xf32>
    %44 = vector.shape_cast %43 : vector<16x16x4xf32> to vector<256x4xf32>
    %45 = arith.truncf %28 : vector<256x4xf32> to vector<256x4xbf16>
    %c0_64 = arith.constant 0 : index
    %c0_65 = arith.constant 0 : index
    %46 = vector.load %arg4[%c0_64, %c0_65] : memref<36x8xbf16, #tpu.memory_space<vmem>>, vector<4x8xbf16>
    %cst_66 = arith.constant dense<0.000000e+00> : vector<256x8xf32>
    %47 = tpu.matmul %45, %46, %cst_66 {dimension_numbers = #tpu.dot_dimension_numbers<[1], [0], [0], [1], [0, 0, 1, 1], [], []>} : vector<256x4xbf16>, vector<4x8xbf16>, vector<256x8xf32> -> vector<256x8xf32>
    %48 = arith.truncf %30 : vector<256x4xf32> to vector<256x4xbf16>
    %c4 = arith.constant 4 : index
    %c0_67 = arith.constant 0 : index
    %49 = vector.load %arg4[%c4, %c0_67] : memref<36x8xbf16, #tpu.memory_space<vmem>>, vector<4x8xbf16>
    %cst_68 = arith.constant dense<0.000000e+00> : vector<256x8xf32>
    %50 = tpu.matmul %48, %49, %cst_68 {dimension_numbers = #tpu.dot_dimension_numbers<[1], [0], [0], [1], [0, 0, 1, 1], [], []>} : vector<256x4xbf16>, vector<4x8xbf16>, vector<256x8xf32> -> vector<256x8xf32>
    %51 = arith.addf %47, %50 : vector<256x8xf32>
    %52 = arith.truncf %32 : vector<256x4xf32> to vector<256x4xbf16>
    %c8 = arith.constant 8 : index
    %c0_69 = arith.constant 0 : index
    %53 = vector.load %arg4[%c8, %c0_69] : memref<36x8xbf16, #tpu.memory_space<vmem>>, vector<4x8xbf16>
    %cst_70 = arith.constant dense<0.000000e+00> : vector<256x8xf32>
    %54 = tpu.matmul %52, %53, %cst_70 {dimension_numbers = #tpu.dot_dimension_numbers<[1], [0], [0], [1], [0, 0, 1, 1], [], []>} : vector<256x4xbf16>, vector<4x8xbf16>, vector<256x8xf32> -> vector<256x8xf32>
    %55 = arith.addf %51, %54 : vector<256x8xf32>
    %56 = arith.truncf %34 : vector<256x4xf32> to vector<256x4xbf16>
    %c12 = arith.constant 12 : index
    %c0_71 = arith.constant 0 : index
    %57 = vector.load %arg4[%c12, %c0_71] : memref<36x8xbf16, #tpu.memory_space<vmem>>, vector<4x8xbf16>
    %cst_72 = arith.constant dense<0.000000e+00> : vector<256x8xf32>
    %58 = tpu.matmul %56, %57, %cst_72 {dimension_numbers = #tpu.dot_dimension_numbers<[1], [0], [0], [1], [0, 0, 1, 1], [], []>} : vector<256x4xbf16>, vector<4x8xbf16>, vector<256x8xf32> -> vector<256x8xf32>
    %59 = arith.addf %55, %58 : vector<256x8xf32>
    %60 = arith.truncf %36 : vector<256x4xf32> to vector<256x4xbf16>
    %c16 = arith.constant 16 : index
    %c0_73 = arith.constant 0 : index
    %61 = vector.load %arg4[%c16, %c0_73] : memref<36x8xbf16, #tpu.memory_space<vmem>>, vector<4x8xbf16>
    %cst_74 = arith.constant dense<0.000000e+00> : vector<256x8xf32>
    %62 = tpu.matmul %60, %61, %cst_74 {dimension_numbers = #tpu.dot_dimension_numbers<[1], [0], [0], [1], [0, 0, 1, 1], [], []>} : vector<256x4xbf16>, vector<4x8xbf16>, vector<256x8xf32> -> vector<256x8xf32>
    %63 = arith.addf %59, %62 : vector<256x8xf32>
    %64 = arith.truncf %38 : vector<256x4xf32> to vector<256x4xbf16>
    %c20 = arith.constant 20 : index
    %c0_75 = arith.constant 0 : index
    %65 = vector.load %arg4[%c20, %c0_75] : memref<36x8xbf16, #tpu.memory_space<vmem>>, vector<4x8xbf16>
    %cst_76 = arith.constant dense<0.000000e+00> : vector<256x8xf32>
    %66 = tpu.matmul %64, %65, %cst_76 {dimension_numbers = #tpu.dot_dimension_numbers<[1], [0], [0], [1], [0, 0, 1, 1], [], []>} : vector<256x4xbf16>, vector<4x8xbf16>, vector<256x8xf32> -> vector<256x8xf32>
    %67 = arith.addf %63, %66 : vector<256x8xf32>
    %68 = arith.truncf %40 : vector<256x4xf32> to vector<256x4xbf16>
    %c24 = arith.constant 24 : index
    %c0_77 = arith.constant 0 : index
    %69 = vector.load %arg4[%c24, %c0_77] : memref<36x8xbf16, #tpu.memory_space<vmem>>, vector<4x8xbf16>
    %cst_78 = arith.constant dense<0.000000e+00> : vector<256x8xf32>
    %70 = tpu.matmul %68, %69, %cst_78 {dimension_numbers = #tpu.dot_dimension_numbers<[1], [0], [0], [1], [0, 0, 1, 1], [], []>} : vector<256x4xbf16>, vector<4x8xbf16>, vector<256x8xf32> -> vector<256x8xf32>
    %71 = arith.addf %67, %70 : vector<256x8xf32>
    %72 = arith.truncf %42 : vector<256x4xf32> to vector<256x4xbf16>
    %c28 = arith.constant 28 : index
    %c0_79 = arith.constant 0 : index
    %73 = vector.load %arg4[%c28, %c0_79] : memref<36x8xbf16, #tpu.memory_space<vmem>>, vector<4x8xbf16>
    %cst_80 = arith.constant dense<0.000000e+00> : vector<256x8xf32>
    %74 = tpu.matmul %72, %73, %cst_80 {dimension_numbers = #tpu.dot_dimension_numbers<[1], [0], [0], [1], [0, 0, 1, 1], [], []>} : vector<256x4xbf16>, vector<4x8xbf16>, vector<256x8xf32> -> vector<256x8xf32>
    %75 = arith.addf %71, %74 : vector<256x8xf32>
    %76 = arith.truncf %44 : vector<256x4xf32> to vector<256x4xbf16>
    %c32 = arith.constant 32 : index
    %c0_81 = arith.constant 0 : index
    %77 = vector.load %arg4[%c32, %c0_81] : memref<36x8xbf16, #tpu.memory_space<vmem>>, vector<4x8xbf16>
    %cst_82 = arith.constant dense<0.000000e+00> : vector<256x8xf32>
    %78 = tpu.matmul %76, %77, %cst_82 {dimension_numbers = #tpu.dot_dimension_numbers<[1], [0], [0], [1], [0, 0, 1, 1], [], []>} : vector<256x4xbf16>, vector<4x8xbf16>, vector<256x8xf32> -> vector<256x8xf32>
    %79 = arith.addf %75, %78 : vector<256x8xf32>
    %c0_83 = arith.constant 0 : index
    %c0_84 = arith.constant 0 : index
    %80 = vector.load %arg5[%c0_83, %c0_84] : memref<1x8xf32, #tpu.memory_space<vmem>>, vector<1x8xf32>
    %81 = vector.broadcast %80 : vector<1x8xf32> to vector<256x8xf32>
    %82 = arith.mulf %79, %81 : vector<256x8xf32>
    %c0_85 = arith.constant 0 : index
    %c0_86 = arith.constant 0 : index
    %83 = vector.load %arg6[%c0_85, %c0_86] : memref<1x8xf32, #tpu.memory_space<vmem>>, vector<1x8xf32>
    %84 = vector.broadcast %83 : vector<1x8xf32> to vector<256x8xf32>
    %85 = arith.addf %82, %84 : vector<256x8xf32>
    %cst_87 = arith.constant 0.000000e+00 : f32
    %86 = vector.broadcast %cst_87 : f32 to vector<256x8xf32>
    %87 = arith.maximumf %85, %86 : vector<256x8xf32>
    %88 = vector.shape_cast %87 : vector<256x8xf32> to vector<16x16x8xf32>
    %c1_88 = arith.constant 1 : index
    %c1_89 = arith.constant 1 : index
    %c0_90 = arith.constant 0 : index
    %89 = vector.load %arg12[%c1_88, %c1_89, %c0_90] : memref<18x24x8xf32, #tpu.memory_space<vmem>>, vector<16x16x8xf32>
    tpu.vector_store %arg12[%c1_88, %c1_89, %c0_90], %88 {strides = array<i32>} : memref<18x24x8xf32, #tpu.memory_space<vmem>>, vector<16x16x8xf32>,
    %c0_91 = arith.constant 0 : index
    %c0_92 = arith.constant 0 : index
    %c0_93 = arith.constant 0 : index
    %90 = vector.load %arg12[%c0_91, %c0_92, %c0_93] : memref<18x24x8xf32, #tpu.memory_space<vmem>>, vector<16x16x8xf32>
    %91 = vector.shape_cast %90 : vector<16x16x8xf32> to vector<256x8xf32>
    %c0_94 = arith.constant 0 : index
    %c1_95 = arith.constant 1 : index
    %c0_96 = arith.constant 0 : index
    %92 = vector.load %arg12[%c0_94, %c1_95, %c0_96] : memref<18x24x8xf32, #tpu.memory_space<vmem>>, vector<16x16x8xf32>
    %93 = vector.shape_cast %92 : vector<16x16x8xf32> to vector<256x8xf32>
    %c0_97 = arith.constant 0 : index
    %c2_98 = arith.constant 2 : index
    %c0_99 = arith.constant 0 : index
    %94 = vector.load %arg12[%c0_97, %c2_98, %c0_99] : memref<18x24x8xf32, #tpu.memory_space<vmem>>, vector<16x16x8xf32>
    %95 = vector.shape_cast %94 : vector<16x16x8xf32> to vector<256x8xf32>
    %c1_100 = arith.constant 1 : index
    %c0_101 = arith.constant 0 : index
    %c0_102 = arith.constant 0 : index
    %96 = vector.load %arg12[%c1_100, %c0_101, %c0_102] : memref<18x24x8xf32, #tpu.memory_space<vmem>>, vector<16x16x8xf32>
    %97 = vector.shape_cast %96 : vector<16x16x8xf32> to vector<256x8xf32>
    %c1_103 = arith.constant 1 : index
    %c1_104 = arith.constant 1 : index
    %c0_105 = arith.constant 0 : index
    %98 = vector.load %arg12[%c1_103, %c1_104, %c0_105] : memref<18x24x8xf32, #tpu.memory_space<vmem>>, vector<16x16x8xf32>
    %99 = vector.shape_cast %98 : vector<16x16x8xf32> to vector<256x8xf32>
    %c1_106 = arith.constant 1 : index
    %c2_107 = arith.constant 2 : index
    %c0_108 = arith.constant 0 : index
    %100 = vector.load %arg12[%c1_106, %c2_107, %c0_108] : memref<18x24x8xf32, #tpu.memory_space<vmem>>, vector<16x16x8xf32>
    %101 = vector.shape_cast %100 : vector<16x16x8xf32> to vector<256x8xf32>
    %c2_109 = arith.constant 2 : index
    %c0_110 = arith.constant 0 : index
    %c0_111 = arith.constant 0 : index
    %102 = vector.load %arg12[%c2_109, %c0_110, %c0_111] : memref<18x24x8xf32, #tpu.memory_space<vmem>>, vector<16x16x8xf32>
    %103 = vector.shape_cast %102 : vector<16x16x8xf32> to vector<256x8xf32>
    %c2_112 = arith.constant 2 : index
    %c1_113 = arith.constant 1 : index
    %c0_114 = arith.constant 0 : index
    %104 = vector.load %arg12[%c2_112, %c1_113, %c0_114] : memref<18x24x8xf32, #tpu.memory_space<vmem>>, vector<16x16x8xf32>
    %105 = vector.shape_cast %104 : vector<16x16x8xf32> to vector<256x8xf32>
    %c2_115 = arith.constant 2 : index
    %c2_116 = arith.constant 2 : index
    %c0_117 = arith.constant 0 : index
    %106 = vector.load %arg12[%c2_115, %c2_116, %c0_117] : memref<18x24x8xf32, #tpu.memory_space<vmem>>, vector<16x16x8xf32>
    %107 = vector.shape_cast %106 : vector<16x16x8xf32> to vector<256x8xf32>
    %108 = arith.truncf %91 : vector<256x8xf32> to vector<256x8xbf16>
    %c0_118 = arith.constant 0 : index
    %c0_119 = arith.constant 0 : index
    %109 = vector.load %arg7[%c0_118, %c0_119] : memref<72x8xbf16, #tpu.memory_space<vmem>>, vector<8x8xbf16>
    %cst_120 = arith.constant dense<0.000000e+00> : vector<256x8xf32>
    %110 = tpu.matmul %108, %109, %cst_120 {dimension_numbers = #tpu.dot_dimension_numbers<[1], [0], [0], [1], [0, 0, 1, 1], [], []>} : vector<256x8xbf16>, vector<8x8xbf16>, vector<256x8xf32> -> vector<256x8xf32>
    %111 = arith.truncf %93 : vector<256x8xf32> to vector<256x8xbf16>
    %c8_121 = arith.constant 8 : index
    %c0_122 = arith.constant 0 : index
    %112 = vector.load %arg7[%c8_121, %c0_122] : memref<72x8xbf16, #tpu.memory_space<vmem>>, vector<8x8xbf16>
    %cst_123 = arith.constant dense<0.000000e+00> : vector<256x8xf32>
    %113 = tpu.matmul %111, %112, %cst_123 {dimension_numbers = #tpu.dot_dimension_numbers<[1], [0], [0], [1], [0, 0, 1, 1], [], []>} : vector<256x8xbf16>, vector<8x8xbf16>, vector<256x8xf32> -> vector<256x8xf32>
    %114 = arith.addf %110, %113 : vector<256x8xf32>
    %115 = arith.truncf %95 : vector<256x8xf32> to vector<256x8xbf16>
    %c16_124 = arith.constant 16 : index
    %c0_125 = arith.constant 0 : index
    %116 = vector.load %arg7[%c16_124, %c0_125] : memref<72x8xbf16, #tpu.memory_space<vmem>>, vector<8x8xbf16>
    %cst_126 = arith.constant dense<0.000000e+00> : vector<256x8xf32>
    %117 = tpu.matmul %115, %116, %cst_126 {dimension_numbers = #tpu.dot_dimension_numbers<[1], [0], [0], [1], [0, 0, 1, 1], [], []>} : vector<256x8xbf16>, vector<8x8xbf16>, vector<256x8xf32> -> vector<256x8xf32>
    %118 = arith.addf %114, %117 : vector<256x8xf32>
    %119 = arith.truncf %97 : vector<256x8xf32> to vector<256x8xbf16>
    %c24_127 = arith.constant 24 : index
    %c0_128 = arith.constant 0 : index
    %120 = vector.load %arg7[%c24_127, %c0_128] : memref<72x8xbf16, #tpu.memory_space<vmem>>, vector<8x8xbf16>
    %cst_129 = arith.constant dense<0.000000e+00> : vector<256x8xf32>
    %121 = tpu.matmul %119, %120, %cst_129 {dimension_numbers = #tpu.dot_dimension_numbers<[1], [0], [0], [1], [0, 0, 1, 1], [], []>} : vector<256x8xbf16>, vector<8x8xbf16>, vector<256x8xf32> -> vector<256x8xf32>
    %122 = arith.addf %118, %121 : vector<256x8xf32>
    %123 = arith.truncf %99 : vector<256x8xf32> to vector<256x8xbf16>
    %c32_130 = arith.constant 32 : index
    %c0_131 = arith.constant 0 : index
    %124 = vector.load %arg7[%c32_130, %c0_131] : memref<72x8xbf16, #tpu.memory_space<vmem>>, vector<8x8xbf16>
    %cst_132 = arith.constant dense<0.000000e+00> : vector<256x8xf32>
    %125 = tpu.matmul %123, %124, %cst_132 {dimension_numbers = #tpu.dot_dimension_numbers<[1], [0], [0], [1], [0, 0, 1, 1], [], []>} : vector<256x8xbf16>, vector<8x8xbf16>, vector<256x8xf32> -> vector<256x8xf32>
    %126 = arith.addf %122, %125 : vector<256x8xf32>
    %127 = arith.truncf %101 : vector<256x8xf32> to vector<256x8xbf16>
    %c40 = arith.constant 40 : index
    %c0_133 = arith.constant 0 : index
    %128 = vector.load %arg7[%c40, %c0_133] : memref<72x8xbf16, #tpu.memory_space<vmem>>, vector<8x8xbf16>
    %cst_134 = arith.constant dense<0.000000e+00> : vector<256x8xf32>
    %129 = tpu.matmul %127, %128, %cst_134 {dimension_numbers = #tpu.dot_dimension_numbers<[1], [0], [0], [1], [0, 0, 1, 1], [], []>} : vector<256x8xbf16>, vector<8x8xbf16>, vector<256x8xf32> -> vector<256x8xf32>
    %130 = arith.addf %126, %129 : vector<256x8xf32>
    %131 = arith.truncf %103 : vector<256x8xf32> to vector<256x8xbf16>
    %c48 = arith.constant 48 : index
    %c0_135 = arith.constant 0 : index
    %132 = vector.load %arg7[%c48, %c0_135] : memref<72x8xbf16, #tpu.memory_space<vmem>>, vector<8x8xbf16>
    %cst_136 = arith.constant dense<0.000000e+00> : vector<256x8xf32>
    %133 = tpu.matmul %131, %132, %cst_136 {dimension_numbers = #tpu.dot_dimension_numbers<[1], [0], [0], [1], [0, 0, 1, 1], [], []>} : vector<256x8xbf16>, vector<8x8xbf16>, vector<256x8xf32> -> vector<256x8xf32>
    %134 = arith.addf %130, %133 : vector<256x8xf32>
    %135 = arith.truncf %105 : vector<256x8xf32> to vector<256x8xbf16>
    %c56 = arith.constant 56 : index
    %c0_137 = arith.constant 0 : index
    %136 = vector.load %arg7[%c56, %c0_137] : memref<72x8xbf16, #tpu.memory_space<vmem>>, vector<8x8xbf16>
    %cst_138 = arith.constant dense<0.000000e+00> : vector<256x8xf32>
    %137 = tpu.matmul %135, %136, %cst_138 {dimension_numbers = #tpu.dot_dimension_numbers<[1], [0], [0], [1], [0, 0, 1, 1], [], []>} : vector<256x8xbf16>, vector<8x8xbf16>, vector<256x8xf32> -> vector<256x8xf32>
    %138 = arith.addf %134, %137 : vector<256x8xf32>
    %139 = arith.truncf %107 : vector<256x8xf32> to vector<256x8xbf16>
    %c64 = arith.constant 64 : index
    %c0_139 = arith.constant 0 : index
    %140 = vector.load %arg7[%c64, %c0_139] : memref<72x8xbf16, #tpu.memory_space<vmem>>, vector<8x8xbf16>
    %cst_140 = arith.constant dense<0.000000e+00> : vector<256x8xf32>
    %141 = tpu.matmul %139, %140, %cst_140 {dimension_numbers = #tpu.dot_dimension_numbers<[1], [0], [0], [1], [0, 0, 1, 1], [], []>} : vector<256x8xbf16>, vector<8x8xbf16>, vector<256x8xf32> -> vector<256x8xf32>
    %142 = arith.addf %138, %141 : vector<256x8xf32>
    %c0_141 = arith.constant 0 : index
    %c0_142 = arith.constant 0 : index
    %143 = vector.load %arg8[%c0_141, %c0_142] : memref<1x8xf32, #tpu.memory_space<vmem>>, vector<1x8xf32>
    %144 = vector.broadcast %143 : vector<1x8xf32> to vector<256x8xf32>
    %145 = arith.addf %142, %144 : vector<256x8xf32>
    %c0_143 = arith.constant 0 : index
    %c0_144 = arith.constant 0 : index
    %c0_145 = arith.constant 0 : index
    %c0_146 = arith.constant 0 : index
    %146 = vector.load %arg1[%c0_143, %c0_144, %c0_145, %c0_146] : memref<1x16x16x4xf32, #tpu.memory_space<vmem>>, vector<1x16x16x4xf32>
    %147 = vector.shape_cast %146 : vector<1x16x16x4xf32> to vector<16x16x4xf32>
    %148 = vector.shape_cast %147 : vector<16x16x4xf32> to vector<256x4xf32>
    %149 = arith.truncf %148 : vector<256x4xf32> to vector<256x4xbf16>
    %c0_147 = arith.constant 0 : index
    %c0_148 = arith.constant 0 : index
    %150 = vector.load %arg9[%c0_147, %c0_148] : memref<4x8xbf16, #tpu.memory_space<vmem>>, vector<4x8xbf16>
    %cst_149 = arith.constant dense<0.000000e+00> : vector<256x8xf32>
    %151 = tpu.matmul %149, %150, %cst_149 {dimension_numbers = #tpu.dot_dimension_numbers<[1], [0], [0], [1], [0, 0, 1, 1], [], []>} : vector<256x4xbf16>, vector<4x8xbf16>, vector<256x8xf32> -> vector<256x8xf32>
    %152 = arith.addf %145, %151 : vector<256x8xf32>
    %153 = vector.shape_cast %152 : vector<256x8xf32> to vector<1x16x16x8xf32>
    %c0_150 = arith.constant 0 : index
    %c0_151 = arith.constant 0 : index
    %c0_152 = arith.constant 0 : index
    %c0_153 = arith.constant 0 : index
    %154 = vector.load %arg10[%c0_150, %c0_151, %c0_152, %c0_153] : memref<1x16x16x8xf32, #tpu.memory_space<vmem>>, vector<1x16x16x8xf32>
    tpu.vector_store %arg10[%c0_150, %c0_151, %c0_152, %c0_153], %153 {strides = array<i32>} : memref<1x16x16x8xf32, #tpu.memory_space<vmem>>, vector<1x16x16x8xf32>,
    return
  }
  func.func @transform_0(%arg0: i32) -> (i32, i32, i32, i32) {
    %c0_i32 = arith.constant 0 : i32
    %c0_i32_0 = arith.constant 0 : i32
    %c0_i32_1 = arith.constant 0 : i32
    %c0_i32_2 = arith.constant 0 : i32
    return %arg0, %c0_i32, %c0_i32_0, %c0_i32_1 : i32, i32, i32, i32
  }
  func.func @transform_1(%arg0: i32) -> (i32, i32) {
    %c0_i32 = arith.constant 0 : i32
    %c0_i32_0 = arith.constant 0 : i32
    %c0_i32_1 = arith.constant 0 : i32
    return %c0_i32, %c0_i32_0 : i32, i32
  }
  func.func @transform_2(%arg0: i32) -> (i32, i32) {
    %c0_i32 = arith.constant 0 : i32
    %c0_i32_0 = arith.constant 0 : i32
    %c0_i32_1 = arith.constant 0 : i32
    return %c0_i32, %c0_i32_0 : i32, i32
  }
  func.func @transform_3(%arg0: i32) -> (i32, i32) {
    %c0_i32 = arith.constant 0 : i32
    %c0_i32_0 = arith.constant 0 : i32
    %c0_i32_1 = arith.constant 0 : i32
    return %c0_i32, %c0_i32_0 : i32, i32
  }
  func.func @transform_4(%arg0: i32) -> (i32, i32) {
    %c0_i32 = arith.constant 0 : i32
    %c0_i32_0 = arith.constant 0 : i32
    %c0_i32_1 = arith.constant 0 : i32
    return %c0_i32, %c0_i32_0 : i32, i32
  }
  func.func @transform_5(%arg0: i32) -> (i32, i32) {
    %c0_i32 = arith.constant 0 : i32
    %c0_i32_0 = arith.constant 0 : i32
    %c0_i32_1 = arith.constant 0 : i32
    return %c0_i32, %c0_i32_0 : i32, i32
  }
  func.func @transform_6(%arg0: i32) -> (i32, i32) {
    %c0_i32 = arith.constant 0 : i32
    %c0_i32_0 = arith.constant 0 : i32
    %c0_i32_1 = arith.constant 0 : i32
    return %c0_i32, %c0_i32_0 : i32, i32
  }
  func.func @transform_7(%arg0: i32) -> (i32, i32) {
    %c0_i32 = arith.constant 0 : i32
    %c0_i32_0 = arith.constant 0 : i32
    %c0_i32_1 = arith.constant 0 : i32
    return %c0_i32, %c0_i32_0 : i32, i32
  }
  func.func @transform_8(%arg0: i32) -> (i32, i32) {
    %c0_i32 = arith.constant 0 : i32
    %c0_i32_0 = arith.constant 0 : i32
    %c0_i32_1 = arith.constant 0 : i32
    return %c0_i32, %c0_i32_0 : i32, i32
  }
  func.func @transform_9(%arg0: i32) -> (i32, i32, i32, i32) {
    %c0_i32 = arith.constant 0 : i32
    %c0_i32_0 = arith.constant 0 : i32
    %c0_i32_1 = arith.constant 0 : i32
    %c0_i32_2 = arith.constant 0 : i32
    return %arg0, %c0_i32, %c0_i32_0, %c0_i32_1 : i32, i32, i32, i32
  }
}

</mosaic_0001>

<bundles_post_ra>
// kernel: tpu_custom_call.1
= control target key start
LH: loop header
LB: loop body
LE: loop exit
PB: predicated region body
PF: predicated region fallthrough
CT: control target
= control target key end

     0   :  { %s6041_s30 = smov 0   ;;  %s9171_s0 = inlined_call_operand.vmem [shape: f32[2,16,16,4], index: 0, kind: input, shape index: {}]   ;;  %s9172_s1 = inlined_call_operand.vmem [shape: f32[1,4], index: 1, kind: input, shape index: {}]   ;;  %s9173_s2 = inlined_call_operand.vmem [shape: f32[1,4], index: 2, kind: input, shape index: {}]   ;;  %s9174_s3 = inlined_call_operand.vmem [shape: bf16[36,8], index: 3, kind: input, shape index: {}]   ;;  %s9175_s4 = inlined_call_operand.vmem [shape: f32[1,8], index: 4, kind: input, shape index: {}]   ;;  %s9176_s5 = inlined_call_operand.vmem [shape: f32[1,8], index: 5, kind: input, shape index: {}]   ;;  %s9177_s6 = inlined_call_operand.vmem [shape: bf16[72,8], index: 6, kind: input, shape index: {}]   ;;  %s9178_s7 = inlined_call_operand.vmem [shape: f32[1,8], index: 7, kind: input, shape index: {}]   ;;  %s9179_s8 = inlined_call_operand.vmem [shape: bf16[4,8], index: 8, kind: input, shape index: {}]   ;;  %s9180_s9 = inlined_call_operand.vmem [shape: f32[2,16,16,8], index: 9, kind: output, shape index: {}]  }
   0x1 LB: > { %s4564_s10 = sadd.s32 4294967295, %s5976_s30   ;;  %p4568_p0 = scmp.ge.s32.totalorder %s5976_s30, 1  ;;  %s5976_s30 = sphi %s6041_s30, %s19_s30  }
   0x2   : > { %p287_p1 = scmp.lt.s32.totalorder %s5976_s30, 3 }
   0x4   : > { %p288_p2 = pnand %p4568_p0, %p287_p1 }
   0x6   : > { %291 = sbr.rel (%p288_p2) target bundleno = 1317 (0x525), region = 56 }
   0xb   : > { %vm334_vm0 = vcmask 31744   ;;  %v9181_v0 = vmov 0.0   ;;  %vm361_vm1 = vcmask 30720   ;;  %vm342_vm2 = vcmask 24576   ;;  %p323_p3 = scmp.lt.s32.totalorder %s4564_s10, 1  ;;  %s5979_s11 = smov 4  }
   0xc   : > { %335 = vst.msk [vmem:[#allocation2] sm:$0xff] %vm334_vm0, %v9181_v0  ;;  %v6117_v4 = vld [vmem:[%s9172_s1] ss:$0 sm:$0xff]  ;;  %s5980_s20 = smov 8   ;;  %s5981_s21 = smov 12   ;;  %vm380_vm3 = vcmask 64512  }
   0xd   : > { %336 = vst.msk [vmem:[#allocation2 + $0x8] sm:$0xff] %vm334_vm0, %v9181_v0  ;;  %s9516_s10 = smov (!%p323_p3, %s4564_s10), 1  ;;  %v6133_v8 = vld [vmem:[%s9173_s2] ss:$0 sm:$0xff]  ;;  %s5982_s22 = smov 16   ;;  %vm1972_vm4 = vcmask 97280  }
   0xe   : > { %337 = vst.msk [vmem:[#allocation2 + $0x10] sm:$0xff] %vm334_vm0, %v9181_v0  ;;  %s4647_s12 = sshll.u32 %s9516_s10, 8  ;;  %s5983_s23 = smov 20   ;;  %vm2005_vm5 = vcmask 130048   ;;  %vm2038_vm6 = vcmask 162816   ;;  %vm2071_vm7 = vcmask 195584  }
   0xf   : > { %362 = vst.msk [vmem:[#allocation2 + $0x11] sm:$0x7f] %vm361_vm1, %v9181_v0  ;;  %s6108_s15 = scalar_lea.vmem %s9171_s0, %s4647_s12  ;;  %s5984_s24 = smov 24   ;;  %vm2104_vm8 = vcmask 228352   ;;  %vm2255_vm9 = vcmask 1041408   ;;  %vm2137_vm10 = vcmask 261120  }
  0x10   : > { %343 = vst.msk [vmem:[#allocation2] sm:$0x1] %vm342_vm2, %v9181_v0  ;;  %v432_v5 = vld [vmem:[%s6108_s15 + $0x30] sm:$0xff]  ;;  %v433_v6 = vld [vmem:[%s6108_s15 + $0x38] sm:$0xff]  ;;  %v426_v12 = vld [vmem:[%s6108_s15] sm:$0xff]  ;;  %s5985_s25 = smov 28  }
  0x11   : > { %339 = vst.msk [vmem:[#allocation2 + $0x198] sm:$0xff] %vm334_vm0, %v9181_v0  ;;  %v468_v7 = vmul.f32 %v6117_v4, %v432_v5  ;;  %v469_v9 = vmul.f32 %v6117_v4, %v433_v6  ;;  %v428_v10 = vld [vmem:[%s6108_s15 + $0x10] sm:$0xff]  ;;  %v429_v11 = vld [vmem:[%s6108_s15 + $0x18] sm:$0xff]  ;;  %v427_v15 = vld [vmem:[%s6108_s15 + $0x8] sm:$0xff]  ;;  %v462_v19 = vmul.f32 %v6117_v4, %v426_v12  ;;  %s5986_s26 = smov 32   ;;  %vm2206_vm11 = vcmask 293888  }
  0x12   : > { %340 = vst.msk [vmem:[#allocation2 + $0x1a0] sm:$0xff] %vm334_vm0, %v9181_v0  ;;  %v464_v14 = vmul.f32 %v6117_v4, %v428_v10  ;;  %v465_v17 = vmul.f32 %v6117_v4, %v429_v11  ;;  %v434_v18 = vld [vmem:[%s6108_s15 + $0x40] sm:$0xff]  ;;  %v435_v20 = vld [vmem:[%s6108_s15 + $0x48] sm:$0xff]  ;;  %v463_v21 = vmul.f32 %v6117_v4, %v427_v15  ;;  %v436_v30 = vld [vmem:[%s6108_s15 + $0x50] sm:$0xff]  ;;  %vm388_vm12 = vcmask 57344  }
  0x13   : > { %341 = vst.msk [vmem:[#allocation2 + $0x1a8] sm:$0xff] %vm334_vm0, %v9181_v0  ;;  %v504_v13 = vadd.f32 %v6133_v8, %v468_v7  ;;  %v505_v16 = vadd.f32 %v6133_v8, %v469_v9  ;;  %v430_v22 = vld [vmem:[%s6108_s15 + $0x20] sm:$0xff]  ;;  %v470_v25 = vmul.f32 %v6117_v4, %v434_v18  ;;  %v431_v26 = vld [vmem:[%s6108_s15 + $0x28] sm:$0xff]  ;;  %v471_v29 = vmul.f32 %v6117_v4, %v435_v20  ;;  %v437_v33 = vld [vmem:[%s6108_s15 + $0x58] sm:$0xff] }
  0x14   : > { %v627_v1 = vld [vmem:[#allocation2 + $0x1] sm:$0xff]  ;;  %344 = vst.msk [vmem:[#allocation2 + $0x18] sm:$0x1] %vm342_vm2, %v9181_v0  ;;  %v500_v24 = vadd.f32 %v6133_v8, %v464_v14  ;;  %v501_v28 = vadd.f32 %v6133_v8, %v465_v17  ;;  %v498_v31 = vadd.f32 %v6133_v8, %v462_v19  ;;  %v466_v32 = vmul.f32 %v6117_v4, %v430_v22  ;;  %v440_v36 = vld [vmem:[%s6108_s15 + $0x70] sm:$0xff]  ;;  %v441_v40 = vld [vmem:[%s6108_s15 + $0x78] sm:$0xff] }
  0x15   : > { %v628_v2 = vld [vmem:[#allocation2 + $0x9] sm:$0xff]  ;;  %345 = vst.msk [vmem:[#allocation2 + $0x30] sm:$0x1] %vm342_vm2, %v9181_v0  ;;  %v536_v23 = vmax.f32 %v504_v13, 0.0  ;;  %v537_v27 = vmax.f32 %v505_v16, 0.0  ;;  %v499_v34 = vadd.f32 %v6133_v8, %v463_v21  ;;  %v467_v35 = vmul.f32 %v6117_v4, %v431_v26  ;;  %v438_v44 = vld [vmem:[%s6108_s15 + $0x60] sm:$0xff] }
  0x16   : > { %v4685_v3 = vpack.i.bf16 %v628_v2, %v627_v1  ;;  %346 = vst.msk [vmem:[#allocation2 + $0x48] sm:$0x1] %vm342_vm2, %v9181_v0  ;;  %v532_v37 = vmax.f32 %v500_v24, 0.0  ;;  %v506_v38 = vadd.f32 %v6133_v8, %v470_v25  ;;  %v472_v39 = vmul.f32 %v6117_v4, %v436_v30  ;;  %v439_v48 = vld [vmem:[%s6108_s15 + $0x68] sm:$0xff]  ;;  %v442_v52 = vld [vmem:[%s6108_s15 + $0x80] sm:$0xff]  ;;  %v444_v7 = vld [vmem:[%s6108_s15 + $0x90] sm:$0xff] }
  0x17   : > { %347 = vst.msk [vmem:[#allocation2 + $0x60] sm:$0x1] %vm342_vm2, %v9181_v0  ;;  %v533_v41 = vmax.f32 %v501_v28, 0.0  ;;  %v507_v42 = vadd.f32 %v6133_v8, %v471_v29  ;;  %v473_v43 = vmul.f32 %v6117_v4, %v437_v33  ;;  %v530_v45 = vmax.f32 %v498_v31, 0.0  ;;  %v443_v56 = vld [vmem:[%s6108_s15 + $0x88] sm:$0xff]  ;;  %v446_v60 = vld [vmem:[%s6108_s15 + $0xa0] sm:$0xff] }
  0x18   : > { %4686 = vrot.lane.b32.xlu0 %v4685_v3, %s5979_s11  ;;  %348 = vst.msk [vmem:[#allocation2 + $0x78] sm:$0x1] %vm342_vm2, %v9181_v0  ;;  %v502_v46 = vadd.f32 %v6133_v8, %v466_v32  ;;  %v476_v47 = vmul.f32 %v6117_v4, %v440_v36  ;;  %v531_v49 = vmax.f32 %v499_v34, 0.0  ;;  %v503_v50 = vadd.f32 %v6133_v8, %v467_v35  ;;  %v447_v1 = vld [vmem:[%s6108_s15 + $0xa8] sm:$0xff]  ;;  %v445_v13 = vld [vmem:[%s6108_s15 + $0x98] sm:$0xff]  ;;  %v448_v18 = vld [vmem:[%s6108_s15 + $0xb0] sm:$0xff] }
  0x19   : > { %349 = vst.msk [vmem:[#allocation2 + $0x90] sm:$0x1] %vm342_vm2, %v9181_v0  ;;  %v477_v51 = vmul.f32 %v6117_v4, %v441_v40  ;;  %v538_v53 = vmax.f32 %v506_v38, 0.0  ;;  %v508_v54 = vadd.f32 %v6133_v8, %v472_v39  ;;  %v474_v55 = vmul.f32 %v6117_v4, %v438_v44  ;;  %v449_v22 = vld [vmem:[%s6108_s15 + $0xb8] sm:$0xff]  ;;  %v450_v38 = vld [vmem:[%s6108_s15 + $0xc0] sm:$0xff] }
  0x1a   : > { %350 = vst.msk [vmem:[#allocation2 + $0xa8] sm:$0x1] %vm342_vm2, %v9181_v0  ;;  %v539_v57 = vmax.f32 %v507_v42, 0.0  ;;  %v509_v58 = vadd.f32 %v6133_v8, %v473_v43  ;;  %v475_v59 = vmul.f32 %v6117_v4, %v439_v48  ;;  %v534_v61 = vmax.f32 %v502_v46, 0.0  ;;  %v453_v32 = vld [vmem:[%s6108_s15 + $0xd8] sm:$0xff]  ;;  %v451_v43 = vld [vmem:[%s6108_s15 + $0xc8] sm:$0xff] }
  0x1b   : > { %351 = vst.msk [vmem:[#allocation2 + $0xc0] sm:$0x1] %vm342_vm2, %v9181_v0  ;;  %v512_v62 = vadd.f32 %v6133_v8, %v476_v47  ;;  %v478_v63 = vmul.f32 %v6117_v4, %v442_v52  ;;  %v535_v3 = vmax.f32 %v503_v50, 0.0  ;;  %v513_v5 = vadd.f32 %v6133_v8, %v477_v51 }
  0x1c   : > { %352 = vst.msk [vmem:[#allocation2 + $0xd8] sm:$0x1] %vm342_vm2, %v9181_v0  ;;  %v479_v6 = vmul.f32 %v6117_v4, %v443_v56  ;;  %v540_v10 = vmax.f32 %v508_v54, 0.0  ;;  %v510_v11 = vadd.f32 %v6133_v8, %v474_v55  ;;  %v482_v12 = vmul.f32 %v6117_v4, %v446_v60  ;;  %v455_v54 = vld [vmem:[%s6108_s15 + $0xe8] sm:$0xff] }
  0x1d   : > { %353 = vst.msk [vmem:[#allocation2 + $0xf0] sm:$0x1] %vm342_vm2, %v9181_v0  ;;  %v541_v15 = vmax.f32 %v509_v58, 0.0  ;;  %v511_v16 = vadd.f32 %v6133_v8, %v475_v59  ;;  %v483_v17 = vmul.f32 %v6117_v4, %v447_v1  ;;  %v544_v19 = vmax.f32 %v512_v62, 0.0 }
  0x1e   : > { %354 = vst.msk [vmem:[#allocation2 + $0x108] sm:$0x1] %vm342_vm2, %v9181_v0  ;;  %v514_v20 = vadd.f32 %v6133_v8, %v478_v63  ;;  %v480_v21 = vmul.f32 %v6117_v4, %v444_v7  ;;  %v545_v24 = vmax.f32 %v513_v5, 0.0  ;;  %v515_v25 = vadd.f32 %v6133_v8, %v479_v6 }
  0x1f   : > { %355 = vst.msk [vmem:[#allocation2 + $0x120] sm:$0x1] %vm342_vm2, %v9181_v0  ;;  %v481_v26 = vmul.f32 %v6117_v4, %v445_v13  ;;  %v542_v29 = vmax.f32 %v510_v11, 0.0  ;;  %v518_v30 = vadd.f32 %v6133_v8, %v482_v12  ;;  %v484_v31 = vmul.f32 %v6117_v4, %v448_v18 }
  0x20   : > { %356 = vst.msk [vmem:[#allocation2 + $0x138] sm:$0x1] %vm342_vm2, %v9181_v0  ;;  %v543_v35 = vmax.f32 %v511_v16, 0.0  ;;  %v519_v36 = vadd.f32 %v6133_v8, %v483_v17  ;;  %v546_v40 = vmax.f32 %v514_v20, 0.0  ;;  %v547_v46 = vmax.f32 %v515_v25, 0.0 }
  0x21   : > { %357 = vst.msk [vmem:[#allocation2 + $0x150] sm:$0x1] %vm342_vm2, %v9181_v0  ;;  %v517_v47 = vadd.f32 %v6133_v8, %v481_v26  ;;  %v489_v48 = vmul.f32 %v6117_v4, %v453_v32  ;;  %v550_v51 = vmax.f32 %v518_v30, 0.0  ;;  %v520_v52 = vadd.f32 %v6133_v8, %v484_v31 }
  0x22   : > { %358 = vst.msk [vmem:[#allocation2 + $0x168] sm:$0x1] %vm342_vm2, %v9181_v0  ;;  %v487_v59 = vmul.f32 %v6117_v4, %v451_v43  ;;  %v491_v6 = vmul.f32 %v6117_v4, %v455_v54  ;;  %vm407_vm13 = vcmask 63488   ;;  %vm4163_vm14 = vcmask 1043456  }
  0x23   : > { %359 = vst.msk [vmem:[#allocation2 + $0x180] sm:$0x1] %vm342_vm2, %v9181_v0  ;;  %v525_v5 = vadd.f32 %v6133_v8, %v489_v48  ;;  %vm3926_vm15 = vcmask 326656  }
  0x24   : > { %363 = vst.msk [vmem:[#allocation2 + $0x29] sm:$0x7f] %vm361_vm1, %v9181_v0 }
  0x25   : > { %364 = vst.msk [vmem:[#allocation2 + $0x41] sm:$0x7f] %vm361_vm1, %v9181_v0  ;;  %v557_v20 = vmax.f32 %v525_v5, 0.0 }
  0x26   : > { %365 = vst.msk [vmem:[#allocation2 + $0x59] sm:$0x7f] %vm361_vm1, %v9181_v0 }
  0x27   : > { %366 = vst.msk [vmem:[#allocation2 + $0x71] sm:$0x7f] %vm361_vm1, %v9181_v0 }
  0x28   : > { %367 = vst.msk [vmem:[#allocation2 + $0x89] sm:$0x7f] %vm361_vm1, %v9181_v0 }
  0x29   : > { %368 = vst.msk [vmem:[#allocation2 + $0xa1] sm:$0x7f] %vm361_vm1, %v9181_v0 }
  0x2a   : > { %369 = vst.msk [vmem:[#allocation2 + $0xb9] sm:$0x7f] %vm361_vm1, %v9181_v0 }
  0x2b   : > { %370 = vst.msk [vmem:[#allocation2 + $0xd1] sm:$0x7f] %vm361_vm1, %v9181_v0 }
  0x2c   : > { %371 = vst.msk [vmem:[#allocation2 + $0xe9] sm:$0x7f] %vm361_vm1, %v9181_v0 }
  0x2d   : > { %372 = vst.msk [vmem:[#allocation2 + $0x101] sm:$0x7f] %vm361_vm1, %v9181_v0 }
  0x2e   : > { %373 = vst.msk [vmem:[#allocation2 + $0x119] sm:$0x7f] %vm361_vm1, %v9181_v0 }
  0x2f   : > { %374 = vst.msk [vmem:[#allocation2 + $0x131] sm:$0x7f] %vm361_vm1, %v9181_v0 }
  0x30   : > { %375 = vst.msk [vmem:[#allocation2 + $0x149] sm:$0x7f] %vm361_vm1, %v9181_v0 }
  0x31   : > { %376 = vst.msk [vmem:[#allocation2 + $0x161] sm:$0x7f] %vm361_vm1, %v9181_v0 }
  0x32   : > { %377 = vst.msk [vmem:[#allocation2 + $0x179] sm:$0x7f] %vm361_vm1, %v9181_v0 }
  0x33   : > { %378 = vst.msk [vmem:[#allocation2 + $0x191] sm:$0x7f] %vm361_vm1, %v9181_v0 }
  0x34   : > { %569 = vst.msk [vmem:[#allocation2 + $0x61] sm:$0xff] %vm334_vm0, %v536_v23 }
  0x35   : > { %570 = vst.msk [vmem:[#allocation2 + $0x69] sm:$0xff] %vm334_vm0, %v537_v27  ;;  %v452_v27 = vld [vmem:[%s6108_s15 + $0xd0] sm:$0xff] }
  0x36   : > { %360 = vst.msk [vmem:[#allocation2 + $0x198] sm:$0x1] %vm342_vm2, %v9181_v0  ;;  %v488_v42 = vmul.f32 %v6117_v4, %v452_v27  ;;  %vm3959_vm2 = vcmask 392192  }
  0x37   : > { %379 = vst.msk [vmem:[#allocation2 + $0x1a9] sm:$0x7f] %vm361_vm1, %v9181_v0  ;;  %vm3992_vm1 = vcmask 457728  }
  0x38   : > { %565 = vst.msk [vmem:[#allocation2 + $0x31] sm:$0xff] %vm334_vm0, %v532_v37  ;;  %v485_v37 = vmul.f32 %v6117_v4, %v449_v22  ;;  %v524_v62 = vadd.f32 %v6133_v8, %v488_v42 }
  0x39   : > { %566 = vst.msk [vmem:[#allocation2 + $0x39] sm:$0xff] %vm334_vm0, %v533_v41  ;;  %v516_v41 = vadd.f32 %v6133_v8, %v480_v21  ;;  %v527_v21 = vadd.f32 %v6133_v8, %v491_v6 }
  0x3a   : > { %563 = vst.msk [vmem:[#allocation2 + $0x19] sm:$0xff] %vm334_vm0, %v530_v45  ;;  %v521_v58 = vadd.f32 %v6133_v8, %v485_v37  ;;  %v556_v17 = vmax.f32 %v524_v62, 0.0 }
  0x3b   : > { %v635_v2 = vld [vmem:[#allocation2 + $0x61] sm:$0xff]  ;;  %564 = vst.msk [vmem:[#allocation2 + $0x21] sm:$0xff] %vm334_vm0, %v531_v49  ;;  %v559_v30 = vmax.f32 %v527_v21, 0.0 }
  0x3c   : > { %v636_v9 = vld [vmem:[#allocation2 + $0x69] sm:$0xff]  ;;  %571 = vst.msk [vmem:[#allocation2 + $0x79] sm:$0xff] %vm334_vm0, %v538_v53  ;;  %v454_v49 = vld [vmem:[%s6108_s15 + $0xe0] sm:$0xff]  ;;  %v486_v53 = vmul.f32 %v6117_v4, %v450_v38  ;;  %v553_v13 = vmax.f32 %v521_v58, 0.0 }
  0x3d   : > { %v6221_v14 = vpack.i.bf16 %v636_v9, %v635_v2  ;;  %572 = vst.msk [vmem:[#allocation2 + $0x81] sm:$0xff] %vm334_vm0, %v539_v57  ;;  %v551_v57 = vmax.f32 %v519_v36, 0.0  ;;  %v490_v63 = vmul.f32 %v6117_v4, %v454_v49  ;;  %v552_v9 = vmax.f32 %v520_v52, 0.0  ;;  %v668_v62 = vld [vmem:[#allocation2 + $0x6a] sm:$0xff] }
  0x3e   : > { %567 = vst.msk [vmem:[#allocation2 + $0x49] sm:$0xff] %vm334_vm0, %v534_v61  ;;  %v548_v61 = vmax.f32 %v516_v41, 0.0 }
  0x3f   : > { %4706 = vrot.lane.b32.xlu2 %v6221_v14, %s5979_s11  ;;  %v631_v23 = vld [vmem:[#allocation2 + $0x31] sm:$0xff]  ;;  %568 = vst.msk [vmem:[#allocation2 + $0x51] sm:$0xff] %vm334_vm0, %v535_v3  ;;  %v549_v3 = vmax.f32 %v517_v47, 0.0  ;;  %v526_v18 = vadd.f32 %v6133_v8, %v490_v63 }
  0x40   : > { %v632_v28 = vld [vmem:[#allocation2 + $0x39] sm:$0xff]  ;;  %573 = vst.msk [vmem:[#allocation2 + $0x91] sm:$0xff] %vm334_vm0, %v540_v10  ;;  %v522_v10 = vadd.f32 %v6133_v8, %v486_v53 }
  0x41   : > { %v6241_v33 = vpack.i.bf16 %v632_v28, %v631_v23  ;;  %v629_v34 = vld [vmem:[#allocation2 + $0x19] sm:$0xff]  ;;  %574 = vst.msk [vmem:[#allocation2 + $0x99] sm:$0xff] %vm334_vm0, %v541_v15  ;;  %v523_v15 = vadd.f32 %v6133_v8, %v487_v59  ;;  %v558_v28 = vmax.f32 %v526_v18, 0.0 }
  0x42   : > { %v630_v39 = vld [vmem:[#allocation2 + $0x21] sm:$0xff]  ;;  %577 = vst.msk [vmem:[#allocation2 + $0xc1] sm:$0xff] %vm334_vm0, %v544_v19  ;;  %v663_v58 = vld [vmem:[#allocation2 + $0x32] sm:$0xff] }
  0x43   : > { %4696 = vrot.lane.b32.xlu1 %v6241_v33, %s5979_s11  ;;  %v6253_v44 = vpack.i.bf16 %v630_v39, %v629_v34  ;;  %v637_v45 = vld [vmem:[#allocation2 + $0x79] sm:$0xff]  ;;  %578 = vst.msk [vmem:[#allocation2 + $0xc9] sm:$0xff] %vm334_vm0, %v545_v24  ;;  %v554_v24 = vmax.f32 %v522_v10, 0.0  ;;  %v555_v25 = vmax.f32 %v523_v15, 0.0  ;;  %v662_v52 = vld [vmem:[#allocation2 + $0x22] sm:$0xff] }
  0x44   : > { %v638_v50 = vld [vmem:[#allocation2 + $0x81] sm:$0xff]  ;;  %575 = vst.msk [vmem:[#allocation2 + $0xa9] sm:$0xff] %vm334_vm0, %v542_v29 }
  0x45   : > { %4691 = vrot.lane.b32.xlu0 %v6253_v44, %s5979_s11  ;;  %v6265_v55 = vpack.i.bf16 %v638_v50, %v637_v45  ;;  %v633_v56 = vld [vmem:[#allocation2 + $0x49] sm:$0xff]  ;;  %576 = vst.msk [vmem:[#allocation2 + $0xb1] sm:$0xff] %vm334_vm0, %v543_v35  ;;  %v664_v59 = vld [vmem:[#allocation2 + $0x3a] sm:$0xff] }
  0x46   : > { %v634_v60 = vld [vmem:[#allocation2 + $0x51] sm:$0xff]  ;;  %579 = vst.msk [vmem:[#allocation2 + $0xd9] sm:$0xff] %vm334_vm0, %v546_v40  ;;  %v6342_v63 = vpack.i.bf16 %v664_v59, %v663_v58  ;;  %v669_v6 = vld [vmem:[#allocation2 + $0x7a] sm:$0xff] }
  0x47   : > { %4711 = vrot.lane.b32.xlu2 %v6265_v55, %s5979_s11  ;;  %v6275_v1 = vpack.i.bf16 %v634_v60, %v633_v56  ;;  %v639_v2 = vld [vmem:[#allocation2 + $0x91] sm:$0xff]  ;;  %580 = vst.msk [vmem:[#allocation2 + $0xe1] sm:$0xff] %vm334_vm0, %v547_v46  ;;  %v659_v56 = vld [vmem:[#allocation2 + $0x2] sm:$0xff] }
  0x48   : > { %v640_v7 = vld [vmem:[#allocation2 + $0x99] sm:$0xff]  ;;  %583 = vst.msk [vmem:[#allocation2 + $0x109] sm:$0xff] %vm334_vm0, %v550_v51  ;;  %v456_v58 = vld [vmem:[%s6108_s15 + $0xf0] sm:$0xff] }
  0x49   : > { %v6282_v11 = vpack.i.bf16 %v640_v7, %v639_v2  ;;  %v643_v12 = vld [vmem:[#allocation2 + $0xc1] sm:$0xff]  ;;  %584 = vst.msk [vmem:[#allocation2 + $0x111] sm:$0xff] %vm334_vm0, %v551_v57  ;;  %v660_v57 = vld [vmem:[#allocation2 + $0xa] sm:$0xff]  ;;  %v666_v5 = vld [vmem:[#allocation2 + $0x52] sm:$0xff] }
  0x4a   : > { %v644_v16 = vld [vmem:[#allocation2 + $0xc9] sm:$0xff]  ;;  %581 = vst.msk [vmem:[#allocation2 + $0xf1] sm:$0xff] %vm334_vm0, %v548_v61  ;;  %v661_v51 = vld [vmem:[#allocation2 + $0x1a] sm:$0xff]  ;;  %v4765_v60 = vpack.i.bf16 %v660_v57, %v659_v56 }
  0x4b   : > { %4701 = vrot.lane.b32.xlu1 %v6275_v1, %s5979_s11  ;;  %v6290_v19 = vpack.i.bf16 %v644_v16, %v643_v12  ;;  %582 = vst.msk [vmem:[#allocation2 + $0xf9] sm:$0xff] %vm334_vm0, %v549_v3  ;;  %v641_v22 = vld [vmem:[#allocation2 + $0xa9] sm:$0xff]  ;;  %v6336_v54 = vpack.i.bf16 %v662_v52, %v661_v51  ;;  %v671_v16 = vld [vmem:[#allocation2 + $0x92] sm:$0xff] }
  0x4c   : > { %v642_v23 = vld [vmem:[#allocation2 + $0xb1] sm:$0xff]  ;;  %585 = vst.msk [vmem:[#allocation2 + $0x121] sm:$0xff] %vm334_vm0, %v552_v9  ;;  %v667_v61 = vld [vmem:[#allocation2 + $0x62] sm:$0xff] }
  0x4d   : > { %4716 = vrot.lane.b32.xlu0 %v6282_v11, %s5979_s11  ;;  %586 = vst.msk [vmem:[#allocation2 + $0x129] sm:$0xff] %vm334_vm0, %v553_v13  ;;  %v645_v26 = vld [vmem:[#allocation2 + $0xd9] sm:$0xff]  ;;  %v6301_v29 = vpack.i.bf16 %v642_v23, %v641_v22  ;;  %v6345_v2 = vpack.i.bf16 %v668_v62, %v667_v61  ;;  %v665_v3 = vld [vmem:[#allocation2 + $0x4a] sm:$0xff]  ;;  %v670_v7 = vld [vmem:[#allocation2 + $0x82] sm:$0xff] }
  0x4e   : > { %v646_v27 = vld [vmem:[#allocation2 + $0xe1] sm:$0xff]  ;;  %589 = vst.msk [vmem:[#allocation2 + $0x151] sm:$0xff] %vm334_vm0, %v556_v17  ;;  %v6349_v9 = vpack.i.bf16 %v666_v5, %v665_v3  ;;  %v673_v10 = vld [vmem:[#allocation2 + $0xaa] sm:$0xff]  ;;  %v674_v12 = vld [vmem:[#allocation2 + $0xb2] sm:$0xff]  ;;  %v6353_v13 = vpack.i.bf16 %v670_v7, %v669_v6 }
  0x4f   : > { %4726 = vrot.lane.b32.xlu2 %v6290_v19, %s5979_s11  ;;  %590 = vst.msk [vmem:[#allocation2 + $0x159] sm:$0xff] %vm334_vm0, %v557_v20  ;;  %v649_v31 = vld [vmem:[#allocation2 + $0x109] sm:$0xff]  ;;  %v6305_v34 = vpack.i.bf16 %v646_v27, %v645_v26  ;;  %v6357_v15 = vpack.i.bf16 %v674_v12, %v673_v10  ;;  %v672_v17 = vld [vmem:[#allocation2 + $0x9a] sm:$0xff] }
  0x50   : > { %v650_v32 = vld [vmem:[#allocation2 + $0x111] sm:$0xff]  ;;  %587 = vst.msk [vmem:[#allocation2 + $0x139] sm:$0xff] %vm334_vm0, %v554_v24  ;;  %v675_v18 = vld [vmem:[#allocation2 + $0xc2] sm:$0xff]  ;;  %v6361_v21 = vpack.i.bf16 %v672_v17, %v671_v16  ;;  %v677_v26 = vld [vmem:[#allocation2 + $0xda] sm:$0xff] }
  0x51   : > { %588 = vst.msk [vmem:[#allocation2 + $0x141] sm:$0xff] %vm334_vm0, %v555_v25  ;;  %v6311_v35 = vpack.i.bf16 %v650_v32, %v649_v31  ;;  %v647_v36 = vld [vmem:[#allocation2 + $0xf1] sm:$0xff]  ;;  %v678_v27 = vld [vmem:[#allocation2 + $0xe2] sm:$0xff] }
  0x52   : > { %591 = vst.msk [vmem:[#allocation2 + $0x169] sm:$0xff] %vm334_vm0, %v558_v28  ;;  %v648_v37 = vld [vmem:[#allocation2 + $0xf9] sm:$0xff]  ;;  %v676_v20 = vld [vmem:[#allocation2 + $0xca] sm:$0xff]  ;;  %v6373_v31 = vpack.i.bf16 %v678_v27, %v677_v26 }
  0x53   : > { %4721 = vrot.lane.b32.xlu1 %v6301_v29, %s5979_s11  ;;  %592 = vst.msk [vmem:[#allocation2 + $0x171] sm:$0xff] %vm334_vm0, %v559_v30  ;;  %v651_v38 = vld [vmem:[#allocation2 + $0x121] sm:$0xff]  ;;  %v6318_v40 = vpack.i.bf16 %v648_v37, %v647_v36  ;;  %v679_v22 = vld [vmem:[#allocation2 + $0xf2] sm:$0xff]  ;;  %v6365_v24 = vpack.i.bf16 %v676_v20, %v675_v18  ;;  %v681_v28 = vld [vmem:[#allocation2 + $0x10a] sm:$0xff] }
  0x54   : > { %v652_v39 = vld [vmem:[#allocation2 + $0x129] sm:$0xff]  ;;  %v680_v23 = vld [vmem:[#allocation2 + $0xfa] sm:$0xff]  ;;  %v682_v30 = vld [vmem:[#allocation2 + $0x112] sm:$0xff] }
  0x55   : > { %4731 = vrot.lane.b32.xlu0 %v6305_v34, %s5979_s11  ;;  %v655_v41 = vld [vmem:[#allocation2 + $0x151] sm:$0xff]  ;;  %v6320_v43 = vpack.i.bf16 %v652_v39, %v651_v38  ;;  %v6369_v25 = vpack.i.bf16 %v680_v23, %v679_v22  ;;  %v6377_v37 = vpack.i.bf16 %v682_v30, %v681_v28  ;;  %v683_v39 = vld [vmem:[#allocation2 + $0x122] sm:$0xff] }
  0x56   : > { %v656_v42 = vld [vmem:[#allocation2 + $0x159] sm:$0xff]  ;;  %v6405_v62 = vld [vmem:[#allocation2 + $0x30] sm:$0xff]  ;;  %v6416_v12 = vld [vmem:[#allocation2 + $0x68] sm:$0xff] }
  0x57   : > { %4741 = vrot.lane.b32.xlu2 %v6311_v35, %s5979_s11  ;;  %v6324_v45 = vpack.i.bf16 %v656_v42, %v655_v41  ;;  %v653_v46 = vld [vmem:[#allocation2 + $0x139] sm:$0xff]  ;;  %v684_v41 = vld [vmem:[#allocation2 + $0x12a] sm:$0xff]  ;;  %9282 = vst [vmem:[#allocation6_spill] sm:$0xff] %v6405_v62 }
  0x58   : > { %v654_v47 = vld [vmem:[#allocation2 + $0x141] sm:$0xff]  ;;  %v687_v42 = vld [vmem:[#allocation2 + $0x152] sm:$0xff] }
  0x59   : > { %v657_v48 = vld [vmem:[#allocation2 + $0x169] sm:$0xff]  ;;  %v6330_v50 = vpack.i.bf16 %v654_v47, %v653_v46  ;;  %v685_v32 = vld [vmem:[#allocation2 + $0x13a] sm:$0xff]  ;;  %v6385_v47 = vpack.i.bf16 %v684_v41, %v683_v39 }
  0x5a   : > { %v658_v49 = vld [vmem:[#allocation2 + $0x171] sm:$0xff]  ;;  %v686_v36 = vld [vmem:[#allocation2 + $0x142] sm:$0xff]  ;;  %v688_v46 = vld [vmem:[#allocation2 + $0x15a] sm:$0xff] }
  0x5b   : > { %4736 = vrot.lane.b32.xlu1 %v6318_v40, %s5979_s11  ;;  %v6332_v53 = vpack.i.bf16 %v658_v49, %v657_v48  ;;  %v6381_v38 = vpack.i.bf16 %v686_v36, %v685_v32  ;;  %v6389_v48 = vld [vmem:[#allocation2 + $0x18] sm:$0xff]  ;;  %v6391_v49 = vld [vmem:[#allocation2 + $0x20] sm:$0xff]  ;;  %v6393_v51 = vpack.i.bf16 %v688_v46, %v687_v42  ;;  %v689_v52 = vld [vmem:[#allocation2 + $0x16a] sm:$0xff] }
  0x5c   : > { %9280 = vst [vmem:[#allocation4_spill] sm:$0xff] %v6389_v48  ;;  %v4845_v56 = vpack.i.bf16 %v6391_v49, %v6389_v48  ;;  %v690_v57 = vld [vmem:[#allocation2 + $0x172] sm:$0xff]  ;;  %v6414_v10 = vld [vmem:[#allocation2 + $0x60] sm:$0xff]  ;;  %v6446_v27 = vld [vmem:[#allocation2 + $0xa8] sm:$0xff] }
  0x5d   : > { %4746 = vrot.lane.b32.xlu0 %v6320_v43, %s5979_s11  ;;  %9281 = vst [vmem:[#allocation5_spill] sm:$0xff] %v6391_v49  ;;  %v457_v59 = vld [vmem:[%s6108_s15 + $0xf8] sm:$0xff]  ;;  %v6409_v5 = vpack.i.bf16 %v690_v57, %v689_v52  ;;  %v6426_v18 = vpack.i.bf16 %v6416_v12, %v6414_v10  ;;  %v6431_v20 = vld [vmem:[#allocation2 + $0x50] sm:$0xff]  ;;  %v6438_v23 = vld [vmem:[#allocation2 + $0x80] sm:$0xff] }
  0x5e   : > { %v493_v61 = vmul.f32 %v6117_v4, %v457_v59  ;;  %v6407_v3 = vld [vmem:[#allocation2 + $0x38] sm:$0xff]  ;;  %9285 = vst [vmem:[#allocation9_spill] sm:$0xff] %v6431_v20  ;;  %v6448_v28 = vld [vmem:[#allocation2 + $0xb0] sm:$0xff]  ;;  %v6468_v42 = vld [vmem:[#allocation2 + $0xc0] sm:$0xff] }
  0x5f   : > { %4756 = vrot.lane.b32.xlu2 %v6324_v45, %s5979_s11  ;;  %9283 = vst [vmem:[#allocation7_spill] sm:$0xff] %v6407_v3  ;;  %v6436_v22 = vld [vmem:[#allocation2 + $0x78] sm:$0xff]  ;;  %v6460_v36 = vpack.i.bf16 %v6448_v28, %v6446_v27  ;;  %v6462_v39 = vld [vmem:[#allocation2 + $0x90] sm:$0xff]  ;;  %v6470_v46 = vld [vmem:[#allocation2 + $0xc8] sm:$0xff] }
  0x60   : > { %v529_v7 = vadd.f32 %v6133_v8, %v493_v61  ;;  %9286 = vst [vmem:[#allocation10_spill] sm:$0xff] %v6446_v27  ;;  %v6452_v30 = vpack.i.bf16 %v6438_v23, %v6436_v22  ;;  %v6464_v41 = vld [vmem:[#allocation2 + $0x98] sm:$0xff] }
  0x61   : > { %9287 = vst [vmem:[#allocation11_spill] sm:$0xff] %v6448_v28  ;;  %v6474_v52 = vpack.i.bf16 %v6464_v41, %v6462_v39  ;;  %v6480_v57 = vld [vmem:[#allocation2 + $0xf8] sm:$0xff]  ;;  %v9298_v28 = vmov 0.0  }
  0x62   : > { %v561_v17 = vmax.f32 %v529_v7, 0.0  ;;  %9288 = vst [vmem:[#allocation12_spill] sm:$0xff] %v6462_v39  ;;  %v6494_v61 = vld [vmem:[#allocation2 + $0xd8] sm:$0xff]  ;;  %v6500_v7 = vld [vmem:[#allocation2 + $0x108] sm:$0xff] }
  0x63   : > { %4751 = vrot.lane.b32.xlu1 %v6330_v50, %s5979_s11  ;;  %9289 = vst [vmem:[#allocation13_spill] sm:$0xff] %v6464_v41  ;;  %v6510_v0 = vld [vmem:[#allocation2 + $0x138] sm:$0xff]  ;;  %v6534_v39 = vld [vmem:[#allocation2 + $0x128] sm:$0xff] }
  0x64   : > { %594 = vst.msk [vmem:[#allocation2 + $0x189] sm:$0xff] %vm334_vm0, %v561_v17 }
  0x65   : > { %4761 = vrot.lane.b32.xlu0 %v6332_v53, %s5979_s11  ;;  %9291 = vst [vmem:[#allocation15_spill] sm:$0xff] %v6480_v57 }
  0x66   : > { %9292 = vst [vmem:[#allocation16_spill] sm:$0xff] %v6494_v61 }
  0x67   : > { %4771 = vrot.lane.b32.xlu2 %v6336_v54, %s5980_s20  ;;  %9294 = vst [vmem:[#allocation18_spill] sm:$0xff] %v6500_v7 }
  0x68   : > { %9296 = vst [vmem:[#allocation20_spill] sm:$0xff] %v6510_v0 }
  0x69   : > { %381 = vst.msk [vmem:[#allocation3] sm:$0xff] %vm380_vm3, %v9298_v28 }
  0x6a   : > { %382 = vst.msk [vmem:[#allocation3 + $0x8] sm:$0xff] %vm380_vm3, %v9298_v28 }
  0x6b   : > { %4766 = vrot.lane.b32.xlu1 %v4765_v60, %s5980_s20  ;;  %v492_v60 = vmul.f32 %v6117_v4, %v456_v58  ;;  %v6420_v4 = vpack.i.bf16 %v6407_v3, %v6405_v62  ;;  %v6484_v58 = vpack.i.bf16 %v6470_v46, %v6468_v42  ;;  %383 = vst.msk [vmem:[#allocation3 + $0x10] sm:$0xff] %vm380_vm3, %v9298_v28 }
  0x6c   : > { %9300 = vst [vmem:[#allocation23_spill] sm:$0xff] %v6534_v39 }
  0x6d   : > { %4776 = vrot.lane.b32.xlu0 %v6342_v63, %s5980_s20  ;;  %v528_v6 = vadd.f32 %v6133_v8, %v492_v60  ;;  %v6429_v8 = vld [vmem:[#allocation2 + $0x48] sm:$0xff]  ;;  %385 = vst.msk [vmem:[#allocation3 + $0x198] sm:$0xff] %vm380_vm3, %v9298_v28 }
  0x6e   : > { %9284 = vst [vmem:[#allocation8_spill] sm:$0xff] %v6429_v8  ;;  %v6442_v26 = vpack.i.bf16 %v6431_v20, %v6429_v8 }
  0x6f   : > { %4786 = vrot.lane.b32.xlu2 %v6345_v2, %s5980_s20  ;;  %v560_v16 = vmax.f32 %v528_v6, 0.0  ;;  %v6496_v6 = vld [vmem:[#allocation2 + $0xe0] sm:$0xff]  ;;  %386 = vst.msk [vmem:[#allocation3 + $0x1a0] sm:$0xff] %vm380_vm3, %v9298_v28 }
  0x70   : > { %9293 = vst [vmem:[#allocation17_spill] sm:$0xff] %v6496_v6  ;;  %v6506_v17 = vpack.i.bf16 %v6496_v6, %v6494_v61  ;;  %v6532_v6 = vld [vmem:[#allocation2 + $0x120] sm:$0xff] }
  0x71   : > { %593 = vst.msk [vmem:[#allocation2 + $0x181] sm:$0xff] %vm334_vm0, %v560_v16  ;;  %v6502_v16 = vld [vmem:[#allocation2 + $0x110] sm:$0xff]  ;;  %v6552_v8 = vpack.i.bf16 %v6534_v39, %v6532_v6 }
  0x72   : > { %9295 = vst [vmem:[#allocation19_spill] sm:$0xff] %v6502_v16 }
  0x73   : > { %4781 = vrot.lane.b32.xlu1 %v6349_v9, %s5980_s20  ;;  %9299 = vst [vmem:[#allocation22_spill] sm:$0xff] %v6532_v6  ;;  %v6568_v6 = vld [vmem:[#allocation2 + $0x170] sm:$0xff] }
  0x74   : > { %387 = vst.msk [vmem:[#allocation3 + $0x1a8] sm:$0xff] %vm380_vm3, %v9298_v28  ;;  %v6566_v28 = vld [vmem:[#allocation2 + $0x168] sm:$0xff] }
  0x75   : > { %4791 = vrot.lane.b32.xlu0 %v6353_v13, %s5980_s20  ;;  %9303 = vst [vmem:[#allocation26_spill] sm:$0xff] %v6566_v28 }
  0x76   : > { %9304 = vst [vmem:[#allocation27_spill] sm:$0xff] %v6568_v6 }
  0x77   : > { %4801 = vrot.lane.b32.xlu2 %v6357_v15, %s5980_s20 }
  0x78   : > { %v721_v20 = vld [vmem:[#allocation2 + $0x180] sm:$0xff]  ;;  %v722_v49 = vld [vmem:[#allocation2 + $0x188] sm:$0xff] }
  0x79   : > { %v6564_v62 = vpack.i.bf16 %v722_v49, %v721_v20 }
  0x7b   : > { %4796 = vrot.lane.b32.xlu1 %v6361_v21, %s5980_s20 }
  0x7d   : > { %4806 = vrot.lane.b32.xlu0 %v6365_v24, %s5980_s20 }
  0x7f   : > { %4816 = vrot.lane.b32.xlu2 %v6369_v25, %s5980_s20 }
  0x83   : > { %4811 = vrot.lane.b32.xlu1 %v6373_v31, %s5980_s20 }
  0x85   : > { %4821 = vrot.lane.b32.xlu0 %v6377_v37, %s5980_s20 }
  0x87   : > { %4831 = vrot.lane.b32.xlu2 %v6381_v38, %s5980_s20 }
  0x8a   : > { %v6540_v41 = vpop.permute.xlu0 %4686 }
  0x8b   : > { %4826 = vrot.lane.b32.xlu1 %v6385_v47, %s5980_s20 }
  0x8d   : > { %4836 = vrot.lane.b32.xlu0 %v6393_v51, %s5980_s20 }
  0x8f   : > { %4846 = vrot.lane.b32.xlu2 %v4845_v56, %s5981_s21  ;;  %v6478_v56 = vld [vmem:[#allocation2 + $0xf0] sm:$0xff] }
  0x90   : > { %9290 = vst [vmem:[#allocation14_spill] sm:$0xff] %v6478_v56  ;;  %v6492_v60 = vpack.i.bf16 %v6480_v57, %v6478_v56  ;;  %v6512_v56 = vld [vmem:[#allocation2 + $0x140] sm:$0xff]  ;;  %v6516_v57 = vpack.i.bf16 %v6502_v16, %v6500_v7 }
  0x91   : > { %9297 = vst [vmem:[#allocation21_spill] sm:$0xff] %v6512_v56  ;;  %v6528_v61 = vpack.i.bf16 %v6512_v56, %v6510_v0  ;;  %v6544_v0 = vld [vmem:[#allocation2 + $0x150] sm:$0xff]  ;;  %v6546_v56 = vld [vmem:[#allocation2 + $0x158] sm:$0xff] }
  0x92   : > { %9301 = vst [vmem:[#allocation24_spill] sm:$0xff] %v6544_v0  ;;  %v6558_v3 = vpack.i.bf16 %v6546_v56, %v6544_v0  ;;  %v6578_v0 = vpack.i.bf16 %v6568_v6, %v6566_v28 }
  0x93   : > { %4841 = vrot.lane.b32.xlu1 %v6409_v5, %s5980_s20  ;;  %9302 = vst [vmem:[#allocation25_spill] sm:$0xff] %v6546_v56 }
  0x95   : > { %4851 = vrot.lane.b32.xlu0 %v6420_v4, %s5981_s21 }
  0x97   : > { %4861 = vrot.lane.b32.xlu2 %v6426_v18, %s5981_s21 }
  0x99   : > { %v6454_v32 = vpop.permute.xlu2 %4706 }
  0x9b   : > { %4856 = vrot.lane.b32.xlu1 %v6442_v26, %s5981_s21 }
  0x9d   : > { %4866 = vrot.lane.b32.xlu0 %v6452_v30, %s5981_s21 }
  0x9f   : > { %4876 = vrot.lane.b32.xlu2 %v6460_v36, %s5981_s21 }
  0xa1   : > { %v6486_v59 = vpop.permute.xlu2 %4711 }
  0xa3   : > { %4871 = vrot.lane.b32.xlu1 %v6474_v52, %s5981_s21 }
  0xa5   : > { %4881 = vrot.lane.b32.xlu0 %v6484_v58, %s5981_s21 }
  0xa7   : > { %4891 = vrot.lane.b32.xlu2 %v6492_v60, %s5981_s21 }
  0xa9   : > { %v6518_v27 = vpop.permute.xlu2 %4726 }
  0xab   : > { %4886 = vrot.lane.b32.xlu1 %v6506_v17, %s5981_s21 }
  0xad   : > { %4896 = vrot.lane.b32.xlu0 %v6516_v57, %s5981_s21 }
  0xaf   : > { %4906 = vrot.lane.b32.xlu2 %v6528_v61, %s5981_s21 }
  0xb1   : > { %v6560_v48 = vpop.permute.xlu2 %4741 }
  0xb3   : > { %4901 = vrot.lane.b32.xlu1 %v6552_v8, %s5981_s21 }
  0xb5   : > { %4911 = vrot.lane.b32.xlu0 %v6558_v3, %s5981_s21  ;;  %v6572_v39 = vpop.permute.xlu1 %4696 }
  0xb7   : > { %v6574_v7 = vpop.permute.xlu0 %4691  ;;  %4921 = vrot.lane.b32.xlu2 %v6564_v62, %s5981_s21 }
  0xb9   : > { %v6582_v49 = vpop.permute.xlu2 %4756 }
  0xbb   : > { %4916 = vrot.lane.b32.xlu1 %v6578_v0, %s5981_s21 }
  0xbd   : > { %4926 = vrot.lane.b32.xlu0 %v6253_v44, %s5982_s22  ;;  %v6588_v20 = vpop.permute.xlu1 %4701 }
  0xbf   : > { %v6590_v56 = vpop.permute.xlu0 %4716  ;;  %4936 = vrot.lane.b32.xlu2 %v6275_v1, %s5982_s22 }
  0xc1   : > { %v6594_v28 = vpop.permute.xlu2 %4771 }
  0xc3   : > { %4931 = vrot.lane.b32.xlu1 %v6241_v33, %s5982_s22 }
  0xc5   : > { %4941 = vrot.lane.b32.xlu0 %v6221_v14, %s5982_s22  ;;  %v6600_v6 = vpop.permute.xlu1 %4721 }
  0xc7   : > { %v6602_v16 = vpop.permute.xlu0 %4731  ;;  %4951 = vrot.lane.b32.xlu2 %v6282_v11, %s5982_s22 }
  0xc9   : > { %v6606_v44 = vpop.permute.xlu2 %4786 }
  0xcb   : > { %4946 = vrot.lane.b32.xlu1 %v6265_v55, %s5982_s22 }
  0xcd   : > { %4956 = vrot.lane.b32.xlu0 %v6301_v29, %s5982_s22  ;;  %v6612_v1 = vpop.permute.xlu1 %4736 }
  0xcf   : > { %v6614_v33 = vpop.permute.xlu0 %4746  ;;  %4966 = vrot.lane.b32.xlu2 %v6305_v34, %s5982_s22 }
  0xd1   : > { %v6618_v14 = vpop.permute.xlu2 %4801 }
  0xd2   : > { %9305 = vst [vmem:[#allocation28_spill] sm:$0xff] %v6618_v14  ;;  %v754_v14 = vld [vmem:[#allocation2 + $0x189] sm:$0xff] }
  0xd3   : > { %4961 = vrot.lane.b32.xlu1 %v6290_v19, %s5982_s22  ;;  %v753_v19 = vld [vmem:[#allocation2 + $0x181] sm:$0xff] }
  0xd5   : > { %4971 = vrot.lane.b32.xlu0 %v6318_v40, %s5982_s22  ;;  %v6624_v11 = vpop.permute.xlu1 %4751 }
  0xd7   : > { %v6626_v55 = vpop.permute.xlu0 %4761  ;;  %4981 = vrot.lane.b32.xlu2 %v6320_v43, %s5982_s22 }
  0xd8   : > { %9306 = vst [vmem:[#allocation29_spill] sm:$0xff] %v6626_v55  ;;  %v6642_v55 = vpack.i.bf16 %v754_v14, %v753_v19  ;;  %v786_v19 = vld [vmem:[#allocation2 + $0x18a] sm:$0xff] }
  0xd9   : > { %v6630_v29 = vpop.permute.xlu2 %4816 }
  0xdb   : > { %4976 = vrot.lane.b32.xlu1 %v6311_v35, %s5982_s22 }
  0xdd   : > { %4986 = vrot.lane.b32.xlu0 %v6330_v50, %s5982_s22  ;;  %v6636_v34 = vpop.permute.xlu1 %4766 }
  0xdf   : > { %v6638_v40 = vpop.permute.xlu0 %4776  ;;  %4996 = vrot.lane.b32.xlu2 %v6332_v53, %s5982_s22 }
  0xe0   : > { %9307 = vst [vmem:[#allocation30_spill] sm:$0xff] %v6638_v40 }
  0xe1   : > { %v6644_v43 = vpop.permute.xlu2 %4831 }
  0xe3   : > { %4991 = vrot.lane.b32.xlu1 %v6324_v45, %s5982_s22 }
  0xe5   : > { %5001 = vrot.lane.b32.xlu0 %v6642_v55, %s5982_s22  ;;  %v6650_v35 = vpop.permute.xlu1 %4781 }
  0xe7   : > { %v6652_v50 = vpop.permute.xlu0 %4791  ;;  %5011 = vrot.lane.b32.xlu2 %v6342_v63, %s5983_s23 }
  0xe9   : > { %v6656_v40 = vpop.permute.xlu2 %4846 }
  0xeb   : > { %5006 = vrot.lane.b32.xlu1 %v6336_v54, %s5983_s23 }
  0xed   : > { %5016 = vrot.lane.b32.xlu0 %v6349_v9, %s5983_s23  ;;  %v6662_v45 = vpop.permute.xlu1 %4796 }
  0xee   : > { %9308 = vst [vmem:[#allocation31_spill] sm:$0xff] %v6662_v45 }
  0xef   : > { %v6664_v53 = vpop.permute.xlu0 %4806  ;;  %5026 = vrot.lane.b32.xlu2 %v6353_v13, %s5983_s23 }
  0xf1   : > { %v6668_v14 = vpop.permute.xlu2 %4861 }
  0xf2   : > { %9309 = vst [vmem:[#allocation32_spill] sm:$0xff] %v6668_v14  ;;  %v833_v14 = vld [vmem:[#allocation2 + $0xc9] sm:$0xff] }
  0xf3   : > { %5021 = vrot.lane.b32.xlu1 %v6345_v2, %s5983_s23 }
  0xf5   : > { %5031 = vrot.lane.b32.xlu0 %v6361_v21, %s5983_s23  ;;  %v6674_v63 = vpop.permute.xlu1 %4811 }
  0xf6   : > { %9310 = vst [vmem:[#allocation33_spill] sm:$0xff] %v6674_v63 }
  0xf7   : > { %v6676_v54 = vpop.permute.xlu0 %4821  ;;  %5041 = vrot.lane.b32.xlu2 %v6365_v24, %s5983_s23 }
  0xf9   : > { %v6680_v9 = vpop.permute.xlu2 %4876 }
  0xfa   : > { %9311 = vst [vmem:[#allocation34_spill] sm:$0xff] %v6680_v9  ;;  %v845_v9 = vld [vmem:[#allocation2 + $0x159] sm:$0xff] }
  0xfb   : > { %5036 = vrot.lane.b32.xlu1 %v6357_v15, %s5983_s23 }
  0xfd   : > { %5046 = vrot.lane.b32.xlu0 %v6373_v31, %s5983_s23  ;;  %v6686_v13 = vpop.permute.xlu1 %4826 }
  0xfe   : > { %9312 = vst [vmem:[#allocation35_spill] sm:$0xff] %v6686_v13  ;;  %v832_v13 = vld [vmem:[#allocation2 + $0xc1] sm:$0xff] }
  0xff   : > { %v6688_v2 = vpop.permute.xlu0 %4836  ;;  %5056 = vrot.lane.b32.xlu2 %v6377_v37, %s5983_s23  ;;  %v785_v37 = vld [vmem:[#allocation2 + $0x182] sm:$0xff] }
 0x101   : > { %v6692_v21 = vpop.permute.xlu2 %4891 }
 0x102   : > { %9313 = vst [vmem:[#allocation36_spill] sm:$0xff] %v6692_v21  ;;  %v6714_v21 = vpack.i.bf16 %v786_v19, %v785_v37 }
 0x103   : > { %5051 = vrot.lane.b32.xlu1 %v6369_v25, %s5983_s23 }
 0x105   : > { %5061 = vrot.lane.b32.xlu0 %v6385_v47, %s5983_s23  ;;  %v6698_v24 = vpop.permute.xlu1 %4841 }
 0x106   : > { %9314 = vst [vmem:[#allocation37_spill] sm:$0xff] %v6698_v24 }
 0x107   : > { %v6700_v15 = vpop.permute.xlu0 %4851  ;;  %5071 = vrot.lane.b32.xlu2 %v6393_v51, %s5983_s23 }
 0x108   : > { %9315 = vst [vmem:[#allocation38_spill] sm:$0xff] %v6700_v15 }
 0x109   : > { %v6704_v31 = vpop.permute.xlu2 %4906 }
 0x10a   : > { %9316 = vst [vmem:[#allocation39_spill] sm:$0xff] %v6704_v31 }
 0x10b   : > { %5066 = vrot.lane.b32.xlu1 %v6381_v38, %s5983_s23 }
 0x10d   : > { %5076 = vrot.lane.b32.xlu0 %v6409_v5, %s5983_s23  ;;  %v6710_v25 = vpop.permute.xlu1 %4856 }
 0x10e   : > { %9317 = vst [vmem:[#allocation40_spill] sm:$0xff] %v6710_v25  ;;  %v821_v25 = vld [vmem:[#allocation2 + $0x39] sm:$0xff] }
 0x10f   : > { %v6712_v47 = vpop.permute.xlu0 %4866  ;;  %5086 = vrot.lane.b32.xlu2 %v6420_v4, %s5984_s24 }
 0x111   : > { %v6718_v51 = vpop.permute.xlu2 %4921 }
 0x112   : > { %9318 = vst [vmem:[#allocation41_spill] sm:$0xff] %v6718_v51 }
 0x113   : > { %5081 = vrot.lane.b32.xlu1 %v6714_v21, %s5983_s23  ;;  %s5988_s23 = smov 48  }
 0x115   : > { %5091 = vrot.lane.b32.xlu0 %v6442_v26, %s5984_s24  ;;  %v6724_v38 = vpop.permute.xlu1 %4871 }
 0x117   : > { %v6726_v5 = vpop.permute.xlu0 %4881  ;;  %5101 = vrot.lane.b32.xlu2 %v6452_v30, %s5984_s24 }
 0x118   : > { %9319 = vst [vmem:[#allocation42_spill] sm:$0xff] %v6726_v5 }
 0x119   : > { %v6730_v37 = vpop.permute.xlu2 %4936 }
 0x11a   : > { %9320 = vst [vmem:[#allocation43_spill] sm:$0xff] %v6730_v37 }
 0x11b   : > { %5096 = vrot.lane.b32.xlu1 %v6426_v18, %s5984_s24 }
 0x11d   : > { %5106 = vrot.lane.b32.xlu0 %v6474_v52, %s5984_s24  ;;  %v6736_v4 = vpop.permute.xlu1 %4886 }
 0x11f   : > { %v6738_v19 = vpop.permute.xlu0 %4896  ;;  %5116 = vrot.lane.b32.xlu2 %v6484_v58, %s5984_s24 }
 0x120   : > { %9321 = vst [vmem:[#allocation44_spill] sm:$0xff] %v6738_v19 }
 0x121   : > { %v6742_v26 = vpop.permute.xlu2 %4951 }
 0x123   : > { %5111 = vrot.lane.b32.xlu1 %v6460_v36, %s5984_s24 }
 0x125   : > { %5121 = vrot.lane.b32.xlu0 %v6506_v17, %s5984_s24  ;;  %v6748_v30 = vpop.permute.xlu1 %4901  ;;  %v818_v17 = vld [vmem:[#allocation2 + $0x198] sm:$0xff] }
 0x127   : > { %v6750_v18 = vpop.permute.xlu0 %4911  ;;  %5131 = vrot.lane.b32.xlu2 %v6516_v57, %s5984_s24 }
 0x128   : > { %9322 = vst [vmem:[#allocation45_spill] sm:$0xff] %v6750_v18  ;;  %v819_v18 = vld [vmem:[#allocation2 + $0x1a0] sm:$0xff] }
 0x129   : > { %v6754_v52 = vpop.permute.xlu2 %4966  ;;  %v5160_v57 = vpack.i.bf16 %v819_v18, %v818_v17  ;;  %v822_v18 = vld [vmem:[#allocation2 + $0x49] sm:$0xff]  ;;  %v823_v17 = vld [vmem:[#allocation2 + $0x51] sm:$0xff] }
 0x12b   : > { %5126 = vrot.lane.b32.xlu1 %v6492_v60, %s5984_s24 }
 0x12d   : > { %5136 = vrot.lane.b32.xlu0 %v6552_v8, %s5984_s24  ;;  %v6760_v58 = vpop.permute.xlu1 %4916  ;;  %v820_v8 = vld [vmem:[#allocation2 + $0x31] sm:$0xff] }
 0x12e   : > { %v5165_v19 = vpack.i.bf16 %v821_v25, %v820_v8  ;;  %v830_v25 = vld [vmem:[#allocation2 + $0xa9] sm:$0xff]  ;;  %v831_v8 = vld [vmem:[#allocation2 + $0xb1] sm:$0xff] }
 0x12f   : > { %v6762_v36 = vpop.permute.xlu0 %4926  ;;  %5146 = vrot.lane.b32.xlu2 %v6558_v3, %s5984_s24  ;;  %v824_v3 = vld [vmem:[#allocation2 + $0x61] sm:$0xff] }
 0x130   : > { %9323 = vst [vmem:[#allocation46_spill] sm:$0xff] %v6762_v36  ;;  %v825_v36 = vld [vmem:[#allocation2 + $0x69] sm:$0xff] }
 0x131   : > { %v6766_v37 = vpop.permute.xlu2 %4981 }
 0x133   : > { %5141 = vrot.lane.b32.xlu1 %v6528_v61, %s5984_s24  ;;  %v5175_v61 = vpack.i.bf16 %v825_v36, %v824_v3  ;;  %v828_v36 = vld [vmem:[#allocation2 + $0x91] sm:$0xff]  ;;  %v829_v3 = vld [vmem:[#allocation2 + $0x99] sm:$0xff] }
 0x135   : > { %5151 = vrot.lane.b32.xlu0 %v6578_v0, %s5984_s24  ;;  %v6772_v60 = vpop.permute.xlu1 %4931 }
 0x136   : > { %9324 = vst [vmem:[#allocation47_spill] sm:$0xff] %v6772_v60  ;;  %v826_v60 = vld [vmem:[#allocation2 + $0x79] sm:$0xff] }
 0x137   : > { %v6774_v31 = vpop.permute.xlu0 %4941  ;;  %5161 = vrot.lane.b32.xlu2 %v5160_v57, %s5984_s24  ;;  %v5170_v57 = vpack.i.bf16 %v823_v17, %v822_v18  ;;  %v5185_v18 = vpack.i.bf16 %v829_v3, %v828_v36 }
 0x138   : > { %9325 = vst [vmem:[#allocation48_spill] sm:$0xff] %v6774_v31  ;;  %v827_v31 = vld [vmem:[#allocation2 + $0x81] sm:$0xff] }
 0x139   : > { %v6777_v5 = vpop.permute.xlu2 %4996  ;;  %v5180_v15 = vpack.i.bf16 %v827_v31, %v826_v60  ;;  %v837_v31 = vld [vmem:[#allocation2 + $0xf9] sm:$0xff]  ;;  %v5195_v60 = vpack.i.bf16 %v833_v14, %v832_v13  ;;  %v843_v14 = vld [vmem:[#allocation2 + $0x141] sm:$0xff] }
 0x13b   : > { %5156 = vrot.lane.b32.xlu1 %v6564_v62, %s5984_s24  ;;  %v5190_v62 = vpack.i.bf16 %v831_v8, %v830_v25  ;;  %v834_v25 = vld [vmem:[#allocation2 + $0xd9] sm:$0xff]  ;;  %v835_v8 = vld [vmem:[#allocation2 + $0xe1] sm:$0xff] }
 0x13c   : > { %v5200_v36 = vpack.i.bf16 %v835_v8, %v834_v25  ;;  %v847_v8 = vld [vmem:[#allocation2 + $0x171] sm:$0xff] }
 0x13d   : > { %5166 = vrot.lane.b32.xlu0 %v5165_v19, %s5985_s25  ;;  %v6782_v0 = vpop.permute.xlu1 %4946 }
 0x13e   : > { %9326 = vst [vmem:[#allocation49_spill] sm:$0xff] %v6782_v0  ;;  %v9358_v0 = vld [vmem:[#allocation5_spill] sm:$0xff] }
 0x13f   : > { %v6784_v51 = vpop.permute.xlu0 %4956  ;;  %5176 = vrot.lane.b32.xlu2 %v5175_v61, %s5985_s25  ;;  %v836_v61 = vld [vmem:[#allocation2 + $0xf1] sm:$0xff] }
 0x140   : > { %9327 = vst [vmem:[#allocation50_spill] sm:$0xff] %v6784_v51 }
 0x141   : > { %v6787_v24 = vpop.permute.xlu2 %5011 }
 0x142   : > { %9328 = vst [vmem:[#allocation51_spill] sm:$0xff] %v6787_v24  ;;  %v838_v24 = vld [vmem:[#allocation2 + $0x109] sm:$0xff] }
 0x143   : > { %5171 = vrot.lane.b32.xlu1 %v5170_v57, %s5985_s25  ;;  %v5205_v57 = vpack.i.bf16 %v837_v31, %v836_v61  ;;  %v840_v61 = vld [vmem:[#allocation2 + $0x121] sm:$0xff]  ;;  %v841_v31 = vld [vmem:[#allocation2 + $0x129] sm:$0xff] }
 0x144   : > { %v5215_v25 = vpack.i.bf16 %v841_v31, %v840_v61 }
 0x145   : > { %5181 = vrot.lane.b32.xlu0 %v5180_v15, %s5985_s25  ;;  %v6791_v19 = vpop.permute.xlu1 %4961 }
 0x146   : > { %9329 = vst [vmem:[#allocation52_spill] sm:$0xff] %v6791_v19  ;;  %v839_v19 = vld [vmem:[#allocation2 + $0x111] sm:$0xff] }
 0x147   : > { %v6793_v51 = vpop.permute.xlu0 %4971  ;;  %5191 = vrot.lane.b32.xlu2 %v5190_v62, %s5985_s25  ;;  %v842_v62 = vld [vmem:[#allocation2 + $0x139] sm:$0xff]  ;;  %v5210_v13 = vpack.i.bf16 %v839_v19, %v838_v24  ;;  %v846_v19 = vld [vmem:[#allocation2 + $0x169] sm:$0xff] }
 0x148   : > { %9330 = vst [vmem:[#allocation53_spill] sm:$0xff] %v6793_v51 }
 0x149   : > { %v6796_v17 = vpop.permute.xlu2 %5026 }
 0x14a   : > { %9331 = vst [vmem:[#allocation54_spill] sm:$0xff] %v6796_v17 }
 0x14b   : > { %5186 = vrot.lane.b32.xlu1 %v5185_v18, %s5985_s25  ;;  %v5220_v18 = vpack.i.bf16 %v843_v14, %v842_v62  ;;  %v850_v62 = vld [vmem:[#allocation2 + $0x199] sm:$0xff]  ;;  %v851_v14 = vld [vmem:[#allocation2 + $0x1a1] sm:$0xff] }
 0x14d   : > { %5196 = vrot.lane.b32.xlu0 %v5195_v60, %s5985_s25  ;;  %v6800_v15 = vpop.permute.xlu1 %4976 }
 0x14e   : > { %9332 = vst [vmem:[#allocation55_spill] sm:$0xff] %v6800_v15  ;;  %v844_v15 = vld [vmem:[#allocation2 + $0x151] sm:$0xff] }
 0x14f   : > { %v6802_v51 = vpop.permute.xlu0 %4986  ;;  %5206 = vrot.lane.b32.xlu2 %v5205_v57, %s5985_s25  ;;  %v5225_v57 = vpack.i.bf16 %v845_v9, %v844_v15  ;;  %v855_v9 = vld [vmem:[#allocation2 + $0x52] sm:$0xff]  ;;  %v5240_v15 = vpack.i.bf16 %v851_v14, %v850_v62  ;;  %v861_v62 = vld [vmem:[#allocation2 + $0x9a] sm:$0xff] }
 0x150   : > { %9333 = vst [vmem:[#allocation56_spill] sm:$0xff] %v6802_v51 }
 0x151   : > { %v6805_v3 = vpop.permute.xlu2 %5041 }
 0x152   : > { %9334 = vst [vmem:[#allocation57_spill] sm:$0xff] %v6805_v3  ;;  %v869_v3 = vld [vmem:[#allocation2 + $0xfa] sm:$0xff] }
 0x153   : > { %5201 = vrot.lane.b32.xlu1 %v5200_v36, %s5985_s25 }
 0x155   : > { %5211 = vrot.lane.b32.xlu0 %v5210_v13, %s5985_s25  ;;  %v6809_v60 = vpop.permute.xlu1 %4991 }
 0x156   : > { %9335 = vst [vmem:[#allocation58_spill] sm:$0xff] %v6809_v60  ;;  %v5230_v60 = vpack.i.bf16 %v847_v8, %v846_v19 }
 0x157   : > { %v6811_v51 = vpop.permute.xlu0 %5001  ;;  %5221 = vrot.lane.b32.xlu2 %v5220_v18, %s5985_s25  ;;  %v854_v18 = vld [vmem:[#allocation2 + $0x4a] sm:$0xff] }
 0x158   : > { %9336 = vst [vmem:[#allocation59_spill] sm:$0xff] %v6811_v51  ;;  %v5250_v31 = vpack.i.bf16 %v855_v9, %v854_v18  ;;  %v858_v18 = vld [vmem:[#allocation2 + $0x7a] sm:$0xff]  ;;  %v859_v9 = vld [vmem:[#allocation2 + $0x82] sm:$0xff]  ;;  %v863_v51 = vld [vmem:[#allocation2 + $0xb2] sm:$0xff] }
 0x159   : > { %v6814_v24 = vpop.permute.xlu2 %5056 }
 0x15a   : > { %9337 = vst [vmem:[#allocation60_spill] sm:$0xff] %v6814_v24  ;;  %v856_v24 = vld [vmem:[#allocation2 + $0x62] sm:$0xff] }
 0x15b   : > { %5216 = vrot.lane.b32.xlu1 %v5215_v25, %s5985_s25  ;;  %v852_v25 = vld [vmem:[#allocation2 + $0x32] sm:$0xff] }
 0x15d   : > { %5226 = vrot.lane.b32.xlu0 %v5225_v57, %s5985_s25  ;;  %v6818_v36 = vpop.permute.xlu1 %5006  ;;  %v853_v57 = vld [vmem:[#allocation2 + $0x3a] sm:$0xff] }
 0x15e   : > { %9338 = vst [vmem:[#allocation61_spill] sm:$0xff] %v6818_v36  ;;  %v5245_v8 = vpack.i.bf16 %v853_v57, %v852_v25  ;;  %v5260_v57 = vpack.i.bf16 %v859_v9, %v858_v18 }
 0x15f   : > { %v6820_v13 = vpop.permute.xlu0 %5016  ;;  %5236 = vrot.lane.b32.xlu2 %v6642_v55, %s5985_s25  ;;  %v860_v55 = vld [vmem:[#allocation2 + $0x92] sm:$0xff] }
 0x160   : > { %9339 = vst [vmem:[#allocation62_spill] sm:$0xff] %v6820_v13  ;;  %v857_v13 = vld [vmem:[#allocation2 + $0x6a] sm:$0xff] }
 0x161   : > { %v6824_v61 = vpop.permute.xlu2 %5071  ;;  %v5255_v14 = vpack.i.bf16 %v857_v13, %v856_v24  ;;  %v867_v24 = vld [vmem:[#allocation2 + $0xe2] sm:$0xff] }
 0x162   : > { %9340 = vst [vmem:[#allocation63_spill] sm:$0xff] %v6824_v61 }
 0x163   : > { %5231 = vrot.lane.b32.xlu1 %v5230_v60, %s5985_s25  ;;  %v5265_v60 = vpack.i.bf16 %v861_v62, %v860_v55  ;;  %v864_v55 = vld [vmem:[#allocation2 + $0xc2] sm:$0xff]  ;;  %v865_v62 = vld [vmem:[#allocation2 + $0xca] sm:$0xff] }
 0x164   : > { %v5275_v18 = vpack.i.bf16 %v865_v62, %v864_v55 }
 0x165   : > { %5241 = vrot.lane.b32.xlu0 %v5240_v15, %s5985_s25  ;;  %v6828_v36 = vpop.permute.xlu1 %5021  ;;  %s5990_s25 = smov 56  }
 0x166   : > { %9341 = vst [vmem:[#allocation64_spill] sm:$0xff] %v6828_v36  ;;  %v862_v36 = vld [vmem:[#allocation2 + $0xaa] sm:$0xff] }
 0x167   : > { %v6830_v19 = vpop.permute.xlu0 %5031  ;;  %5251 = vrot.lane.b32.xlu2 %v5250_v31, %s5986_s26  ;;  %v866_v31 = vld [vmem:[#allocation2 + $0xda] sm:$0xff]  ;;  %v5270_v13 = vpack.i.bf16 %v863_v51, %v862_v36  ;;  %v873_v51 = vld [vmem:[#allocation2 + $0x12a] sm:$0xff] }
 0x169   : > { %v6833_v61 = vpop.permute.xlu2 %5086 }
 0x16a   : > { %9342 = vst [vmem:[#allocation65_spill] sm:$0xff] %v6833_v61 }
 0x16b   : > { %5246 = vrot.lane.b32.xlu1 %v5245_v8, %s5986_s26  ;;  %v5280_v8 = vpack.i.bf16 %v867_v24, %v866_v31  ;;  %v870_v31 = vld [vmem:[#allocation2 + $0x10a] sm:$0xff]  ;;  %v871_v24 = vld [vmem:[#allocation2 + $0x112] sm:$0xff] }
 0x16c   : > { %v5290_v55 = vpack.i.bf16 %v871_v24, %v870_v31  ;;  %v4689_v31 = vunpack.i.h.bf16 %v6540_v41  ;;  %v4709_v24 = vunpack.i.h.bf16 %v6454_v32 }
 0x16d   : > { %5256 = vrot.lane.b32.xlu0 %v5255_v14, %s5986_s26  ;;  %v6837_v15 = vpop.permute.xlu1 %5036 }
 0x16e   : > { %9343 = vst [vmem:[#allocation66_spill] sm:$0xff] %v6837_v15  ;;  %v868_v15 = vld [vmem:[#allocation2 + $0xf2] sm:$0xff] }
 0x16f   : > { %v6839_v25 = vpop.permute.xlu0 %5046  ;;  %5266 = vrot.lane.b32.xlu2 %v5265_v60, %s5986_s26  ;;  %v872_v60 = vld [vmem:[#allocation2 + $0x122] sm:$0xff]  ;;  %v5285_v36 = vpack.i.bf16 %v869_v3, %v868_v15  ;;  %v879_v3 = vld [vmem:[#allocation2 + $0x172] sm:$0xff] }
 0x171   : > { %v6842_v61 = vpop.permute.xlu2 %5101 }
 0x172   : > { %9344 = vst [vmem:[#allocation67_spill] sm:$0xff] %v6842_v61  ;;  %v874_v61 = vld [vmem:[#allocation2 + $0x13a] sm:$0xff] }
 0x173   : > { %5261 = vrot.lane.b32.xlu1 %v5260_v57, %s5986_s26  ;;  %v5295_v57 = vpack.i.bf16 %v873_v51, %v872_v60  ;;  %v876_v60 = vld [vmem:[#allocation2 + $0x152] sm:$0xff]  ;;  %v877_v51 = vld [vmem:[#allocation2 + $0x15a] sm:$0xff] }
 0x175   : > { %5271 = vrot.lane.b32.xlu0 %v5270_v13, %s5986_s26  ;;  %v6846_v14 = vpop.permute.xlu1 %5051 }
 0x176   : > { %9345 = vst [vmem:[#allocation68_spill] sm:$0xff] %v6846_v14  ;;  %v875_v14 = vld [vmem:[#allocation2 + $0x142] sm:$0xff] }
 0x177   : > { %v6848_v63 = vpop.permute.xlu0 %5061  ;;  %5281 = vrot.lane.b32.xlu2 %v5280_v8, %s5986_s26  ;;  %v878_v8 = vld [vmem:[#allocation2 + $0x16a] sm:$0xff]  ;;  %v5300_v15 = vpack.i.bf16 %v875_v14, %v874_v61  ;;  %v4714_v61 = vunpack.i.h.bf16 %v6486_v59  ;;  %v4713_v14 = vunpack.i.l.bf16 %v6486_v59 }
 0x179   : > { %v6851_v9 = vpop.permute.xlu2 %5116 }
 0x17a   : > { %9346 = vst [vmem:[#allocation69_spill] sm:$0xff] %v6851_v9  ;;  %v4728_v9 = vunpack.i.l.bf16 %v6518_v27 }
 0x17b   : > { %5276 = vrot.lane.b32.xlu1 %v5275_v18, %s5986_s26  ;;  %v5310_v18 = vpack.i.bf16 %v879_v3, %v878_v8  ;;  %v595_v8 = vld [vmem:[#allocation2] sm:$0xff] }
 0x17d   : > { %5286 = vrot.lane.b32.xlu0 %v5285_v36, %s5986_s26  ;;  %v6855_v13 = vpop.permute.xlu1 %5066 }
 0x17e   : > { %9347 = vst [vmem:[#allocation70_spill] sm:$0xff] %v6855_v13  ;;  %v4708_v13 = vunpack.i.l.bf16 %v6454_v32 }
 0x17f   : > { %v6857_v45 = vpop.permute.xlu0 %5076  ;;  %5296 = vrot.lane.b32.xlu2 %v5295_v57, %s5986_s26  ;;  %v4688_v57 = vunpack.i.l.bf16 %v6540_v41 }
 0x180   : > { %v6881_v32 = vsel %vm334_vm0, %v6414_v10, %v4708_v13  ;;  %v4744_v10 = vunpack.i.h.bf16 %v6560_v48 }
 0x181   : > { %v6860_v62 = vpop.permute.xlu2 %5131  ;;  %v6887_v59 = vsel %vm334_vm0, %v595_v8, %v4688_v57  ;;  %v883_v57 = vld [vmem:[#allocation2 + $0x1a2] sm:$0xff]  ;;  %v4773_v8 = vunpack.i.l.bf16 %v6594_v28 }
 0x182   : > { %9348 = vst [vmem:[#allocation71_spill] sm:$0xff] %v6860_v62  ;;  %v5305_v62 = vpack.i.bf16 %v877_v51, %v876_v60  ;;  %v6891_v60 = vsel %vm334_vm0, %v6416_v12, %v4709_v24  ;;  %v4743_v51 = vunpack.i.l.bf16 %v6560_v48  ;;  %v4698_v12 = vunpack.i.l.bf16 %v6572_v39 }
 0x183   : > { %5291 = vrot.lane.b32.xlu1 %v5290_v55, %s5986_s26  ;;  %v596_v55 = vld [vmem:[#allocation2 + $0x8] sm:$0xff]  ;;  %v4699_v24 = vunpack.i.h.bf16 %v6572_v39 }
 0x184   : > { %v6884_v41 = vsel %vm334_vm0, %v596_v55, %v4689_v31  ;;  %v4693_v31 = vunpack.i.l.bf16 %v6574_v7  ;;  %v4703_v55 = vunpack.i.l.bf16 %v6588_v20 }
 0x185   : > { %5301 = vrot.lane.b32.xlu0 %v5300_v15, %s5986_s26  ;;  %v6864_v36 = vpop.permute.xlu1 %5081  ;;  %v4729_v15 = vunpack.i.h.bf16 %v6518_v27  ;;  %v6899_v27 = vsel %vm334_vm0, %v6436_v22, %v4713_v14  ;;  %v6912_v22 = vsel %vm334_vm0, %v6468_v42, %v4728_v9  ;;  %v4704_v14 = vunpack.i.h.bf16 %v6588_v20  ;;  %v9353_v9 = vld [vmem:[#allocation19_spill] sm:$0xff] }
 0x186   : > { %9349 = vst [vmem:[#allocation72_spill] sm:$0xff] %v6864_v36  ;;  %v4719_v42 = vunpack.i.h.bf16 %v6590_v56  ;;  %v6927_v39 = vsel %vm334_vm0, %v9353_v9, %v4744_v10  ;;  %v4774_v10 = vunpack.i.h.bf16 %v6594_v28  ;;  %v9357_v9 = vld [vmem:[#allocation7_spill] sm:$0xff]  ;;  %v9362_v28 = vld [vmem:[#allocation9_spill] sm:$0xff] }
 0x187   : > { %v6872_v3 = vpop.permute.xlu0 %5091  ;;  %5311 = vrot.lane.b32.xlu2 %v5310_v18, %s5986_s26  ;;  %v6895_v18 = vsel %vm334_vm0, %v6438_v23, %v4714_v61  ;;  %v6905_v13 = vsel %vm334_vm0, %v6470_v46, %v4729_v15  ;;  %v882_v23 = vld [vmem:[#allocation2 + $0x19a] sm:$0xff]  ;;  %v4759_v61 = vunpack.i.h.bf16 %v6582_v49  ;;  %v4758_v46 = vunpack.i.l.bf16 %v6582_v49 }
 0x188   : > { %9350 = vst [vmem:[#allocation73_spill] sm:$0xff] %v6872_v3  ;;  %v9356_v3 = vld [vmem:[#allocation4_spill] sm:$0xff] }
 0x189   : > { %v6877_v36 = vpop.permute.xlu2 %5146  ;;  %v1910_v17 = vsel %vm334_vm0, %v9356_v3, %v4693_v31  ;;  %v6963_v31 = vsel %vm334_vm0, %v9362_v28, %v4704_v14  ;;  %v4734_v14 = vunpack.i.h.bf16 %v6602_v16  ;;  %v4788_v28 = vunpack.i.l.bf16 %v6606_v44 }
 0x18a   : > { %9351 = vst [vmem:[#allocation74_spill] sm:$0xff] %v6877_v36  ;;  %v9355_v36 = vld [vmem:[#allocation6_spill] sm:$0xff] }
 0x18b   : > { %5306 = vrot.lane.b32.xlu1 %v5305_v62, %s5986_s26  ;;  %v4694_v62 = vunpack.i.h.bf16 %v6574_v7  ;;  %v4718_v7 = vunpack.i.l.bf16 %v6590_v56  ;;  %v6939_v20 = vsel %vm334_vm0, %v9355_v36, %v4698_v12  ;;  %v6946_v56 = vsel %vm334_vm0, %v9357_v9, %v4699_v24  ;;  %v9361_v12 = vld [vmem:[#allocation24_spill] sm:$0xff] }
 0x18c   : > { %v6959_v3 = vsel %vm334_vm0, %v9361_v12, %v4758_v46  ;;  %v9364_v24 = vld [vmem:[#allocation8_spill] sm:$0xff]  ;;  %v6979_v46 = vsel %vm380_vm3, %v1910_v17, %v4773_v8  ;;  %v4733_v12 = vunpack.i.l.bf16 %v6602_v16  ;;  %v4738_v17 = vunpack.i.l.bf16 %v6612_v1 }
 0x18d   : > { %5316 = vrot.lane.b32.xlu0 %v6714_v21, %s5986_s26  ;;  %v6919_v48 = vpop.permute.xlu1 %5096  ;;  %v5320_v21 = vpack.i.bf16 %v883_v57, %v882_v23  ;;  %v1911_v23 = vsel %vm334_vm0, %v9358_v0, %v4694_v62  ;;  %v9359_v57 = vld [vmem:[#allocation25_spill] sm:$0xff]  ;;  %v6967_v9 = vsel %vm334_vm0, %v9364_v24, %v4703_v55  ;;  %9369 = vst [vmem:[#allocation7_spill] sm:$0xff] %v6979_v46  ;;  %v4749_v8 = vunpack.i.h.bf16 %v6614_v33 }
 0x18e   : > { %9352 = vst [vmem:[#allocation75_spill] sm:$0xff] %v6919_v48  ;;  %v9354_v48 = vld [vmem:[#allocation18_spill] sm:$0xff]  ;;  %v9366_v0 = vld [vmem:[#allocation13_spill] sm:$0xff]  ;;  %v6984_v55 = vsel %vm380_vm3, %v1911_v23, %v4774_v10  ;;  %v4754_v10 = vunpack.i.h.bf16 %v6624_v11  ;;  %v9372_v23 = vld [vmem:[#allocation28_spill] sm:$0xff] }
 0x18f   : > { %v6931_v15 = vpop.permute.xlu0 %5106  ;;  %v6935_v49 = vsel %vm334_vm0, %v9354_v48, %v4743_v51  ;;  %v6952_v51 = vsel %vm334_vm0, %v9359_v57, %v4759_v61  ;;  %v4724_v48 = vunpack.i.h.bf16 %v6600_v6  ;;  %9363 = vst [vmem:[#allocation18_spill] sm:$0xff] %v6963_v31  ;;  %v6971_v62 = vsel %vm334_vm0, %v9366_v0, %v4719_v42  ;;  %v9368_v61 = vld [vmem:[#allocation12_spill] sm:$0xff]  ;;  %v9374_v31 = vld [vmem:[#allocation17_spill] sm:$0xff] }
 0x190   : > { %9365 = vst [vmem:[#allocation6_spill] sm:$0xff] %v6967_v9  ;;  %v6975_v57 = vsel %vm334_vm0, %v9368_v61, %v4718_v7  ;;  %v4789_v42 = vunpack.i.h.bf16 %v6606_v44  ;;  %v9371_v7 = vld [vmem:[#allocation11_spill] sm:$0xff]  ;;  %v4804_v16 = vunpack.i.h.bf16 %v9372_v23  ;;  %v4803_v61 = vunpack.i.l.bf16 %v9372_v23  ;;  %v9373_v9 = vld [vmem:[#allocation10_spill] sm:$0xff] }
 0x191   : > { %v6955_v36 = vpop.permute.xlu2 %5161  ;;  %9367 = vst [vmem:[#allocation4_spill] sm:$0xff] %v6971_v62  ;;  %v1923_v24 = vsel %vm334_vm0, %v9371_v7, %v4724_v48  ;;  %v7002_v48 = vsel %vm334_vm0, %v9374_v31, %v4734_v14  ;;  %v9376_v7 = vld [vmem:[#allocation29_spill] sm:$0xff]  ;;  %v9380_v14 = vld [vmem:[#allocation14_spill] sm:$0xff] }
 0x192   : > { %9360 = vst [vmem:[#allocation19_spill] sm:$0xff] %v6955_v36  ;;  %v4723_v36 = vunpack.i.l.bf16 %v6600_v6  ;;  %v4739_v6 = vunpack.i.h.bf16 %v6612_v1  ;;  %v4753_v1 = vunpack.i.l.bf16 %v6624_v11  ;;  %v7014_v23 = vsel %vm380_vm3, %v6891_v60, %v4789_v42  ;;  %v9383_v60 = vld [vmem:[#allocation22_spill] sm:$0xff] }
 0x193   : > { %5321 = vrot.lane.b32.xlu1 %v5320_v21, %s5986_s26  ;;  %9370 = vst [vmem:[#allocation5_spill] sm:$0xff] %v6984_v55  ;;  %v4748_v21 = vunpack.i.l.bf16 %v6614_v33  ;;  %v4764_v55 = vunpack.i.h.bf16 %v9376_v7  ;;  %v9378_v33 = vld [vmem:[#allocation16_spill] sm:$0xff]  ;;  %v4763_v31 = vunpack.i.l.bf16 %v9376_v7 }
 0x194   : > { %v1922_v44 = vsel %vm334_vm0, %v9373_v9, %v4723_v36  ;;  %9375 = vst [vmem:[#allocation25_spill] sm:$0xff] %v7002_v48  ;;  %v7010_v62 = vsel %vm334_vm0, %v9378_v33, %v4733_v12  ;;  %v7018_v36 = vsel %vm380_vm3, %v6881_v32, %v4788_v28  ;;  %v9379_v9 = vld [vmem:[#allocation15_spill] sm:$0xff]  ;;  %v9384_v32 = vld [vmem:[#allocation21_spill] sm:$0xff]  ;;  %v9387_v7 = vld [vmem:[#allocation20_spill] sm:$0xff] }
 0x195   : > { %v5112_v0 = vpop.permute.xlu1 %5111  ;;  %v1929_v11 = vsel %vm334_vm0, %v9379_v9, %v4739_v6  ;;  %v9381_v48 = vld [vmem:[#allocation23_spill] sm:$0xff]  ;;  %v7033_v42 = vsel %vm334_vm0, %v9383_v60, %v4748_v21  ;;  %v7037_v28 = vsel %vm334_vm0, %v9384_v32, %v4754_v10  ;;  %v7040_v6 = vsel %vm380_vm3, %v1923_v24, %v4804_v16  ;;  %v9391_v10 = vld [vmem:[#allocation26_spill] sm:$0xff] }
 0x196   : > { %v7027_v12 = vsel %vm334_vm0, %v9381_v48, %v4749_v8  ;;  %9385 = vst [vmem:[#allocation8_spill] sm:$0xff] %v7040_v6  ;;  %v7047_v8 = vsel %vm334_vm0, %v9387_v7, %v4753_v1  ;;  %v9389_v48 = vld [vmem:[#allocation27_spill] sm:$0xff]  ;;  %v4794_v21 = vunpack.i.h.bf16 %v6652_v50  ;;  %v7057_v60 = vsel %vm334_vm0, %v9391_v10, %v4763_v31  ;;  %v9393_v31 = vld [vmem:[#allocation30_spill] sm:$0xff] }
 0x197   : > { %v7006_v46 = vpop.permute.xlu0 %5121  ;;  %9388 = vst [vmem:[#allocation12_spill] sm:$0xff] %v7047_v8  ;;  %v7051_v9 = vsel %vm334_vm0, %v9389_v48, %v4764_v55  ;;  %v4819_v24 = vunpack.i.h.bf16 %v6630_v29  ;;  %v4874_v16 = vunpack.i.h.bf16 %v6724_v38  ;;  %v4818_v1 = vunpack.i.l.bf16 %v6630_v29 }
 0x198   : > { %9377 = vst [vmem:[#allocation24_spill] sm:$0xff] %v7006_v46  ;;  %v1928_v46 = vsel %vm334_vm0, %v9380_v14, %v4738_v17  ;;  %v7043_v17 = vsel %vm380_vm3, %v1922_v44, %v4803_v61  ;;  %v4793_v14 = vunpack.i.l.bf16 %v6652_v50  ;;  %v4873_v61 = vunpack.i.l.bf16 %v6724_v38 }
 0x199   : > { %v7029_v33 = vpop.permute.xlu2 %5176  ;;  %9386 = vst [vmem:[#allocation13_spill] sm:$0xff] %v7043_v17  ;;  %v4769_v44 = vunpack.i.h.bf16 %v6636_v34  ;;  %v4954_v55 = vunpack.i.h.bf16 %v6742_v26  ;;  %v4953_v32 = vunpack.i.l.bf16 %v6742_v26  ;;  %v4768_v50 = vunpack.i.l.bf16 %v6636_v34 }
 0x19a   : > { %9382 = vst [vmem:[#allocation9_spill] sm:$0xff] %v7029_v33  ;;  %v4779_v48 = vunpack.i.h.bf16 %v9393_v31  ;;  %v5034_v10 = vunpack.i.h.bf16 %v6830_v19  ;;  %v5033_v8 = vunpack.i.l.bf16 %v6830_v19  ;;  %v1951_v38 = vsel %vm380_vm3, %v6895_v18, %v4794_v21 }
 0x19b   : > { %9390 = vst [vmem:[#allocation11_spill] sm:$0xff] %v7051_v9  ;;  %v1950_v29 = vsel %vm380_vm3, %v6899_v27, %v4793_v14  ;;  %v5114_v33 = vunpack.i.h.bf16 %v5112_v0  ;;  %v5113_v17 = vunpack.i.l.bf16 %v5112_v0  ;;  %v4809_v26 = vunpack.i.h.bf16 %v6664_v53 }
 0x19c   : > { %9392 = vst [vmem:[#allocation28_spill] sm:$0xff] %v7057_v60  ;;  %v1983_v34 = vsel %vm1972_vm4, %v1950_v29, %v4873_v61  ;;  %v1984_v9 = vsel %vm1972_vm4, %v1951_v38, %v4874_v16  ;;  %v7109_v38 = vsel %vm380_vm3, %v1928_v46, %v4818_v1  ;;  %v5049_v29 = vunpack.i.h.bf16 %v6839_v25 }
 0x19d   : > { %v7066_v7 = vpop.permute.xlu1 %5126  ;;  %v2016_v60 = vsel %vm2005_vm5, %v1983_v34, %v4953_v32  ;;  %v2017_v19 = vsel %vm2005_vm5, %v1984_v9, %v4954_v55  ;;  %v4889_v32 = vunpack.i.h.bf16 %v6736_v4  ;;  %v4888_v9 = vunpack.i.l.bf16 %v6736_v4 }
 0x19e   : > { %v2049_v27 = vsel %vm2038_vm6, %v2016_v60, %v5033_v8  ;;  %v2050_v0 = vsel %vm2038_vm6, %v2017_v19, %v5034_v10  ;;  %v7097_v60 = vsel %vm380_vm3, %v1929_v11, %v4819_v24  ;;  %v7106_v4 = vsel %vm380_vm3, %v6884_v41, %v4769_v44 }
 0x19f   : > { %v7076_v6 = vpop.permute.xlu0 %5136  ;;  %v2082_v61 = vsel %vm2071_vm7, %v2049_v27, %v5113_v17  ;;  %v2083_v16 = vsel %vm2071_vm7, %v2050_v0, %v5114_v33  ;;  %v4969_v17 = vunpack.i.h.bf16 %v6754_v52  ;;  %v4968_v33 = vunpack.i.l.bf16 %v6754_v52 }
 0x1a0   : > { %9394 = vst [vmem:[#allocation10_spill] sm:$0xff] %v7076_v6  ;;  %v4808_v6 = vunpack.i.l.bf16 %v6664_v53  ;;  %v4778_v53 = vunpack.i.l.bf16 %v9393_v31  ;;  %v5048_v11 = vunpack.i.l.bf16 %v6839_v25  ;;  %v1957_v24 = vsel %vm380_vm3, %v6905_v13, %v4809_v26 }
 0x1a1   : > { %v5192_v18 = vpop.permute.xlu2 %5191  ;;  %v5129_v52 = vunpack.i.h.bf16 %v7066_v7  ;;  %v5128_v34 = vunpack.i.l.bf16 %v7066_v7  ;;  %v7123_v41 = vsel %vm380_vm3, %v6887_v59, %v4768_v50  ;;  %v7127_v46 = vsel %vm380_vm3, %v6946_v56, %v4779_v48 }
 0x1a2   : > { %v5194_v21 = vunpack.i.h.bf16 %v5192_v18  ;;  %v5193_v14 = vunpack.i.l.bf16 %v5192_v18  ;;  %v1956_v31 = vsel %vm380_vm3, %v6912_v22, %v4808_v6  ;;  %v1990_v13 = vsel %vm1972_vm4, %v1957_v24, %v4889_v32 }
 0x1a3   : > { %v1989_v25 = vsel %vm1972_vm4, %v1956_v31, %v4888_v9  ;;  %v7133_v22 = vsel %vm380_vm3, %v6939_v20, %v4778_v53  ;;  %v4834_v6 = vunpack.i.h.bf16 %v6644_v43  ;;  %v2023_v1 = vsel %vm2005_vm5, %v1990_v13, %v4969_v17  ;;  %v9423_v17 = vld [vmem:[#allocation46_spill] sm:$0xff] }
 0x1a4   : > { %v7091_v55 = vsel %vm2104_vm8, %v2082_v61, %v5193_v14  ;;  %v7094_v8 = vsel %vm2104_vm8, %v2083_v16, %v5194_v21  ;;  %v2022_v44 = vsel %vm2005_vm5, %v1989_v25, %v4968_v33  ;;  %v2056_v56 = vsel %vm2038_vm6, %v2023_v1, %v5049_v29 }
 0x1a5   : > { %v7102_v10 = vpop.permute.xlu1 %5141  ;;  %v2055_v7 = vsel %vm2038_vm6, %v2022_v44, %v5048_v11  ;;  %v4824_v26 = vunpack.i.h.bf16 %v6676_v54  ;;  %v4823_v18 = vunpack.i.l.bf16 %v6676_v54  ;;  %v2089_v27 = vsel %vm2071_vm7, %v2056_v56, %v5129_v52 }
 0x1a6   : > { %v2088_v20 = vsel %vm2071_vm7, %v2055_v7, %v5128_v34  ;;  %v4904_v0 = vunpack.i.h.bf16 %v6748_v30  ;;  %v4903_v21 = vunpack.i.l.bf16 %v6748_v30  ;;  %v7154_v16 = vsel %vm380_vm3, %v7037_v28, %v4834_v6 }
 0x1a7   : > { %v7119_v19 = vpop.permute.xlu0 %5151  ;;  %v4984_v32 = vunpack.i.h.bf16 %v6766_v37  ;;  %v4983_v9 = vunpack.i.l.bf16 %v6766_v37  ;;  %v5064_v33 = vunpack.i.h.bf16 %v6848_v63  ;;  %v5063_v29 = vunpack.i.l.bf16 %v6848_v63 }
 0x1a8   : > { %v1963_v28 = vsel %vm380_vm3, %v6927_v39, %v4824_v26  ;;  %v1962_v11 = vsel %vm380_vm3, %v6935_v49, %v4823_v18  ;;  %v5144_v24 = vunpack.i.h.bf16 %v7102_v10  ;;  %v5143_v37 = vunpack.i.l.bf16 %v7102_v10 }
 0x1a9   : > { %v5207_v59 = vpop.permute.xlu2 %5206  ;;  %v4849_v52 = vunpack.i.h.bf16 %v6656_v40  ;;  %v4839_v34 = vunpack.i.h.bf16 %v6688_v2  ;;  %v1995_v25 = vsel %vm1972_vm4, %v1962_v11, %v4903_v21  ;;  %v1996_v63 = vsel %vm1972_vm4, %v1963_v28, %v4904_v0 }
 0x1aa   : > { %v5209_v50 = vunpack.i.h.bf16 %v5207_v59  ;;  %v5208_v48 = vunpack.i.l.bf16 %v5207_v59  ;;  %v4838_v13 = vunpack.i.l.bf16 %v6688_v2  ;;  %v4918_v39 = vunpack.i.l.bf16 %v6760_v58 }
 0x1ab   : > { %v2028_v49 = vsel %vm2005_vm5, %v1995_v25, %v4983_v9  ;;  %v2029_v6 = vsel %vm2005_vm5, %v1996_v63, %v4984_v32  ;;  %v4848_v56 = vunpack.i.l.bf16 %v6656_v40  ;;  %v4999_v26 = vunpack.i.h.bf16 %v6777_v5  ;;  %v9396_v25 = vld [vmem:[#allocation49_spill] sm:$0xff] }
 0x1ac   : > { %v7147_v14 = vsel %vm2104_vm8, %v2088_v20, %v5208_v48  ;;  %v7150_v61 = vsel %vm2104_vm8, %v2089_v27, %v5209_v50  ;;  %v2061_v10 = vsel %vm2038_vm6, %v2028_v49, %v5063_v29  ;;  %v2062_v1 = vsel %vm2038_vm6, %v2029_v6, %v5064_v33  ;;  %v2190_v20 = vld [vmem:[%s9174_s3 + $0x10] sm:$0x3] }
 0x1ad   : > { %v7159_v53 = vpop.permute.xlu1 %5156  ;;  %v4919_v50 = vunpack.i.h.bf16 %v6760_v58  ;;  %v2094_v48 = vsel %vm2071_vm7, %v2061_v10, %v5143_v37  ;;  %v2095_v2 = vsel %vm2071_vm7, %v2062_v1, %v5144_v24  ;;  %v4998_v18 = vunpack.i.l.bf16 %v6777_v5  ;;  %v9397_v49 = vld [vmem:[#allocation54_spill] sm:$0xff] }
 0x1ae   : > { %v1969_v58 = vsel %vm380_vm3, %v6952_v51, %v4839_v34  ;;  %v1968_v21 = vsel %vm380_vm3, %v6959_v3, %v4838_v13  ;;  %v4869_v32 = vunpack.i.h.bf16 %v6712_v47  ;;  %v2200_v5 = vunpack.c.l.b16 %v2190_v20 }
 0x1af   : > { %v7171_v31 = vpop.permute.xlu0 %5166  ;;  %v4868_v33 = vunpack.i.l.bf16 %v6712_v47  ;;  %v2001_v29 = vsel %vm1972_vm4, %v1968_v21, %v4918_v39  ;;  %v5079_v28 = vunpack.i.h.bf16 %v6857_v45  ;;  %v5078_v11 = vunpack.i.l.bf16 %v6857_v45 }
 0x1b0   : > { %v2002_v24 = vsel %vm1972_vm4, %v1969_v58, %v4919_v50  ;;  %v5159_v51 = vunpack.i.h.bf16 %v7159_v53  ;;  %v5158_v37 = vunpack.i.l.bf16 %v7159_v53  ;;  %v2203_v34 = vpack.c.b16 %v2200_v5, %v2200_v5  ;;  %v4650_v50 = vld [vmem:[%s9174_s3 + $0x8] sm:$0xff] }
 0x1b1   : > { %v5222_v44 = vpop.permute.xlu2 %5221  ;;  %v4949_v63 = vunpack.i.h.bf16 %v9396_v25  ;;  %v2034_v13 = vsel %vm2005_vm5, %v2001_v29, %v4998_v18  ;;  %v2035_v47 = vsel %vm2005_vm5, %v2002_v24, %v4999_v26  ;;  %v4948_v39 = vunpack.i.l.bf16 %v9396_v25  ;;  %v9398_v29 = vld [vmem:[#allocation31_spill] sm:$0xff] }
 0x1b2   : > { %v5224_v59 = vunpack.i.h.bf16 %v5222_v44  ;;  %v5223_v7 = vunpack.i.l.bf16 %v5222_v44  ;;  %v5029_v45 = vunpack.i.h.bf16 %v9397_v49  ;;  %v5028_v6 = vunpack.i.l.bf16 %v9397_v49  ;;  %v9400_v49 = vld [vmem:[#allocation34_spill] sm:$0xff] }
 0x1b3   : > { %v2257_v10 = vsel %vm2255_vm9, %v2203_v34, 0  ;;  %v2067_v53 = vsel %vm2038_vm6, %v2034_v13, %v5078_v11  ;;  %v2068_v1 = vsel %vm2038_vm6, %v2035_v47, %v5079_v28  ;;  %v1982_v20 = vsel %vm1972_vm4, %v7014_v23, %v4869_v32  ;;  %v9399_v34 = vld [vmem:[#allocation33_spill] sm:$0xff] }
 0x1b4   : > { %v7193_v27 = vsel %vm2104_vm8, %v2094_v48, %v5223_v7  ;;  %v7196_v0 = vsel %vm2104_vm8, %v2095_v2, %v5224_v59  ;;  %2264 = vmatpush.bf16.msra.mxu0 %v2257_v10  ;;  %4655 = vmatpush.bf16.msra.mxu3 %v2257_v10  ;;  %v5109_v48 = vunpack.i.h.bf16 %v6931_v15  ;;  %v5108_v2 = vunpack.i.l.bf16 %v6931_v15  ;;  %v9401_v10 = vld [vmem:[#allocation4_spill] sm:$0xff] }
 0x1b5   : > { %v7203_v9 = vpop.permute.xlu1 %5171  ;;  %v2100_v26 = vsel %vm2071_vm7, %v2067_v53, %v5158_v37  ;;  %v2101_v18 = vsel %vm2071_vm7, %v2068_v1, %v5159_v51  ;;  %v1981_v58 = vsel %vm1972_vm4, %v7018_v36, %v4868_v33  ;;  %v4799_v28 = vunpack.i.h.bf16 %v9398_v29 }
 0x1b6   : > { %v4798_v15 = vunpack.i.l.bf16 %v9398_v29  ;;  %v2014_v11 = vsel %vm2005_vm5, %v1981_v58, %v4948_v39  ;;  %v2015_v24 = vsel %vm2005_vm5, %v1982_v20, %v4949_v63  ;;  %v7250_v37 = vsel %vm1972_vm4, %v7106_v4, %v4849_v52  ;;  %v9404_v20 = vld [vmem:[#allocation37_spill] sm:$0xff] }
 0x1b7   : > { %v7212_v3 = vpop.permute.xlu0 %5181  ;;  %v2047_v23 = vsel %vm2038_vm6, %v2014_v11, %v5028_v6  ;;  %v2048_v32 = vsel %vm2038_vm6, %v2015_v24, %v5029_v45  ;;  %v4814_v25 = vunpack.i.h.bf16 %v9399_v34  ;;  %v4813_v39 = vunpack.i.l.bf16 %v9399_v34  ;;  %v4649_v6 = vld [vmem:[%s9174_s3] sm:$0xff] }
 0x1b8   : > { %9395 = vst [vmem:[#allocation17_spill] sm:$0xff] %v7212_v3  ;;  %2265 = vmatpush.bf16.msra.mxu0 %v4650_v50  ;;  %4656 = vmatpush.bf16.msra.mxu3 %v4650_v50  ;;  %v2080_v13 = vsel %vm2071_vm7, %v2047_v23, %v5108_v2  ;;  %v2081_v63 = vsel %vm2071_vm7, %v2048_v32, %v5109_v48  ;;  %v4878_v45 = vunpack.i.l.bf16 %v9400_v49  ;;  %v9402_v50 = vld [vmem:[#allocation32_spill] sm:$0xff]  ;;  %v4844_v40 = vunpack.i.h.bf16 %v9404_v20 }
 0x1b9   : > { %v5237_v44 = vpop.permute.xlu2 %5236  ;;  %v1952_v52 = vsel %vm380_vm3, %v6975_v57, %v4798_v15  ;;  %v1953_v53 = vsel %vm380_vm3, %v9401_v10, %v4799_v28  ;;  %v7272_v1 = vsel %vm1972_vm4, %v7123_v41, %v4848_v56  ;;  %v4843_v58 = vunpack.i.l.bf16 %v9404_v20  ;;  %v9405_v41 = vld [vmem:[#allocation36_spill] sm:$0xff]  ;;  %v9406_v15 = vld [vmem:[#allocation25_spill] sm:$0xff] }
 0x1ba   : > { %v5239_v59 = vunpack.i.h.bf16 %v5237_v44  ;;  %v5238_v7 = vunpack.i.l.bf16 %v5237_v44  ;;  %v4894_v56 = vunpack.i.h.bf16 %v9405_v41  ;;  %v4893_v29 = vunpack.i.l.bf16 %v9405_v41  ;;  %v9414_v41 = vld [vmem:[#allocation39_spill] sm:$0xff]  ;;  %v9417_v2 = vld [vmem:[#allocation52_spill] sm:$0xff] }
 0x1bb   : > { %v1958_v28 = vsel %vm380_vm3, %v7010_v62, %v4813_v39  ;;  %v1959_v11 = vsel %vm380_vm3, %v9406_v15, %v4814_v25  ;;  %v7290_v24 = vsel %vm1972_vm4, %v1952_v52, %v4878_v45  ;;  %v9410_v45 = vld [vmem:[#allocation44_spill] sm:$0xff]  ;;  %v4964_v48 = vunpack.i.h.bf16 %v9417_v2 }
 0x1bc   : > { %v7235_v21 = vsel %vm2104_vm8, %v2100_v26, %v5238_v7  ;;  %v7238_v5 = vsel %vm2104_vm8, %v2101_v18, %v5239_v59  ;;  %v4879_v59 = vunpack.i.h.bf16 %v9400_v49  ;;  %v9403_v26 = vld [vmem:[#allocation35_spill] sm:$0xff]  ;;  %2266 = vmatpush.bf16.msra.mxu0 %v4649_v6  ;;  %4657 = vmatpush.bf16.msra.mxu3 %v4649_v6  ;;  %v4899_v6 = vunpack.i.h.bf16 %v9410_v45  ;;  %v9411_v52 = vld [vmem:[#allocation28_spill] sm:$0xff] }
 0x1bd   : > { %v5187_v51 = vpop.permute.xlu1 %5186  ;;  %v4829_v18 = vunpack.i.h.bf16 %v9403_v26  ;;  %v4828_v57 = vunpack.i.l.bf16 %v9403_v26  ;;  %v1970_v10 = vsel %vm380_vm3, %v9411_v52, %v4843_v58  ;;  %v7316_v26 = vsel %vm1972_vm4, %v1958_v28, %v4893_v29  ;;  %v9415_v28 = vld [vmem:[#allocation8_spill] sm:$0xff] }
 0x1be   : > { %v5189_v36 = vunpack.i.h.bf16 %v5187_v51  ;;  %v5188_v33 = vunpack.i.l.bf16 %v5187_v51  ;;  %v9407_v51 = vld [vmem:[#allocation38_spill] sm:$0xff]  ;;  %v7294_v32 = vsel %vm1972_vm4, %v1953_v53, %v4879_v59  ;;  %v9412_v53 = vld [vmem:[#allocation11_spill] sm:$0xff]  ;;  %v4929_v54 = vunpack.i.h.bf16 %v9423_v17 }
 0x1bf   : > { %v7255_v47 = vpop.permute.xlu0 %5196  ;;  %v4853_v23 = vunpack.i.l.bf16 %v9407_v51  ;;  %v7303_v62 = vsel %vm380_vm3, %v7033_v42, %v4828_v57  ;;  %v7307_v25 = vsel %vm380_vm3, %v7027_v12, %v4829_v18  ;;  %v1971_v59 = vsel %vm380_vm3, %v9412_v53, %v4844_v40  ;;  %v9413_v18 = vld [vmem:[#allocation7_spill] sm:$0xff] }
 0x1c0   : > { %v2113_v44 = vsel %vm2104_vm8, %v2080_v13, %v5188_v33  ;;  %v2114_v4 = vsel %vm2104_vm8, %v2081_v63, %v5189_v36  ;;  %v9408_v36 = vld [vmem:[#allocation41_spill] sm:$0xff]  ;;  %v9409_v13 = vld [vmem:[#allocation42_spill] sm:$0xff]  ;;  %v7319_v42 = vsel %vm1972_vm4, %v1959_v11, %v4894_v56  ;;  %v4898_v11 = vunpack.i.l.bf16 %v9410_v45 }
 0x1c1   : > { %v7275_v7 = vpop.permute.xlu2 %5251  ;;  %v4924_v33 = vunpack.i.h.bf16 %v9408_v36  ;;  %v4923_v34 = vunpack.i.l.bf16 %v9408_v36  ;;  %v4884_v63 = vunpack.i.h.bf16 %v9409_v13  ;;  %v4883_v39 = vunpack.i.l.bf16 %v9409_v13  ;;  %v9416_v13 = vld [vmem:[#allocation13_spill] sm:$0xff] }
 0x1c2   : > { %v7326_v20 = vsel %vm1972_vm4, %v9413_v18, %v4853_v23  ;;  %v1994_v23 = vsel %vm1972_vm4, %v7097_v60, %v4899_v6  ;;  %v1993_v60 = vsel %vm1972_vm4, %v7109_v38, %v4898_v11 }
 0x1c3   : > { %v2003_v40 = vsel %vm1972_vm4, %v1970_v10, %v4923_v34  ;;  %v2004_v29 = vsel %vm1972_vm4, %v1971_v59, %v4924_v33  ;;  %v1988_v56 = vsel %vm1972_vm4, %v9415_v28, %v4884_v63  ;;  %v1987_v52 = vsel %vm1972_vm4, %v9416_v13, %v4883_v39  ;;  %v9418_v10 = vld [vmem:[#allocation55_spill] sm:$0xff]  ;;  %v9419_v59 = vld [vmem:[#allocation57_spill] sm:$0xff] }
 0x1c4   : > { %v4963_v34 = vunpack.i.l.bf16 %v9417_v2  ;;  %v4979_v33 = vunpack.i.h.bf16 %v9418_v10  ;;  %v4978_v63 = vunpack.i.l.bf16 %v9418_v10  ;;  %v5043_v45 = vunpack.i.l.bf16 %v9419_v59 }
 0x1c5   : > { %v7299_v49 = vpop.permute.xlu1 %5201  ;;  %v5044_v6 = vunpack.i.h.bf16 %v9419_v59  ;;  %v2021_v10 = vsel %vm2005_vm5, %v1988_v56, %v4964_v48 }
 0x1c6   : > { %v5204_v11 = vunpack.i.h.bf16 %v7299_v49  ;;  %v5203_v59 = vunpack.i.l.bf16 %v7299_v49  ;;  %v2026_v58 = vsel %vm2005_vm5, %v1993_v60, %v4978_v63 }
 0x1c7   : > { %v7321_v57 = vpop.permute.xlu0 %5211 }
 0x1c9   : > { %v5267_v36 = vpop.permute.xlu2 %5266 }
 0x1ca   : > { %v5269_v53 = vunpack.i.h.bf16 %v5267_v36  ;;  %v5268_v18 = vunpack.i.l.bf16 %v5267_v36  ;;  %v9422_v36 = vld [vmem:[#allocation59_spill] sm:$0xff] }
 0x1cb   : > { %v5003_v2 = vunpack.i.l.bf16 %v9422_v36  ;;  %v5004_v38 = vunpack.i.h.bf16 %v9422_v36 }
 0x1cc   : > { %v7345_v28 = vsel %vm2137_vm10, %v2113_v44, %v5268_v18  ;;  %v7348_v39 = vsel %vm2137_vm10, %v2114_v4, %v5269_v53  ;;  %v4928_v44 = vunpack.i.l.bf16 %v9423_v17  ;;  %v9424_v18 = vld [vmem:[#allocation24_spill] sm:$0xff]  ;;  %v2020_v53 = vsel %vm2005_vm5, %v1987_v52, %v4963_v34 }
 0x1cd   : > { %9420 = vst [vmem:[#allocation29_spill] sm:$0xff] %v7345_v28  ;;  %v7354_v13 = vpop.permute.xlu1 %5216  ;;  %v5124_v30 = vunpack.i.h.bf16 %v9424_v18  ;;  %v5123_v4 = vunpack.i.l.bf16 %v9424_v18  ;;  %v2027_v17 = vsel %vm2005_vm5, %v1994_v23, %v4979_v33  ;;  %v2053_v12 = vsel %vm2038_vm6, %v2020_v53, %v5043_v45  ;;  %v9425_v34 = vld [vmem:[#allocation60_spill] sm:$0xff] }
 0x1ce   : > { %9421 = vst [vmem:[#allocation16_spill] sm:$0xff] %v7348_v39  ;;  %v2054_v18 = vsel %vm2038_vm6, %v2021_v10, %v5044_v6  ;;  %v2036_v52 = vsel %vm2005_vm5, %v2003_v40, %v5003_v2  ;;  %v5059_v36 = vunpack.i.h.bf16 %v9425_v34  ;;  %v5058_v28 = vunpack.i.l.bf16 %v9425_v34  ;;  %v9426_v23 = vld [vmem:[#allocation72_spill] sm:$0xff]  ;;  %v9427_v6 = vld [vmem:[#allocation19_spill] sm:$0xff] }
 0x1cf   : > { %v7366_v15 = vpop.permute.xlu0 %5226  ;;  %v2086_v49 = vsel %vm2071_vm7, %v2053_v12, %v5123_v4  ;;  %v2087_v3 = vsel %vm2071_vm7, %v2054_v18, %v5124_v30  ;;  %v2037_v63 = vsel %vm2005_vm5, %v2004_v29, %v5004_v38  ;;  %v5084_v33 = vunpack.i.h.bf16 %v9426_v23  ;;  %v9430_v38 = vld [vmem:[#allocation61_spill] sm:$0xff] }
 0x1d0   : > { %v2119_v45 = vsel %vm2104_vm8, %v2086_v49, %v5203_v59  ;;  %v2120_v60 = vsel %vm2104_vm8, %v2087_v3, %v5204_v11  ;;  %v5083_v40 = vunpack.i.l.bf16 %v9426_v23  ;;  %v5164_v2 = vunpack.i.h.bf16 %v9427_v6  ;;  %v9431_v49 = vld [vmem:[#allocation65_spill] sm:$0xff] }
 0x1d1   : > { %v5282_v39 = vpop.permute.xlu2 %5281  ;;  %v5163_v30 = vunpack.i.l.bf16 %v9427_v6  ;;  %v5009_v11 = vunpack.i.h.bf16 %v9430_v38  ;;  %v5008_v59 = vunpack.i.l.bf16 %v9430_v38  ;;  %v2059_v18 = vsel %vm2038_vm6, %v2026_v58, %v5058_v28 }
 0x1d2   : > { %v5284_v48 = vunpack.i.h.bf16 %v5282_v39  ;;  %v5283_v56 = vunpack.i.l.bf16 %v5282_v39  ;;  %v9429_v39 = vld [vmem:[#allocation10_spill] sm:$0xff]  ;;  %v2060_v34 = vsel %vm2038_vm6, %v2027_v17, %v5059_v36  ;;  %v5219_v23 = vunpack.i.h.bf16 %v7354_v13 }
 0x1d3   : > { %v5139_v29 = vunpack.i.h.bf16 %v9429_v39  ;;  %v5138_v4 = vunpack.i.l.bf16 %v9429_v39  ;;  %v2069_v6 = vsel %vm2038_vm6, %v2036_v52, %v5083_v40  ;;  %v2070_v39 = vsel %vm2038_vm6, %v2037_v63, %v5084_v33 }
 0x1d4   : > { %v7385_v10 = vsel %vm2137_vm10, %v2119_v45, %v5283_v56  ;;  %v7388_v12 = vsel %vm2137_vm10, %v2120_v60, %v5284_v48  ;;  %v5089_v48 = vunpack.i.h.bf16 %v9431_v49  ;;  %v5088_v56 = vunpack.i.l.bf16 %v9431_v49 }
 0x1d5   : > { %9428 = vst [vmem:[#allocation15_spill] sm:$0xff] %v7385_v10  ;;  %v7393_v53 = vpop.permute.xlu1 %5231  ;;  %v5218_v45 = vunpack.i.l.bf16 %v7354_v13  ;;  %v2102_v38 = vsel %vm2071_vm7, %v2069_v6, %v5163_v30  ;;  %v2103_v58 = vsel %vm2071_vm7, %v2070_v39, %v5164_v2  ;;  %v2092_v28 = vsel %vm2071_vm7, %v2059_v18, %v5138_v4  ;;  %v9432_v18 = vld [vmem:[#allocation40_spill] sm:$0xff]  ;;  %v9433_v39 = vld [vmem:[#allocation43_spill] sm:$0xff] }
 0x1d6   : > { %v2093_v17 = vsel %vm2071_vm7, %v2060_v34, %v5139_v29  ;;  %v5169_v63 = vunpack.i.h.bf16 %v7171_v31  ;;  %v5168_v33 = vunpack.i.l.bf16 %v7171_v31  ;;  %v2007_v29 = vsel %vm2005_vm5, %v7250_v37, %v4929_v54 }
 0x1d7   : > { %v5242_v60 = vpop.permute.xlu0 %5241  ;;  %v2125_v30 = vsel %vm2104_vm8, %v2092_v28, %v5218_v45  ;;  %v2126_v2 = vsel %vm2104_vm8, %v2093_v17, %v5219_v23  ;;  %v4859_v34 = vunpack.i.h.bf16 %v9432_v18  ;;  %v2040_v45 = vsel %vm2038_vm6, %v2007_v29, %v5009_v11 }
 0x1d8   : > { %v5244_v3 = vunpack.i.h.bf16 %v5242_v60  ;;  %v5243_v10 = vunpack.i.l.bf16 %v5242_v60  ;;  %v2073_v37 = vsel %vm2071_vm7, %v2040_v45, %v5089_v48  ;;  %v4858_v6 = vunpack.i.l.bf16 %v9432_v18  ;;  %v9434_v48 = vld [vmem:[#allocation47_spill] sm:$0xff] }
 0x1d9   : > { %v5297_v36 = vpop.permute.xlu2 %5296  ;;  %v2106_v11 = vsel %vm2104_vm8, %v2073_v37, %v5169_v63  ;;  %v4938_v28 = vunpack.i.l.bf16 %v9433_v39  ;;  %v9436_v29 = vunpack.i.h.bf16 %v9407_v51  ;;  %v9438_v18 = vld [vmem:[#allocation51_spill] sm:$0xff]  ;;  %v9439_v37 = vunpack.i.l.bf16 %v9414_v41 }
 0x1da   : > { %v7412_v49 = vsel %vm2104_vm8, %v2102_v38, %v5243_v10  ;;  %v7415_v13 = vsel %vm2104_vm8, %v2103_v58, %v5244_v3  ;;  %v5299_v52 = vunpack.i.h.bf16 %v5297_v36  ;;  %v5298_v40 = vunpack.i.l.bf16 %v5297_v36 }
 0x1db   : > { %v2006_v10 = vsel %vm2005_vm5, %v7272_v1, %v4928_v44  ;;  %v4939_v38 = vunpack.i.h.bf16 %v9433_v39  ;;  %v4934_v36 = vunpack.i.h.bf16 %v9434_v48  ;;  %v5013_v45 = vunpack.i.l.bf16 %v9438_v18 }
 0x1dc   : > { %v7426_v4 = vsel %vm2137_vm10, %v2125_v30, %v5298_v40  ;;  %v7429_v3 = vsel %vm2137_vm10, %v2126_v2, %v5299_v52  ;;  %v2039_v31 = vsel %vm2038_vm6, %v2006_v10, %v5008_v59  ;;  %v4933_v52 = vunpack.i.l.bf16 %v9434_v48  ;;  %v9435_v40 = vld [vmem:[#allocation50_spill] sm:$0xff]  ;;  %v9437_v10 = vld [vmem:[#allocation5_spill] sm:$0xff] }
 0x1dd   : > { %v5247_v60 = vpop.permute.xlu1 %5246  ;;  %v2072_v54 = vsel %vm2071_vm7, %v2039_v31, %v5088_v56  ;;  %v4958_v30 = vunpack.i.l.bf16 %v9435_v40  ;;  %v4959_v63 = vunpack.i.h.bf16 %v9435_v40  ;;  %v5014_v31 = vunpack.i.h.bf16 %v9438_v18  ;;  %v9446_v18 = vld [vmem:[#allocation69_spill] sm:$0xff] }
 0x1de   : > { %v5249_v1 = vunpack.i.h.bf16 %v5247_v60  ;;  %v5248_v44 = vunpack.i.l.bf16 %v5247_v60  ;;  %v2105_v59 = vsel %vm2104_vm8, %v2072_v54, %v5168_v33  ;;  %v1976_v33 = vsel %vm1972_vm4, %v9437_v10, %v9436_v29  ;;  %v9445_v29 = vld [vmem:[#allocation73_spill] sm:$0xff] }
 0x1df   : > { %v7440_v58 = vpop.permute.xlu0 %5256  ;;  %v1977_v60 = vsel %vm1972_vm4, %v7133_v22, %v4858_v6  ;;  %v1978_v54 = vsel %vm1972_vm4, %v7127_v46, %v4859_v34  ;;  %v7465_v51 = vsel %vm1972_vm4, %v7303_v62, %v9439_v37  ;;  %v9441_v39 = vunpack.i.h.bf16 %v9414_v41  ;;  %v9442_v34 = vld [vmem:[#allocation45_spill] sm:$0xff] }
 0x1e0   : > { %v2138_v17 = vsel %vm2137_vm10, %v2105_v59, %v5248_v44  ;;  %v2139_v56 = vsel %vm2137_vm10, %v2106_v11, %v5249_v1  ;;  %v9440_v1 = vld [vmem:[#allocation53_spill] sm:$0xff]  ;;  %v7476_v22 = vsel %vm2005_vm5, %v1977_v60, %v4938_v28  ;;  %v7479_v46 = vsel %vm2005_vm5, %v1978_v54, %v4939_v38 }
 0x1e1   : > { %v2170_v2 = vpack.c.bf16 %v2139_v56, %v2138_v17  ;;  %v4973_v44 = vunpack.i.l.bf16 %v9440_v1  ;;  %v7473_v59 = vsel %vm1972_vm4, %v7307_v25, %v9441_v39  ;;  %v4914_v6 = vunpack.i.h.bf16 %v9442_v34 }
 0x1e2   : > { %v4913_v62 = vunpack.i.l.bf16 %v9442_v34  ;;  %v2008_v11 = vsel %vm2005_vm5, %v7326_v20, %v4933_v52  ;;  %v2009_v17 = vsel %vm2005_vm5, %v1976_v33, %v4934_v36  ;;  %v2018_v41 = vsel %vm2005_vm5, %v7290_v24, %v4958_v30  ;;  %v9443_v20 = vld [vmem:[#allocation56_spill] sm:$0xff]  ;;  %v9444_v36 = vld [vmem:[#allocation66_spill] sm:$0xff] }
 0x1e3   : > { %4581 = vmatmul.msk.bf16.vlgmr.msra.gmra.mxu0 %vm2206_vm11, %v2170_v2  ;;  %v2019_v28 = vsel %vm2005_vm5, %v7294_v32, %v4959_v63  ;;  %v2041_v38 = vsel %vm2038_vm6, %v2008_v11, %v5013_v45  ;;  %v2042_v56 = vsel %vm2038_vm6, %v2009_v17, %v5014_v31  ;;  %v4974_v48 = vunpack.i.h.bf16 %v9440_v1 }
 0x1e4   : > { %v2024_v40 = vsel %vm2005_vm5, %v7316_v26, %v4973_v44  ;;  %v4989_v52 = vunpack.i.h.bf16 %v9443_v20  ;;  %v5039_v2 = vunpack.i.h.bf16 %v9444_v36  ;;  %v5038_v24 = vunpack.i.l.bf16 %v9444_v36 }
 0x1e5   : > { %v7488_v25 = vpop.permute.xlu1 %5261  ;;  %v5094_v10 = vunpack.i.h.bf16 %v9445_v29  ;;  %v5093_v32 = vunpack.i.l.bf16 %v9445_v29  ;;  %v5119_v31 = vunpack.i.h.bf16 %v9446_v18  ;;  %v5118_v45 = vunpack.i.l.bf16 %v9446_v18 }
 0x1e6   : > { %v5174_v60 = vunpack.i.h.bf16 %v7203_v9  ;;  %v5173_v26 = vunpack.i.l.bf16 %v7203_v9  ;;  %v5254_v54 = vunpack.i.h.bf16 %v7275_v7  ;;  %v5253_v37 = vunpack.i.l.bf16 %v7275_v7 }
 0x1e7   : > { %v5272_v30 = vpop.permute.xlu0 %5271  ;;  %v4988_v39 = vunpack.i.l.bf16 %v9443_v20  ;;  %v5199_v11 = vunpack.i.h.bf16 %v7255_v47  ;;  %v5198_v17 = vunpack.i.l.bf16 %v7255_v47  ;;  %v2051_v36 = vsel %vm2038_vm6, %v2018_v41, %v5038_v24 }
 0x1e8   : > { %v5274_v33 = vunpack.i.h.bf16 %v5272_v30  ;;  %v5273_v63 = vunpack.i.l.bf16 %v5272_v30  ;;  %v2052_v7 = vsel %vm2038_vm6, %v2019_v28, %v5039_v2  ;;  %v2075_v30 = vsel %vm2071_vm7, %v2042_v56, %v5094_v10  ;;  %v9447_v28 = vld [vmem:[#allocation62_spill] sm:$0xff] }
 0x1e9   : > { %v2085_v29 = vsel %vm2071_vm7, %v2052_v7, %v5119_v31  ;;  %v2108_v47 = vsel %vm2104_vm8, %v2075_v30, %v5174_v60  ;;  %v5018_v2 = vunpack.i.l.bf16 %v9447_v28 }
 0x1ea   : > { %v7510_v1 = vsel %vm2137_vm10, %v7091_v55, %v5273_v63  ;;  %v7514_v44 = vsel %vm2137_vm10, %v7094_v8, %v5274_v33  ;;  %v2074_v55 = vsel %vm2071_vm7, %v2041_v38, %v5093_v32  ;;  %v2084_v8 = vsel %vm2071_vm7, %v2051_v36, %v5118_v45  ;;  %v9448_v38 = vld [vmem:[#allocation68_spill] sm:$0xff] }
 0x1eb   : > { %v2175_v9 = vpack.c.bf16 %v7514_v44, %v7510_v1  ;;  %v2107_v33 = vsel %vm2104_vm8, %v2074_v55, %v5173_v26  ;;  %v2141_v41 = vsel %vm2137_vm10, %v2108_v47, %v5254_v54  ;;  %v5053_v24 = vunpack.i.l.bf16 %v9448_v38  ;;  %v9449_v54 = vld [vmem:[#allocation71_spill] sm:$0xff] }
 0x1ec   : > { %v2140_v23 = vsel %vm2137_vm10, %v2107_v33, %v5253_v37  ;;  %v2117_v10 = vsel %vm2104_vm8, %v2084_v8, %v5198_v17  ;;  %v2118_v32 = vsel %vm2104_vm8, %v2085_v29, %v5199_v11  ;;  %v5054_v37 = vunpack.i.h.bf16 %v9448_v38  ;;  %v9451_v38 = vld [vmem:[#allocation74_spill] sm:$0xff]  ;;  %v9472_v1 = vld [vmem:[#allocation15_spill] sm:$0xff] }
 0x1ed   : > { %v5277_v20 = vpop.permute.xlu1 %5276  ;;  %v5133_v36 = vunpack.i.l.bf16 %v9449_v54  ;;  %v2171_v7 = vpack.c.bf16 %v2141_v41, %v2140_v23  ;;  %v2025_v17 = vsel %vm2005_vm5, %v7319_v42, %v4974_v48  ;;  %v5134_v11 = vunpack.i.h.bf16 %v9449_v54 }
 0x1ee   : > { %v5279_v63 = vunpack.i.h.bf16 %v5277_v20  ;;  %v5278_v18 = vunpack.i.l.bf16 %v5277_v20  ;;  %v2030_v29 = vsel %vm2005_vm5, %v7465_v51, %v4988_v39  ;;  %v5214_v23 = vunpack.i.h.bf16 %v7321_v57  ;;  %v9450_v39 = vld [vmem:[#allocation70_spill] sm:$0xff] }
 0x1ef   : > { %v5287_v56 = vpop.permute.xlu0 %5286  ;;  %v5213_v20 = vunpack.i.l.bf16 %v7321_v57  ;;  %v5019_v48 = vunpack.i.h.bf16 %v9447_v28  ;;  %v2057_v33 = vsel %vm2038_vm6, %v2024_v40, %v5053_v24  ;;  %v2058_v51 = vsel %vm2038_vm6, %v2025_v17, %v5054_v37 }
 0x1f0   : > { %v5289_v31 = vunpack.i.h.bf16 %v5287_v56  ;;  %v5288_v45 = vunpack.i.l.bf16 %v5287_v56  ;;  %v7536_v26 = vsel %vm2137_vm10, %v2117_v10, %v5278_v18  ;;  %v7539_v60 = vsel %vm2137_vm10, %v2118_v32, %v5279_v63  ;;  %v9452_v56 = vld [vmem:[#allocation75_spill] sm:$0xff] }
 0x1f1   : > { %v2176_v55 = vpack.c.bf16 %v7539_v60, %v7536_v26  ;;  %v5069_v47 = vunpack.i.h.bf16 %v9450_v39  ;;  %v5068_v57 = vunpack.i.l.bf16 %v9450_v39  ;;  %v2090_v63 = vsel %vm2071_vm7, %v2057_v33, %v5133_v36  ;;  %v9453_v36 = vld [vmem:[#allocation9_spill] sm:$0xff] }
 0x1f2   : > { %v7550_v30 = vsel %vm2137_vm10, %v7147_v14, %v5288_v45  ;;  %v7554_v8 = vsel %vm2137_vm10, %v7150_v61, %v5289_v31  ;;  %v2031_v14 = vsel %vm2005_vm5, %v7473_v59, %v4989_v52  ;;  %v2043_v61 = vsel %vm2038_vm6, %v7476_v22, %v5018_v2 }
 0x1f3   : > { %4582 = vmatmul.msk.bf16.gmra.mxu0 %vm2206_vm11, %v2171_v7  ;;  %v2178_v42 = vpack.c.bf16 %v7554_v8, %v7550_v30  ;;  %v2091_v41 = vsel %vm2071_vm7, %v2058_v51, %v5134_v11  ;;  %v5149_v59 = vunpack.i.h.bf16 %v9451_v38  ;;  %v5099_v10 = vunpack.i.h.bf16 %v9452_v56 }
 0x1f4   : > { %v5098_v22 = vunpack.i.l.bf16 %v9452_v56  ;;  %v2123_v2 = vsel %vm2104_vm8, %v2090_v63, %v5213_v20  ;;  %v2124_v24 = vsel %vm2104_vm8, %v2091_v41, %v5214_v23  ;;  %v5148_v54 = vunpack.i.l.bf16 %v9451_v38 }
 0x1f5   : > { %v5292_v18 = vpop.permute.xlu1 %5291  ;;  %v5179_v7 = vunpack.i.h.bf16 %v9453_v36  ;;  %v5178_v17 = vunpack.i.l.bf16 %v9453_v36  ;;  %v5259_v20 = vunpack.i.h.bf16 %v7440_v58  ;;  %v5258_v23 = vunpack.i.l.bf16 %v7440_v58 }
 0x1f6   : > { %v5294_v52 = vunpack.i.h.bf16 %v5292_v18  ;;  %v5293_v28 = vunpack.i.l.bf16 %v5292_v18  ;;  %v2044_v39 = vsel %vm2038_vm6, %v7479_v46, %v5019_v48  ;;  %v5229_v63 = vunpack.i.h.bf16 %v7366_v15 }
 0x1f7   : > { %v5302_v40 = vpop.permute.xlu0 %5301  ;;  %v5228_v18 = vunpack.i.l.bf16 %v7366_v15  ;;  %v2063_v58 = vsel %vm2038_vm6, %v2030_v29, %v5068_v57  ;;  %v2064_v38 = vsel %vm2038_vm6, %v2031_v14, %v5069_v47  ;;  %v9454_v14 = vld [vmem:[#allocation48_spill] sm:$0xff]  ;;  %v9473_v44 = vpack.c.bf16 %v7388_v12, %v9472_v1 }
 0x1f8   : > { %v5304_v32 = vunpack.i.h.bf16 %v5302_v40  ;;  %v5303_v31 = vunpack.i.l.bf16 %v5302_v40  ;;  %v7580_v45 = vsel %vm2137_vm10, %v2123_v2, %v5293_v28  ;;  %v7583_v37 = vsel %vm2137_vm10, %v2124_v24, %v5294_v52  ;;  %v7756_v12 = vld [vmem:[%s9175_s4] ss:$0 sm:$0xff] }
 0x1f9   : > { %v2179_v11 = vpack.c.bf16 %v7583_v37, %v7580_v45  ;;  %v2077_v52 = vsel %vm2071_vm7, %v2044_v39, %v5099_v10  ;;  %v2097_v28 = vsel %vm2071_vm7, %v2064_v38, %v5149_v59  ;;  %v4944_v47 = vunpack.i.h.bf16 %v9454_v14  ;;  %v9457_v39 = vld [vmem:[#allocation18_spill] sm:$0xff] }
 0x1fa   : > { %v7594_v33 = vsel %vm2137_vm10, %v7193_v27, %v5303_v31  ;;  %v7598_v51 = vsel %vm2137_vm10, %v7196_v0, %v5304_v32  ;;  %v2076_v27 = vsel %vm2071_vm7, %v2043_v61, %v5098_v22  ;;  %v2096_v0 = vsel %vm2071_vm7, %v2063_v58, %v5148_v54  ;;  %v9455_v54 = vld [vmem:[#allocation58_spill] sm:$0xff] }
 0x1fb   : > { %v2181_v41 = vpack.c.bf16 %v7598_v51, %v7594_v33  ;;  %v2109_v48 = vsel %vm2104_vm8, %v2076_v27, %v5178_v17  ;;  %v2110_v15 = vsel %vm2104_vm8, %v2077_v52, %v5179_v7  ;;  %v4943_v61 = vunpack.i.l.bf16 %v9454_v14 }
 0x1fc   : > { %v2142_v2 = vsel %vm2137_vm10, %v2109_v48, %v5258_v23  ;;  %v2143_v29 = vsel %vm2137_vm10, %v2110_v15, %v5259_v20  ;;  %v2129_v10 = vsel %vm2104_vm8, %v2096_v0, %v5228_v18  ;;  %v2130_v59 = vsel %vm2104_vm8, %v2097_v28, %v5229_v63  ;;  %v9459_v63 = vld [vmem:[#allocation12_spill] sm:$0xff]  ;;  %v9461_v28 = vld [vmem:[#allocation6_spill] sm:$0xff] }
 0x1fd   : > { %v5307_v46 = vpop.permute.xlu1 %5306  ;;  %v4994_v36 = vunpack.i.h.bf16 %v9455_v54  ;;  %v4993_v7 = vunpack.i.l.bf16 %v9455_v54  ;;  %v2172_v17 = vpack.c.bf16 %v2143_v29, %v2142_v2  ;;  %v9456_v23 = vunpack.i.h.bf16 %v6650_v35 }
 0x1fe   : > { %v5309_v56 = vunpack.i.h.bf16 %v5307_v46  ;;  %v5308_v40 = vunpack.i.l.bf16 %v5307_v46  ;;  %v9458_v18 = vunpack.i.l.bf16 %v6644_v43  ;;  %v9460_v0 = vunpack.i.l.bf16 %v6650_v35 }
 0x1ff   : > { %v5317_v57 = vpop.permute.xlu0 %5316  ;;  %v1947_v58 = vsel %vm380_vm3, %v9457_v39, %v9456_v23  ;;  %v9462_v48 = vunpack.i.h.bf16 %v9402_v50  ;;  %v2000_v35 = vsel %vm1972_vm4, %v7154_v16, %v4914_v6  ;;  %v5153_v54 = vunpack.i.l.bf16 %v7119_v19 }
 0x200   : > { %v5319_v22 = vunpack.i.h.bf16 %v5317_v57  ;;  %v5318_v24 = vunpack.i.l.bf16 %v5317_v57  ;;  %v2162_v32 = vsel %vm2137_vm10, %v2129_v10, %v5308_v40  ;;  %v2163_v31 = vsel %vm2137_vm10, %v2130_v59, %v5309_v56  ;;  %v9465_v59 = vld [vmem:[#allocation64_spill] sm:$0xff] }
 0x201   : > { %v2182_v20 = vpack.c.bf16 %v2163_v31, %v2162_v32  ;;  %v1966_v38 = vsel %vm380_vm3, %v9459_v63, %v9458_v18  ;;  %v1946_v46 = vsel %vm380_vm3, %v9461_v28, %v9460_v0  ;;  %v1980_v15 = vsel %vm1972_vm4, %v1947_v58, %v9462_v48  ;;  %v5312_v31 = vpop.permute.xlu2 %5311 }
 0x202   : > { %v2166_v27 = vsel %vm2137_vm10, %v7235_v21, %v5318_v24  ;;  %v2167_v52 = vsel %vm2137_vm10, %v7238_v5, %v5319_v22  ;;  %v9463_v56 = vunpack.i.l.bf16 %v9402_v50  ;;  %v1999_v5 = vsel %vm1972_vm4, %v1966_v38, %v4913_v62  ;;  %v9464_v50 = vld [vmem:[#allocation63_spill] sm:$0xff] }
 0x203   : > { %4583 = vmatmul.msk.bf16.gmra.mxu0 %vm2206_vm11, %v2172_v17  ;;  %4593 = vmatmul.msk.bf16.vlgmr.msra.gmra.mxu3 %vm2206_vm11, %v2182_v20  ;;  %v2184_v43 = vpack.c.bf16 %v2167_v52, %v2166_v27  ;;  %v2013_v40 = vsel %vm2005_vm5, %v1980_v15, %v4944_v47  ;;  %v2032_v29 = vsel %vm2005_vm5, %v1999_v5, %v4993_v7  ;;  %v5074_v57 = vunpack.i.h.bf16 %v9464_v50  ;;  %v9466_v62 = vld [vmem:[#allocation67_spill] sm:$0xff] }
 0x204   : > { %v1979_v21 = vsel %vm1972_vm4, %v1946_v46, %v9463_v56  ;;  %v2033_v14 = vsel %vm2005_vm5, %v2000_v35, %v4994_v36  ;;  %v5024_v22 = vunpack.i.h.bf16 %v9465_v59  ;;  %v5073_v24 = vunpack.i.l.bf16 %v9464_v50  ;;  %v9467_v36 = vld [vmem:[#allocation17_spill] sm:$0xff]  ;;  %v9468_v50 = vld [vmem:[#allocation16_spill] sm:$0xff] }
 0x205   : > { %v2012_v2 = vsel %vm2005_vm5, %v1979_v21, %v4943_v61  ;;  %v5322_v10 = vpop.permute.xlu1 %5321  ;;  %v5023_v34 = vunpack.i.l.bf16 %v9465_v59  ;;  %v5104_v32 = vunpack.i.h.bf16 %v9466_v62  ;;  %v5103_v47 = vunpack.i.l.bf16 %v9466_v62 }
 0x206   : > { %v5324_v16 = vunpack.i.h.bf16 %v5322_v10  ;;  %v5323_v6 = vunpack.i.l.bf16 %v5322_v10  ;;  %v5154_v61 = vunpack.i.h.bf16 %v7119_v19  ;;  %v5184_v7 = vunpack.i.h.bf16 %v9467_v36 }
 0x207   : > { %v5183_v23 = vunpack.i.l.bf16 %v9467_v36  ;;  %v5234_v39 = vunpack.i.h.bf16 %v7393_v53  ;;  %v5233_v58 = vunpack.i.l.bf16 %v7393_v53  ;;  %v5264_v63 = vunpack.i.h.bf16 %v7488_v25 }
 0x208   : > { %v2168_v17 = vsel %vm2137_vm10, %v7412_v49, %v5323_v6  ;;  %v2169_v20 = vsel %vm2137_vm10, %v7415_v13, %v5324_v16  ;;  %v5263_v38 = vunpack.i.l.bf16 %v7488_v25  ;;  %v5314_v19 = vunpack.i.h.bf16 %v5312_v31  ;;  %v2517_v16 = vld [vmem:[#allocation3 + $0x1] sm:$0xff]  ;;  %v2518_v6 = vld [vmem:[#allocation3 + $0x9] sm:$0xff] }
 0x209   : > { %v2185_v18 = vpack.c.bf16 %v2169_v20, %v2168_v17  ;;  %v5313_v27 = vunpack.i.l.bf16 %v5312_v31  ;;  %v2045_v52 = vsel %vm2038_vm6, %v2012_v2, %v5023_v34  ;;  %v2046_v49 = vsel %vm2038_vm6, %v2013_v40, %v5024_v22 }
 0x20a   : > { %v2065_v0 = vsel %vm2038_vm6, %v2032_v29, %v5073_v24  ;;  %v2066_v13 = vsel %vm2038_vm6, %v2033_v14, %v5074_v57  ;;  %v2078_v28 = vsel %vm2071_vm7, %v2045_v52, %v5103_v47  ;;  %v2079_v46 = vsel %vm2071_vm7, %v2046_v49, %v5104_v32  ;;  %v9469_v57 = vld [vmem:[#allocation29_spill] sm:$0xff] }
 0x20b   : > { %v2098_v53 = vsel %vm2071_vm7, %v2065_v0, %v5153_v54  ;;  %v2099_v48 = vsel %vm2071_vm7, %v2066_v13, %v5154_v61  ;;  %v2111_v56 = vsel %vm2104_vm8, %v2078_v28, %v5183_v23  ;;  %v2112_v21 = vsel %vm2104_vm8, %v2079_v46, %v5184_v7 }
 0x20c   : > { %v2131_v25 = vsel %vm2104_vm8, %v2098_v53, %v5233_v58  ;;  %v2132_v15 = vsel %vm2104_vm8, %v2099_v48, %v5234_v39  ;;  %v2144_v35 = vsel %vm2137_vm10, %v2111_v56, %v5263_v38  ;;  %v2145_v5 = vsel %vm2137_vm10, %v2112_v21, %v5264_v63 }
 0x20d   : > { %v2164_v40 = vsel %vm2137_vm10, %v2131_v25, %v5313_v27  ;;  %v2165_v2 = vsel %vm2137_vm10, %v2132_v15, %v5314_v19  ;;  %v2173_v29 = vpack.c.bf16 %v2145_v5, %v2144_v35  ;;  %v9470_v10 = vpack.c.bf16 %v9468_v50, %v9469_v57 }
 0x20e   : > { %v2183_v14 = vpack.c.bf16 %v2165_v2, %v2164_v40  ;;  %v9471_v59 = vmov 0.0   ;;  %v5325_v62 = vpack.i.bf16 %v2518_v6, %v2517_v16  ;;  %v9474_v23 = vpack.c.bf16 %v7429_v3, %v7426_v4 }
 0x20f   : > { %391 = vst.msk [vmem:[#allocation3 + $0x30] sm:$0x1] %vm388_vm12, %v9471_v59  ;;  %vm4025_vm4 = vcmask 523264  }
 0x210   : > { %389 = vst.msk [vmem:[#allocation3] sm:$0x1] %vm388_vm12, %v9471_v59  ;;  %5326 = vrot.lane.b32.xlu2 %v5325_v62, %s5980_s20 }
 0x211   : > { %390 = vst.msk [vmem:[#allocation3 + $0x18] sm:$0x1] %vm388_vm12, %v9471_v59 }
 0x212   : > { %392 = vst.msk [vmem:[#allocation3 + $0x48] sm:$0x1] %vm388_vm12, %v9471_v59 }
 0x213   : > { %4584 = vmatmul.msk.bf16.gmra.mxu0 %vm2206_vm11, %v2173_v29  ;;  %4594 = vmatmul.msk.bf16.gmra.mxu3 %vm2206_vm11, %v2183_v14  ;;  %393 = vst.msk [vmem:[#allocation3 + $0x60] sm:$0x1] %vm388_vm12, %v9471_v59 }
 0x214   : > { %394 = vst.msk [vmem:[#allocation3 + $0x78] sm:$0x1] %vm388_vm12, %v9471_v59 }
 0x215   : > { %395 = vst.msk [vmem:[#allocation3 + $0x90] sm:$0x1] %vm388_vm12, %v9471_v59 }
 0x216   : > { %396 = vst.msk [vmem:[#allocation3 + $0xa8] sm:$0x1] %vm388_vm12, %v9471_v59 }
 0x217   : > { %408 = vst.msk [vmem:[#allocation3 + $0x11] sm:$0x7f] %vm407_vm13, %v9471_v59 }
 0x218   : > { %409 = vst.msk [vmem:[#allocation3 + $0x29] sm:$0x7f] %vm407_vm13, %v9471_v59 }
 0x219   : > { %410 = vst.msk [vmem:[#allocation3 + $0x41] sm:$0x7f] %vm407_vm13, %v9471_v59 }
 0x21a   : > { %411 = vst.msk [vmem:[#allocation3 + $0x59] sm:$0x7f] %vm407_vm13, %v9471_v59 }
 0x21b   : > { %412 = vst.msk [vmem:[#allocation3 + $0x71] sm:$0x7f] %vm407_vm13, %v9471_v59 }
 0x21c   : > { %413 = vst.msk [vmem:[#allocation3 + $0x89] sm:$0x7f] %vm407_vm13, %v9471_v59 }
 0x21d   : > { %414 = vst.msk [vmem:[#allocation3 + $0xa1] sm:$0x7f] %vm407_vm13, %v9471_v59 }
 0x21e   : > { %415 = vst.msk [vmem:[#allocation3 + $0xb9] sm:$0x7f] %vm407_vm13, %v9471_v59 }
 0x21f   : > { %416 = vst.msk [vmem:[#allocation3 + $0xd1] sm:$0x7f] %vm407_vm13, %v9471_v59 }
 0x220   : > { %417 = vst.msk [vmem:[#allocation3 + $0xe9] sm:$0x7f] %vm407_vm13, %v9471_v59 }
 0x221   : > { %418 = vst.msk [vmem:[#allocation3 + $0x101] sm:$0x7f] %vm407_vm13, %v9471_v59 }
 0x222   : > { %419 = vst.msk [vmem:[#allocation3 + $0x119] sm:$0x7f] %vm407_vm13, %v9471_v59 }
 0x223   : > { %4585 = vmatmul.msk.bf16.gmra.mxu0 %vm2206_vm11, %v9470_v10  ;;  %4595 = vmatmul.msk.bf16.gmra.mxu3 %vm2206_vm11, %v2184_v43  ;;  %420 = vst.msk [vmem:[#allocation3 + $0x131] sm:$0x7f] %vm407_vm13, %v9471_v59 }
 0x224   : > { %421 = vst.msk [vmem:[#allocation3 + $0x149] sm:$0x7f] %vm407_vm13, %v9471_v59 }
 0x225   : > { %422 = vst.msk [vmem:[#allocation3 + $0x161] sm:$0x7f] %vm407_vm13, %v9471_v59 }
 0x226   : > { %423 = vst.msk [vmem:[#allocation3 + $0x179] sm:$0x7f] %vm407_vm13, %v9471_v59 }
 0x227   : > { %424 = vst.msk [vmem:[#allocation3 + $0x191] sm:$0x7f] %vm407_vm13, %v9471_v59 }
 0x228   : > { %425 = vst.msk [vmem:[#allocation3 + $0x1a9] sm:$0x7f] %vm407_vm13, %v9471_v59 }
 0x229   : > { %397 = vst.msk [vmem:[#allocation3 + $0xc0] sm:$0x1] %vm388_vm12, %v9471_v59 }
 0x22a   : > { %398 = vst.msk [vmem:[#allocation3 + $0xd8] sm:$0x1] %vm388_vm12, %v9471_v59 }
 0x22b   : > { %399 = vst.msk [vmem:[#allocation3 + $0xf0] sm:$0x1] %vm388_vm12, %v9471_v59 }
 0x22c   : > { %400 = vst.msk [vmem:[#allocation3 + $0x108] sm:$0x1] %vm388_vm12, %v9471_v59 }
 0x22d   : > { %401 = vst.msk [vmem:[#allocation3 + $0x120] sm:$0x1] %vm388_vm12, %v9471_v59 }
 0x22e   : > { %402 = vst.msk [vmem:[#allocation3 + $0x138] sm:$0x1] %vm388_vm12, %v9471_v59 }
 0x22f   : > { %403 = vst.msk [vmem:[#allocation3 + $0x150] sm:$0x1] %vm388_vm12, %v9471_v59 }
 0x230   : > { %404 = vst.msk [vmem:[#allocation3 + $0x168] sm:$0x1] %vm388_vm12, %v9471_v59 }
 0x231   : > { %405 = vst.msk [vmem:[#allocation3 + $0x180] sm:$0x1] %vm388_vm12, %v9471_v59 }
 0x232   : > { %406 = vst.msk [vmem:[#allocation3 + $0x198] sm:$0x1] %vm388_vm12, %v9471_v59 }
 0x233   : > { %4586 = vmatmul.msk.bf16.gmra.mxu0 %vm2206_vm11, %v2175_v9  ;;  %4596 = vmatmul.msk.bf16.gmra.mxu3 %vm2206_vm11, %v2185_v18  ;;  %v7765_v9 = vld [vmem:[%s9176_s5] ss:$0 sm:$0xff] }
 0x243   : > { %4587 = vmatmul.msk.bf16.gmra.mxu0 %vm2206_vm11, %v2176_v55 }
 0x253   : > { %4588 = vmatmul.msk.bf16.gmra.mxu0 %vm2206_vm11, %v9473_v44 }
 0x260   : > { %v2268_v26 = vpop.f32.mrf.mxu0 }
 0x261   : > { %v2352_v60 = vmul.f32 %v7756_v12, %v2268_v26 }
 0x263   : > { %v2388_v55 = vadd.f32 %v7765_v9, %v2352_v60  ;;  %4589 = vmatmul.msk.bf16.gmra.mxu0 %vm2206_vm11, %v2178_v42 }
 0x265   : > { %v2420_v43 = vmax.f32 %v2388_v55, 0.0 }
 0x267   : > { %2453 = vst.msk [vmem:[#allocation3 + $0x19] sm:$0xff] %vm380_vm3, %v2420_v43 }
 0x268   : > { %v2270_v22 = vpop.f32.mrf.mxu0 }
 0x269   : > { %v2353_v30 = vmul.f32 %v7756_v12, %v2270_v22 }
 0x26b   : > { %v2389_v8 = vadd.f32 %v7765_v9, %v2353_v30 }
 0x26d   : > { %v2421_v42 = vmax.f32 %v2389_v8, 0.0 }
 0x26e   : > { %v2519_v61 = vld [vmem:[#allocation3 + $0x19] sm:$0xff] }
 0x26f   : > { %2454 = vst.msk [vmem:[#allocation3 + $0x21] sm:$0xff] %vm380_vm3, %v2421_v42 }
 0x270   : > { %v2273_v24 = vpop.f32.mrf.mxu0 }
 0x271   : > { %v2354_v34 = vmul.f32 %v7756_v12, %v2273_v24 }
 0x273   : > { %v2390_v32 = vadd.f32 %v7765_v9, %v2354_v34  ;;  %4590 = vmatmul.msk.bf16.gmra.mxu0 %vm2206_vm11, %v2179_v11 }
 0x275   : > { %v2422_v47 = vmax.f32 %v2390_v32, 0.0 }
 0x276   : > { %v2520_v31 = vld [vmem:[#allocation3 + $0x21] sm:$0xff] }
 0x277   : > { %2455 = vst.msk [vmem:[#allocation3 + $0x31] sm:$0xff] %vm380_vm3, %v2422_v47  ;;  %v7813_v54 = vpack.i.bf16 %v2520_v31, %v2519_v61 }
 0x278   : > { %v2275_v36 = vpop.f32.mrf.mxu0 }
 0x279   : > { %v2355_v7 = vmul.f32 %v7756_v12, %v2275_v36  ;;  %5331 = vrot.lane.b32.xlu0 %v7813_v54, %s5980_s20 }
 0x27b   : > { %v2391_v17 = vadd.f32 %v7765_v9, %v2355_v7 }
 0x27d   : > { %v2423_v45 = vmax.f32 %v2391_v17, 0.0 }
 0x27e   : > { %v2521_v18 = vld [vmem:[#allocation3 + $0x31] sm:$0xff] }
 0x27f   : > { %2456 = vst.msk [vmem:[#allocation3 + $0x39] sm:$0xff] %vm380_vm3, %v2423_v45 }
 0x280   : > { %v2278_v37 = vpop.f32.mrf.mxu0 }
 0x281   : > { %v2356_v11 = vmul.f32 %v7756_v12, %v2278_v37 }
 0x283   : > { %v2392_v20 = vadd.f32 %v7765_v9, %v2356_v11  ;;  %4591 = vmatmul.msk.bf16.gmra.mxu0 %vm2206_vm11, %v9474_v23  ;;  %v2549_v11 = vld [vmem:[#allocation3 + $0x2] sm:$0xff] }
 0x285   : > { %v2424_v39 = vmax.f32 %v2392_v20, 0.0  ;;  %v2550_v20 = vld [vmem:[#allocation3 + $0xa] sm:$0xff] }
 0x286   : > { %v2328_v58 = vpop.f32.mrf.mxu3  ;;  %v2522_v63 = vld [vmem:[#allocation3 + $0x39] sm:$0xff] }
 0x287   : > { %2457 = vst.msk [vmem:[#allocation3 + $0x49] sm:$0xff] %vm380_vm3, %v2424_v39  ;;  %v2376_v38 = vmul.f32 %v7756_v12, %v2328_v58  ;;  %v7828_v19 = vpack.i.bf16 %v2522_v63, %v2521_v18  ;;  %v5370_v18 = vpack.i.bf16 %v2550_v20, %v2549_v11 }
 0x288   : > { %v2280_v27 = vpop.f32.mrf.mxu0 }
 0x289   : > { %v2412_v52 = vadd.f32 %v7765_v9, %v2376_v38  ;;  %v2357_v49 = vmul.f32 %v7756_v12, %v2280_v27  ;;  %5336 = vrot.lane.b32.xlu1 %v7828_v19, %s5980_s20 }
 0x28b   : > { %v2444_v4 = vmax.f32 %v2412_v52, 0.0  ;;  %v2393_v3 = vadd.f32 %v7765_v9, %v2357_v49 }
 0x28d   : > { %2477 = vst.msk [vmem:[#allocation3 + $0x139] sm:$0xff] %vm380_vm3, %v2444_v4  ;;  %v2425_v0 = vmax.f32 %v2393_v3, 0.0 }
 0x28e   : > { %v2330_v13 = vpop.f32.mrf.mxu3  ;;  %v2523_v35 = vld [vmem:[#allocation3 + $0x49] sm:$0xff] }
 0x28f   : > { %2458 = vst.msk [vmem:[#allocation3 + $0x51] sm:$0xff] %vm380_vm3, %v2425_v0  ;;  %v2377_v28 = vmul.f32 %v7756_v12, %v2330_v13 }
 0x290   : > { %v2283_v46 = vpop.f32.mrf.mxu0 }
 0x291   : > { %v2413_v53 = vadd.f32 %v7765_v9, %v2377_v28  ;;  %v2358_v48 = vmul.f32 %v7756_v12, %v2283_v46 }
 0x293   : > { %v2445_v25 = vmax.f32 %v2413_v53, 0.0  ;;  %v2394_v15 = vadd.f32 %v7765_v9, %v2358_v48  ;;  %4592 = vmatmul.msk.bf16.gmra.mxu0 %vm2206_vm11, %v2181_v41 }
 0x294   : > { %v2543_v31 = vld [vmem:[#allocation3 + $0x139] sm:$0xff] }
 0x295   : > { %2478 = vst.msk [vmem:[#allocation3 + $0x141] sm:$0xff] %vm380_vm3, %v2445_v25  ;;  %v2426_v56 = vmax.f32 %v2394_v15, 0.0 }
 0x296   : > { %v2333_v21 = vpop.f32.mrf.mxu3  ;;  %v2524_v5 = vld [vmem:[#allocation3 + $0x51] sm:$0xff] }
 0x297   : > { %2459 = vst.msk [vmem:[#allocation3 + $0x61] sm:$0xff] %vm380_vm3, %v2426_v56  ;;  %v2378_v40 = vmul.f32 %v7756_v12, %v2333_v21  ;;  %v7848_v2 = vpack.i.bf16 %v2524_v5, %v2523_v35  ;;  %v2555_v46 = vld [vmem:[#allocation3 + $0x4a] sm:$0xff]  ;;  %v2556_v53 = vld [vmem:[#allocation3 + $0x52] sm:$0xff] }
 0x298   : > { %v2285_v29 = vpop.f32.mrf.mxu0 }
 0x299   : > { %v2414_v14 = vadd.f32 %v7765_v9, %v2378_v40  ;;  %v2359_v50 = vmul.f32 %v7756_v12, %v2285_v29  ;;  %5341 = vrot.lane.b32.xlu2 %v7848_v2, %s5980_s20  ;;  %v7899_v29 = vpack.i.bf16 %v2556_v53, %v2555_v46 }
 0x29b   : > { %v2446_v33 = vmax.f32 %v2414_v14, 0.0  ;;  %v2395_v51 = vadd.f32 %v7765_v9, %v2359_v50 }
 0x29c   : > { %v2544_v32 = vld [vmem:[#allocation3 + $0x141] sm:$0xff] }
 0x29d   : > { %2479 = vst.msk [vmem:[#allocation3 + $0x151] sm:$0xff] %vm380_vm3, %v2446_v33  ;;  %v2427_v41 = vmax.f32 %v2395_v51, 0.0  ;;  %v7874_v7 = vpack.i.bf16 %v2544_v32, %v2543_v31 }
 0x29e   : > { %v2335_v57 = vpop.f32.mrf.mxu3  ;;  %v2525_v22 = vld [vmem:[#allocation3 + $0x61] sm:$0xff] }
 0x29f   : > { %2460 = vst.msk [vmem:[#allocation3 + $0x69] sm:$0xff] %vm380_vm3, %v2427_v41  ;;  %v2379_v10 = vmul.f32 %v7756_v12, %v2335_v57  ;;  %v2553_v41 = vld [vmem:[#allocation3 + $0x32] sm:$0xff]  ;;  %v2554_v57 = vld [vmem:[#allocation3 + $0x3a] sm:$0xff] }
 0x2a0   : > { %v2288_v59 = vpop.f32.mrf.mxu0 }
 0x2a1   : > { %v2415_v1 = vadd.f32 %v7765_v9, %v2379_v10  ;;  %v2360_v44 = vmul.f32 %v7756_v12, %v2288_v59 }
 0x2a3   : > { %v2447_v26 = vmax.f32 %v2415_v1, 0.0  ;;  %v2396_v60 = vadd.f32 %v7765_v9, %v2360_v44  ;;  %v2551_v1 = vld [vmem:[#allocation3 + $0x1a] sm:$0xff]  ;;  %v2552_v44 = vld [vmem:[#allocation3 + $0x22] sm:$0xff] }
 0x2a4   : > { %v2545_v5 = vld [vmem:[#allocation3 + $0x151] sm:$0xff] }
 0x2a5   : > { %2480 = vst.msk [vmem:[#allocation3 + $0x159] sm:$0xff] %vm380_vm3, %v2447_v26  ;;  %v2428_v55 = vmax.f32 %v2396_v60, 0.0  ;;  %v7911_v60 = vpack.i.bf16 %v2554_v57, %v2553_v41 }
 0x2a6   : > { %v2338_v43 = vpop.f32.mrf.mxu3  ;;  %v2526_v30 = vld [vmem:[#allocation3 + $0x69] sm:$0xff] }
 0x2a7   : > { %2461 = vst.msk [vmem:[#allocation3 + $0x79] sm:$0xff] %vm380_vm3, %v2428_v55  ;;  %v2380_v8 = vmul.f32 %v7756_v12, %v2338_v43  ;;  %v7864_v42 = vpack.i.bf16 %v2526_v30, %v2525_v22  ;;  %v7916_v55 = vpack.i.bf16 %v2552_v44, %v2551_v1 }
 0x2a8   : > { %v2290_v24 = vpop.f32.mrf.mxu0 }
 0x2a9   : > { %v2416_v16 = vadd.f32 %v7765_v9, %v2380_v8  ;;  %v2361_v6 = vmul.f32 %v7756_v12, %v2290_v24  ;;  %5346 = vrot.lane.b32.xlu0 %v7864_v42, %s5980_s20 }
 0x2ab   : > { %v2448_v34 = vmax.f32 %v2416_v16, 0.0  ;;  %v2397_v62 = vadd.f32 %v7765_v9, %v2361_v6  ;;  %v2557_v16 = vld [vmem:[#allocation3 + $0x62] sm:$0xff]  ;;  %v2558_v6 = vld [vmem:[#allocation3 + $0x6a] sm:$0xff] }
 0x2ac   : > { %v2546_v15 = vld [vmem:[#allocation3 + $0x159] sm:$0xff]  ;;  %v7927_v32 = vpack.i.bf16 %v2558_v6, %v2557_v16 }
 0x2ad   : > { %2481 = vst.msk [vmem:[#allocation3 + $0x169] sm:$0xff] %vm380_vm3, %v2448_v34  ;;  %v2429_v47 = vmax.f32 %v2397_v62, 0.0  ;;  %v7901_v14 = vpack.i.bf16 %v2546_v15, %v2545_v5 }
 0x2ae   : > { %v2340_v61 = vpop.f32.mrf.mxu3  ;;  %v2527_v38 = vld [vmem:[#allocation3 + $0x79] sm:$0xff] }
 0x2af   : > { %2462 = vst.msk [vmem:[#allocation3 + $0x81] sm:$0xff] %vm380_vm3, %v2429_v47  ;;  %v2381_v36 = vmul.f32 %v7756_v12, %v2340_v61 }
 0x2b0   : > { %v2293_v17 = vpop.f32.mrf.mxu0 }
 0x2b1   : > { %v2417_v45 = vadd.f32 %v7765_v9, %v2381_v36  ;;  %v2362_v37 = vmul.f32 %v7756_v12, %v2293_v17  ;;  %5351 = vrot.lane.b32.xlu0 %v7874_v7, %s5980_s20 }
 0x2b3   : > { %v2449_v23 = vmax.f32 %v2417_v45, 0.0  ;;  %v2398_v39 = vadd.f32 %v7765_v9, %v2362_v37 }
 0x2b4   : > { %v2547_v48 = vld [vmem:[#allocation3 + $0x169] sm:$0xff] }
 0x2b5   : > { %2482 = vst.msk [vmem:[#allocation3 + $0x171] sm:$0xff] %vm380_vm3, %v2449_v23  ;;  %v2430_v58 = vmax.f32 %v2398_v39, 0.0 }
 0x2b6   : > { %v2343_v63 = vpop.f32.mrf.mxu3  ;;  %v2528_v27 = vld [vmem:[#allocation3 + $0x81] sm:$0xff] }
 0x2b7   : > { %2463 = vst.msk [vmem:[#allocation3 + $0x91] sm:$0xff] %vm380_vm3, %v2430_v58  ;;  %v2382_v52 = vmul.f32 %v7756_v12, %v2343_v63  ;;  %v7884_v49 = vpack.i.bf16 %v2528_v27, %v2527_v38  ;;  %v2559_v31 = vld [vmem:[#allocation3 + $0x7a] sm:$0xff]  ;;  %v2560_v36 = vld [vmem:[#allocation3 + $0x82] sm:$0xff]  ;;  %v2577_v27 = vld [vmem:[#allocation3 + $0x152] sm:$0xff] }
 0x2b8   : > { %v2295_v4 = vpop.f32.mrf.mxu0  ;;  %v7933_v37 = vpack.i.bf16 %v2560_v36, %v2559_v31 }
 0x2b9   : > { %v2418_v3 = vadd.f32 %v7765_v9, %v2382_v52  ;;  %v2363_v0 = vmul.f32 %v7756_v12, %v2295_v4  ;;  %5371 = vrot.lane.b32.xlu0 %v5370_v18, %s5982_s22  ;;  %5356 = vrot.lane.b32.xlu1 %v7884_v49, %s5980_s20  ;;  %v2578_v52 = vld [vmem:[#allocation3 + $0x15a] sm:$0xff] }
 0x2ba   : > { %v5425_v53 = vpack.i.bf16 %v2578_v52, %v2577_v27 }
 0x2bb   : > { %v2450_v13 = vmax.f32 %v2418_v3, 0.0  ;;  %v2399_v28 = vadd.f32 %v7765_v9, %v2363_v0  ;;  %v2575_v3 = vld [vmem:[#allocation3 + $0x13a] sm:$0xff]  ;;  %v2576_v0 = vld [vmem:[#allocation3 + $0x142] sm:$0xff] }
 0x2bc   : > { %v2548_v25 = vld [vmem:[#allocation3 + $0x171] sm:$0xff] }
 0x2bd   : > { %2483 = vst.msk [vmem:[#allocation3 + $0x181] sm:$0xff] %vm380_vm3, %v2450_v13  ;;  %v2431_v56 = vmax.f32 %v2399_v28, 0.0  ;;  %v7893_v21 = vpack.i.bf16 %v2548_v25, %v2547_v48  ;;  %v5420_v48 = vpack.i.bf16 %v2576_v0, %v2575_v3 }
 0x2be   : > { %v2345_v35 = vpop.f32.mrf.mxu3  ;;  %v2529_v24 = vld [vmem:[#allocation3 + $0x91] sm:$0xff] }
 0x2bf   : > { %2464 = vst.msk [vmem:[#allocation3 + $0x99] sm:$0xff] %vm380_vm3, %v2431_v56  ;;  %v2383_v40 = vmul.f32 %v7756_v12, %v2345_v35  ;;  %5366 = vrot.lane.b32.xlu2 %v7893_v21, %s5980_s20  ;;  %v7950_v35 = vld [vmem:[#allocation3 + $0x38] sm:$0xff] }
 0x2c0   : > { %v2298_v50 = vpop.f32.mrf.mxu0 }
 0x2c1   : > { %v2419_v33 = vadd.f32 %v7765_v9, %v2383_v40  ;;  %v2364_v51 = vmul.f32 %v7756_v12, %v2298_v50  ;;  %5386 = vrot.lane.b32.xlu0 %v7899_v29, %s5982_s22  ;;  %5361 = vrot.lane.b32.xlu1 %v7901_v14, %s5980_s20  ;;  %v7953_v40 = vld [vmem:[#allocation3 + $0x30] sm:$0xff] }
 0x2c2   : > { %v2579_v50 = vld [vmem:[#allocation3 + $0x16a] sm:$0xff]  ;;  %v7957_v41 = vpack.i.bf16 %v7950_v35, %v7953_v40 }
 0x2c3   : > { %v2451_v10 = vmax.f32 %v2419_v33, 0.0  ;;  %v2400_v59 = vadd.f32 %v7765_v9, %v2364_v51  ;;  %v2580_v33 = vld [vmem:[#allocation3 + $0x172] sm:$0xff] }
 0x2c4   : > { %9475 = vst [vmem:[#allocation14_spill] sm:$0xff] %v7957_v41 }
 0x2c5   : > { %2484 = vst.msk [vmem:[#allocation3 + $0x189] sm:$0xff] %vm380_vm3, %v2451_v10  ;;  %v2432_v26 = vmax.f32 %v2400_v59, 0.0  ;;  %v5430_v59 = vpack.i.bf16 %v2580_v33, %v2579_v50 }
 0x2c6   : > { %v2530_v30 = vld [vmem:[#allocation3 + $0x99] sm:$0xff] }
 0x2c7   : > { %2465 = vst.msk [vmem:[#allocation3 + $0xa9] sm:$0xff] %vm380_vm3, %v2432_v26  ;;  %5381 = vrot.lane.b32.xlu2 %v7911_v60, %s5982_s22  ;;  %v7922_v62 = vpack.i.bf16 %v2530_v30, %v2529_v24  ;;  %v2561_v13 = vld [vmem:[#allocation3 + $0x92] sm:$0xff]  ;;  %v2562_v28 = vld [vmem:[#allocation3 + $0x9a] sm:$0xff] }
 0x2c8   : > { %v2300_v43 = vpop.f32.mrf.mxu0  ;;  %v5410_v25 = vpack.i.bf16 %v2562_v28, %v2561_v13  ;;  %v7971_v24 = vld [vmem:[#allocation3 + $0x50] sm:$0xff] }
 0x2c9   : > { %v2365_v22 = vmul.f32 %v7756_v12, %v2300_v43  ;;  %5376 = vrot.lane.b32.xlu1 %v7916_v55, %s5982_s22 }
 0x2cb   : > { %v2401_v8 = vadd.f32 %v7765_v9, %v2365_v22 }
 0x2cd   : > { %v2433_v34 = vmax.f32 %v2401_v8, 0.0  ;;  %v7969_v8 = vld [vmem:[#allocation3 + $0x20] sm:$0xff] }
 0x2ce   : > { %v2531_v11 = vld [vmem:[#allocation3 + $0xa9] sm:$0xff] }
 0x2cf   : > { %2466 = vst.msk [vmem:[#allocation3 + $0xb1] sm:$0xff] %vm380_vm3, %v2433_v34  ;;  %5396 = vrot.lane.b32.xlu2 %v7922_v62, %s5980_s20  ;;  %v7973_v34 = vld [vmem:[#allocation3 + $0x18] sm:$0xff] }
 0x2d0   : > { %v2303_v47 = vpop.f32.mrf.mxu0  ;;  %v5440_v31 = vpack.i.bf16 %v7969_v8, %v7973_v34 }
 0x2d1   : > { %v2366_v61 = vmul.f32 %v7756_v12, %v2303_v47  ;;  %5391 = vrot.lane.b32.xlu1 %v7927_v32, %s5982_s22  ;;  %v7975_v47 = vld [vmem:[#allocation3 + $0x48] sm:$0xff] }
 0x2d3   : > { %v2402_v17 = vadd.f32 %v7765_v9, %v2366_v61  ;;  %v7981_v61 = vpack.i.bf16 %v7971_v24, %v7975_v47 }
 0x2d5   : > { %v2434_v45 = vmax.f32 %v2402_v17, 0.0  ;;  %9476 = vst [vmem:[#allocation23_spill] sm:$0xff] %v7981_v61 }
 0x2d6   : > { %v2563_v20 = vld [vmem:[#allocation3 + $0xaa] sm:$0xff]  ;;  %v2564_v23 = vld [vmem:[#allocation3 + $0xb2] sm:$0xff] }
 0x2d7   : > { %v2532_v39 = vld [vmem:[#allocation3 + $0xb1] sm:$0xff]  ;;  %2467 = vst.msk [vmem:[#allocation3 + $0xc1] sm:$0xff] %vm380_vm3, %v2434_v45  ;;  %5401 = vrot.lane.b32.xlu2 %v7933_v37, %s5982_s22  ;;  %v5415_v58 = vpack.i.bf16 %v2564_v23, %v2563_v20  ;;  %v7989_v45 = vld [vmem:[#allocation3 + $0x80] sm:$0xff]  ;;  %v7994_v23 = vld [vmem:[#allocation3 + $0x68] sm:$0xff] }
 0x2d8   : > { %v7938_v18 = vpack.i.bf16 %v2532_v39, %v2531_v11  ;;  %v2305_v63 = vpop.f32.mrf.mxu0  ;;  %v7992_v20 = vld [vmem:[#allocation3 + $0x78] sm:$0xff] }
 0x2d9   : > { %v2367_v38 = vmul.f32 %v7756_v12, %v2305_v63  ;;  %5416 = vrot.lane.b32.xlu1 %v5415_v58, %s5982_s22  ;;  %v7998_v58 = vpack.i.bf16 %v7989_v45, %v7992_v20  ;;  %v8000_v63 = vld [vmem:[#allocation3 + $0x60] sm:$0xff] }
 0x2da   : > { %5406 = vrot.lane.b32.xlu0 %v7938_v18, %s5980_s20  ;;  %v8007_v52 = vpack.i.bf16 %v7994_v23, %v8000_v63 }
 0x2db   : > { %v2403_v4 = vadd.f32 %v7765_v9, %v2367_v38  ;;  %9477 = vst [vmem:[#allocation22_spill] sm:$0xff] %v7998_v58 }
 0x2dc   : > { %9478 = vst [vmem:[#allocation21_spill] sm:$0xff] %v8007_v52 }
 0x2dd   : > { %v2435_v46 = vmax.f32 %v2403_v4, 0.0 }
 0x2de   : > { %v2533_v57 = vld [vmem:[#allocation3 + $0xc1] sm:$0xff] }
 0x2df   : > { %2468 = vst.msk [vmem:[#allocation3 + $0xc9] sm:$0xff] %vm380_vm3, %v2435_v46  ;;  %5426 = vrot.lane.b32.xlu2 %v5425_v53, %s5982_s22  ;;  %v8014_v53 = vld [vmem:[#allocation3 + $0xb0] sm:$0xff] }
 0x2e0   : > { %v2308_v15 = vpop.f32.mrf.mxu0 }
 0x2e1   : > { %v2368_v56 = vmul.f32 %v7756_v12, %v2308_v15  ;;  %5421 = vrot.lane.b32.xlu1 %v5420_v48, %s5982_s22  ;;  %v8016_v48 = vld [vmem:[#allocation3 + $0x98] sm:$0xff] }
 0x2e2   : > { %5411 = vrot.lane.b32.xlu0 %v5410_v25, %s5982_s22 }
 0x2e3   : > { %v2404_v5 = vadd.f32 %v7765_v9, %v2368_v56  ;;  %v8020_v56 = vld [vmem:[#allocation3 + $0xa8] sm:$0xff] }
 0x2e4   : > { %v8029_v50 = vpack.i.bf16 %v8014_v53, %v8020_v56 }
 0x2e5   : > { %v2436_v51 = vmax.f32 %v2404_v5, 0.0  ;;  %v8022_v5 = vld [vmem:[#allocation3 + $0x90] sm:$0xff] }
 0x2e6   : > { %v2534_v10 = vld [vmem:[#allocation3 + $0xc9] sm:$0xff]  ;;  %9479 = vst [vmem:[#allocation20_spill] sm:$0xff] %v8029_v50  ;;  %v8033_v33 = vpack.i.bf16 %v8016_v48, %v8022_v5 }
 0x2e7   : > { %2469 = vst.msk [vmem:[#allocation3 + $0xd9] sm:$0xff] %vm380_vm3, %v2436_v51  ;;  %5446 = vrot.lane.b32.xlu2 %v7957_v41, %s5984_s24  ;;  %v7962_v1 = vpack.i.bf16 %v2534_v10, %v2533_v57  ;;  %v2565_v43 = vld [vmem:[#allocation3 + $0xc2] sm:$0xff]  ;;  %v2566_v22 = vld [vmem:[#allocation3 + $0xca] sm:$0xff] }
 0x2e8   : > { %v2310_v44 = vpop.f32.mrf.mxu0  ;;  %v5460_v6 = vpack.i.bf16 %v2566_v22, %v2565_v43  ;;  %9480 = vst [vmem:[#allocation27_spill] sm:$0xff] %v8033_v33  ;;  %v8040_v10 = vld [vmem:[#allocation3 + $0xc8] sm:$0xff] }
 0x2e9   : > { %v2369_v26 = vmul.f32 %v7756_v12, %v2310_v44  ;;  %5436 = vrot.lane.b32.xlu1 %v7962_v1, %s5980_s20  ;;  %v8043_v44 = vld [vmem:[#allocation3 + $0xc0] sm:$0xff] }
 0x2ea   : > { %5431 = vrot.lane.b32.xlu0 %v5430_v59, %s5982_s22  ;;  %v5490_v43 = vpack.i.bf16 %v8040_v10, %v8043_v44 }
 0x2eb   : > { %v2405_v30 = vadd.f32 %v7765_v9, %v2369_v26 }
 0x2ed   : > { %v2437_v16 = vmax.f32 %v2405_v30, 0.0 }
 0x2ee   : > { %v2535_v46 = vld [vmem:[#allocation3 + $0xd9] sm:$0xff] }
 0x2ef   : > { %2470 = vst.msk [vmem:[#allocation3 + $0xe1] sm:$0xff] %vm380_vm3, %v2437_v16  ;;  %5461 = vrot.lane.b32.xlu2 %v5460_v6, %s5982_s22 }
 0x2f0   : > { %v2313_v36 = vpop.f32.mrf.mxu0 }
 0x2f1   : > { %v2370_v17 = vmul.f32 %v7756_v12, %v2313_v36  ;;  %5441 = vrot.lane.b32.xlu1 %v5440_v31, %s5984_s24  ;;  %v8047_v31 = vpop.permute.xlu2 %5326 }
 0x2f2   : > { %5451 = vrot.lane.b32.xlu0 %v7981_v61, %s5984_s24  ;;  %v2611_v61 = vld [vmem:[#allocation3 + $0x180] sm:$0xff] }
 0x2f3   : > { %v2406_v11 = vadd.f32 %v7765_v9, %v2370_v17 }
 0x2f5   : > { %v2438_v39 = vmax.f32 %v2406_v11, 0.0 }
 0x2f6   : > { %v2567_v38 = vld [vmem:[#allocation3 + $0xda] sm:$0xff]  ;;  %v2568_v27 = vld [vmem:[#allocation3 + $0xe2] sm:$0xff] }
 0x2f7   : > { %2471 = vst.msk [vmem:[#allocation3 + $0xf1] sm:$0xff] %vm380_vm3, %v2438_v39  ;;  %5466 = vrot.lane.b32.xlu2 %v7998_v58, %s5984_s24  ;;  %v5475_v4 = vpack.i.bf16 %v2568_v27, %v2567_v38  ;;  %v2536_v13 = vld [vmem:[#allocation3 + $0xe1] sm:$0xff]  ;;  %v8057_v38 = vld [vmem:[#allocation3 + $0x158] sm:$0xff] }
 0x2f8   : > { %v2315_v3 = vpop.f32.mrf.mxu0  ;;  %v8018_v15 = vpack.i.bf16 %v2536_v13, %v2535_v46 }
 0x2f9   : > { %v2371_v0 = vmul.f32 %v7756_v12, %v2315_v3  ;;  %5456 = vrot.lane.b32.xlu1 %v8007_v52, %s5984_s24 }
 0x2fa   : > { %5476 = vrot.lane.b32.xlu0 %v5475_v4, %s5982_s22  ;;  %v8060_v4 = vld [vmem:[#allocation3 + $0x150] sm:$0xff] }
 0x2fb   : > { %v2407_v28 = vadd.f32 %v7765_v9, %v2371_v0  ;;  %v8064_v0 = vld [vmem:[#allocation3 + $0xe0] sm:$0xff] }
 0x2fc   : > { %9482 = vst [vmem:[#allocation30_spill] sm:$0xff] %v8064_v0 }
 0x2fd   : > { %v2439_v25 = vmax.f32 %v2407_v28, 0.0  ;;  %v8068_v28 = vpack.i.bf16 %v8057_v38, %v8060_v4 }
 0x2fe   : > { %v2537_v22 = vld [vmem:[#allocation3 + $0xf1] sm:$0xff] }
 0x2ff   : > { %2472 = vst.msk [vmem:[#allocation3 + $0xf9] sm:$0xff] %vm380_vm3, %v2439_v25  ;;  %5471 = vrot.lane.b32.xlu2 %v8018_v15, %s5980_s20  ;;  %v8070_v46 = vld [vmem:[#allocation3 + $0xf0] sm:$0xff]  ;;  %v8072_v25 = vld [vmem:[#allocation3 + $0xd8] sm:$0xff] }
 0x300   : > { %v2318_v51 = vpop.f32.mrf.mxu0  ;;  %9483 = vst [vmem:[#allocation49_spill] sm:$0xff] %v8068_v28 }
 0x301   : > { %v2372_v57 = vmul.f32 %v7756_v12, %v2318_v51  ;;  %5486 = vrot.lane.b32.xlu1 %v8029_v50, %s5984_s24  ;;  %9484 = vst [vmem:[#allocation54_spill] sm:$0xff] %v8070_v46 }
 0x302   : > { %5481 = vrot.lane.b32.xlu0 %v8033_v33, %s5984_s24  ;;  %9485 = vst [vmem:[#allocation31_spill] sm:$0xff] %v8072_v25  ;;  %v5337_v33 = vpop.permute.xlu1 %5336 }
 0x303   : > { %v2408_v59 = vadd.f32 %v7765_v9, %v2372_v57  ;;  %v5500_v57 = vpack.i.bf16 %v8064_v0, %v8072_v25  ;;  %v2486_v0 = vld [vmem:[#allocation3 + $0x8] sm:$0xff] }
 0x305   : > { %v2440_v26 = vmax.f32 %v2408_v59, 0.0 }
 0x306   : > { %v2569_v30 = vld [vmem:[#allocation3 + $0xf2] sm:$0xff]  ;;  %v2570_v16 = vld [vmem:[#allocation3 + $0xfa] sm:$0xff] }
 0x307   : > { %v2538_v6 = vld [vmem:[#allocation3 + $0xf9] sm:$0xff]  ;;  %2473 = vst.msk [vmem:[#allocation3 + $0x109] sm:$0xff] %vm380_vm3, %v2440_v26  ;;  %5491 = vrot.lane.b32.xlu2 %v5490_v43, %s5984_s24  ;;  %v5505_v36 = vpack.i.bf16 %v2570_v16, %v2569_v30  ;;  %v8081_v26 = vpop.permute.xlu2 %5341  ;;  %v8089_v16 = vld [vmem:[#allocation3 + $0x170] sm:$0xff] }
 0x308   : > { %v8051_v17 = vpack.i.bf16 %v2538_v6, %v2537_v22  ;;  %v2320_v11 = vpop.f32.mrf.mxu0  ;;  %v8062_v3 = vld [vmem:[#allocation3 + $0xf8] sm:$0xff]  ;;  %v8086_v22 = vpop.permute.xlu0 %5331 }
 0x309   : > { %v2373_v39 = vmul.f32 %v7756_v12, %v2320_v11  ;;  %5506 = vrot.lane.b32.xlu1 %v5505_v36, %s5982_s22  ;;  %9481 = vst [vmem:[#allocation26_spill] sm:$0xff] %v8062_v3  ;;  %v5510_v51 = vpack.i.bf16 %v8062_v3, %v8070_v46  ;;  %v8091_v36 = vld [vmem:[#allocation3 + $0x168] sm:$0xff] }
 0x30a   : > { %5496 = vrot.lane.b32.xlu0 %v8051_v17, %s5980_s20  ;;  %v2612_v46 = vld [vmem:[#allocation3 + $0x188] sm:$0xff] }
 0x30b   : > { %v2409_v27 = vadd.f32 %v7765_v9, %v2373_v39 }
 0x30d   : > { %v2441_v13 = vmax.f32 %v2409_v27, 0.0 }
 0x30e   : > { %v2539_v11 = vld [vmem:[#allocation3 + $0x109] sm:$0xff] }
 0x30f   : > { %2474 = vst.msk [vmem:[#allocation3 + $0x111] sm:$0xff] %vm380_vm3, %v2441_v13  ;;  %5526 = vrot.lane.b32.xlu2 %v8068_v28, %s5984_s24 }
 0x310   : > { %v2323_v59 = vpop.f32.mrf.mxu0 }
 0x311   : > { %v2374_v43 = vmul.f32 %v7756_v12, %v2323_v59  ;;  %5511 = vrot.lane.b32.xlu1 %v5510_v51, %s5984_s24  ;;  %v5530_v51 = vpack.i.bf16 %v8089_v16, %v8091_v36 }
 0x312   : > { %5501 = vrot.lane.b32.xlu0 %v5500_v57, %s5984_s24 }
 0x313   : > { %v2410_v30 = vadd.f32 %v7765_v9, %v2374_v43 }
 0x315   : > { %v2442_v6 = vmax.f32 %v2410_v30, 0.0 }
 0x316   : > { %v2571_v39 = vld [vmem:[#allocation3 + $0x10a] sm:$0xff]  ;;  %v2572_v27 = vld [vmem:[#allocation3 + $0x112] sm:$0xff] }
 0x317   : > { %v2540_v13 = vld [vmem:[#allocation3 + $0x111] sm:$0xff]  ;;  %2475 = vst.msk [vmem:[#allocation3 + $0x121] sm:$0xff] %vm380_vm3, %v2442_v6  ;;  %v5540_v59 = vpack.i.bf16 %v2572_v27, %v2571_v39  ;;  %v8110_v27 = vld [vmem:[#allocation3 + $0x140] sm:$0xff] }
 0x318   : > { %v8096_v57 = vpack.i.bf16 %v2540_v13, %v2539_v11  ;;  %v2325_v50 = vpop.f32.mrf.mxu0  ;;  %v8108_v39 = vld [vmem:[#allocation3 + $0x110] sm:$0xff]  ;;  %v5338_v13 = vunpack.i.l.bf16 %v5337_v33 }
 0x319   : > { %v2375_v43 = vmul.f32 %v7756_v12, %v2325_v50  ;;  %v8099_v28 = vpop.permute.xlu2 %5366  ;;  %5541 = vrot.lane.b32.xlu2 %v5540_v59, %s5982_s22  ;;  %9486 = vst [vmem:[#allocation33_spill] sm:$0xff] %v8108_v39  ;;  %v8112_v12 = vld [vmem:[#allocation3 + $0x108] sm:$0xff]  ;;  %v5339_v50 = vunpack.i.h.bf16 %v5337_v33  ;;  %v8117_v59 = vld [vmem:[#allocation3 + $0x138] sm:$0xff] }
 0x31a   : > { %5531 = vrot.lane.b32.xlu0 %v5530_v51, %s5984_s24  ;;  %5516 = vrot.lane.b32.xlu1 %v8096_v57, %s5980_s20  ;;  %9487 = vst [vmem:[#allocation34_spill] sm:$0xff] %v8112_v12  ;;  %v5545_v51 = vpack.i.bf16 %v8108_v39, %v8112_v12  ;;  %v3802_v33 = vsel %vm380_vm3, %v7953_v40, %v5338_v13  ;;  %v2485_v13 = vld [vmem:[#allocation3] sm:$0xff] }
 0x31b   : > { %v2411_v30 = vadd.f32 %v7765_v9, %v2375_v43  ;;  %v8106_v6 = vpop.permute.xlu0 %5346  ;;  %v5520_v9 = vpack.i.bf16 %v8110_v27, %v8117_v59 }
 0x31d   : > { %v2443_v11 = vmax.f32 %v2411_v30, 0.0 }
 0x31f   : > { %2476 = vst.msk [vmem:[#allocation3 + $0x129] sm:$0xff] %vm380_vm3, %v2443_v11  ;;  %v3803_v11 = vsel %vm380_vm3, %v7950_v35, %v5339_v50  ;;  %v5535_v35 = vpack.i.bf16 %v2612_v46, %v2611_v61 }
 0x321   : > { %v5382_v43 = vpop.permute.xlu2 %5381  ;;  %5546 = vrot.lane.b32.xlu2 %v5545_v51, %s5984_s24 }
 0x322   : > { %v5384_v30 = vunpack.i.h.bf16 %v5382_v43  ;;  %v5383_v58 = vunpack.i.l.bf16 %v5382_v43  ;;  %5521 = vrot.lane.b32.xlu1 %v5520_v9, %s5984_s24  ;;  %v5329_v43 = vunpack.i.h.bf16 %v8047_v31  ;;  %v5328_v9 = vunpack.i.l.bf16 %v8047_v31 }
 0x323   : > { %v8127_v3 = vpop.permute.xlu0 %5351 }
 0x324   : > { %v8130_v39 = vsel %vm2005_vm5, %v3803_v11, %v5384_v30  ;;  %v8133_v12 = vsel %vm2005_vm5, %v3802_v33, %v5383_v58  ;;  %v3799_v58 = vsel %vm380_vm3, %v2486_v0, %v5329_v43  ;;  %v3798_v30 = vsel %vm380_vm3, %v2485_v13, %v5328_v9 }
 0x325   : > { %v5344_v13 = vunpack.i.h.bf16 %v8081_v26 }
 0x326   : > { %v2573_v51 = vld [vmem:[#allocation3 + $0x122] sm:$0xff]  ;;  %v2574_v52 = vld [vmem:[#allocation3 + $0x12a] sm:$0xff] }
 0x327   : > { %v5560_v40 = vpack.i.bf16 %v2574_v52, %v2573_v51  ;;  %v8145_v51 = vld [vmem:[#allocation3 + $0x128] sm:$0xff] }
 0x328   : > { %9488 = vst [vmem:[#allocation4_spill] sm:$0xff] %v8145_v51  ;;  %v2542_v61 = vld [vmem:[#allocation3 + $0x129] sm:$0xff] }
 0x329   : > { %v8137_v50 = vpop.permute.xlu2 %5396  ;;  %5551 = vrot.lane.b32.xlu2 %v7813_v54, %s5986_s26  ;;  %5561 = vrot.lane.b32.xlu0 %v5560_v40, %s5982_s22  ;;  %v8153_v40 = vld [vmem:[#allocation3 + $0x120] sm:$0xff] }
 0x32a   : > { %5536 = vrot.lane.b32.xlu1 %v5535_v35, %s5984_s24  ;;  %9489 = vst [vmem:[#allocation32_spill] sm:$0xff] %v8153_v40  ;;  %v2541_v35 = vld [vmem:[#allocation3 + $0x121] sm:$0xff]  ;;  %v5565_v43 = vpack.i.bf16 %v8145_v51, %v8153_v40  ;;  %v4256_v40 = vld [vmem:[%s6108_s15] sm:$0xff] }
 0x32b   : > { %v5372_v33 = vpop.permute.xlu0 %5371  ;;  %v5357_v31 = vpop.permute.xlu1 %5356  ;;  %v8157_v9 = vpack.i.bf16 %v2542_v61, %v2541_v35 }
 0x32c   : > { %v5374_v11 = vunpack.i.h.bf16 %v5372_v33  ;;  %v5373_v52 = vunpack.i.l.bf16 %v5372_v33  ;;  %v5359_v25 = vunpack.i.h.bf16 %v5357_v31  ;;  %v5358_v0 = vunpack.i.l.bf16 %v5357_v31  ;;  %v4304_v31 = vld [vmem:[%s9179_s8] sm:$0x3] }
 0x32d   : > { %v5343_v33 = vunpack.i.l.bf16 %v8081_v26  ;;  %v8174_v35 = vsel %vm2255_vm9, %v4304_v31, 0 }
 0x32e   : > { %v8148_v46 = vsel %vm2005_vm5, %v3799_v58, %v5374_v11  ;;  %v8151_v54 = vsel %vm2005_vm5, %v3798_v30, %v5373_v52  ;;  %v3808_v26 = vsel %vm380_vm3, %v7992_v20, %v5358_v0  ;;  %v3809_v11 = vsel %vm380_vm3, %v7989_v45, %v5359_v25  ;;  %9490 = vst [vmem:[#allocation35_spill] sm:$0xff] %v8174_v35  ;;  %v4257_v20 = vld [vmem:[%s6108_s15 + $0x8] sm:$0xff] }
 0x32f   : > { %4363 = vmatpush.bf16.msra.mxu2 %v8174_v35  ;;  %v3804_v45 = vsel %vm380_vm3, %v7975_v47, %v5343_v33  ;;  %v3805_v25 = vsel %vm380_vm3, %v7971_v24, %v5344_v13  ;;  %v4288_v0 = vpack.c.bf16 %v4257_v20, %v4256_v40 }
 0x331   : > { %v5402_v41 = vpop.permute.xlu2 %5401  ;;  %5566 = vrot.lane.b32.xlu0 %v5565_v43, %s5984_s24  ;;  %5556 = vrot.lane.b32.xlu2 %v8157_v9, %s5980_s20  ;;  %s5987_s20 = smov 40   ;;  %s5989_s24 = smov 64  }
 0x332   : > { %v5404_v58 = vunpack.i.h.bf16 %v5402_v41  ;;  %v5403_v30 = vunpack.i.l.bf16 %v5402_v41  ;;  %5576 = vrot.lane.b32.xlu1 %v7848_v2, %s5986_s26  ;;  %4629 = vmatmul.msk.bf16.vlgmr.msra.gmra.mxu2 %vm334_vm0, %v4288_v0 }
 0x333   : > { %v5387_v52 = vpop.permute.xlu0 %5386  ;;  %v5362_v61 = vpop.permute.xlu1 %5361 }
 0x334   : > { %v8177_v41 = vsel %vm2005_vm5, %v3809_v11, %v5404_v58  ;;  %v8180_v2 = vsel %vm2005_vm5, %v3808_v26, %v5403_v30  ;;  %v5389_v43 = vunpack.i.h.bf16 %v5387_v52  ;;  %v5388_v51 = vunpack.i.l.bf16 %v5387_v52 }
 0x335   : > { %v5364_v30 = vunpack.i.h.bf16 %v5362_v61  ;;  %v5363_v26 = vunpack.i.l.bf16 %v5362_v61  ;;  %v5334_v11 = vunpack.i.h.bf16 %v8086_v22  ;;  %v5333_v52 = vunpack.i.l.bf16 %v8086_v22 }
 0x336   : > { %v8190_v31 = vsel %vm2005_vm5, %v3805_v25, %v5389_v43  ;;  %v8193_v58 = vsel %vm2005_vm5, %v3804_v45, %v5388_v51  ;;  %v5348_v43 = vunpack.i.l.bf16 %v8106_v6 }
 0x337   : > { %v3827_v51 = vsel %vm380_vm3, %v8057_v38, %v5364_v30  ;;  %v3826_v40 = vsel %vm380_vm3, %v8060_v4, %v5363_v26  ;;  %v3800_v61 = vsel %vm380_vm3, %v7973_v34, %v5333_v52  ;;  %v4258_v26 = vld [vmem:[%s6108_s15 + $0x10] sm:$0xff] }
 0x339   : > { %v5427_v35 = vpop.permute.xlu2 %5426  ;;  %5571 = vrot.lane.b32.xlu0 %v7828_v19, %s5986_s26  ;;  %5581 = vrot.lane.b32.xlu2 %v7864_v42, %s5986_s26 }
 0x33a   : > { %v5429_v24 = vunpack.i.h.bf16 %v5427_v35  ;;  %v5428_v47 = vunpack.i.l.bf16 %v5427_v35  ;;  %5591 = vrot.lane.b32.xlu1 %v7922_v62, %s5986_s26  ;;  %v3801_v62 = vsel %vm380_vm3, %v7969_v8, %v5334_v11  ;;  %v5349_v35 = vunpack.i.h.bf16 %v8106_v6  ;;  %v4259_v11 = vld [vmem:[%s6108_s15 + $0x18] sm:$0xff] }
 0x33b   : > { %v5377_v13 = vpop.permute.xlu1 %5376  ;;  %v4289_v52 = vpack.c.bf16 %v4259_v11, %v4258_v26 }
 0x33c   : > { %v8209_v22 = vsel %vm2005_vm5, %v3827_v51, %v5429_v24  ;;  %v8212_v19 = vsel %vm2005_vm5, %v3826_v40, %v5428_v47  ;;  %v5379_v33 = vunpack.i.h.bf16 %v5377_v13  ;;  %v5378_v42 = vunpack.i.l.bf16 %v5377_v13 }
 0x33e   : > { %v3833_v38 = vsel %vm2005_vm5, %v3801_v62, %v5379_v33  ;;  %v3832_v4 = vsel %vm2005_vm5, %v3800_v61, %v5378_v42 }
 0x341   : > { %v5447_v20 = vpop.permute.xlu2 %5446  ;;  %5586 = vrot.lane.b32.xlu0 %v7884_v49, %s5986_s26  ;;  %5596 = vrot.lane.b32.xlu2 %v7938_v18, %s5986_s26  ;;  %v3806_v49 = vsel %vm380_vm3, %v8000_v63, %v5348_v43  ;;  %v3807_v18 = vsel %vm380_vm3, %v7994_v23, %v5349_v35 }
 0x342   : > { %v5449_v34 = vunpack.i.h.bf16 %v5447_v20  ;;  %v5448_v45 = vunpack.i.l.bf16 %v5447_v20  ;;  %5606 = vrot.lane.b32.xlu1 %v8018_v15, %s5986_s26  ;;  %4630 = vmatmul.msk.bf16.gmra.mxu2 %vm334_vm0, %v4289_v52 }
 0x343   : > { %v5392_v8 = vpop.permute.xlu1 %5391 }
 0x344   : > { %v8229_v25 = vsel %vm2071_vm7, %v3833_v38, %v5449_v34  ;;  %v8232_v0 = vsel %vm2071_vm7, %v3832_v4, %v5448_v45  ;;  %v5394_v6 = vunpack.i.h.bf16 %v5392_v8  ;;  %v5393_v30 = vunpack.i.l.bf16 %v5392_v8  ;;  %v2644_v8 = vld [vmem:[#allocation3 + $0x189] sm:$0xff] }
 0x346   : > { %v3839_v15 = vsel %vm2005_vm5, %v3807_v18, %v5394_v6  ;;  %v3838_v24 = vsel %vm2005_vm5, %v3806_v49, %v5393_v30  ;;  %v4261_v6 = vld [vmem:[%s6108_s15 + $0x28] sm:$0xff] }
 0x349   : > { %v8243_v47 = vpop.permute.xlu2 %5461  ;;  %5601 = vrot.lane.b32.xlu0 %v7962_v1, %s5986_s26  ;;  %5611 = vrot.lane.b32.xlu2 %v8051_v17, %s5986_s26  ;;  %v5354_v1 = vunpack.i.h.bf16 %v8127_v3 }
 0x34a   : > { %5621 = vrot.lane.b32.xlu1 %v8157_v9, %s5986_s26  ;;  %v5353_v9 = vunpack.i.l.bf16 %v8127_v3 }
 0x34b   : > { %v5417_v63 = vpop.permute.xlu1 %5416  ;;  %v3825_v3 = vsel %vm380_vm3, %v8110_v27, %v5354_v1 }
 0x34c   : > { %v5407_v23 = vpop.permute.xlu0 %5406  ;;  %v5419_v51 = vunpack.i.h.bf16 %v5417_v63  ;;  %v5418_v40 = vunpack.i.l.bf16 %v5417_v63  ;;  %v3824_v30 = vsel %vm380_vm3, %v8117_v59, %v5353_v9  ;;  %v5463_v9 = vunpack.i.l.bf16 %v8243_v47 }
 0x34d   : > { %v5409_v13 = vunpack.i.h.bf16 %v5407_v23  ;;  %v5408_v33 = vunpack.i.l.bf16 %v5407_v23 }
 0x34f   : > { %v3812_v42 = vsel %vm380_vm3, %v8020_v56, %v5408_v33  ;;  %v3813_v61 = vsel %vm380_vm3, %v8014_v53, %v5409_v13  ;;  %v5399_v53 = vunpack.i.h.bf16 %v8137_v50  ;;  %v5398_v56 = vunpack.i.l.bf16 %v8137_v50  ;;  %v4260_v50 = vld [vmem:[%s6108_s15 + $0x20] sm:$0xff] }
 0x350   : > { %v8257_v62 = vsel %vm2005_vm5, %v3812_v42, %v5418_v40  ;;  %v8260_v17 = vsel %vm2005_vm5, %v3813_v61, %v5419_v51  ;;  %v4290_v11 = vpack.c.bf16 %v4261_v6, %v4260_v50 }
 0x351   : > { %v5467_v38 = vpop.permute.xlu2 %5466  ;;  %5616 = vrot.lane.b32.xlu0 %v8096_v57, %s5986_s26  ;;  %5626 = vrot.lane.b32.xlu2 %v7874_v7, %s5986_s26  ;;  %v3810_v27 = vsel %vm380_vm3, %v8022_v5, %v5398_v56  ;;  %v3811_v49 = vsel %vm380_vm3, %v8016_v48, %v5399_v53  ;;  %v5369_v5 = vunpack.i.h.bf16 %v8099_v28  ;;  %v5368_v48 = vunpack.i.l.bf16 %v8099_v28 }
 0x352   : > { %v5469_v4 = vunpack.i.h.bf16 %v5467_v38  ;;  %v5468_v35 = vunpack.i.l.bf16 %v5467_v38  ;;  %5636 = vrot.lane.b32.xlu1 %v7893_v21, %s5986_s26  ;;  %4631 = vmatmul.msk.bf16.gmra.mxu2 %vm334_vm0, %v4290_v11 }
 0x353   : > { %v5422_v43 = vpop.permute.xlu1 %5421  ;;  %v3829_v42 = vsel %vm380_vm3, %v8089_v16, %v5369_v5  ;;  %v3828_v28 = vsel %vm380_vm3, %v8091_v36, %v5368_v48  ;;  %v2711_v48 = vld [vmem:[#allocation3 + $0x39] sm:$0xff] }
 0x354   : > { %v5412_v20 = vpop.permute.xlu0 %5411  ;;  %v8274_v57 = vsel %vm2071_vm7, %v3839_v15, %v5469_v4  ;;  %v8277_v34 = vsel %vm2071_vm7, %v3838_v24, %v5468_v35  ;;  %v5424_v7 = vunpack.i.h.bf16 %v5422_v43  ;;  %v5423_v45 = vunpack.i.l.bf16 %v5422_v43  ;;  %v2643_v15 = vld [vmem:[#allocation3 + $0x181] sm:$0xff] }
 0x355   : > { %v5414_v21 = vunpack.i.h.bf16 %v5412_v20  ;;  %v5413_v26 = vunpack.i.l.bf16 %v5412_v20  ;;  %v8299_v63 = vpack.i.bf16 %v2644_v8, %v2643_v15  ;;  %v4263_v8 = vld [vmem:[%s6108_s15 + $0x38] sm:$0xff] }
 0x356   : > { %v8288_v18 = vsel %vm2005_vm5, %v3825_v3, %v5424_v7  ;;  %v8291_v52 = vsel %vm2005_vm5, %v3824_v30, %v5423_v45  ;;  %v4262_v45 = vld [vmem:[%s6108_s15 + $0x30] sm:$0xff] }
 0x357   : > { %v8294_v24 = vsel %vm2005_vm5, %v3811_v49, %v5414_v21  ;;  %v8297_v59 = vsel %vm2005_vm5, %v3810_v27, %v5413_v26  ;;  %v4291_v6 = vpack.c.bf16 %v4263_v8, %v4262_v45  ;;  %v4265_v45 = vld [vmem:[%s6108_s15 + $0x48] sm:$0xff]  ;;  %v2746_v8 = vld [vmem:[#allocation3 + $0x62] sm:$0xff] }
 0x359   : > { %v8304_v23 = vpop.permute.xlu2 %5471  ;;  %5631 = vrot.lane.b32.xlu0 %v7901_v14, %s5986_s26  ;;  %5641 = vrot.lane.b32.xlu2 %v8299_v63, %s5986_s26  ;;  %v5464_v14 = vunpack.i.h.bf16 %v8243_v47 }
 0x35a   : > { %5651 = vrot.lane.b32.xlu1 %v7911_v60, %s5987_s20  ;;  %v5473_v26 = vunpack.i.l.bf16 %v8304_v23 }
 0x35b   : > { %v5437_v40 = vpop.permute.xlu1 %5436 }
 0x35c   : > { %v5432_v51 = vpop.permute.xlu0 %5431  ;;  %v5439_v61 = vunpack.i.h.bf16 %v5437_v40  ;;  %v5438_v1 = vunpack.i.l.bf16 %v5437_v40  ;;  %v2744_v40 = vld [vmem:[#allocation3 + $0x4a] sm:$0xff] }
 0x35d   : > { %v5434_v13 = vunpack.i.h.bf16 %v5432_v51  ;;  %v5433_v33 = vunpack.i.l.bf16 %v5432_v51 }
 0x35e   : > { %v3814_v56 = vsel %vm380_vm3, %v8043_v44, %v5438_v1  ;;  %v3815_v16 = vsel %vm380_vm3, %v8040_v10, %v5439_v61  ;;  %v2710_v61 = vld [vmem:[#allocation3 + $0x31] sm:$0xff] }
 0x35f   : > { %v8319_v38 = vsel %vm2005_vm5, %v3829_v42, %v5434_v13  ;;  %v8322_v53 = vsel %vm2005_vm5, %v3828_v28, %v5433_v33  ;;  %v8329_v36 = vsel %vm2005_vm5, %v3814_v56, %v5463_v9  ;;  %v8332_v4 = vsel %vm2005_vm5, %v3815_v16, %v5464_v14  ;;  %v2745_v13 = vld [vmem:[#allocation3 + $0x52] sm:$0xff]  ;;  %v9492_v33 = vld [vmem:[#allocation31_spill] sm:$0xff]  ;;  %v9493_v42 = vld [vmem:[#allocation30_spill] sm:$0xff] }
 0x360   : > { %v5675_v9 = vpack.i.bf16 %v2711_v48, %v2710_v61  ;;  %v5695_v56 = vpack.i.bf16 %v2745_v13, %v2744_v40  ;;  %v2715_v48 = vld [vmem:[#allocation3 + $0x69] sm:$0xff]  ;;  %v9496_v40 = vld [vmem:[#allocation54_spill] sm:$0xff] }
 0x361   : > { %v5492_v47 = vpop.permute.xlu2 %5491  ;;  %5646 = vrot.lane.b32.xlu0 %v7916_v55, %s5987_s20  ;;  %5656 = vrot.lane.b32.xlu2 %v7899_v29, %s5987_s20  ;;  %v2714_v61 = vld [vmem:[#allocation3 + $0x61] sm:$0xff] }
 0x362   : > { %v5494_v35 = vunpack.i.h.bf16 %v5492_v47  ;;  %v5493_v44 = vunpack.i.l.bf16 %v5492_v47  ;;  %5666 = vrot.lane.b32.xlu1 %v7933_v37, %s5987_s20  ;;  %4632 = vmatmul.msk.bf16.gmra.mxu2 %vm334_vm0, %v4291_v6 }
 0x363   : > { %v5442_v3 = vpop.permute.xlu1 %5441 }
 0x364   : > { %v5452_v10 = vpop.permute.xlu0 %5451  ;;  %v8342_v43 = vsel %vm2071_vm7, %v8260_v17, %v5494_v35  ;;  %v8346_v20 = vsel %vm2071_vm7, %v8257_v62, %v5493_v44  ;;  %v5444_v29 = vunpack.i.h.bf16 %v5442_v3  ;;  %v5443_v50 = vunpack.i.l.bf16 %v5442_v3 }
 0x365   : > { %v5454_v7 = vunpack.i.h.bf16 %v5452_v10  ;;  %v5453_v55 = vunpack.i.l.bf16 %v5452_v10 }
 0x366   : > { %v8360_v17 = vsel %vm2071_vm7, %v8148_v46, %v5444_v29  ;;  %v8364_v62 = vsel %vm2071_vm7, %v8151_v54, %v5443_v50  ;;  %v2747_v29 = vld [vmem:[#allocation3 + $0x6a] sm:$0xff] }
 0x367   : > { %v8352_v37 = vsel %vm2071_vm7, %v8130_v39, %v5454_v7  ;;  %v8356_v30 = vsel %vm2071_vm7, %v8133_v12, %v5453_v55  ;;  %v9491_v39 = vld [vmem:[#allocation14_spill] sm:$0xff]  ;;  %v5474_v12 = vunpack.i.h.bf16 %v8304_v23  ;;  %v2713_v7 = vld [vmem:[#allocation3 + $0x51] sm:$0xff] }
 0x368   : > { %v4264_v55 = vld [vmem:[%s6108_s15 + $0x40] sm:$0xff] }
 0x369   : > { %v5527_v21 = vpop.permute.xlu2 %5526  ;;  %5661 = vrot.lane.b32.xlu0 %v7927_v32, %s5987_s20  ;;  %5671 = vrot.lane.b32.xlu2 %v9491_v39, %s5988_s23  ;;  %v3817_v28 = vsel %vm380_vm3, %v9493_v42, %v5474_v12  ;;  %v4292_v50 = vpack.c.bf16 %v4265_v45, %v4264_v55 }
 0x36a   : > { %v5529_v46 = vunpack.i.h.bf16 %v5527_v21  ;;  %v5528_v11 = vunpack.i.l.bf16 %v5527_v21  ;;  %5681 = vrot.lane.b32.xlu1 %v7911_v60, %s5989_s24  ;;  %v3816_v60 = vsel %vm380_vm3, %v9492_v33, %v5473_v26  ;;  %v2712_v26 = vld [vmem:[#allocation3 + $0x49] sm:$0xff]  ;;  %v9497_v33 = vld [vmem:[#allocation26_spill] sm:$0xff] }
 0x36b   : > { %v5457_v54 = vpop.permute.xlu1 %5456 }
 0x36c   : > { %v5477_v27 = vpop.permute.xlu0 %5476  ;;  %v8377_v49 = vsel %vm2071_vm7, %v8288_v18, %v5529_v46  ;;  %v8381_v32 = vsel %vm2071_vm7, %v8291_v52, %v5528_v11  ;;  %v5459_v15 = vunpack.i.h.bf16 %v5457_v54  ;;  %v5458_v5 = vunpack.i.l.bf16 %v5457_v54 }
 0x36d   : > { %v5479_v23 = vunpack.i.h.bf16 %v5477_v27  ;;  %v5478_v51 = vunpack.i.l.bf16 %v5477_v27  ;;  %v5690_v46 = vpack.i.bf16 %v2713_v7, %v2712_v26  ;;  %v5710_v11 = vpack.i.bf16 %v2747_v29, %v2746_v8  ;;  %v2717_v26 = vld [vmem:[#allocation3 + $0x81] sm:$0xff] }
 0x36e   : > { %v8389_v18 = vsel %vm2071_vm7, %v8190_v31, %v5459_v15  ;;  %v8393_v52 = vsel %vm2071_vm7, %v8193_v58, %v5458_v5  ;;  %v9494_v31 = vld [vmem:[#allocation23_spill] sm:$0xff] }
 0x36f   : > { %v8396_v1 = vsel %vm2005_vm5, %v3816_v60, %v5478_v51  ;;  %v8399_v14 = vsel %vm2005_vm5, %v3817_v28, %v5479_v23  ;;  %v2748_v23 = vld [vmem:[#allocation3 + $0x7a] sm:$0xff]  ;;  %v2749_v51 = vld [vmem:[#allocation3 + $0x82] sm:$0xff] }
 0x371   : > { %5676 = vrot.lane.b32.xlu0 %v5675_v9, %s5990_s25  ;;  %5686 = vrot.lane.b32.xlu2 %v9494_v31, %s5988_s23  ;;  %v5705_v31 = vpack.i.bf16 %v2715_v48, %v2714_v61 }
 0x372   : > { %5696 = vrot.lane.b32.xlu1 %v5695_v56, %s5989_s24  ;;  %4633 = vmatmul.msk.bf16.gmra.mxu2 %vm334_vm0, %v4292_v50  ;;  %v2750_v50 = vld [vmem:[#allocation3 + $0x92] sm:$0xff] }
 0x373   : > { %v5487_v58 = vpop.permute.xlu1 %5486  ;;  %v8405_v3 = vpop.permute.xlu2 %5541 }
 0x374   : > { %v5482_v16 = vpop.permute.xlu0 %5481  ;;  %v5489_v47 = vunpack.i.h.bf16 %v5487_v58  ;;  %v5488_v35 = vunpack.i.l.bf16 %v5487_v58 }
 0x375   : > { %v5484_v44 = vunpack.i.h.bf16 %v5482_v16  ;;  %v5483_v10 = vunpack.i.l.bf16 %v5482_v16 }
 0x376   : > { %v8411_v6 = vsel %vm2071_vm7, %v8294_v24, %v5489_v47  ;;  %v8415_v21 = vsel %vm2071_vm7, %v8297_v59, %v5488_v35  ;;  %v9495_v24 = vld [vmem:[#allocation21_spill] sm:$0xff]  ;;  %v5725_v47 = vpack.i.bf16 %v2749_v51, %v2748_v23  ;;  %v9498_v35 = vld [vmem:[#allocation22_spill] sm:$0xff] }
 0x377   : > { %v8419_v39 = vsel %vm2071_vm7, %v8177_v41, %v5484_v44  ;;  %v8423_v12 = vsel %vm2071_vm7, %v8180_v2, %v5483_v10 }
 0x379   : > { %5691 = vrot.lane.b32.xlu0 %v5690_v46, %s5990_s25  ;;  %5701 = vrot.lane.b32.xlu2 %v9495_v24, %s5988_s23  ;;  %v2751_v24 = vld [vmem:[#allocation3 + $0x9a] sm:$0xff] }
 0x37a   : > { %5711 = vrot.lane.b32.xlu1 %v5710_v11, %s5989_s24  ;;  %v8472_v51 = vpack.i.bf16 %v2751_v24, %v2750_v50  ;;  %v2767_v24 = vld [vmem:[#allocation3 + $0x15a] sm:$0xff] }
 0x37b   : > { %v5507_v59 = vpop.permute.xlu1 %5506  ;;  %v5547_v2 = vpop.permute.xlu2 %5546 }
 0x37c   : > { %v5497_v54 = vpop.permute.xlu0 %5496  ;;  %v5509_v41 = vunpack.i.h.bf16 %v5507_v59  ;;  %v5508_v27 = vunpack.i.l.bf16 %v5507_v59  ;;  %v5549_v42 = vunpack.i.h.bf16 %v5547_v2  ;;  %v5548_v28 = vunpack.i.l.bf16 %v5547_v2  ;;  %v4266_v59 = vld [vmem:[%s6108_s15 + $0x50] sm:$0xff] }
 0x37d   : > { %v5499_v15 = vunpack.i.h.bf16 %v5497_v54  ;;  %v5498_v5 = vunpack.i.l.bf16 %v5497_v54  ;;  %v4267_v54 = vld [vmem:[%s6108_s15 + $0x58] sm:$0xff]  ;;  %v2716_v2 = vld [vmem:[#allocation3 + $0x79] sm:$0xff] }
 0x37e   : > { %v5720_v23 = vpack.i.bf16 %v2717_v26, %v2716_v2  ;;  %v4268_v2 = vld [vmem:[%s6108_s15 + $0x60] sm:$0xff] }
 0x37f   : > { %v3818_v13 = vsel %vm380_vm3, %v9496_v40, %v5498_v5  ;;  %v3819_v60 = vsel %vm380_vm3, %v9497_v33, %v5499_v15  ;;  %v2719_v33 = vld [vmem:[#allocation3 + $0x99] sm:$0xff] }
 0x380   : > { %v3850_v9 = vsel %vm2005_vm5, %v3818_v13, %v5508_v27  ;;  %v3851_v56 = vsel %vm2005_vm5, %v3819_v60, %v5509_v41  ;;  %v2669_v60 = vld [vmem:[#allocation3 + $0x13a] sm:$0xff] }
 0x381   : > { %v8437_v58 = vsel %vm2071_vm7, %v3851_v56, %v5549_v42  ;;  %v8440_v16 = vsel %vm2071_vm7, %v3850_v9, %v5548_v28  ;;  %5706 = vrot.lane.b32.xlu0 %v5705_v31, %s5990_s25  ;;  %5716 = vrot.lane.b32.xlu2 %v9498_v35, %s5988_s23  ;;  %v2670_v42 = vld [vmem:[#allocation3 + $0x142] sm:$0xff]  ;;  %v2735_v9 = vld [vmem:[#allocation3 + $0x159] sm:$0xff]  ;;  %v5544_v56 = vunpack.i.h.bf16 %v8405_v3  ;;  %v5543_v31 = vunpack.i.l.bf16 %v8405_v3 }
 0x382   : > { %5726 = vrot.lane.b32.xlu1 %v5725_v47, %s5989_s24  ;;  %v8494_v3 = vpack.i.bf16 %v2670_v42, %v2669_v60  ;;  %v9502_v60 = vld [vmem:[#allocation49_spill] sm:$0xff]  ;;  %v9503_v42 = vld [vmem:[#allocation20_spill] sm:$0xff] }
 0x383   : > { %v5512_v44 = vpop.permute.xlu1 %5511  ;;  %v5552_v29 = vpop.permute.xlu2 %5551 }
 0x384   : > { %v5502_v10 = vpop.permute.xlu0 %5501  ;;  %v5514_v7 = vunpack.i.h.bf16 %v5512_v44  ;;  %v5513_v55 = vunpack.i.l.bf16 %v5512_v44  ;;  %v5554_v46 = vunpack.i.h.bf16 %v5552_v29  ;;  %v5553_v11 = vunpack.i.l.bf16 %v5552_v29  ;;  %v2718_v44 = vld [vmem:[#allocation3 + $0x91] sm:$0xff] }
 0x385   : > { %v5504_v45 = vunpack.i.h.bf16 %v5502_v10  ;;  %v5503_v8 = vunpack.i.l.bf16 %v5502_v10  ;;  %v9500_v10 = vld [vmem:[#allocation34_spill] sm:$0xff]  ;;  %v5735_v29 = vpack.i.bf16 %v2719_v33, %v2718_v44  ;;  %v2721_v33 = vld [vmem:[#allocation3 + $0xb1] sm:$0xff] }
 0x386   : > { %v8450_v41 = vsel %vm2071_vm7, %v8399_v14, %v5514_v7  ;;  %v8454_v27 = vsel %vm2071_vm7, %v8396_v1, %v5513_v55  ;;  %v8466_v48 = vsel %vm2137_vm10, %v8360_v17, %v5554_v46  ;;  %v8470_v14 = vsel %vm2137_vm10, %v8364_v62, %v5553_v11  ;;  %v9501_v55 = vld [vmem:[#allocation33_spill] sm:$0xff] }
 0x387   : > { %v8458_v15 = vsel %vm2071_vm7, %v8332_v4, %v5504_v45  ;;  %v8462_v5 = vsel %vm2071_vm7, %v8329_v36, %v5503_v8  ;;  %v4293_v1 = vpack.c.bf16 %v4267_v54, %v4266_v59  ;;  %v9499_v4 = vld [vmem:[#allocation27_spill] sm:$0xff]  ;;  %v2734_v8 = vld [vmem:[#allocation3 + $0x151] sm:$0xff] }
 0x388   : > { %v5755_v50 = vpack.i.bf16 %v2735_v9, %v2734_v8  ;;  %v2766_v11 = vld [vmem:[#allocation3 + $0x152] sm:$0xff] }
 0x389   : > { %5721 = vrot.lane.b32.xlu0 %v5720_v23, %s5990_s25  ;;  %5731 = vrot.lane.b32.xlu2 %v9499_v4, %s5988_s23  ;;  %v4269_v23 = vld [vmem:[%s6108_s15 + $0x68] sm:$0xff]  ;;  %v9504_v9 = vld [vmem:[#allocation32_spill] sm:$0xff] }
 0x38a   : > { %5741 = vrot.lane.b32.xlu1 %v8472_v51, %s5989_s24  ;;  %4634 = vmatmul.msk.bf16.gmra.mxu2 %vm334_vm0, %v4293_v1  ;;  %v4294_v1 = vpack.c.bf16 %v4269_v23, %v4268_v2 }
 0x38b   : > { %v5557_v62 = vpop.permute.xlu2 %5556 }
 0x38c   : > { %v5532_v36 = vpop.permute.xlu0 %5531  ;;  %v5517_v13 = vpop.permute.xlu1 %5516 }
 0x38d   : > { %v5534_v17 = vunpack.i.h.bf16 %v5532_v36  ;;  %v5533_v40 = vunpack.i.l.bf16 %v5532_v36  ;;  %v5519_v28 = vunpack.i.h.bf16 %v5517_v13  ;;  %v5518_v61 = vunpack.i.l.bf16 %v5517_v13 }
 0x38e   : > { %v5558_v13 = vunpack.i.l.bf16 %v5557_v62 }
 0x38f   : > { %v8484_v47 = vsel %vm2071_vm7, %v8209_v22, %v5534_v17  ;;  %v8488_v35 = vsel %vm2071_vm7, %v8212_v19, %v5533_v40  ;;  %v3820_v7 = vsel %vm380_vm3, %v9500_v10, %v5518_v61  ;;  %v3821_v45 = vsel %vm380_vm3, %v9501_v55, %v5519_v28  ;;  %v2720_v28 = vld [vmem:[#allocation3 + $0xa9] sm:$0xff] }
 0x390   : > { %v8497_v22 = vsel %vm2005_vm5, %v3820_v7, %v5543_v31  ;;  %v8500_v19 = vsel %vm2005_vm5, %v3821_v45, %v5544_v56  ;;  %v5760_v17 = vpack.i.bf16 %v2767_v24, %v2766_v11  ;;  %v5559_v40 = vunpack.i.h.bf16 %v5557_v62  ;;  %v9505_v56 = vld [vmem:[#allocation4_spill] sm:$0xff] }
 0x391   : > { %5736 = vrot.lane.b32.xlu0 %v5735_v29, %s5990_s25  ;;  %5746 = vrot.lane.b32.xlu2 %v8494_v3, %s5987_s20  ;;  %v5775_v61 = vpack.i.bf16 %v2721_v33, %v2720_v28  ;;  %v2768_v28 = vld [vmem:[#allocation3 + $0x16a] sm:$0xff] }
 0x392   : > { %5756 = vrot.lane.b32.xlu1 %v5755_v50, %s5990_s25  ;;  %v3823_v62 = vsel %vm380_vm3, %v9505_v56, %v5559_v40  ;;  %v2753_v40 = vld [vmem:[#allocation3 + $0xb2] sm:$0xff] }
 0x393   : > { %v5582_v46 = vpop.permute.xlu2 %5581 }
 0x394   : > { %v5522_v26 = vpop.permute.xlu1 %5521  ;;  %v5584_v59 = vunpack.i.h.bf16 %v5582_v46  ;;  %v5583_v54 = vunpack.i.l.bf16 %v5582_v46 }
 0x395   : > { %v5524_v50 = vunpack.i.h.bf16 %v5522_v26  ;;  %v5523_v46 = vunpack.i.l.bf16 %v5522_v26 }
 0x396   : > { %v8510_v4 = vsel %vm2137_vm10, %v8389_v18, %v5584_v59  ;;  %v8514_v36 = vsel %vm2137_vm10, %v8393_v52, %v5583_v54  ;;  %v3822_v52 = vsel %vm380_vm3, %v9504_v9, %v5558_v13  ;;  %v2704_v13 = vld [vmem:[#allocation3 + $0x168] sm:$0xff] }
 0x399   : > { %5751 = vrot.lane.b32.xlu0 %v9502_v60, %s5988_s23  ;;  %5761 = vrot.lane.b32.xlu2 %v5760_v17, %s5989_s24 }
 0x39a   : > { %5771 = vrot.lane.b32.xlu1 %v9503_v42, %s5988_s23  ;;  %4635 = vmatmul.msk.bf16.gmra.mxu2 %vm334_vm0, %v4294_v1 }
 0x39b   : > { %v5562_v18 = vpop.permute.xlu0 %5561  ;;  %v5597_v7 = vpop.permute.xlu2 %5596 }
 0x39c   : > { %v5537_v31 = vpop.permute.xlu1 %5536  ;;  %v5564_v44 = vunpack.i.h.bf16 %v5562_v18  ;;  %v5563_v10 = vunpack.i.l.bf16 %v5562_v18  ;;  %v5599_v8 = vunpack.i.h.bf16 %v5597_v7  ;;  %v5598_v29 = vunpack.i.l.bf16 %v5597_v7 }
 0x39d   : > { %v5539_v55 = vunpack.i.h.bf16 %v5537_v31  ;;  %v5538_v45 = vunpack.i.l.bf16 %v5537_v31  ;;  %v4271_v31 = vld [vmem:[%s6108_s15 + $0x78] sm:$0xff] }
 0x39e   : > { %v3854_v11 = vsel %vm2005_vm5, %v3822_v52, %v5563_v10  ;;  %v3855_v24 = vsel %vm2005_vm5, %v3823_v62, %v5564_v44  ;;  %v8538_v2 = vsel %vm2137_vm10, %v8411_v6, %v5599_v8  ;;  %v8542_v23 = vsel %vm2137_vm10, %v8415_v21, %v5598_v29  ;;  %v2752_v6 = vld [vmem:[#allocation3 + $0xaa] sm:$0xff]  ;;  %v4270_v62 = vld [vmem:[%s6108_s15 + $0x70] sm:$0xff] }
 0x39f   : > { %v8530_v59 = vsel %vm2071_vm7, %v8319_v38, %v5539_v55  ;;  %v8534_v54 = vsel %vm2071_vm7, %v8322_v53, %v5538_v45  ;;  %v3886_v26 = vsel %vm2071_vm7, %v3854_v11, %v5523_v46  ;;  %v3887_v1 = vsel %vm2071_vm7, %v3855_v24, %v5524_v50  ;;  %v2705_v38 = vld [vmem:[#allocation3 + $0x170] sm:$0xff] }
 0x3a0   : > { %v5790_v18 = vpack.i.bf16 %v2705_v38, %v2704_v13  ;;  %v5780_v10 = vpack.i.bf16 %v2753_v40, %v2752_v6  ;;  %v4295_v7 = vpack.c.bf16 %v4271_v31, %v4270_v62  ;;  %v2736_v6 = vld [vmem:[#allocation3 + $0x169] sm:$0xff]  ;;  %vm4114_vm5 = vcmask 588800  }
 0x3a1   : > { %5766 = vrot.lane.b32.xlu0 %v8472_v51, %s5987_s20  ;;  %5776 = vrot.lane.b32.xlu2 %v5775_v61, %s5990_s25  ;;  %v2769_v61 = vld [vmem:[#allocation3 + $0x172] sm:$0xff] }
 0x3a2   : > { %5786 = vrot.lane.b32.xlu1 %v5760_v17, %s5987_s20  ;;  %v4082_v31 = vld [vmem:[%s9177_s6 + $0x20] sm:$0xf] }
 0x3a3   : > { %v5567_v53 = vpop.permute.xlu0 %5566  ;;  %v5612_v42 = vpop.permute.xlu2 %5611 }
 0x3a4   : > { %v5577_v21 = vpop.permute.xlu1 %5576  ;;  %v5569_v33 = vunpack.i.h.bf16 %v5567_v53  ;;  %v5568_v60 = vunpack.i.l.bf16 %v5567_v53  ;;  %v5614_v51 = vunpack.i.h.bf16 %v5612_v42  ;;  %v5613_v56 = vunpack.i.l.bf16 %v5612_v42  ;;  %v2723_v53 = vld [vmem:[#allocation3 + $0xc9] sm:$0xff] }
 0x3a5   : > { %v5579_v9 = vunpack.i.h.bf16 %v5577_v21  ;;  %v5578_v52 = vunpack.i.l.bf16 %v5577_v21 }
 0x3a6   : > { %v8554_v17 = vsel %vm2071_vm7, %v8500_v19, %v5569_v33  ;;  %v8558_v44 = vsel %vm2071_vm7, %v8497_v22, %v5568_v60  ;;  %v8570_v8 = vsel %vm2137_vm10, %v8450_v41, %v5614_v51  ;;  %v8574_v19 = vsel %vm2137_vm10, %v8454_v27, %v5613_v56 }
 0x3a7   : > { %v8562_v55 = vsel %vm2137_vm10, %v8352_v37, %v5579_v9  ;;  %v8566_v45 = vsel %vm2137_vm10, %v8356_v30, %v5578_v52  ;;  %v8576_v22 = vpack.i.bf16 %v2769_v61, %v2768_v28  ;;  %v2737_v30 = vld [vmem:[#allocation3 + $0x171] sm:$0xff]  ;;  %v2754_v9 = vld [vmem:[#allocation3 + $0xc2] sm:$0xff] }
 0x3a8   : > { %v5795_v21 = vpack.i.bf16 %v2737_v30, %v2736_v6  ;;  %v2690_v52 = vld [vmem:[#allocation3 + $0xc0] sm:$0xff] }
 0x3a9   : > { %5781 = vrot.lane.b32.xlu0 %v5780_v10, %s5989_s24  ;;  %5791 = vrot.lane.b32.xlu2 %v5790_v18, %s5988_s23 }
 0x3aa   : > { %5801 = vrot.lane.b32.xlu1 %v8576_v22, %s5989_s24  ;;  %4636 = vmatmul.msk.bf16.gmra.mxu2 %vm334_vm0, %v4295_v7 }
 0x3ab   : > { %v5572_v37 = vpop.permute.xlu0 %5571  ;;  %v5627_v46 = vpop.permute.xlu2 %5626 }
 0x3ac   : > { %v5592_v29 = vpop.permute.xlu1 %5591  ;;  %v5574_v41 = vunpack.i.h.bf16 %v5572_v37  ;;  %v5573_v50 = vunpack.i.l.bf16 %v5572_v37  ;;  %v5629_v24 = vunpack.i.h.bf16 %v5627_v46  ;;  %v5628_v38 = vunpack.i.l.bf16 %v5627_v46 }
 0x3ad   : > { %v5594_v11 = vunpack.i.h.bf16 %v5592_v29  ;;  %v5593_v27 = vunpack.i.l.bf16 %v5592_v29  ;;  %v2707_v29 = vld [vmem:[#allocation3 + $0x188] sm:$0xff] }
 0x3ae   : > { %v8585_v40 = vsel %vm2137_vm10, %v8229_v25, %v5574_v41  ;;  %v8589_v13 = vsel %vm2137_vm10, %v8232_v0, %v5573_v50  ;;  %v8600_v42 = vsel %vm2137_vm10, %v3886_v26, %v5628_v38  ;;  %v8603_v28 = vsel %vm2137_vm10, %v3887_v1, %v5629_v24  ;;  %v2722_v25 = vld [vmem:[#allocation3 + $0xc1] sm:$0xff]  ;;  %v4272_v41 = vld [vmem:[%s6108_s15 + $0x80] sm:$0xff]  ;;  %v4273_v50 = vld [vmem:[%s6108_s15 + $0x88] sm:$0xff] }
 0x3af   : > { %v8593_v33 = vsel %vm2137_vm10, %v8419_v39, %v5594_v11  ;;  %v8597_v60 = vsel %vm2137_vm10, %v8423_v12, %v5593_v27  ;;  %v5815_v18 = vpack.i.bf16 %v2723_v53, %v2722_v25  ;;  %v2691_v0 = vld [vmem:[#allocation3 + $0xc8] sm:$0xff]  ;;  %v4296_v27 = vpack.c.bf16 %v4273_v50, %v4272_v41  ;;  %v4274_v50 = vld [vmem:[%s6108_s15 + $0x90] sm:$0xff] }
 0x3b0   : > { %v2755_v39 = vld [vmem:[#allocation3 + $0xca] sm:$0xff]  ;;  %v5810_v61 = vpack.i.bf16 %v2691_v0, %v2690_v52  ;;  %v4104_v24 = vunpack.c.l.b16 %v4082_v31  ;;  %v2757_v41 = vld [vmem:[#allocation3 + $0xe2] sm:$0xff] }
 0x3b1   : > { %5796 = vrot.lane.b32.xlu0 %v5795_v21, %s5990_s25  ;;  %5806 = vrot.lane.b32.xlu2 %v5780_v10, %s5987_s20  ;;  %v5820_v62 = vpack.i.bf16 %v2755_v39, %v2754_v9 }
 0x3b2   : > { %5816 = vrot.lane.b32.xlu1 %v5815_v18, %s5990_s25  ;;  %v4109_v25 = vpack.c.b16 %v4104_v24, %v4104_v24 }
 0x3b3   : > { %v5587_v12 = vpop.permute.xlu0 %5586  ;;  %v5642_v1 = vpop.permute.xlu2 %5641 }
 0x3b4   : > { %v5607_v26 = vpop.permute.xlu1 %5606  ;;  %v5589_v51 = vunpack.i.h.bf16 %v5587_v12  ;;  %v5588_v56 = vunpack.i.l.bf16 %v5587_v12  ;;  %v5644_v37 = vunpack.i.h.bf16 %v5642_v1  ;;  %v5643_v30 = vunpack.i.l.bf16 %v5642_v1 }
 0x3b5   : > { %v5609_v10 = vunpack.i.h.bf16 %v5607_v26  ;;  %v5608_v7 = vunpack.i.l.bf16 %v5607_v26 }
 0x3b6   : > { %v8615_v46 = vsel %vm2137_vm10, %v8274_v57, %v5589_v51  ;;  %v8619_v11 = vsel %vm2137_vm10, %v8277_v34, %v5588_v56  ;;  %v8631_v6 = vsel %vm2137_vm10, %v8530_v59, %v5644_v37  ;;  %v8635_v57 = vsel %vm2137_vm10, %v8534_v54, %v5643_v30  ;;  %v2706_v34 = vld [vmem:[#allocation3 + $0x180] sm:$0xff]  ;;  %v4654_v54 = vld [vmem:[%s9177_s6 + $0x18] sm:$0xff] }
 0x3b7   : > { %v8623_v38 = vsel %vm2137_vm10, %v8458_v15, %v5609_v10  ;;  %v8627_v53 = vsel %vm2137_vm10, %v8462_v5, %v5608_v7  ;;  %v5830_v21 = vpack.i.bf16 %v2707_v29, %v2706_v34  ;;  %v4165_v15 = vsel %vm4163_vm14, %v4109_v25, 0  ;;  %v8641_v5 = vpop.f32.mrf.mxu2  ;;  %v2756_v37 = vld [vmem:[#allocation3 + $0xda] sm:$0xff] }
 0x3b8   : > { %4170 = vmatpush.bf16.msra.mxu1 %v4165_v15  ;;  %4658 = vmatpush.bf16.msrb.mxu3 %v4165_v15  ;;  %v2693_v30 = vld [vmem:[#allocation3 + $0xe0] sm:$0xff] }
 0x3b9   : > { %5811 = vrot.lane.b32.xlu0 %v5810_v61, %s5988_s23  ;;  %5821 = vrot.lane.b32.xlu2 %v5820_v62, %s5989_s24  ;;  %v4653_v61 = vld [vmem:[%s9177_s6 + $0x10] sm:$0xff] }
 0x3ba   : > { %5831 = vrot.lane.b32.xlu1 %v5830_v21, %s5988_s23  ;;  %4637 = vmatmul.msk.bf16.gmra.mxu2 %vm334_vm0, %v4296_v27  ;;  %v4275_v27 = vld [vmem:[%s6108_s15 + $0x98] sm:$0xff]  ;;  %v2692_v21 = vld [vmem:[#allocation3 + $0xd8] sm:$0xff] }
 0x3bb   : > { %v5602_v59 = vpop.permute.xlu0 %5601  ;;  %v8646_v39 = vpop.permute.xlu2 %5656  ;;  %v4297_v25 = vpack.c.bf16 %v4275_v27, %v4274_v50 }
 0x3bc   : > { %v5622_v18 = vpop.permute.xlu1 %5621  ;;  %v5604_v0 = vunpack.i.h.bf16 %v5602_v59  ;;  %v5603_v9 = vunpack.i.l.bf16 %v5602_v59  ;;  %4171 = vmatpush.bf16.msra.mxu1 %v4654_v54  ;;  %4659 = vmatpush.bf16.msrb.mxu3 %v4654_v54 }
 0x3bd   : > { %v5624_v12 = vunpack.i.h.bf16 %v5622_v18  ;;  %v5623_v52 = vunpack.i.l.bf16 %v5622_v18  ;;  %v5850_v18 = vpack.i.bf16 %v2693_v30, %v2692_v21  ;;  %v2708_v30 = vld [vmem:[#allocation3 + $0x198] sm:$0xff] }
 0x3be   : > { %v8650_v26 = vsel %vm2137_vm10, %v8342_v43, %v5604_v0  ;;  %v8654_v51 = vsel %vm2137_vm10, %v8346_v20, %v5603_v9  ;;  %v8700_v0 = vpack.i.bf16 %v2757_v41, %v2756_v37  ;;  %v2741_v9 = vld [vmem:[#allocation3 + $0x1a1] sm:$0xff]  ;;  %v2724_v37 = vld [vmem:[#allocation3 + $0xd9] sm:$0xff] }
 0x3bf   : > { %v8658_v56 = vsel %vm2137_vm10, %v8558_v44, %v5623_v52  ;;  %v8662_v1 = vsel %vm2137_vm10, %v8554_v17, %v5624_v12  ;;  %v8672_v43 = vpop.f32.mrf.mxu2  ;;  %v2770_v17 = vld [vmem:[#allocation3 + $0x182] sm:$0xff]  ;;  %v4652_v44 = vld [vmem:[%s9177_s6 + $0x8] sm:$0xff] }
 0x3c0   : > { %4172 = vmatpush.bf16.msra.mxu1 %v4653_v61  ;;  %4660 = vmatpush.bf16.msrb.mxu3 %v4653_v61 }
 0x3c1   : > { %5826 = vrot.lane.b32.xlu0 %v8576_v22, %s5987_s20  ;;  %5836 = vrot.lane.b32.xlu2 %v8299_v63, %s5990_s25  ;;  %v2771_v63 = vld [vmem:[#allocation3 + $0x18a] sm:$0xff] }
 0x3c2   : > { %5846 = vrot.lane.b32.xlu1 %v5820_v62, %s5987_s20  ;;  %v5840_v54 = vpack.i.bf16 %v2771_v63, %v2770_v17  ;;  %v2725_v17 = vld [vmem:[#allocation3 + $0xe1] sm:$0xff] }
 0x3c3   : > { %v5617_v20 = vpop.permute.xlu0 %5616  ;;  %v8677_v22 = vpop.permute.xlu2 %5671  ;;  %v5855_v63 = vpack.i.bf16 %v2725_v17, %v2724_v37  ;;  %v2694_v17 = vld [vmem:[#allocation3 + $0xf0] sm:$0xff] }
 0x3c4   : > { %v5637_v31 = vpop.permute.xlu1 %5636  ;;  %v5619_v10 = vunpack.i.h.bf16 %v5617_v20  ;;  %v5618_v7 = vunpack.i.l.bf16 %v5617_v20  ;;  %4173 = vmatpush.bf16.msra.mxu1 %v4652_v44  ;;  %4661 = vmatpush.bf16.msrb.mxu3 %v4652_v44  ;;  %v9507_v44 = vld [vmem:[#allocation35_spill] sm:$0xff] }
 0x3c5   : > { %v5639_v62 = vunpack.i.h.bf16 %v5637_v31  ;;  %v5638_v29 = vunpack.i.l.bf16 %v5637_v31 }
 0x3c6   : > { %v8683_v24 = vsel %vm2137_vm10, %v8437_v58, %v5619_v10  ;;  %v8687_v34 = vsel %vm2137_vm10, %v8440_v16, %v5618_v7  ;;  %v4651_v58 = vld [vmem:[%s9177_s6] sm:$0xff] }
 0x3c7   : > { %v8691_v15 = vsel %vm2137_vm10, %v8484_v47, %v5639_v62  ;;  %v8695_v59 = vsel %vm2137_vm10, %v8488_v35, %v5638_v29  ;;  %v8707_v16 = vpop.f32.mrf.mxu2  ;;  %v2740_v35 = vld [vmem:[#allocation3 + $0x199] sm:$0xff] }
 0x3c8   : > { %9506 = vst [vmem:[#allocation37_spill] sm:$0xff] %v8707_v16  ;;  %4174 = vmatpush.bf16.msra.mxu1 %v4651_v58  ;;  %4662 = vmatpush.bf16.msrb.mxu3 %v4651_v58  ;;  %v5875_v7 = vpack.i.bf16 %v2741_v9, %v2740_v35  ;;  %v2709_v62 = vld [vmem:[#allocation3 + $0x1a0] sm:$0xff]  ;;  %v4276_v35 = vld [vmem:[%s6108_s15 + $0xa0] sm:$0xff] }
 0x3c9   : > { %5841 = vrot.lane.b32.xlu0 %v5840_v54, %s5989_s24  ;;  %5851 = vrot.lane.b32.xlu2 %v5850_v18, %s5988_s23  ;;  %v2772_v29 = vld [vmem:[#allocation3 + $0x19a] sm:$0xff]  ;;  %v5870_v58 = vpack.i.bf16 %v2709_v62, %v2708_v30 }
 0x3ca   : > { %5861 = vrot.lane.b32.xlu1 %v8700_v0, %s5989_s24  ;;  %4638 = vmatmul.msk.bf16.gmra.mxu2 %vm334_vm0, %v4297_v25  ;;  %v2695_v18 = vld [vmem:[#allocation3 + $0xf8] sm:$0xff] }
 0x3cb   : > { %v5632_v47 = vpop.permute.xlu0 %5631  ;;  %v8711_v20 = vpop.permute.xlu2 %5686  ;;  %v2727_v30 = vld [vmem:[#allocation3 + $0xf9] sm:$0xff] }
 0x3cc   : > { %v8709_v12 = vpop.permute.xlu1 %5651  ;;  %v5634_v52 = vunpack.i.h.bf16 %v5632_v47  ;;  %v5633_v61 = vunpack.i.l.bf16 %v5632_v47  ;;  %4663 = vmatpush.bf16.msra.mxu3 %v9507_v44  ;;  %v5890_v44 = vpack.i.bf16 %v2695_v18, %v2694_v17  ;;  %v2664_v62 = vld [vmem:[#allocation3 + $0xfa] sm:$0xff]  ;;  %v2697_v18 = vld [vmem:[#allocation3 + $0x110] sm:$0xff] }
 0x3ce   : > { %v8716_v31 = vsel %vm2137_vm10, %v8377_v49, %v5634_v52  ;;  %v8720_v10 = vsel %vm2137_vm10, %v8381_v32, %v5633_v61  ;;  %v2773_v49 = vld [vmem:[#allocation3 + $0x1a2] sm:$0xff] }
 0x3cf   : > { %v8725_v41 = vpop.f32.mrf.mxu2  ;;  %v5880_v47 = vpack.i.bf16 %v2773_v49, %v2772_v29 }
 0x3d0   : > { %9508 = vst [vmem:[#allocation36_spill] sm:$0xff] %v8725_v41 }
 0x3d1   : > { %5856 = vrot.lane.b32.xlu0 %v5855_v63, %s5990_s25  ;;  %5866 = vrot.lane.b32.xlu2 %v5840_v54, %s5987_s20  ;;  %v4277_v54 = vld [vmem:[%s6108_s15 + $0xa8] sm:$0xff] }
 0x3d2   : > { %5876 = vrot.lane.b32.xlu1 %v5875_v7, %s5990_s25  ;;  %v4298_v9 = vpack.c.bf16 %v4277_v54, %v4276_v35  ;;  %v2696_v35 = vld [vmem:[#allocation3 + $0x108] sm:$0xff] }
 0x3d3   : > { %v5647_v50 = vpop.permute.xlu0 %5646  ;;  %v8727_v27 = vpop.permute.xlu2 %5701  ;;  %v5910_v17 = vpack.i.bf16 %v2697_v18, %v2696_v35  ;;  %v5653_v18 = vunpack.i.l.bf16 %v8709_v12 }
 0x3d4   : > { %v5667_v32 = vpop.permute.xlu1 %5666  ;;  %v5649_v29 = vunpack.i.h.bf16 %v5647_v50  ;;  %v5648_v49 = vunpack.i.l.bf16 %v5647_v50  ;;  %v5674_v50 = vunpack.i.h.bf16 %v8677_v22 }
 0x3d5   : > { %v5669_v21 = vunpack.i.h.bf16 %v5667_v32  ;;  %v5668_v25 = vunpack.i.l.bf16 %v5667_v32  ;;  %v2726_v32 = vld [vmem:[#allocation3 + $0xf1] sm:$0xff] }
 0x3d7   : > { %v8733_v52 = vsel %vm3926_vm15, %v8619_v11, %v5668_v25  ;;  %v8737_v61 = vsel %vm3926_vm15, %v8615_v46, %v5669_v21  ;;  %v8743_v7 = vpop.f32.mrf.mxu2  ;;  %v2663_v46 = vld [vmem:[#allocation3 + $0xf2] sm:$0xff]  ;;  %v5895_v21 = vpack.i.bf16 %v2727_v30, %v2726_v32 }
 0x3d8   : > { %9509 = vst [vmem:[#allocation25_spill] sm:$0xff] %v8743_v7  ;;  %v5905_v25 = vpack.i.bf16 %v2664_v62, %v2663_v46  ;;  %v5654_v7 = vunpack.i.h.bf16 %v8709_v12  ;;  %v3929_v12 = vsel %vm3926_vm15, %v8589_v13, %v5653_v18 }
 0x3d9   : > { %5871 = vrot.lane.b32.xlu0 %v5870_v58, %s5988_s23  ;;  %5881 = vrot.lane.b32.xlu2 %v5880_v47, %s5989_s24  ;;  %v3928_v58 = vsel %vm3926_vm15, %v8466_v48, %v5649_v29  ;;  %v3927_v47 = vsel %vm3926_vm15, %v8470_v14, %v5648_v49  ;;  %v2760_v14 = vld [vmem:[#allocation3 + $0x10a] sm:$0xff] }
 0x3da   : > { %5891 = vrot.lane.b32.xlu1 %v5890_v44, %s5988_s23  ;;  %4639 = vmatmul.msk.bf16.gmra.mxu2 %vm334_vm0, %v4298_v9  ;;  %v5673_v9 = vunpack.i.l.bf16 %v8677_v22  ;;  %v3961_v32 = vsel %vm3959_vm2, %v3928_v58, %v5674_v50  ;;  %v2761_v22 = vld [vmem:[#allocation3 + $0x112] sm:$0xff]  ;;  %v5689_v58 = vunpack.i.h.bf16 %v8711_v20  ;;  %v5688_v50 = vunpack.i.l.bf16 %v8711_v20 }
 0x3db   : > { %v8745_v37 = vpop.permute.xlu0 %5661  ;;  %v8747_v63 = vpop.permute.xlu2 %5716 }
 0x3dc   : > { %v5682_v11 = vpop.permute.xlu1 %5681  ;;  %v3960_v49 = vsel %vm3959_vm2, %v3927_v47, %v5673_v9  ;;  %v5920_v47 = vpack.i.bf16 %v2761_v22, %v2760_v14  ;;  %v3962_v14 = vsel %vm3959_vm2, %v3929_v12, %v5688_v50  ;;  %v2730_v22 = vld [vmem:[#allocation3 + $0x121] sm:$0xff]  ;;  %v5703_v12 = vunpack.i.l.bf16 %v8727_v27 }
 0x3dd   : > { %v5684_v62 = vunpack.i.h.bf16 %v5682_v11  ;;  %v5683_v29 = vunpack.i.l.bf16 %v5682_v11 }
 0x3df   : > { %v8757_v54 = vpop.f32.mrf.mxu2 }
 0x3e0   : > { %9510 = vst [vmem:[#allocation38_spill] sm:$0xff] %v8757_v54  ;;  %v4279_v54 = vld [vmem:[%s6108_s15 + $0xb8] sm:$0xff] }
 0x3e1   : > { %5886 = vrot.lane.b32.xlu0 %v8700_v0, %s5987_s20  ;;  %5896 = vrot.lane.b32.xlu2 %v5895_v21, %s5990_s25  ;;  %v4278_v21 = vld [vmem:[%s6108_s15 + $0xb0] sm:$0xff] }
 0x3e2   : > { %5906 = vrot.lane.b32.xlu1 %v5905_v25, %s5987_s20  ;;  %v4299_v11 = vpack.c.bf16 %v4279_v54, %v4278_v21 }
 0x3e3   : > { %v5677_v0 = vpop.permute.xlu0 %5676  ;;  %v8761_v46 = vpop.permute.xlu2 %5731 }
 0x3e4   : > { %v5697_v44 = vpop.permute.xlu1 %5696  ;;  %v5679_v48 = vunpack.i.h.bf16 %v5677_v0  ;;  %v5678_v30 = vunpack.i.l.bf16 %v5677_v0 }
 0x3e6   : > { %v3993_v35 = vsel %vm3992_vm1, %v3960_v49, %v5678_v30  ;;  %v3994_v0 = vsel %vm3992_vm1, %v3961_v32, %v5679_v48  ;;  %v3930_v48 = vsel %vm3926_vm15, %v8585_v40, %v5654_v7  ;;  %v5699_v40 = vunpack.i.h.bf16 %v5697_v44  ;;  %v2728_v32 = vld [vmem:[#allocation3 + $0x109] sm:$0xff] }
 0x3e7   : > { %v4026_v41 = vsel %vm4025_vm4, %v3993_v35, %v5683_v29  ;;  %v4027_v16 = vsel %vm4025_vm4, %v3994_v0, %v5684_v62  ;;  %v8783_v54 = vpop.f32.mrf.mxu2  ;;  %v3963_v13 = vsel %vm3959_vm2, %v3930_v48, %v5689_v58  ;;  %v5698_v7 = vunpack.i.l.bf16 %v5697_v44  ;;  %v2731_v62 = vld [vmem:[#allocation3 + $0x129] sm:$0xff]  ;;  %v2698_v48 = vld [vmem:[#allocation3 + $0x120] sm:$0xff] }
 0x3e8   : > { %v4058_v9 = vpack.c.bf16 %v4027_v16, %v4026_v41  ;;  %v5659_v0 = vunpack.i.h.bf16 %v8646_v39  ;;  %v2699_v58 = vld [vmem:[#allocation3 + $0x128] sm:$0xff]  ;;  %v5704_v44 = vunpack.i.h.bf16 %v8727_v27 }
 0x3e9   : > { %5901 = vrot.lane.b32.xlu0 %v5905_v25, %s5989_s24  ;;  %5911 = vrot.lane.b32.xlu2 %v5910_v17, %s5988_s23  ;;  %v2729_v17 = vld [vmem:[#allocation3 + $0x111] sm:$0xff] }
 0x3ea   : > { %5921 = vrot.lane.b32.xlu1 %v5920_v47, %s5989_s24  ;;  %4613 = vmatmul.msk.bf16.vlgmr.msra.gmra.mxu1 %vm4114_vm5, %v4058_v9  ;;  %v5915_v21 = vpack.i.bf16 %v2729_v17, %v2728_v32  ;;  %v5935_v9 = vpack.i.bf16 %v2731_v62, %v2730_v22  ;;  %v2701_v22 = vld [vmem:[#allocation3 + $0x140] sm:$0xff] }
 0x3eb   : > { %v5692_v16 = vpop.permute.xlu0 %5691  ;;  %4640 = vmatmul.msk.bf16.gmra.mxu2 %vm334_vm0, %v4299_v11  ;;  %v8786_v30 = vpop.permute.xlu2 %5746  ;;  %v5658_v11 = vunpack.i.l.bf16 %v8646_v39  ;;  %v5930_v39 = vpack.i.bf16 %v2699_v58, %v2698_v48 }
 0x3ec   : > { %v5712_v20 = vpop.permute.xlu1 %5711  ;;  %v5694_v41 = vunpack.i.h.bf16 %v5692_v16  ;;  %v5693_v25 = vunpack.i.l.bf16 %v5692_v16 }
 0x3ed   : > { %v3931_v17 = vsel %vm3926_vm15, %v8566_v45, %v5658_v11  ;;  %v5713_v32 = vunpack.i.l.bf16 %v5712_v20  ;;  %v5663_v45 = vunpack.i.l.bf16 %v8745_v37  ;;  %v2700_v11 = vld [vmem:[#allocation3 + $0x138] sm:$0xff] }
 0x3ee   : > { %v3995_v29 = vsel %vm3992_vm1, %v3962_v14, %v5693_v25  ;;  %v3996_v49 = vsel %vm3992_vm1, %v3963_v13, %v5694_v41  ;;  %v3932_v25 = vsel %vm3926_vm15, %v8562_v55, %v5659_v0  ;;  %v3964_v62 = vsel %vm3959_vm2, %v3931_v17, %v5703_v12 }
 0x3ef   : > { %v4028_v18 = vsel %vm4025_vm4, %v3995_v29, %v5698_v7  ;;  %v4029_v35 = vsel %vm4025_vm4, %v3996_v49, %v5699_v40  ;;  %v8801_v16 = vpop.f32.mrf.mxu2  ;;  %v2763_v7 = vld [vmem:[#allocation3 + $0x12a] sm:$0xff]  ;;  %v3965_v29 = vsel %vm3959_vm2, %v3932_v25, %v5704_v44  ;;  %v5714_v49 = vunpack.i.h.bf16 %v5712_v20 }
 0x3f0   : > { %v4059_v50 = vpack.c.bf16 %v4029_v35, %v4028_v18  ;;  %v4281_v18 = vld [vmem:[%s6108_s15 + $0xc8] sm:$0xff]  ;;  %v5664_v55 = vunpack.i.h.bf16 %v8745_v37  ;;  %v5950_v48 = vpack.i.bf16 %v2701_v22, %v2700_v11  ;;  %v5718_v25 = vunpack.i.l.bf16 %v8747_v63 }
 0x3f1   : > { %5916 = vrot.lane.b32.xlu0 %v5915_v21, %s5990_s25  ;;  %5926 = vrot.lane.b32.xlu2 %v5920_v47, %s5987_s20  ;;  %v2762_v47 = vld [vmem:[#allocation3 + $0x122] sm:$0xff]  ;;  %v4280_v21 = vld [vmem:[%s6108_s15 + $0xc0] sm:$0xff]  ;;  %v3933_v37 = vsel %vm3926_vm15, %v8514_v36, %v5663_v45  ;;  %v2732_v22 = vld [vmem:[#allocation3 + $0x139] sm:$0xff] }
 0x3f2   : > { %5936 = vrot.lane.b32.xlu1 %v5935_v9, %s5990_s25  ;;  %v5940_v9 = vpack.i.bf16 %v2763_v7, %v2762_v47  ;;  %v4300_v44 = vpack.c.bf16 %v4281_v18, %v4280_v21  ;;  %v3934_v17 = vsel %vm3926_vm15, %v8510_v4, %v5664_v55  ;;  %v2733_v7 = vld [vmem:[#allocation3 + $0x141] sm:$0xff] }
 0x3f3   : > { %v5707_v41 = vpop.permute.xlu0 %5706  ;;  %v8807_v40 = vpop.permute.xlu2 %5761  ;;  %v5955_v21 = vpack.i.bf16 %v2733_v7, %v2732_v22 }
 0x3f4   : > { %v5727_v27 = vpop.permute.xlu1 %5726  ;;  %v5709_v13 = vunpack.i.h.bf16 %v5707_v41  ;;  %v5708_v14 = vunpack.i.l.bf16 %v5707_v41  ;;  %v5719_v41 = vunpack.i.h.bf16 %v8747_v63 }
 0x3f6   : > { %v3997_v35 = vsel %vm3992_vm1, %v3964_v62, %v5708_v14  ;;  %v3998_v0 = vsel %vm3992_vm1, %v3965_v29, %v5709_v13  ;;  %v3966_v62 = vsel %vm3959_vm2, %v3933_v37, %v5718_v25  ;;  %v3967_v36 = vsel %vm3959_vm2, %v3934_v17, %v5719_v41 }
 0x3f7   : > { %v4030_v58 = vsel %vm4025_vm4, %v3997_v35, %v5713_v32  ;;  %v4031_v12 = vsel %vm4025_vm4, %v3998_v0, %v5714_v49  ;;  %v8829_v13 = vpop.f32.mrf.mxu2  ;;  %v5729_v29 = vunpack.i.h.bf16 %v5727_v27  ;;  %v5728_v49 = vunpack.i.l.bf16 %v5727_v27 }
 0x3f8   : > { %v4060_v20 = vpack.c.bf16 %v4031_v12, %v4030_v58  ;;  %v5734_v35 = vunpack.i.h.bf16 %v8761_v46  ;;  %v5733_v0 = vunpack.i.l.bf16 %v8761_v46 }
 0x3f9   : > { %5931 = vrot.lane.b32.xlu0 %v5930_v39, %s5988_s23  ;;  %5941 = vrot.lane.b32.xlu2 %v5940_v9, %s5989_s24 }
 0x3fa   : > { %5951 = vrot.lane.b32.xlu1 %v5950_v48, %s5988_s23  ;;  %4614 = vmatmul.msk.bf16.gmra.mxu1 %vm4114_vm5, %v4059_v50  ;;  %v3969_v48 = vsel %vm3959_vm2, %v8737_v61, %v5734_v35  ;;  %v3968_v41 = vsel %vm3959_vm2, %v8733_v52, %v5733_v0  ;;  %v5748_v52 = vunpack.i.l.bf16 %v8786_v30  ;;  %s9009_s23 = scalar_lea.vmem %s9180_s9, %s4647_s12 }
 0x3fb   : > { %v5722_v14 = vpop.permute.xlu0 %5721  ;;  %4641 = vmatmul.msk.bf16.gmra.mxu2 %vm334_vm0, %v4300_v44  ;;  %v8834_v4 = vpop.permute.xlu2 %5776 }
 0x3fc   : > { %v5742_v63 = vpop.permute.xlu1 %5741  ;;  %v5724_v47 = vunpack.i.h.bf16 %v5722_v14  ;;  %v5723_v39 = vunpack.i.l.bf16 %v5722_v14 }
 0x3fd   : > { %v5744_v25 = vunpack.i.h.bf16 %v5742_v63  ;;  %v5743_v37 = vunpack.i.l.bf16 %v5742_v63 }
 0x3fe   : > { %v3999_v32 = vsel %vm3992_vm1, %v3966_v62, %v5723_v39  ;;  %v4000_v50 = vsel %vm3992_vm1, %v3967_v36, %v5724_v47  ;;  %v5749_v39 = vunpack.i.h.bf16 %v8786_v30  ;;  %v5764_v30 = vunpack.i.h.bf16 %v8807_v40 }
 0x3ff   : > { %v4032_v18 = vsel %vm4025_vm4, %v3999_v32, %v5728_v49  ;;  %v4033_v55 = vsel %vm4025_vm4, %v4000_v50, %v5729_v29  ;;  %v8844_v11 = vpop.f32.mrf.mxu2  ;;  %v3951_v29 = vsel %vm3926_vm15, %v8600_v42, %v5748_v52  ;;  %v5778_v52 = vunpack.i.l.bf16 %v8834_v4 }
 0x400   : > { %v4061_v45 = vpack.c.bf16 %v4033_v55, %v4032_v18  ;;  %v3952_v49 = vsel %vm3926_vm15, %v8603_v28, %v5749_v39  ;;  %v5779_v39 = vunpack.i.h.bf16 %v8834_v4 }
 0x401   : > { %5946 = vrot.lane.b32.xlu0 %v5940_v9, %s5987_s20  ;;  %5956 = vrot.lane.b32.xlu2 %v5955_v21, %s5990_s25 }
 0x403   : > { %v5737_v27 = vpop.permute.xlu0 %5736  ;;  %v8852_v17 = vpop.permute.xlu2 %5791 }
 0x404   : > { %v5757_v58 = vpop.permute.xlu1 %5756  ;;  %v5739_v12 = vunpack.i.h.bf16 %v5737_v27  ;;  %v5738_v44 = vunpack.i.l.bf16 %v5737_v27 }
 0x405   : > { %v5759_v32 = vunpack.i.h.bf16 %v5757_v58  ;;  %v5758_v50 = vunpack.i.l.bf16 %v5757_v58 }
 0x406   : > { %v4001_v46 = vsel %vm3992_vm1, %v3968_v41, %v5738_v44  ;;  %v4002_v9 = vsel %vm3992_vm1, %v3969_v48, %v5739_v12 }
 0x407   : > { %v8855_v14 = vsel %vm4025_vm4, %v4001_v46, %v5743_v37  ;;  %v8858_v47 = vsel %vm4025_vm4, %v4002_v9, %v5744_v25 }
 0x408   : > { %v4062_v61 = vpack.c.bf16 %v8858_v47, %v8855_v14 }
 0x409   : > { %5961 = vrot.lane.b32.xlu0 %v8494_v3, %s5989_s24  ;;  %v5763_v3 = vunpack.i.l.bf16 %v8807_v40 }
 0x40a   : > { %4615 = vmatmul.msk.bf16.gmra.mxu1 %vm4114_vm5, %v4060_v20 }
 0x40b   : > { %v5752_v63 = vpop.permute.xlu0 %5751  ;;  %v5807_v35 = vpop.permute.xlu2 %5806 }
 0x40c   : > { %v5772_v7 = vpop.permute.xlu1 %5771  ;;  %v5754_v62 = vunpack.i.h.bf16 %v5752_v63  ;;  %v5753_v36 = vunpack.i.l.bf16 %v5752_v63 }
 0x40d   : > { %v8871_v22 = vpop.f32.mrf.mxu2  ;;  %v5774_v25 = vunpack.i.h.bf16 %v5772_v7  ;;  %v5773_v37 = vunpack.i.l.bf16 %v5772_v7 }
 0x40e   : > { %v3984_v20 = vsel %vm3959_vm2, %v3951_v29, %v5753_v36  ;;  %v3985_v21 = vsel %vm3959_vm2, %v3952_v49, %v5754_v62 }
 0x40f   : > { %v4017_v18 = vsel %vm3992_vm1, %v3984_v20, %v5758_v50  ;;  %v4018_v55 = vsel %vm3992_vm1, %v3985_v21, %v5759_v32  ;;  %v5794_v21 = vunpack.i.h.bf16 %v8852_v17 }
 0x410   : > { %v4050_v42 = vsel %vm4025_vm4, %v4017_v18, %v5763_v3  ;;  %v4051_v28 = vsel %vm4025_vm4, %v4018_v55, %v5764_v30  ;;  %v5793_v18 = vunpack.i.l.bf16 %v8852_v17 }
 0x411   : > { %v4070_v0 = vpack.c.bf16 %v4051_v28, %v4050_v42 }
 0x413   : > { %v5767_v27 = vpop.permute.xlu0 %5766  ;;  %4625 = vmatmul.msk.bf16.vlgmr.msrb.gmra.mxu3 %vm4114_vm5, %v4070_v0  ;;  %v5822_v63 = vpop.permute.xlu2 %5821 }
 0x414   : > { %v5787_v58 = vpop.permute.xlu1 %5786  ;;  %v5769_v12 = vunpack.i.h.bf16 %v5767_v27  ;;  %v5768_v40 = vunpack.i.l.bf16 %v5767_v27 }
 0x415   : > { %v8882_v44 = vpop.f32.mrf.mxu2  ;;  %v5789_v32 = vunpack.i.h.bf16 %v5787_v58  ;;  %v5788_v50 = vunpack.i.l.bf16 %v5787_v58 }
 0x416   : > { %v3938_v48 = vsel %vm3926_vm15, %v8593_v33, %v5769_v12  ;;  %v3937_v41 = vsel %vm3926_vm15, %v8597_v60, %v5768_v40 }
 0x417   : > { %v3971_v46 = vsel %vm3959_vm2, %v3938_v48, %v5774_v25  ;;  %v3970_v9 = vsel %vm3959_vm2, %v3937_v41, %v5773_v37  ;;  %v3953_v4 = vsel %vm3926_vm15, %v8720_v10, %v5788_v50  ;;  %v3954_v20 = vsel %vm3926_vm15, %v8716_v31, %v5789_v32 }
 0x418   : > { %v4003_v60 = vsel %vm3992_vm1, %v3970_v9, %v5778_v52  ;;  %v4004_v7 = vsel %vm3992_vm1, %v3971_v46, %v5779_v39  ;;  %v3986_v40 = vsel %vm3959_vm2, %v3953_v4, %v5793_v18  ;;  %v3987_v48 = vsel %vm3959_vm2, %v3954_v20, %v5794_v21 }
 0x419   : > { %v5809_v46 = vunpack.i.h.bf16 %v5807_v35  ;;  %v5808_v9 = vunpack.i.l.bf16 %v5807_v35  ;;  %v5824_v35 = vunpack.i.h.bf16 %v5822_v63  ;;  %v5823_v32 = vunpack.i.l.bf16 %v5822_v63 }
 0x41a   : > { %4616 = vmatmul.msk.bf16.gmra.mxu1 %vm4114_vm5, %v4061_v45 }
 0x41b   : > { %v5782_v62 = vpop.permute.xlu0 %5781  ;;  %v5837_v12 = vpop.permute.xlu2 %5836 }
 0x41c   : > { %v5802_v36 = vpop.permute.xlu1 %5801  ;;  %v5784_v29 = vunpack.i.h.bf16 %v5782_v62  ;;  %v5783_v33 = vunpack.i.l.bf16 %v5782_v62 }
 0x41d   : > { %v8893_v49 = vpop.f32.mrf.mxu2  ;;  %v5804_v27 = vunpack.i.h.bf16 %v5802_v36  ;;  %v5803_v58 = vunpack.i.l.bf16 %v5802_v36 }
 0x41e   : > { %v4036_v30 = vsel %vm4025_vm4, %v4003_v60, %v5783_v33  ;;  %v4037_v45 = vsel %vm4025_vm4, %v4004_v7, %v5784_v29  ;;  %v3939_v29 = vsel %vm3926_vm15, %v8542_v23, %v5808_v9  ;;  %v3940_v33 = vsel %vm3926_vm15, %v8538_v2, %v5809_v46 }
 0x41f   : > { %v4063_v3 = vpack.c.bf16 %v4037_v45, %v4036_v30 }
 0x423   : > { %v5797_v55 = vpop.permute.xlu0 %5796 }
 0x424   : > { %v5817_v42 = vpop.permute.xlu1 %5816  ;;  %v5799_v28 = vunpack.i.h.bf16 %v5797_v55  ;;  %v5798_v0 = vunpack.i.l.bf16 %v5797_v55 }
 0x425   : > { %v8909_v31 = vpop.f32.mrf.mxu2  ;;  %v5819_v60 = vunpack.i.h.bf16 %v5817_v42  ;;  %v5818_v7 = vunpack.i.l.bf16 %v5817_v42 }
 0x426   : > { %v4019_v10 = vsel %vm3992_vm1, %v3986_v40, %v5798_v0  ;;  %v4020_v41 = vsel %vm3992_vm1, %v3987_v48, %v5799_v28 }
 0x427   : > { %v4052_v25 = vsel %vm4025_vm4, %v4019_v10, %v5803_v58  ;;  %v4053_v17 = vsel %vm4025_vm4, %v4020_v41, %v5804_v27  ;;  %v5839_v10 = vunpack.i.h.bf16 %v5837_v12  ;;  %v5838_v41 = vunpack.i.l.bf16 %v5837_v12 }
 0x428   : > { %v4071_v37 = vpack.c.bf16 %v4053_v17, %v4052_v25 }
 0x42a   : > { %4617 = vmatmul.msk.bf16.gmra.mxu1 %vm4114_vm5, %v4062_v61  ;;  %4626 = vmatmul.msk.bf16.gmra.mxu3 %vm4114_vm5, %v4071_v37  ;;  %v5852_v61 = vpop.permute.xlu2 %5851 }
 0x42b   : > { %v5812_v39 = vpop.permute.xlu0 %5811 }
 0x42c   : > { %v5832_v52 = vpop.permute.xlu1 %5831  ;;  %v5814_v62 = vunpack.i.h.bf16 %v5812_v39  ;;  %v5813_v36 = vunpack.i.l.bf16 %v5812_v39 }
 0x42d   : > { %v8926_v45 = vpop.f32.mrf.mxu2  ;;  %v5834_v28 = vunpack.i.h.bf16 %v5832_v52  ;;  %v5833_v0 = vunpack.i.l.bf16 %v5832_v52 }
 0x42e   : > { %v3972_v14 = vsel %vm3959_vm2, %v3939_v29, %v5813_v36  ;;  %v3973_v47 = vsel %vm3959_vm2, %v3940_v33, %v5814_v62  ;;  %v5854_v29 = vunpack.i.h.bf16 %v5852_v61  ;;  %v5853_v33 = vunpack.i.l.bf16 %v5852_v61 }
 0x42f   : > { %v4005_v50 = vsel %vm3992_vm1, %v3972_v14, %v5818_v7  ;;  %v4006_v30 = vsel %vm3992_vm1, %v3973_v47, %v5819_v60 }
 0x430   : > { %v4038_v23 = vsel %vm4025_vm4, %v4005_v50, %v5823_v32  ;;  %v4039_v4 = vsel %vm4025_vm4, %v4006_v30, %v5824_v35 }
 0x431   : > { %v4064_v2 = vpack.c.bf16 %v4039_v4, %v4038_v23 }
 0x432   : > { %v5867_v27 = vpop.permute.xlu2 %5866 }
 0x433   : > { %v5827_v20 = vpop.permute.xlu0 %5826 }
 0x434   : > { %v5847_v21 = vpop.permute.xlu1 %5846  ;;  %v5829_v18 = vunpack.i.h.bf16 %v5827_v20  ;;  %v5828_v63 = vunpack.i.l.bf16 %v5827_v20 }
 0x435   : > { %v8937_v48 = vpop.f32.mrf.mxu2  ;;  %v5849_v9 = vunpack.i.h.bf16 %v5847_v21  ;;  %v5848_v39 = vunpack.i.l.bf16 %v5847_v21 }
 0x436   : > { %v3956_v55 = vsel %vm3926_vm15, %v8691_v15, %v5829_v18  ;;  %v3955_v42 = vsel %vm3926_vm15, %v8695_v59, %v5828_v63  ;;  %v5869_v18 = vunpack.i.h.bf16 %v5867_v27  ;;  %v5868_v63 = vunpack.i.l.bf16 %v5867_v27 }
 0x437   : > { %v3989_v58 = vsel %vm3959_vm2, %v3956_v55, %v5834_v28  ;;  %v3988_v40 = vsel %vm3959_vm2, %v3955_v42, %v5833_v0  ;;  %v3942_v12 = vsel %vm3926_vm15, %v8650_v26, %v5849_v9 }
 0x438   : > { %v4021_v46 = vsel %vm3992_vm1, %v3988_v40, %v5838_v41  ;;  %v4022_v59 = vsel %vm3992_vm1, %v3989_v58, %v5839_v10  ;;  %v3975_v4 = vsel %vm3959_vm2, %v3942_v12, %v5854_v29 }
 0x43a   : > { %4618 = vmatmul.msk.bf16.gmra.mxu1 %vm4114_vm5, %v4063_v3  ;;  %v3941_v3 = vsel %vm3926_vm15, %v8654_v51, %v5848_v39  ;;  %v5882_v60 = vpop.permute.xlu2 %5881 }
 0x43b   : > { %v5842_v25 = vpop.permute.xlu0 %5841  ;;  %v3974_v23 = vsel %vm3959_vm2, %v3941_v3, %v5853_v33  ;;  %v5884_v0 = vunpack.i.h.bf16 %v5882_v60  ;;  %v5883_v58 = vunpack.i.l.bf16 %v5882_v60 }
 0x43c   : > { %v5862_v17 = vpop.permute.xlu1 %5861  ;;  %v5844_v37 = vunpack.i.h.bf16 %v5842_v25  ;;  %v5843_v15 = vunpack.i.l.bf16 %v5842_v25  ;;  %v3957_v25 = vsel %vm3926_vm15, %v8635_v57, %v5868_v63 }
 0x43d   : > { %v8948_v47 = vpop.f32.mrf.mxu2  ;;  %v5864_v50 = vunpack.i.h.bf16 %v5862_v17  ;;  %v5863_v30 = vunpack.i.l.bf16 %v5862_v17  ;;  %v3958_v17 = vsel %vm3926_vm15, %v8631_v6, %v5869_v18 }
 0x43e   : > { %v4054_v52 = vsel %vm4025_vm4, %v4021_v46, %v5843_v15  ;;  %v4055_v62 = vsel %vm4025_vm4, %v4022_v59, %v5844_v37 }
 0x43f   : > { %v4072_v36 = vpack.c.bf16 %v4055_v62, %v4054_v52 }
 0x441   : > { %4627 = vmatmul.msk.bf16.gmra.mxu3 %vm4114_vm5, %v4072_v36 }
 0x442   : > { %v5897_v37 = vpop.permute.xlu2 %5896 }
 0x443   : > { %v5857_v7 = vpop.permute.xlu0 %5856 }
 0x444   : > { %v5877_v35 = vpop.permute.xlu1 %5876  ;;  %v5859_v32 = vunpack.i.h.bf16 %v5857_v7  ;;  %v5858_v14 = vunpack.i.l.bf16 %v5857_v7 }
 0x445   : > { %v5879_v55 = vunpack.i.h.bf16 %v5877_v35  ;;  %v5878_v42 = vunpack.i.l.bf16 %v5877_v35 }
 0x446   : > { %v4007_v51 = vsel %vm3992_vm1, %v3974_v23, %v5858_v14  ;;  %v4008_v20 = vsel %vm3992_vm1, %v3975_v4, %v5859_v32  ;;  %v5899_v14 = vunpack.i.h.bf16 %v5897_v37 }
 0x447   : > { %v4040_v26 = vsel %vm4025_vm4, %v4007_v51, %v5863_v30  ;;  %v4041_v61 = vsel %vm4025_vm4, %v4008_v20, %v5864_v50  ;;  %v5898_v50 = vunpack.i.l.bf16 %v5897_v37  ;;  %v4282_v51 = vld [vmem:[%s6108_s15 + $0xd0] sm:$0xff] }
 0x448   : > { %v4065_v21 = vpack.c.bf16 %v4041_v61, %v4040_v26 }
 0x44a   : > { %4619 = vmatmul.msk.bf16.gmra.mxu1 %vm4114_vm5, %v4064_v2  ;;  %v8963_v2 = vpop.f32.mrf.mxu2  ;;  %v5912_v3 = vpop.permute.xlu2 %5911 }
 0x44b   : > { %v5872_v28 = vpop.permute.xlu0 %5871 }
 0x44c   : > { %v5892_v40 = vpop.permute.xlu1 %5891  ;;  %v5874_v10 = vunpack.i.h.bf16 %v5872_v28  ;;  %v5873_v41 = vunpack.i.l.bf16 %v5872_v28 }
 0x44d   : > { %v5894_v33 = vunpack.i.h.bf16 %v5892_v40  ;;  %v5893_v60 = vunpack.i.l.bf16 %v5892_v40 }
 0x44e   : > { %v3990_v15 = vsel %vm3959_vm2, %v3957_v25, %v5873_v41  ;;  %v3991_v27 = vsel %vm3959_vm2, %v3958_v17, %v5874_v10  ;;  %v5914_v10 = vunpack.i.h.bf16 %v5912_v3  ;;  %v5913_v41 = vunpack.i.l.bf16 %v5912_v3 }
 0x44f   : > { %v4023_v46 = vsel %vm3992_vm1, %v3990_v15, %v5878_v42  ;;  %v4024_v59 = vsel %vm3992_vm1, %v3991_v27, %v5879_v55  ;;  %v8995_v15 = vld [vmem:[%s9178_s7] ss:$0 sm:$0xff] }
 0x450   : > { %v4056_v9 = vsel %vm4025_vm4, %v4023_v46, %v5883_v58  ;;  %v4057_v39 = vsel %vm4025_vm4, %v4024_v59, %v5884_v0 }
 0x451   : > { %v4073_v52 = vpack.c.bf16 %v4057_v39, %v4056_v9 }
 0x452   : > { %v8974_v7 = vpop.f32.mrf.mxu2  ;;  %v5927_v28 = vpop.permute.xlu2 %5926 }
 0x453   : > { %v5887_v57 = vpop.permute.xlu0 %5886  ;;  %4628 = vmatmul.msk.bf16.gmra.mxu3 %vm4114_vm5, %v4073_v52  ;;  %v5928_v3 = vunpack.i.l.bf16 %v5927_v28 }
 0x454   : > { %v5889_v6 = vunpack.i.h.bf16 %v5887_v57  ;;  %v5888_v62 = vunpack.i.l.bf16 %v5887_v57  ;;  %v5907_v36 = vpop.permute.xlu1 %5906 }
 0x455   : > { %v5909_v26 = vunpack.i.h.bf16 %v5907_v36  ;;  %v5908_v61 = vunpack.i.l.bf16 %v5907_v36  ;;  %v5929_v36 = vunpack.i.h.bf16 %v5927_v28 }
 0x456   : > { %v3944_v12 = vsel %vm3926_vm15, %v8623_v38, %v5889_v6  ;;  %v3943_v29 = vsel %vm3926_vm15, %v8627_v53, %v5888_v62  ;;  %v4283_v38 = vld [vmem:[%s6108_s15 + $0xd8] sm:$0xff] }
 0x457   : > { %v3977_v35 = vsel %vm3959_vm2, %v3944_v12, %v5894_v33  ;;  %v3976_v32 = vsel %vm3959_vm2, %v3943_v29, %v5893_v60  ;;  %v4301_v55 = vpack.c.bf16 %v4283_v38, %v4282_v51  ;;  %v3945_v0 = vsel %vm3926_vm15, %v8574_v19, %v5908_v61 }
 0x458   : > { %v4009_v20 = vsel %vm3992_vm1, %v3976_v32, %v5898_v50  ;;  %v4010_v53 = vsel %vm3992_vm1, %v3977_v35, %v5899_v14  ;;  %v3946_v58 = vsel %vm3926_vm15, %v8570_v8, %v5909_v26  ;;  %v3978_v46 = vsel %vm3959_vm2, %v3945_v0, %v5913_v41  ;;  %v4284_v14 = vld [vmem:[%s6108_s15 + $0xe0] sm:$0xff]  ;;  %v4285_v50 = vld [vmem:[%s6108_s15 + $0xe8] sm:$0xff] }
 0x459   : > { %v3979_v8 = vsel %vm3959_vm2, %v3946_v58, %v5914_v10 }
 0x45a   : > { %4620 = vmatmul.msk.bf16.gmra.mxu1 %vm4114_vm5, %v4065_v21  ;;  %v8989_v40 = vpop.f32.mrf.mxu2  ;;  %v5942_v33 = vpop.permute.xlu2 %5941 }
 0x45b   : > { %v5902_v30 = vpop.permute.xlu0 %5901  ;;  %v5944_v38 = vunpack.i.h.bf16 %v5942_v33 }
 0x45c   : > { %v5904_v23 = vunpack.i.h.bf16 %v5902_v30  ;;  %v5903_v4 = vunpack.i.l.bf16 %v5902_v30  ;;  %v5922_v21 = vpop.permute.xlu1 %5921 }
 0x45d   : > { %v5924_v27 = vunpack.i.h.bf16 %v5922_v21  ;;  %v5923_v19 = vunpack.i.l.bf16 %v5922_v21 }
 0x45e   : > { %v4042_v18 = vsel %vm4025_vm4, %v4009_v20, %v5903_v4  ;;  %v4043_v63 = vsel %vm4025_vm4, %v4010_v53, %v5904_v23  ;;  %v3948_v23 = vsel %vm3926_vm15, %v8683_v24, %v5929_v36  ;;  %v3947_v4 = vsel %vm3926_vm15, %v8687_v34, %v5928_v3  ;;  %v4286_v3 = vld [vmem:[%s6108_s15 + $0xf0] sm:$0xff] }
 0x45f   : > { %v4066_v42 = vpack.c.bf16 %v4043_v63, %v4042_v18  ;;  %v5943_v20 = vunpack.i.l.bf16 %v5942_v33  ;;  %v4302_v18 = vpack.c.bf16 %v4285_v50, %v4284_v14 }
 0x462   : > { %v9017_v30 = vpop.f32.mrf.mxu2 }
 0x463   : > { %v5917_v25 = vpop.permute.xlu0 %5916  ;;  %4642 = vmatmul.msk.bf16.vlgmr.msra.gmra.mxu3 %vm334_vm0, %v4301_v55 }
 0x464   : > { %v5919_v17 = vunpack.i.h.bf16 %v5917_v25  ;;  %v5918_v37 = vunpack.i.l.bf16 %v5917_v25  ;;  %v5937_v12 = vpop.permute.xlu1 %5936 }
 0x465   : > { %v5939_v51 = vunpack.i.h.bf16 %v5937_v12 }
 0x466   : > { %v4011_v59 = vsel %vm3992_vm1, %v3978_v46, %v5918_v37  ;;  %v4012_v9 = vsel %vm3992_vm1, %v3979_v8, %v5919_v17 }
 0x467   : > { %v4176_v39 = vpop.f32.mrf.mxu1  ;;  %v4044_v52 = vsel %vm4025_vm4, %v4011_v59, %v5923_v19  ;;  %v4045_v57 = vsel %vm4025_vm4, %v4012_v9, %v5924_v27 }
 0x468   : > { %v4177_v6 = vadd.f32 %v8995_v15, %v4176_v39  ;;  %v4067_v62 = vpack.c.bf16 %v4045_v57, %v4044_v52  ;;  %v9511_v39 = vld [vmem:[#allocation37_spill] sm:$0xff] }
 0x46a   : > { %v4445_v29 = vadd.f32 %v8641_v5, %v4177_v6  ;;  %4621 = vmatmul.msk.bf16.gmra.mxu1 %vm4114_vm5, %v4066_v42  ;;  %v5938_v5 = vunpack.i.l.bf16 %v5937_v12  ;;  %v9034_v25 = vpop.f32.mrf.mxu2  ;;  %v4287_v12 = vld [vmem:[%s6108_s15 + $0xf8] sm:$0xff] }
 0x46b   : > { %v5932_v60 = vpop.permute.xlu0 %5931 }
 0x46c   : > { %4477 = vst.msk [vmem:[%s9009_s23] sm:$0xff] %vm380_vm3, %v4445_v29  ;;  %v5934_v35 = vunpack.i.h.bf16 %v5932_v60  ;;  %v5933_v32 = vunpack.i.l.bf16 %v5932_v60  ;;  %v5952_v41 = vpop.permute.xlu1 %5951 }
 0x46d   : > { %v5954_v19 = vunpack.i.h.bf16 %v5952_v41  ;;  %v5953_v46 = vunpack.i.l.bf16 %v5952_v41 }
 0x46e   : > { %v3980_v53 = vsel %vm3959_vm2, %v3947_v4, %v5933_v32  ;;  %v3981_v26 = vsel %vm3959_vm2, %v3948_v23, %v5934_v35  ;;  %v4303_v32 = vpack.c.bf16 %v4287_v12, %v4286_v3  ;;  %v9512_v4 = vld [vmem:[#allocation36_spill] sm:$0xff] }
 0x46f   : > { %v4178_v61 = vpop.f32.mrf.mxu1  ;;  %v4013_v63 = vsel %vm3992_vm1, %v3980_v53, %v5938_v5  ;;  %v4014_v55 = vsel %vm3992_vm1, %v3981_v26, %v5939_v51 }
 0x470   : > { %v4179_v24 = vadd.f32 %v8995_v15, %v4178_v61  ;;  %v4046_v42 = vsel %vm4025_vm4, %v4013_v63, %v5943_v20  ;;  %v4047_v34 = vsel %vm4025_vm4, %v4014_v55, %v5944_v38  ;;  %v9513_v20 = vld [vmem:[#allocation25_spill] sm:$0xff]  ;;  %v9514_v63 = vld [vmem:[#allocation38_spill] sm:$0xff] }
 0x471   : > { %v4068_v21 = vpack.c.bf16 %v4047_v34, %v4046_v42 }
 0x472   : > { %v4446_v28 = vadd.f32 %v8672_v43, %v4179_v24  ;;  %v5957_v43 = vpop.permute.xlu2 %5956  ;;  %v9054_v23 = vpop.f32.mrf.mxu2 }
 0x473   : > { %v5947_v0 = vpop.permute.xlu0 %5946  ;;  %4643 = vmatmul.msk.bf16.gmra.mxu3 %vm334_vm0, %v4302_v18  ;;  %v5958_v57 = vunpack.i.l.bf16 %v5957_v43 }
 0x474   : > { %4478 = vst.msk [vmem:[%s9009_s23 + $0x8] sm:$0xff] %vm380_vm3, %v4446_v28  ;;  %v5949_v58 = vunpack.i.h.bf16 %v5947_v0  ;;  %v5948_v10 = vunpack.i.l.bf16 %v5947_v0 }
 0x476   : > { %v3949_v17 = vsel %vm3926_vm15, %v8658_v56, %v5948_v10  ;;  %v3950_v37 = vsel %vm3926_vm15, %v8662_v1, %v5949_v58  ;;  %v5959_v56 = vunpack.i.h.bf16 %v5957_v43 }
 0x477   : > { %v4181_v27 = vpop.f32.mrf.mxu1  ;;  %v3982_v59 = vsel %vm3959_vm2, %v3949_v17, %v5953_v46  ;;  %v3983_v9 = vsel %vm3959_vm2, %v3950_v37, %v5954_v19 }
 0x478   : > { %v4182_v8 = vadd.f32 %v8995_v15, %v4181_v27  ;;  %v4015_v29 = vsel %vm3992_vm1, %v3982_v59, %v5958_v57  ;;  %v4016_v33 = vsel %vm3992_vm1, %v3983_v9, %v5959_v56 }
 0x47a   : > { %v4447_v52 = vadd.f32 %v9511_v39, %v4182_v8  ;;  %4622 = vmatmul.msk.bf16.gmra.mxu1 %vm4114_vm5, %v4067_v62  ;;  %v9063_v26 = vpop.f32.mrf.mxu2 }
 0x47b   : > { %v5962_v6 = vpop.permute.xlu0 %5961 }
 0x47c   : > { %4479 = vst.msk [vmem:[%s9009_s23 + $0x10] sm:$0xff] %vm380_vm3, %v4447_v52  ;;  %v5964_v1 = vunpack.i.h.bf16 %v5962_v6  ;;  %v5963_v36 = vunpack.i.l.bf16 %v5962_v6 }
 0x47e   : > { %v4048_v60 = vsel %vm4025_vm4, %v4015_v29, %v5963_v36  ;;  %v4049_v35 = vsel %vm4025_vm4, %v4016_v33, %v5964_v1 }
 0x47f   : > { %v4183_v62 = vpop.f32.mrf.mxu1  ;;  %v4069_v14 = vpack.c.bf16 %v4049_v35, %v4048_v60 }
 0x480   : > { %v4184_v50 = vadd.f32 %v8995_v15, %v4183_v62 }
 0x482   : > { %v4448_v51 = vadd.f32 %v9512_v4, %v4184_v50  ;;  %v4425_v24 = vpop.f32.mrf.mxu2 }
 0x483   : > { %4644 = vmatmul.msk.bf16.gmra.mxu3 %vm334_vm0, %v4303_v32 }
 0x484   : > { %4480 = vst.msk [vmem:[%s9009_s23 + $0x18] sm:$0xff] %vm380_vm3, %v4448_v51 }
 0x487   : > { %v4186_v5 = vpop.f32.mrf.mxu1 }
 0x488   : > { %v4187_v38 = vadd.f32 %v8995_v15, %v4186_v5 }
 0x48a   : > { %v4449_v53 = vadd.f32 %v9513_v20, %v4187_v38  ;;  %4623 = vmatmul.msk.bf16.gmra.mxu1 %vm4114_vm5, %v4068_v21  ;;  %v4427_v41 = vpop.f32.mrf.mxu2 }
 0x48c   : > { %4481 = vst.msk [vmem:[%s9009_s23 + $0x20] sm:$0xff] %vm380_vm3, %v4449_v53 }
 0x48f   : > { %v4188_v61 = vpop.f32.mrf.mxu1 }
 0x490   : > { %v4189_v18 = vadd.f32 %v8995_v15, %v4188_v61 }
 0x492   : > { %v4450_v55 = vadd.f32 %v9514_v63, %v4189_v18 }
 0x494   : > { %4482 = vst.msk [vmem:[%s9009_s23 + $0x28] sm:$0xff] %vm380_vm3, %v4450_v55 }
 0x496   : > { %v4236_v42 = vpop.f32.mrf.mxu3 }
 0x497   : > { %v4237_v34 = vadd.f32 %v8995_v15, %v4236_v42  ;;  %v4191_v28 = vpop.f32.mrf.mxu1 }
 0x498   : > { %v4192_v21 = vadd.f32 %v8995_v15, %v4191_v28 }
 0x499   : > { %v4469_v0 = vadd.f32 %v4425_v24, %v4237_v34 }
 0x49a   : > { %v4451_v58 = vadd.f32 %v8783_v54, %v4192_v21  ;;  %4624 = vmatmul.msk.bf16.gmra.mxu1 %vm4114_vm5, %v4069_v14 }
 0x49b   : > { %4501 = vst.msk [vmem:[%s9009_s23 + $0xc0] sm:$0xff] %vm380_vm3, %v4469_v0 }
 0x49c   : > { %4483 = vst.msk [vmem:[%s9009_s23 + $0x30] sm:$0xff] %vm380_vm3, %v4451_v58 }
 0x49e   : > { %v4238_v10 = vpop.f32.mrf.mxu3 }
 0x49f   : > { %v4239_v17 = vadd.f32 %v8995_v15, %v4238_v10  ;;  %v4193_v37 = vpop.f32.mrf.mxu1 }
 0x4a0   : > { %v4194_v27 = vadd.f32 %v8995_v15, %v4193_v37 }
 0x4a1   : > { %v4470_v43 = vadd.f32 %v4427_v41, %v4239_v17 }
 0x4a2   : > { %v4452_v19 = vadd.f32 %v8801_v16, %v4194_v27 }
 0x4a3   : > { %4502 = vst.msk [vmem:[%s9009_s23 + $0xc8] sm:$0xff] %vm380_vm3, %v4470_v43 }
 0x4a4   : > { %4484 = vst.msk [vmem:[%s9009_s23 + $0x38] sm:$0xff] %vm380_vm3, %v4452_v19 }
 0x4a7   : > { %v4196_v54 = vpop.f32.mrf.mxu1 }
 0x4a8   : > { %v4197_v46 = vadd.f32 %v8995_v15, %v4196_v54 }
 0x4aa   : > { %v4453_v8 = vadd.f32 %v8829_v13, %v4197_v46 }
 0x4ac   : > { %4485 = vst.msk [vmem:[%s9009_s23 + $0x40] sm:$0xff] %vm380_vm3, %v4453_v8 }
 0x4ad   : > { %v4241_v39 = vpop.f32.mrf.mxu3 }
 0x4af   : > { %v4198_v59 = vpop.f32.mrf.mxu1 }
 0x4b0   : > { %v4199_v9 = vadd.f32 %v8995_v15, %v4198_v59 }
 0x4b2   : > { %v4454_v16 = vadd.f32 %v8844_v11, %v4199_v9 }
 0x4b4   : > { %4486 = vst.msk [vmem:[%s9009_s23 + $0x48] sm:$0xff] %vm380_vm3, %v4454_v16 }
 0x4b5   : > { %v4243_v6 = vpop.f32.mrf.mxu3 }
 0x4b7   : > { %v4201_v52 = vpop.f32.mrf.mxu1 }
 0x4b8   : > { %v4202_v56 = vadd.f32 %v8995_v15, %v4201_v52 }
 0x4ba   : > { %v4455_v57 = vadd.f32 %v8871_v22, %v4202_v56 }
 0x4bc   : > { %4487 = vst.msk [vmem:[%s9009_s23 + $0x50] sm:$0xff] %vm380_vm3, %v4455_v57 }
 0x4bf   : > { %v4203_v13 = vpop.f32.mrf.mxu1 }
 0x4c0   : > { %v4204_v1 = vadd.f32 %v8995_v15, %v4203_v13 }
 0x4c2   : > { %v4456_v36 = vadd.f32 %v8882_v44, %v4204_v1 }
 0x4c4   : > { %4488 = vst.msk [vmem:[%s9009_s23 + $0x58] sm:$0xff] %vm380_vm3, %v4456_v36  ;;  %v4246_v11 = vpop.f32.mrf.mxu3 }
 0x4c7   : > { %v4206_v3 = vpop.f32.mrf.mxu1 }
 0x4c8   : > { %v4207_v12 = vadd.f32 %v8995_v15, %v4206_v3 }
 0x4ca   : > { %v4457_v29 = vadd.f32 %v8893_v49, %v4207_v12 }
 0x4cc   : > { %4489 = vst.msk [vmem:[%s9009_s23 + $0x60] sm:$0xff] %vm380_vm3, %v4457_v29  ;;  %v4248_v22 = vpop.f32.mrf.mxu3 }
 0x4cf   : > { %v4208_v33 = vpop.f32.mrf.mxu1 }
 0x4d0   : > { %v4209_v60 = vadd.f32 %v8995_v15, %v4208_v33 }
 0x4d2   : > { %v4458_v35 = vadd.f32 %v8909_v31, %v4209_v60  ;;  %v4242_v31 = vadd.f32 %v8995_v15, %v4241_v39 }
 0x4d4   : > { %4490 = vst.msk [vmem:[%s9009_s23 + $0x68] sm:$0xff] %vm380_vm3, %v4458_v35 }
 0x4d6   : > { %v4251_v44 = vpop.f32.mrf.mxu3 }
 0x4d7   : > { %v4211_v62 = vpop.f32.mrf.mxu1 }
 0x4d8   : > { %v4212_v32 = vadd.f32 %v8995_v15, %v4211_v62 }
 0x4da   : > { %v4459_v14 = vadd.f32 %v8926_v45, %v4212_v32 }
 0x4dc   : > { %4491 = vst.msk [vmem:[%s9009_s23 + $0x70] sm:$0xff] %vm380_vm3, %v4459_v14 }
 0x4de   : > { %v4253_v49 = vpop.f32.mrf.mxu3 }
 0x4df   : > { %v4213_v50 = vpop.f32.mrf.mxu1 }
 0x4e0   : > { %v4214_v4 = vadd.f32 %v8995_v15, %v4213_v50 }
 0x4e2   : > { %v4460_v51 = vadd.f32 %v8937_v48, %v4214_v4  ;;  %v4244_v48 = vadd.f32 %v8995_v15, %v4243_v6 }
 0x4e4   : > { %4492 = vst.msk [vmem:[%s9009_s23 + $0x78] sm:$0xff] %vm380_vm3, %v4460_v51 }
 0x4e6   : > { %v4430_v5 = vpop.f32.mrf.mxu3 }
 0x4e7   : > { %v4471_v38 = vadd.f32 %v4430_v5, %v4242_v31  ;;  %v4216_v20 = vpop.f32.mrf.mxu1 }
 0x4e8   : > { %v4217_v53 = vadd.f32 %v8995_v15, %v4216_v20 }
 0x4e9   : > { %4503 = vst.msk [vmem:[%s9009_s23 + $0xd0] sm:$0xff] %vm380_vm3, %v4471_v38 }
 0x4ea   : > { %v4461_v45 = vadd.f32 %v8948_v47, %v4217_v53  ;;  %v4247_v47 = vadd.f32 %v8995_v15, %v4246_v11 }
 0x4ec   : > { %4493 = vst.msk [vmem:[%s9009_s23 + $0x80] sm:$0xff] %vm380_vm3, %v4461_v45 }
 0x4ee   : > { %v4432_v61 = vpop.f32.mrf.mxu3 }
 0x4ef   : > { %v4472_v18 = vadd.f32 %v4432_v61, %v4244_v48  ;;  %v4218_v63 = vpop.f32.mrf.mxu1 }
 0x4f0   : > { %v4219_v55 = vadd.f32 %v8995_v15, %v4218_v63 }
 0x4f1   : > { %4504 = vst.msk [vmem:[%s9009_s23 + $0xd8] sm:$0xff] %vm380_vm3, %v4472_v18 }
 0x4f2   : > { %v4462_v24 = vadd.f32 %v8963_v2, %v4219_v55  ;;  %v4249_v2 = vadd.f32 %v8995_v15, %v4248_v22 }
 0x4f4   : > { %4494 = vst.msk [vmem:[%s9009_s23 + $0x88] sm:$0xff] %vm380_vm3, %v4462_v24 }
 0x4f6   : > { %v4435_v42 = vpop.f32.mrf.mxu3 }
 0x4f7   : > { %v4473_v34 = vadd.f32 %v4435_v42, %v4247_v47  ;;  %v4221_v28 = vpop.f32.mrf.mxu1 }
 0x4f8   : > { %v4222_v21 = vadd.f32 %v8995_v15, %v4221_v28 }
 0x4f9   : > { %4505 = vst.msk [vmem:[%s9009_s23 + $0xe0] sm:$0xff] %vm380_vm3, %v4473_v34 }
 0x4fa   : > { %v4463_v0 = vadd.f32 %v8974_v7, %v4222_v21  ;;  %v4252_v7 = vadd.f32 %v8995_v15, %v4251_v44 }
 0x4fc   : > { %4495 = vst.msk [vmem:[%s9009_s23 + $0x90] sm:$0xff] %vm380_vm3, %v4463_v0 }
 0x4fe   : > { %v4437_v58 = vpop.f32.mrf.mxu3 }
 0x4ff   : > { %v4474_v10 = vadd.f32 %v4437_v58, %v4249_v2  ;;  %v4223_v41 = vpop.f32.mrf.mxu1 }
 0x500   : > { %v4224_v17 = vadd.f32 %v8995_v15, %v4223_v41 }
 0x501   : > { %4506 = vst.msk [vmem:[%s9009_s23 + $0xe8] sm:$0xff] %vm380_vm3, %v4474_v10 }
 0x502   : > { %v4464_v37 = vadd.f32 %v8989_v40, %v4224_v17  ;;  %v4254_v40 = vadd.f32 %v8995_v15, %v4253_v49 }
 0x504   : > { %4496 = vst.msk [vmem:[%s9009_s23 + $0x98] sm:$0xff] %vm380_vm3, %v4464_v37 }
 0x506   : > { %v4440_v27 = vpop.f32.mrf.mxu3 }
 0x507   : > { %v4475_v43 = vadd.f32 %v4440_v27, %v4252_v7  ;;  %v4226_v19 = vpop.f32.mrf.mxu1 }
 0x508   : > { %v4227_v54 = vadd.f32 %v8995_v15, %v4226_v19 }
 0x509   : > { %4507 = vst.msk [vmem:[%s9009_s23 + $0xf0] sm:$0xff] %vm380_vm3, %v4475_v43 }
 0x50a   : > { %v4465_v46 = vadd.f32 %v9017_v30, %v4227_v54 }
 0x50c   : > { %4497 = vst.msk [vmem:[%s9009_s23 + $0xa0] sm:$0xff] %vm380_vm3, %v4465_v46 }
 0x50e   : > { %v4442_v8 = vpop.f32.mrf.mxu3 }
 0x50f   : > { %v4476_v59 = vadd.f32 %v4442_v8, %v4254_v40  ;;  %v4228_v9 = vpop.f32.mrf.mxu1 }
 0x510   : > { %v4229_v39 = vadd.f32 %v8995_v15, %v4228_v9 }
 0x511   : > { %4508 = vst.msk [vmem:[%s9009_s23 + $0xf8] sm:$0xff] %vm380_vm3, %v4476_v59 }
 0x512   : > { %v4466_v16 = vadd.f32 %v9034_v25, %v4229_v39 }
 0x514   : > { %4498 = vst.msk [vmem:[%s9009_s23 + $0xa8] sm:$0xff] %vm380_vm3, %v4466_v16 }
 0x517   : > { %v4231_v52 = vpop.f32.mrf.mxu1 }
 0x518   : > { %v4232_v56 = vadd.f32 %v8995_v15, %v4231_v52 }
 0x51a   : > { %v4467_v30 = vadd.f32 %v9054_v23, %v4232_v56 }
 0x51c   : > { %4499 = vst.msk [vmem:[%s9009_s23 + $0xb0] sm:$0xff] %vm380_vm3, %v4467_v30 }
 0x51f   : > { %v4233_v57 = vpop.f32.mrf.mxu1 }
 0x520   : > { %v4234_v6 = vadd.f32 %v8995_v15, %v4233_v57 }
 0x522   : > { %v4468_v13 = vadd.f32 %v9063_v26, %v4234_v6 }
 0x524   : > { %4500 = vst.msk [vmem:[%s9009_s23 + $0xb8] sm:$0xff] %vm380_vm3, %v4468_v13 }
 0x525 PF: > { %s19_s30 = sadd.s32 1, %s5976_s30  }
 0x526   : > { %p16_p4 = scmp.ge.s32.totalorder %s19_s30, 4  }
 0x528   :  { %18 = sbr.rel (!%p16_p4) target bundleno = 1 (0x1), region = 92 }

// kernel: tpu_custom_call.1
= control target key start
LH: loop header
LB: loop body
LE: loop exit
PB: predicated region body
PF: predicated region fallthrough
CT: control target
= control target key end

     0   :  { %s5343_s30 = smov 0   ;;  %s7334_s0 = inlined_call_operand.vmem [shape: f32[2,16,16,4], index: 0, kind: input, shape index: {}]   ;;  %s7335_s1 = inlined_call_operand.vmem [shape: f32[1,4], index: 1, kind: input, shape index: {}]   ;;  %s7336_s2 = inlined_call_operand.vmem [shape: f32[1,4], index: 2, kind: input, shape index: {}]   ;;  %s7337_s3 = inlined_call_operand.vmem [shape: bf16[36,8], index: 3, kind: input, shape index: {}]   ;;  %s7338_s4 = inlined_call_operand.vmem [shape: f32[1,8], index: 4, kind: input, shape index: {}]   ;;  %s7339_s5 = inlined_call_operand.vmem [shape: f32[1,8], index: 5, kind: input, shape index: {}]   ;;  %s7340_s6 = inlined_call_operand.vmem [shape: bf16[72,8], index: 6, kind: input, shape index: {}]   ;;  %s7341_s7 = inlined_call_operand.vmem [shape: f32[1,8], index: 7, kind: input, shape index: {}]   ;;  %s7342_s8 = inlined_call_operand.vmem [shape: bf16[4,8], index: 8, kind: input, shape index: {}]   ;;  %s7343_s9 = inlined_call_operand.vmem [shape: f32[2,16,16,8], index: 9, kind: output, shape index: {}]  }
   0x1 LB: > { %s4946_s10 = sadd.s32 4294967295, %s5290_s30   ;;  %p4950_p0 = scmp.ge.s32.totalorder %s5290_s30, 1  ;;  %s5290_s30 = sphi %s5343_s30, %s19_s30  }
   0x2   : > { %p287_p1 = scmp.lt.s32.totalorder %s5290_s30, 3 }
   0x4   : > { %p288_p2 = pnand %p4950_p0, %p287_p1 }
   0x6   : > { %291 = sbr.rel (%p288_p2) target bundleno = 1541 (0x605), region = 56 }
   0xb   : > { %v917_v0 = vld [vmem:[%s7337_s3] sm:$0xc]  ;;  %vm970_vm0 = vcmask 1041408   ;;  %vm334_vm1 = vcmask 31744   ;;  %v7344_v2 = vmov 0.0   ;;  %p323_p3 = scmp.lt.s32.totalorder %s4946_s10, 1 }
   0xc   : > { %v919_v1 = vunpack.c.l.b16 %v917_v0  ;;  %335 = vst.msk [vmem:[#allocation2] sm:$0xff] %vm334_vm1, %v7344_v2  ;;  %v1219_v3 = vld [vmem:[%s7337_s3 + $0x4] sm:$0x3]  ;;  %v900_v4 = vld [vmem:[%s7337_s3] sm:$0x3]  ;;  %vm361_vm2 = vcmask 30720  }
   0xd   : > { %336 = vst.msk [vmem:[#allocation2 + $0x8] sm:$0xff] %vm334_vm1, %v7344_v2  ;;  %v5365_v5 = vsel %vm970_vm0, %v1219_v3, 0  ;;  %v1112_v6 = vsel %vm970_vm0, %v900_v4, 0  ;;  %s7389_s10 = smov (!%p323_p3, %s4946_s10), 1  ;;  %v5397_v11 = vld [vmem:[%s7335_s1] ss:$0 sm:$0xff] }
   0xe   : > { %v920_v7 = vpack.c.b16 %v919_v1, %v919_v1  ;;  %337 = vst.msk [vmem:[#allocation2 + $0x10] sm:$0xff] %vm334_vm1, %v7344_v2  ;;  %1278 = vmatpush.bf16.msra.mxu2 %v5365_v5  ;;  %1121 = vmatpush.bf16.msra.mxu1 %v1112_v6  ;;  %s5261_s17 = sshll.u32 %s7389_s10, 8  ;;  %v5414_v18 = vld [vmem:[%s7336_s2] ss:$0 sm:$0xff]  ;;  %vm342_vm3 = vcmask 24576   ;;  %vm3046_vm4 = vcmask 1043456  }
   0xf   : > { %339 = vst.msk [vmem:[#allocation2 + $0x198] sm:$0xff] %vm334_vm1, %v7344_v2  ;;  %s5388_s20 = scalar_lea.vmem %s7334_s0, %s5261_s17  ;;  %v1601_v26 = vld [vmem:[%s7337_s3 + $0x8] sm:$0x3]  ;;  %vm380_vm5 = vcmask 64512   ;;  %vm388_vm6 = vcmask 57344   ;;  %vm407_vm7 = vcmask 63488   ;;  %s7141_s22 = scalar_lea.vmem %s7343_s9, %s5261_s17 }
  0x10   : > { %v921_v8 = vrot.slane %v920_v7, 2  ;;  %340 = vst.msk [vmem:[#allocation2 + $0x1a0] sm:$0xff] %vm334_vm1, %v7344_v2  ;;  %v448_v13 = vld [vmem:[%s5388_s20 + $0xb0] sm:$0xff]  ;;  %v449_v15 = vld [vmem:[%s5388_s20 + $0xb8] sm:$0xff]  ;;  %v1651_v27 = vsel %vm970_vm0, %v1601_v26, 0  ;;  %v426_v28 = vld [vmem:[%s5388_s20] sm:$0xff] }
  0x11   : > { %341 = vst.msk [vmem:[#allocation2 + $0x1a8] sm:$0xff] %vm334_vm1, %v7344_v2  ;;  %v484_v17 = vmul.f32 %v5397_v11, %v448_v13  ;;  %v485_v20 = vmul.f32 %v5397_v11, %v449_v15  ;;  %v427_v29 = vld [vmem:[%s5388_s20 + $0x8] sm:$0xff]  ;;  %v450_v32 = vld [vmem:[%s5388_s20 + $0xc0] sm:$0xff]  ;;  %v462_v34 = vmul.f32 %v5397_v11, %v426_v28  ;;  %v428_v39 = vld [vmem:[%s5388_s20 + $0x10] sm:$0xff] }
  0x12   : > { %v972_v9 = vsel %vm970_vm0, %v921_v8, 0  ;;  %362 = vst.msk [vmem:[#allocation2 + $0x11] sm:$0x7f] %vm361_vm2, %v7344_v2  ;;  %v451_v35 = vld [vmem:[%s5388_s20 + $0xc8] sm:$0xff]  ;;  %v463_v38 = vmul.f32 %v5397_v11, %v427_v29  ;;  %v486_v41 = vmul.f32 %v5397_v11, %v450_v32  ;;  %v429_v42 = vld [vmem:[%s5388_s20 + $0x18] sm:$0xff]  ;;  %v452_v44 = vld [vmem:[%s5388_s20 + $0xd0] sm:$0xff]  ;;  %v464_v46 = vmul.f32 %v5397_v11, %v428_v39 }
  0x13   : > { %981 = vmatpush.bf16.msra.mxu0 %v972_v9  ;;  %363 = vst.msk [vmem:[#allocation2 + $0x29] sm:$0x7f] %vm361_vm2, %v7344_v2  ;;  %5263 = vmatpush.bf16.msra.mxu3 %v972_v9  ;;  %v520_v22 = vadd.f32 %v5414_v18, %v484_v17  ;;  %v521_v23 = vadd.f32 %v5414_v18, %v485_v20  ;;  %v453_v47 = vld [vmem:[%s5388_s20 + $0xd8] sm:$0xff]  ;;  %v430_v52 = vld [vmem:[%s5388_s20 + $0x20] sm:$0xff]  ;;  %v431_v53 = vld [vmem:[%s5388_s20 + $0x28] sm:$0xff] }
  0x14   : > { %v627_v10 = vld [vmem:[#allocation2 + $0x1] sm:$0xff]  ;;  %364 = vst.msk [vmem:[#allocation2 + $0x41] sm:$0x7f] %vm361_vm2, %v7344_v2  ;;  %v487_v43 = vmul.f32 %v5397_v11, %v451_v35  ;;  %v498_v45 = vadd.f32 %v5414_v18, %v462_v34  ;;  %v499_v48 = vadd.f32 %v5414_v18, %v463_v38  ;;  %v465_v49 = vmul.f32 %v5397_v11, %v429_v42 }
  0x15   : > { %v628_v12 = vld [vmem:[#allocation2 + $0x9] sm:$0xff]  ;;  %365 = vst.msk [vmem:[#allocation2 + $0x59] sm:$0x7f] %vm361_vm2, %v7344_v2  ;;  %v552_v24 = vmax.f32 %v520_v22, 0.0  ;;  %v553_v25 = vmax.f32 %v521_v23, 0.0  ;;  %v522_v50 = vadd.f32 %v5414_v18, %v486_v41  ;;  %v488_v51 = vmul.f32 %v5397_v11, %v452_v44 }
  0x16   : > { %v901_v14 = vpack.c.bf16 %v628_v12, %v627_v10  ;;  %366 = vst.msk [vmem:[#allocation2 + $0x71] sm:$0x7f] %vm361_vm2, %v7344_v2  ;;  %v659_v16 = vld [vmem:[#allocation2 + $0x2] sm:$0xff]  ;;  %v523_v54 = vadd.f32 %v5414_v18, %v487_v43  ;;  %v489_v55 = vmul.f32 %v5397_v11, %v453_v47  ;;  %v530_v56 = vmax.f32 %v498_v45, 0.0 }
  0x17   : > { %5264 = vmatpush.bf16.msrb.mxu3 %v1112_v6  ;;  %367 = vst.msk [vmem:[#allocation2 + $0x89] sm:$0x7f] %vm361_vm2, %v7344_v2  ;;  %1660 = vmatpush.bf16.msrb.mxu0 %v1651_v27  ;;  %v596_v31 = vld [vmem:[#allocation2 + $0x8] sm:$0xff]  ;;  %v500_v57 = vadd.f32 %v5414_v18, %v464_v46  ;;  %v466_v58 = vmul.f32 %v5397_v11, %v430_v52  ;;  %v531_v59 = vmax.f32 %v499_v48, 0.0  ;;  %v554_v62 = vmax.f32 %v522_v50, 0.0  ;;  %v454_v12 = vld [vmem:[%s5388_s20 + $0xe0] sm:$0xff] }
  0x18   : > { %4955 = vmatmul.msk.bf16.vlgmr.msra.gmra.mxu0 %vm334_vm1, %v901_v14  ;;  %368 = vst.msk [vmem:[#allocation2 + $0xa1] sm:$0x7f] %vm361_vm2, %v7344_v2  ;;  %v501_v60 = vadd.f32 %v5414_v18, %v465_v49  ;;  %v467_v61 = vmul.f32 %v5397_v11, %v431_v53  ;;  %v524_v63 = vadd.f32 %v5414_v18, %v488_v51  ;;  %v555_v0 = vmax.f32 %v523_v54, 0.0  ;;  %v455_v13 = vld [vmem:[%s5388_s20 + $0xe8] sm:$0xff]  ;;  %v434_v53 = vld [vmem:[%s5388_s20 + $0x40] sm:$0xff] }
  0x19   : > { %v660_v19 = vld [vmem:[#allocation2 + $0xa] sm:$0xff]  ;;  %369 = vst.msk [vmem:[#allocation2 + $0xb9] sm:$0x7f] %vm361_vm2, %v7344_v2  ;;  %v525_v1 = vadd.f32 %v5414_v18, %v489_v55  ;;  %v532_v3 = vmax.f32 %v500_v57, 0.0  ;;  %v502_v4 = vadd.f32 %v5414_v18, %v466_v58  ;;  %v491_v17 = vmul.f32 %v5397_v11, %v455_v13 }
  0x1a   : > { %v1203_v21 = vpack.c.bf16 %v660_v19, %v659_v16  ;;  %370 = vst.msk [vmem:[#allocation2 + $0xd1] sm:$0x7f] %vm361_vm2, %v7344_v2  ;;  %v503_v6 = vadd.f32 %v5414_v18, %v467_v61  ;;  %v556_v7 = vmax.f32 %v524_v63, 0.0  ;;  %v490_v16 = vmul.f32 %v5397_v11, %v454_v12  ;;  %v435_v54 = vld [vmem:[%s5388_s20 + $0x48] sm:$0xff]  ;;  %v437_v12 = vld [vmem:[%s5388_s20 + $0x58] sm:$0xff] }
  0x1b   : > { %371 = vst.msk [vmem:[#allocation2 + $0xe9] sm:$0x7f] %vm361_vm2, %v7344_v2  ;;  %v557_v8 = vmax.f32 %v525_v1, 0.0  ;;  %v534_v9 = vmax.f32 %v502_v4, 0.0  ;;  %v527_v27 = vadd.f32 %v5414_v18, %v491_v17  ;;  %v470_v55 = vmul.f32 %v5397_v11, %v434_v53 }
  0x1c   : > { %4987 = vmatmul.msk.bf16.vlgmr.msra.gmra.mxu2 %vm334_vm1, %v1203_v21  ;;  %372 = vst.msk [vmem:[#allocation2 + $0x101] sm:$0x7f] %vm361_vm2, %v7344_v2  ;;  %v535_v10 = vmax.f32 %v503_v6, 0.0  ;;  %v526_v26 = vadd.f32 %v5414_v18, %v490_v16 }
  0x1d   : > { %373 = vst.msk [vmem:[#allocation2 + $0x119] sm:$0x7f] %vm361_vm2, %v7344_v2  ;;  %v559_v34 = vmax.f32 %v527_v27, 0.0  ;;  %v506_v57 = vadd.f32 %v5414_v18, %v470_v55 }
  0x1e   : > { %374 = vst.msk [vmem:[#allocation2 + $0x131] sm:$0x7f] %vm361_vm2, %v7344_v2 }
  0x1f   : > { %375 = vst.msk [vmem:[#allocation2 + $0x149] sm:$0x7f] %vm361_vm2, %v7344_v2 }
  0x20   : > { %376 = vst.msk [vmem:[#allocation2 + $0x161] sm:$0x7f] %vm361_vm2, %v7344_v2 }
  0x21   : > { %377 = vst.msk [vmem:[#allocation2 + $0x179] sm:$0x7f] %vm361_vm2, %v7344_v2 }
  0x22   : > { %378 = vst.msk [vmem:[#allocation2 + $0x191] sm:$0x7f] %vm361_vm2, %v7344_v2 }
  0x23   : > { %379 = vst.msk [vmem:[#allocation2 + $0x1a9] sm:$0x7f] %vm361_vm2, %v7344_v2 }
  0x24   : > { %585 = vst.msk [vmem:[#allocation2 + $0x121] sm:$0xff] %vm334_vm1, %v552_v24 }
  0x25   : > { %586 = vst.msk [vmem:[#allocation2 + $0x129] sm:$0xff] %vm334_vm1, %v553_v25 }
  0x26   : > { %343 = vst.msk [vmem:[#allocation2] sm:$0x1] %vm342_vm3, %v7344_v2 }
  0x27   : > { %344 = vst.msk [vmem:[#allocation2 + $0x18] sm:$0x1] %vm342_vm3, %v7344_v2 }
  0x28   : > { %345 = vst.msk [vmem:[#allocation2 + $0x30] sm:$0x1] %vm342_vm3, %v7344_v2 }
  0x29   : > { %346 = vst.msk [vmem:[#allocation2 + $0x48] sm:$0x1] %vm342_vm3, %v7344_v2 }
  0x2a   : > { %347 = vst.msk [vmem:[#allocation2 + $0x60] sm:$0x1] %vm342_vm3, %v7344_v2 }
  0x2b   : > { %v651_v30 = vld [vmem:[#allocation2 + $0x121] sm:$0xff]  ;;  %348 = vst.msk [vmem:[#allocation2 + $0x78] sm:$0x1] %vm342_vm3, %v7344_v2 }
  0x2c   : > { %v652_v33 = vld [vmem:[#allocation2 + $0x129] sm:$0xff]  ;;  %349 = vst.msk [vmem:[#allocation2 + $0x90] sm:$0x1] %vm342_vm3, %v7344_v2 }
  0x2d   : > { %v913_v36 = vpack.c.bf16 %v652_v33, %v651_v30  ;;  %v595_v37 = vld [vmem:[#allocation2] sm:$0xff]  ;;  %350 = vst.msk [vmem:[#allocation2 + $0xa8] sm:$0x1] %vm342_vm3, %v7344_v2  ;;  %v432_v30 = vld [vmem:[%s5388_s20 + $0x30] sm:$0xff]  ;;  %v558_v33 = vmax.f32 %v526_v26, 0.0 }
  0x2e   : > { %v884_v40 = vpack.c.bf16 %v596_v31, %v595_v37  ;;  %351 = vst.msk [vmem:[#allocation2 + $0xc0] sm:$0x1] %vm342_vm3, %v7344_v2  ;;  %v433_v31 = vld [vmem:[%s5388_s20 + $0x38] sm:$0xff]  ;;  %v468_v35 = vmul.f32 %v5397_v11, %v432_v30  ;;  %v620_v30 = vld [vmem:[#allocation2 + $0x128] sm:$0xff] }
  0x2f   : > { %4967 = vmatmul.msk.bf16.vlgmr.msra.gmra.mxu3 %vm334_vm1, %v913_v36  ;;  %352 = vst.msk [vmem:[#allocation2 + $0xd8] sm:$0x1] %vm342_vm3, %v7344_v2  ;;  %v469_v36 = vmul.f32 %v5397_v11, %v433_v31 }
  0x30   : > { %4971 = vmatmul.msk.bf16.vlgmr.msra.gmra.mxu1 %vm334_vm1, %v884_v40  ;;  %353 = vst.msk [vmem:[#allocation2 + $0xf0] sm:$0x1] %vm342_vm3, %v7344_v2  ;;  %5265 = vmatpush.bf16.msra.mxu3 %v5365_v5  ;;  %v533_v5 = vmax.f32 %v501_v60, 0.0  ;;  %v504_v37 = vadd.f32 %v5414_v18, %v468_v35  ;;  %v438_v35 = vld [vmem:[%s5388_s20 + $0x60] sm:$0xff] }
  0x31   : > { %354 = vst.msk [vmem:[#allocation2 + $0x108] sm:$0x1] %vm342_vm3, %v7344_v2  ;;  %v505_v38 = vadd.f32 %v5414_v18, %v469_v36  ;;  %v439_v36 = vld [vmem:[%s5388_s20 + $0x68] sm:$0xff] }
  0x32   : > { %355 = vst.msk [vmem:[#allocation2 + $0x120] sm:$0x1] %vm342_vm3, %v7344_v2  ;;  %v536_v39 = vmax.f32 %v504_v37, 0.0  ;;  %v474_v37 = vmul.f32 %v5397_v11, %v438_v35 }
  0x33   : > { %356 = vst.msk [vmem:[#allocation2 + $0x138] sm:$0x1] %vm342_vm3, %v7344_v2  ;;  %v537_v40 = vmax.f32 %v505_v38, 0.0  ;;  %v475_v38 = vmul.f32 %v5397_v11, %v439_v36 }
  0x34   : > { %357 = vst.msk [vmem:[#allocation2 + $0x150] sm:$0x1] %vm342_vm3, %v7344_v2 }
  0x35   : > { %358 = vst.msk [vmem:[#allocation2 + $0x168] sm:$0x1] %vm342_vm3, %v7344_v2 }
  0x36   : > { %359 = vst.msk [vmem:[#allocation2 + $0x180] sm:$0x1] %vm342_vm3, %v7344_v2 }
  0x37   : > { %360 = vst.msk [vmem:[#allocation2 + $0x198] sm:$0x1] %vm342_vm3, %v7344_v2 }
  0x38   : > { %563 = vst.msk [vmem:[#allocation2 + $0x19] sm:$0xff] %vm334_vm1, %v530_v56  ;;  %v471_v56 = vmul.f32 %v5397_v11, %v435_v54 }
  0x39   : > { %564 = vst.msk [vmem:[#allocation2 + $0x21] sm:$0xff] %vm334_vm1, %v531_v59  ;;  %v538_v59 = vmax.f32 %v506_v57, 0.0 }
  0x3a   : > { %587 = vst.msk [vmem:[#allocation2 + $0x139] sm:$0xff] %vm334_vm1, %v554_v62  ;;  %v507_v58 = vadd.f32 %v5414_v18, %v471_v56 }
  0x3b   : > { %588 = vst.msk [vmem:[#allocation2 + $0x141] sm:$0xff] %vm334_vm1, %v555_v0 }
  0x3c   : > { %565 = vst.msk [vmem:[#allocation2 + $0x31] sm:$0xff] %vm334_vm1, %v532_v3  ;;  %v539_v60 = vmax.f32 %v507_v58, 0.0  ;;  %v440_v58 = vld [vmem:[%s5388_s20 + $0x70] sm:$0xff] }
  0x3d   : > { %566 = vst.msk [vmem:[#allocation2 + $0x39] sm:$0xff] %vm334_vm1, %v533_v5 }
  0x3e   : > { %589 = vst.msk [vmem:[#allocation2 + $0x151] sm:$0xff] %vm334_vm1, %v556_v7 }
  0x3f   : > { %v629_v14 = vld [vmem:[#allocation2 + $0x19] sm:$0xff]  ;;  %590 = vst.msk [vmem:[#allocation2 + $0x159] sm:$0xff] %vm334_vm1, %v557_v8 }
  0x40   : > { %v597_v15 = vld [vmem:[#allocation2 + $0x18] sm:$0xff]  ;;  %v630_v19 = vld [vmem:[#allocation2 + $0x21] sm:$0xff]  ;;  %567 = vst.msk [vmem:[#allocation2 + $0x49] sm:$0xff] %vm334_vm1, %v534_v9 }
  0x41   : > { %v661_v20 = vld [vmem:[#allocation2 + $0x1a] sm:$0xff]  ;;  %v662_v21 = vld [vmem:[#allocation2 + $0x22] sm:$0xff]  ;;  %v5530_v22 = vpack.c.bf16 %v630_v19, %v629_v14  ;;  %568 = vst.msk [vmem:[#allocation2 + $0x51] sm:$0xff] %vm334_vm1, %v535_v10  ;;  %v436_v10 = vld [vmem:[%s5388_s20 + $0x50] sm:$0xff]  ;;  %v473_v14 = vmul.f32 %v5397_v11, %v437_v12 }
  0x42   : > { %v5532_v23 = vpack.c.bf16 %v662_v21, %v661_v20  ;;  %v653_v24 = vld [vmem:[#allocation2 + $0x139] sm:$0xff]  ;;  %v654_v28 = vld [vmem:[#allocation2 + $0x141] sm:$0xff]  ;;  %591 = vst.msk [vmem:[#allocation2 + $0x169] sm:$0xff] %vm334_vm1, %v558_v33  ;;  %v472_v13 = vmul.f32 %v5397_v11, %v436_v10 }
  0x43   : > { %v598_v25 = vld [vmem:[#allocation2 + $0x20] sm:$0xff]  ;;  %4956 = vmatmul.msk.bf16.gmra.mxu0 %vm334_vm1, %v5530_v22  ;;  %v914_v32 = vpack.c.bf16 %v654_v28, %v653_v24  ;;  %592 = vst.msk [vmem:[#allocation2 + $0x171] sm:$0xff] %vm334_vm1, %v559_v34  ;;  %v631_v41 = vld [vmem:[#allocation2 + $0x31] sm:$0xff]  ;;  %v509_v16 = vadd.f32 %v5414_v18, %v473_v14 }
  0x44   : > { %v5537_v29 = vpack.c.bf16 %v598_v25, %v597_v15  ;;  %4988 = vmatmul.msk.bf16.gmra.mxu2 %vm334_vm1, %v5532_v23  ;;  %569 = vst.msk [vmem:[#allocation2 + $0x61] sm:$0xff] %vm334_vm1, %v536_v39  ;;  %v632_v42 = vld [vmem:[#allocation2 + $0x39] sm:$0xff]  ;;  %v599_v45 = vld [vmem:[#allocation2 + $0x30] sm:$0xff]  ;;  %v508_v15 = vadd.f32 %v5414_v18, %v472_v13  ;;  %v510_v39 = vadd.f32 %v5414_v18, %v474_v37 }
  0x45   : > { %4968 = vmatmul.msk.bf16.gmra.mxu3 %vm334_vm1, %v914_v32  ;;  %570 = vst.msk [vmem:[#allocation2 + $0x69] sm:$0xff] %vm334_vm1, %v537_v40  ;;  %v663_v43 = vld [vmem:[#allocation2 + $0x32] sm:$0xff]  ;;  %v664_v44 = vld [vmem:[#allocation2 + $0x3a] sm:$0xff]  ;;  %v5556_v49 = vpack.c.bf16 %v632_v42, %v631_v41  ;;  %v541_v19 = vmax.f32 %v509_v16, 0.0  ;;  %v511_v40 = vadd.f32 %v5414_v18, %v475_v38 }
  0x46   : > { %4972 = vmatmul.msk.bf16.gmra.mxu1 %vm334_vm1, %v5537_v29  ;;  %v600_v46 = vld [vmem:[#allocation2 + $0x38] sm:$0xff]  ;;  %v5558_v50 = vpack.c.bf16 %v664_v44, %v663_v43  ;;  %571 = vst.msk [vmem:[#allocation2 + $0x79] sm:$0xff] %vm334_vm1, %v538_v59  ;;  %v540_v17 = vmax.f32 %v508_v15, 0.0  ;;  %v619_v28 = vld [vmem:[#allocation2 + $0x120] sm:$0xff]  ;;  %v542_v41 = vmax.f32 %v510_v39, 0.0  ;;  %v623_v13 = vld [vmem:[#allocation2 + $0x150] sm:$0xff] }
  0x47   : > { %v655_v47 = vld [vmem:[#allocation2 + $0x151] sm:$0xff]  ;;  %v656_v48 = vld [vmem:[#allocation2 + $0x159] sm:$0xff]  ;;  %v5560_v51 = vpack.c.bf16 %v600_v46, %v599_v45  ;;  %572 = vst.msk [vmem:[#allocation2 + $0x81] sm:$0xff] %vm334_vm1, %v539_v60  ;;  %v633_v61 = vld [vmem:[#allocation2 + $0x49] sm:$0xff]  ;;  %v896_v34 = vpack.c.bf16 %v620_v30, %v619_v28  ;;  %v543_v42 = vmax.f32 %v511_v40, 0.0  ;;  %v476_v60 = vmul.f32 %v5397_v11, %v440_v58 }
  0x48   : > { %v915_v52 = vpack.c.bf16 %v656_v48, %v655_v47  ;;  %v634_v62 = vld [vmem:[#allocation2 + $0x51] sm:$0xff]  ;;  %v601_v1 = vld [vmem:[#allocation2 + $0x48] sm:$0xff]  ;;  %573 = vst.msk [vmem:[#allocation2 + $0x91] sm:$0xff] %vm334_vm1, %v540_v17  ;;  %v622_v53 = vld [vmem:[#allocation2 + $0x140] sm:$0xff] }
  0x49   : > { %v665_v63 = vld [vmem:[#allocation2 + $0x4a] sm:$0xff]  ;;  %v666_v0 = vld [vmem:[#allocation2 + $0x52] sm:$0xff]  ;;  %v5577_v6 = vpack.c.bf16 %v634_v62, %v633_v61  ;;  %574 = vst.msk [vmem:[#allocation2 + $0x99] sm:$0xff] %vm334_vm1, %v541_v19  ;;  %v512_v62 = vadd.f32 %v5414_v18, %v476_v60 }
  0x4a   : > { %v602_v3 = vld [vmem:[#allocation2 + $0x50] sm:$0xff]  ;;  %v5579_v7 = vpack.c.bf16 %v666_v0, %v665_v63  ;;  %575 = vst.msk [vmem:[#allocation2 + $0xa9] sm:$0xff] %vm334_vm1, %v542_v41  ;;  %v441_v59 = vld [vmem:[%s5388_s20 + $0x78] sm:$0xff] }
  0x4b   : > { %v657_v4 = vld [vmem:[#allocation2 + $0x169] sm:$0xff]  ;;  %v658_v5 = vld [vmem:[#allocation2 + $0x171] sm:$0xff]  ;;  %v5581_v8 = vpack.c.bf16 %v602_v3, %v601_v1  ;;  %v635_v20 = vld [vmem:[#allocation2 + $0x61] sm:$0xff]  ;;  %576 = vst.msk [vmem:[#allocation2 + $0xb1] sm:$0xff] %vm334_vm1, %v543_v42  ;;  %v477_v61 = vmul.f32 %v5397_v11, %v441_v59  ;;  %v544_v0 = vmax.f32 %v512_v62, 0.0 }
  0x4c   : > { %v916_v9 = vpack.c.bf16 %v658_v5, %v657_v4  ;;  %v636_v21 = vld [vmem:[#allocation2 + $0x69] sm:$0xff]  ;;  %v603_v26 = vld [vmem:[#allocation2 + $0x60] sm:$0xff]  ;;  %v624_v14 = vld [vmem:[#allocation2 + $0x158] sm:$0xff] }
  0x4d   : > { %v667_v24 = vld [vmem:[#allocation2 + $0x62] sm:$0xff]  ;;  %v668_v25 = vld [vmem:[#allocation2 + $0x6a] sm:$0xff]  ;;  %v5598_v31 = vpack.c.bf16 %v636_v21, %v635_v20  ;;  %v637_v43 = vld [vmem:[#allocation2 + $0x79] sm:$0xff]  ;;  %v513_v63 = vadd.f32 %v5414_v18, %v477_v61  ;;  %577 = vst.msk [vmem:[#allocation2 + $0xc1] sm:$0xff] %vm334_vm1, %v544_v0  ;;  %v898_v19 = vpack.c.bf16 %v624_v14, %v623_v13 }
  0x4e   : > { %v604_v27 = vld [vmem:[#allocation2 + $0x68] sm:$0xff]  ;;  %v5600_v32 = vpack.c.bf16 %v668_v25, %v667_v24  ;;  %v669_v45 = vld [vmem:[#allocation2 + $0x7a] sm:$0xff] }
  0x4f   : > { %v5602_v33 = vpack.c.bf16 %v604_v27, %v603_v26  ;;  %v638_v44 = vld [vmem:[#allocation2 + $0x81] sm:$0xff]  ;;  %v605_v47 = vld [vmem:[#allocation2 + $0x78] sm:$0xff]  ;;  %v545_v1 = vmax.f32 %v513_v63, 0.0  ;;  %v607_v10 = vld [vmem:[#allocation2 + $0x90] sm:$0xff] }
  0x50   : > { %v670_v46 = vld [vmem:[#allocation2 + $0x82] sm:$0xff]  ;;  %v5619_v54 = vpack.c.bf16 %v638_v44, %v637_v43  ;;  %v639_v3 = vld [vmem:[#allocation2 + $0x91] sm:$0xff]  ;;  %v640_v4 = vld [vmem:[#allocation2 + $0x99] sm:$0xff] }
  0x51   : > { %v606_v48 = vld [vmem:[#allocation2 + $0x80] sm:$0xff]  ;;  %v5621_v55 = vpack.c.bf16 %v670_v46, %v669_v45  ;;  %578 = vst.msk [vmem:[#allocation2 + $0xc9] sm:$0xff] %vm334_vm1, %v545_v1  ;;  %v671_v5 = vld [vmem:[#allocation2 + $0x92] sm:$0xff]  ;;  %v5640_v15 = vpack.c.bf16 %v640_v4, %v639_v3  ;;  %v443_v21 = vld [vmem:[%s5388_s20 + $0x88] sm:$0xff] }
  0x52   : > { %v5623_v56 = vpack.c.bf16 %v606_v48, %v605_v47  ;;  %v608_v12 = vld [vmem:[#allocation2 + $0x98] sm:$0xff]  ;;  %v442_v20 = vld [vmem:[%s5388_s20 + $0x80] sm:$0xff]  ;;  %v479_v25 = vmul.f32 %v5397_v11, %v443_v21  ;;  %v641_v38 = vld [vmem:[#allocation2 + $0xa9] sm:$0xff] }
  0x53   : > { %4957 = vmatmul.msk.bf16.gmra.mxu0 %vm334_vm1, %v5556_v49  ;;  %v5644_v17 = vpack.c.bf16 %v608_v12, %v607_v10  ;;  %v478_v24 = vmul.f32 %v5397_v11, %v442_v20  ;;  %v1408_v26 = vld [vmem:[%s7337_s3 + $0x4] sm:$0xc]  ;;  %v642_v39 = vld [vmem:[#allocation2 + $0xb1] sm:$0xff]  ;;  %v609_v43 = vld [vmem:[#allocation2 + $0xa8] sm:$0xff] }
  0x54   : > { %4989 = vmatmul.msk.bf16.gmra.mxu2 %vm334_vm1, %v5558_v50  ;;  %v515_v28 = vadd.f32 %v5414_v18, %v479_v25  ;;  %v1410_v30 = vunpack.c.l.b16 %v1408_v26  ;;  %v673_v40 = vld [vmem:[#allocation2 + $0xaa] sm:$0xff]  ;;  %v674_v41 = vld [vmem:[#allocation2 + $0xb2] sm:$0xff]  ;;  %v5665_v47 = vpack.c.bf16 %v642_v39, %v641_v38  ;;  %v643_v4 = vld [vmem:[#allocation2 + $0xc1] sm:$0xff] }
  0x55   : > { %4969 = vmatmul.msk.bf16.gmra.mxu3 %vm334_vm1, %v915_v52  ;;  %v621_v52 = vld [vmem:[#allocation2 + $0x138] sm:$0xff]  ;;  %v514_v27 = vadd.f32 %v5414_v18, %v478_v24  ;;  %v610_v44 = vld [vmem:[#allocation2 + $0xb0] sm:$0xff]  ;;  %v625_v45 = vld [vmem:[#allocation2 + $0x168] sm:$0xff]  ;;  %v5667_v48 = vpack.c.bf16 %v674_v41, %v673_v40 }
  0x56   : > { %4973 = vmatmul.msk.bf16.gmra.mxu1 %vm334_vm1, %v5560_v51  ;;  %v897_v57 = vpack.c.bf16 %v622_v53, %v621_v52  ;;  %v547_v35 = vmax.f32 %v515_v28, 0.0  ;;  %v1411_v36 = vpack.c.b16 %v1410_v30, %v1410_v30  ;;  %v626_v46 = vld [vmem:[#allocation2 + $0x170] sm:$0xff]  ;;  %v5669_v52 = vpack.c.bf16 %v610_v44, %v609_v43  ;;  %v445_v58 = vld [vmem:[%s5388_s20 + $0x98] sm:$0xff]  ;;  %v1983_v3 = vld [vmem:[%s7337_s3 + $0xc] sm:$0x3] }
  0x57   : > { %v899_v53 = vpack.c.bf16 %v626_v46, %v625_v45  ;;  %v481_v60 = vmul.f32 %v5397_v11, %v445_v58  ;;  %v683_v24 = vld [vmem:[#allocation2 + $0x122] sm:$0xff]  ;;  %v684_v25 = vld [vmem:[#allocation2 + $0x12a] sm:$0xff] }
  0x58   : > { %v1412_v37 = vrot.slane %v1411_v36, 2  ;;  %580 = vst.msk [vmem:[#allocation2 + $0xe1] sm:$0xff] %vm334_vm1, %v547_v35  ;;  %v644_v10 = vld [vmem:[#allocation2 + $0xc9] sm:$0xff]  ;;  %v1215_v35 = vpack.c.bf16 %v684_v25, %v683_v24 }
  0x59   : > { %v517_v62 = vadd.f32 %v5414_v18, %v481_v60  ;;  %v675_v12 = vld [vmem:[#allocation2 + $0xc2] sm:$0xff]  ;;  %v676_v13 = vld [vmem:[#allocation2 + $0xca] sm:$0xff]  ;;  %v5690_v26 = vpack.c.bf16 %v644_v10, %v643_v4 }
  0x5a   : > { %v1462_v42 = vsel %vm970_vm0, %v1412_v37, 0  ;;  %v612_v20 = vld [vmem:[#allocation2 + $0xc8] sm:$0xff]  ;;  %v446_v37 = vld [vmem:[%s5388_s20 + $0xa0] sm:$0xff] }
  0x5b   : > { %v549_v0 = vmax.f32 %v517_v62, 0.0  ;;  %v447_v38 = vld [vmem:[%s5388_s20 + $0xa8] sm:$0xff]  ;;  %v482_v40 = vmul.f32 %v5397_v11, %v446_v37 }
  0x5c   : > { %v483_v41 = vmul.f32 %v5397_v11, %v447_v38 }
  0x5d   : > { %582 = vst.msk [vmem:[#allocation2 + $0xf9] sm:$0xff] %vm334_vm1, %v549_v0 }
  0x63   : > { %4958 = vmatmul.msk.bf16.gmra.mxu0 %vm334_vm1, %v5577_v6 }
  0x64   : > { %4990 = vmatmul.msk.bf16.gmra.mxu2 %vm334_vm1, %v5579_v7 }
  0x65   : > { %4970 = vmatmul.msk.bf16.gmra.mxu3 %vm334_vm1, %v916_v9  ;;  %v672_v9 = vld [vmem:[#allocation2 + $0x9a] sm:$0xff] }
  0x66   : > { %4974 = vmatmul.msk.bf16.gmra.mxu1 %vm334_vm1, %v5581_v8  ;;  %v5642_v16 = vpack.c.bf16 %v672_v9, %v671_v5  ;;  %v2033_v9 = vsel %vm970_vm0, %v1983_v3, 0 }
  0x67   : > { %2042 = vmatpush.bf16.msrb.mxu2 %v2033_v9  ;;  %v686_v9 = vld [vmem:[#allocation2 + $0x142] sm:$0xff] }
  0x73   : > { %4959 = vmatmul.msk.bf16.gmra.mxu0 %vm334_vm1, %v5598_v31 }
  0x74   : > { %4991 = vmatmul.msk.bf16.gmra.mxu2 %vm334_vm1, %v5600_v32 }
  0x75   : > { %4983 = vmatmul.msk.bf16.vlgmr.msrb.gmra.mxu3 %vm334_vm1, %v896_v34  ;;  %v546_v34 = vmax.f32 %v514_v27, 0.0  ;;  %v5692_v27 = vpack.c.bf16 %v676_v13, %v675_v12 }
  0x76   : > { %4975 = vmatmul.msk.bf16.gmra.mxu1 %vm334_vm1, %v5602_v33  ;;  %1471 = vmatpush.bf16.msrb.mxu3 %v1462_v42 }
  0x77   : > { %579 = vst.msk [vmem:[#allocation2 + $0xd9] sm:$0xff] %vm334_vm1, %v546_v34  ;;  %v1790_v34 = vld [vmem:[%s7337_s3 + $0x8] sm:$0xc] }
  0x78   : > { %v1792_v36 = vunpack.c.l.b16 %v1790_v34 }
  0x7a   : > { %v1793_v39 = vpack.c.b16 %v1792_v36, %v1792_v36 }
  0x7c   : > { %v1794_v46 = vrot.slane %v1793_v39, 2  ;;  %v648_v39 = vld [vmem:[#allocation2 + $0xf9] sm:$0xff] }
  0x7e   : > { %v645_v62 = vld [vmem:[#allocation2 + $0xd9] sm:$0xff] }
  0x7f   : > { %v677_v0 = vld [vmem:[#allocation2 + $0xda] sm:$0xff] }
  0x80   : > { %v613_v3 = vld [vmem:[#allocation2 + $0xd8] sm:$0xff]  ;;  %v614_v4 = vld [vmem:[#allocation2 + $0xe0] sm:$0xff] }
  0x83   : > { %4960 = vmatmul.msk.bf16.gmra.mxu0 %vm334_vm1, %v5619_v54 }
  0x84   : > { %4992 = vmatmul.msk.bf16.gmra.mxu2 %vm334_vm1, %v5621_v55 }
  0x85   : > { %4984 = vmatmul.msk.bf16.gmra.mxu3 %vm334_vm1, %v897_v57  ;;  %v444_v57 = vld [vmem:[%s5388_s20 + $0x90] sm:$0xff] }
  0x86   : > { %4976 = vmatmul.msk.bf16.gmra.mxu1 %vm334_vm1, %v5623_v56  ;;  %v480_v59 = vmul.f32 %v5397_v11, %v444_v57  ;;  %v519_v57 = vadd.f32 %v5414_v18, %v483_v41  ;;  %v680_v41 = vld [vmem:[#allocation2 + $0xfa] sm:$0xff] }
  0x88   : > { %v516_v61 = vadd.f32 %v5414_v18, %v480_v59  ;;  %v1844_v59 = vsel %vm970_vm0, %v1794_v46, 0  ;;  %v551_v11 = vmax.f32 %v519_v57, 0.0  ;;  %v687_v46 = vld [vmem:[#allocation2 + $0x152] sm:$0xff] }
  0x89   : > { %1853 = vmatpush.bf16.msrb.mxu1 %v1844_v59 }
  0x8a   : > { %v548_v63 = vmax.f32 %v516_v61, 0.0  ;;  %584 = vst.msk [vmem:[#allocation2 + $0x111] sm:$0xff] %vm334_vm1, %v551_v11 }
  0x8c   : > { %581 = vst.msk [vmem:[#allocation2 + $0xf1] sm:$0xff] %vm334_vm1, %v548_v63  ;;  %v646_v63 = vld [vmem:[#allocation2 + $0xe1] sm:$0xff] }
  0x8d   : > { %v5723_v10 = vpack.c.bf16 %v646_v63, %v645_v62 }
  0x93   : > { %4961 = vmatmul.msk.bf16.gmra.mxu0 %vm334_vm1, %v5640_v15  ;;  %v647_v38 = vld [vmem:[#allocation2 + $0xf1] sm:$0xff] }
  0x94   : > { %4993 = vmatmul.msk.bf16.gmra.mxu2 %vm334_vm1, %v5642_v16  ;;  %v5743_v57 = vpack.c.bf16 %v648_v39, %v647_v38  ;;  %v682_v39 = vld [vmem:[#allocation2 + $0x112] sm:$0xff] }
  0x95   : > { %4985 = vmatmul.msk.bf16.gmra.mxu3 %vm334_vm1, %v898_v19  ;;  %v983_v1 = vpop.f32.mrf.mxu0  ;;  %v611_v19 = vld [vmem:[#allocation2 + $0xc0] sm:$0xff] }
  0x96   : > { %4977 = vmatmul.msk.bf16.gmra.mxu1 %vm334_vm1, %v5644_v17  ;;  %v5696_v30 = vpack.c.bf16 %v612_v20, %v611_v19 }
  0x9d   : > { %v985_v42 = vpop.f32.mrf.mxu0 }
  0x9f   : > { %v1280_v5 = vpop.f32.mrf.mxu2 }
  0xa3   : > { %4962 = vmatmul.msk.bf16.gmra.mxu0 %vm334_vm1, %v5665_v47 }
  0xa4   : > { %4994 = vmatmul.msk.bf16.gmra.mxu2 %vm334_vm1, %v5667_v48 }
  0xa5   : > { %4986 = vmatmul.msk.bf16.gmra.mxu3 %vm334_vm1, %v899_v53  ;;  %v518_v53 = vadd.f32 %v5414_v18, %v482_v40  ;;  %v685_v18 = vld [vmem:[#allocation2 + $0x13a] sm:$0xff]  ;;  %v679_v40 = vld [vmem:[#allocation2 + $0xf2] sm:$0xff] }
  0xa6   : > { %4978 = vmatmul.msk.bf16.gmra.mxu1 %vm334_vm1, %v5669_v52  ;;  %v5729_v20 = vpack.c.bf16 %v686_v9, %v685_v18  ;;  %v5747_v59 = vpack.c.bf16 %v680_v41, %v679_v40 }
  0xa7   : > { %v1282_v45 = vpop.f32.mrf.mxu2  ;;  %v550_v60 = vmax.f32 %v518_v53, 0.0  ;;  %v688_v53 = vld [vmem:[#allocation2 + $0x15a] sm:$0xff] }
  0xa9   : > { %583 = vst.msk [vmem:[#allocation2 + $0x109] sm:$0xff] %vm334_vm1, %v550_v60 }
  0xad   : > { %v1123_v14 = vpop.f32.mrf.mxu1 }
  0xae   : > { %v1124_v21 = vadd.f32 %v1123_v14, %v983_v1  ;;  %v678_v1 = vld [vmem:[#allocation2 + $0xe2] sm:$0xff]  ;;  %v5727_v14 = vpack.c.bf16 %v614_v4, %v613_v3 }
  0xaf   : > { %v5725_v12 = vpack.c.bf16 %v678_v1, %v677_v0  ;;  %v5753_v0 = vpack.c.bf16 %v688_v53, %v687_v46  ;;  %v690_v46 = vld [vmem:[#allocation2 + $0x172] sm:$0xff] }
  0xb0   : > { %v5694_v28 = vadd.f32 %v1280_v5, %v1124_v21  ;;  %v681_v38 = vld [vmem:[#allocation2 + $0x10a] sm:$0xff] }
  0xb1   : > { %v617_v40 = vld [vmem:[#allocation2 + $0x108] sm:$0xff]  ;;  %v618_v41 = vld [vmem:[#allocation2 + $0x110] sm:$0xff] }
  0xb2   : > { %v5711_v43 = vpop.f32.mrf.mxu3 }
  0xb3   : > { %4963 = vmatmul.msk.bf16.gmra.mxu0 %vm334_vm1, %v5690_v26 }
  0xb4   : > { %4995 = vmatmul.msk.bf16.gmra.mxu2 %vm334_vm1, %v5692_v27 }
  0xb5   : > { %4999 = vmatmul.msk.bf16.vlgmr.msra.gmra.mxu3 %vm334_vm1, %v1215_v35  ;;  %v1125_v44 = vpop.f32.mrf.mxu1 }
  0xb6   : > { %4979 = vmatmul.msk.bf16.gmra.mxu1 %vm334_vm1, %v5696_v30  ;;  %v1126_v58 = vadd.f32 %v1125_v44, %v985_v42  ;;  %v615_v42 = vld [vmem:[#allocation2 + $0xf0] sm:$0xff]  ;;  %v616_v44 = vld [vmem:[#allocation2 + $0xf8] sm:$0xff] }
  0xb7   : > { %v5751_v62 = vpack.c.bf16 %v616_v44, %v615_v42 }
  0xb8   : > { %v5717_v61 = vadd.f32 %v1282_v45, %v1126_v58 }
  0xba   : > { %v5721_v5 = vpop.f32.mrf.mxu3 }
  0xc0   : > { %v988_v13 = vpop.f32.mrf.mxu0 }
  0xc3   : > { %v1128_v19 = vpop.f32.mrf.mxu1  ;;  %4964 = vmatmul.msk.bf16.gmra.mxu0 %vm334_vm1, %v5723_v10 }
  0xc4   : > { %v1129_v21 = vadd.f32 %v1128_v19, %v988_v13  ;;  %4996 = vmatmul.msk.bf16.gmra.mxu2 %vm334_vm1, %v5725_v12  ;;  %v2172_v13 = vld [vmem:[%s7337_s3 + $0xc] sm:$0xc] }
  0xc5   : > { %5000 = vmatmul.msk.bf16.gmra.mxu3 %vm334_vm1, %v5729_v20 }
  0xc6   : > { %4980 = vmatmul.msk.bf16.gmra.mxu1 %vm334_vm1, %v5727_v14 }
  0xc7   : > { %v1285_v24 = vpop.f32.mrf.mxu2 }
  0xc8   : > { %v5739_v25 = vadd.f32 %v1285_v24, %v1129_v21  ;;  %v990_v34 = vpop.f32.mrf.mxu0  ;;  %v5741_v35 = vpop.f32.mrf.mxu3  ;;  %v2174_v21 = vunpack.c.l.b16 %v2172_v13  ;;  %v5779_v13 = vpack.c.bf16 %v618_v41, %v617_v40 }
  0xcb   : > { %v1130_v36 = vpop.f32.mrf.mxu1 }
  0xcc   : > { %v1131_v37 = vadd.f32 %v1130_v36, %v990_v34  ;;  %v649_v34 = vld [vmem:[#allocation2 + $0x109] sm:$0xff]  ;;  %v2175_v36 = vpack.c.b16 %v2174_v21, %v2174_v21 }
  0xce   : > { %v2176_v42 = vrot.slane %v2175_v36, 2 }
  0xcf   : > { %v1287_v45 = vpop.f32.mrf.mxu2 }
  0xd0   : > { %v5745_v58 = vadd.f32 %v1287_v45, %v1131_v37  ;;  %v993_v60 = vpop.f32.mrf.mxu0  ;;  %v5749_v11 = vpop.f32.mrf.mxu3  ;;  %v650_v37 = vld [vmem:[#allocation2 + $0x111] sm:$0xff] }
  0xd1   : > { %v689_v45 = vld [vmem:[#allocation2 + $0x16a] sm:$0xff]  ;;  %v5770_v53 = vpack.c.bf16 %v650_v37, %v649_v34 }
  0xd2   : > { %v5781_v21 = vpack.c.bf16 %v690_v46, %v689_v45 }
  0xd3   : > { %v1133_v63 = vpop.f32.mrf.mxu1  ;;  %4965 = vmatmul.msk.bf16.gmra.mxu0 %vm334_vm1, %v5743_v57 }
  0xd4   : > { %v1134_v1 = vadd.f32 %v1133_v63, %v993_v60  ;;  %4997 = vmatmul.msk.bf16.gmra.mxu2 %vm334_vm1, %v5747_v59  ;;  %v5774_v63 = vpack.c.bf16 %v682_v39, %v681_v38 }
  0xd5   : > { %5001 = vmatmul.msk.bf16.gmra.mxu3 %vm334_vm1, %v5753_v0 }
  0xd6   : > { %4981 = vmatmul.msk.bf16.gmra.mxu1 %vm334_vm1, %v5751_v62 }
  0xd7   : > { %v1290_v3 = vpop.f32.mrf.mxu2 }
  0xd8   : > { %v5763_v4 = vadd.f32 %v1290_v3, %v1134_v1  ;;  %v995_v18 = vpop.f32.mrf.mxu0  ;;  %v5765_v9 = vpop.f32.mrf.mxu3  ;;  %v2226_v1 = vsel %vm970_vm0, %v2176_v42, 0 }
  0xd9   : > { %2235 = vmatpush.bf16.msra.mxu3 %v2226_v1 }
  0xdb   : > { %v1135_v19 = vpop.f32.mrf.mxu1 }
  0xdc   : > { %v1136_v24 = vadd.f32 %v1135_v19, %v995_v18 }
  0xdf   : > { %v1292_v44 = vpop.f32.mrf.mxu2 }
  0xe0   : > { %v5772_v60 = vadd.f32 %v1292_v44, %v1136_v24  ;;  %v998_v3 = vpop.f32.mrf.mxu0  ;;  %v5777_v18 = vpop.f32.mrf.mxu3  ;;  %v2365_v24 = vld [vmem:[%s7337_s3 + $0x10] sm:$0x3] }
  0xe1   : > { %v2415_v34 = vsel %vm970_vm0, %v2365_v24, 0 }
  0xe2   : > { %2424 = vmatpush.bf16.msra.mxu0 %v2415_v34 }
  0xe3   : > { %v1138_v19 = vpop.f32.mrf.mxu1  ;;  %4966 = vmatmul.msk.bf16.gmra.mxu0 %vm334_vm1, %v5770_v53 }
  0xe4   : > { %v1139_v36 = vadd.f32 %v1138_v19, %v998_v3  ;;  %4998 = vmatmul.msk.bf16.gmra.mxu2 %vm334_vm1, %v5774_v63 }
  0xe5   : > { %5002 = vmatmul.msk.bf16.gmra.mxu3 %vm334_vm1, %v5781_v21 }
  0xe6   : > { %4982 = vmatmul.msk.bf16.gmra.mxu1 %vm334_vm1, %v5779_v13 }
  0xe7   : > { %v1295_v37 = vpop.f32.mrf.mxu2 }
  0xe8   : > { %v5795_v38 = vadd.f32 %v1295_v37, %v1139_v36  ;;  %v1000_v39 = vpop.f32.mrf.mxu0  ;;  %v5797_v40 = vpop.f32.mrf.mxu3 }
  0xeb   : > { %v1140_v41 = vpop.f32.mrf.mxu1 }
  0xec   : > { %v1141_v42 = vadd.f32 %v1140_v41, %v1000_v39 }
  0xef   : > { %v1297_v44 = vpop.f32.mrf.mxu2 }
  0xf0   : > { %v5799_v45 = vadd.f32 %v1297_v44, %v1141_v42  ;;  %v1003_v46 = vpop.f32.mrf.mxu0  ;;  %v5801_v1 = vpop.f32.mrf.mxu3 }
  0xf3   : > { %v1143_v3 = vpop.f32.mrf.mxu1  ;;  %5019 = vmatmul.msk.bf16.vlgmr.msrb.gmra.mxu0 %vm334_vm1, %v5530_v22 }
  0xf4   : > { %v1144_v19 = vadd.f32 %v1143_v3, %v1003_v46  ;;  %5051 = vmatmul.msk.bf16.vlgmr.msrb.gmra.mxu2 %vm334_vm1, %v5560_v51 }
  0xf5   : > { %5003 = vmatmul.msk.bf16.vlgmr.msrb.gmra.mxu3 %vm334_vm1, %v5537_v29 }
  0xf6   : > { %5035 = vmatmul.msk.bf16.vlgmr.msrb.gmra.mxu1 %vm334_vm1, %v5532_v23 }
  0xf7   : > { %v1300_v36 = vpop.f32.mrf.mxu2 }
  0xf8   : > { %v5811_v24 = vadd.f32 %v1300_v36, %v1144_v19  ;;  %v1005_v34 = vpop.f32.mrf.mxu0  ;;  %v1183_v37 = vpop.f32.mrf.mxu3 }
  0xf9   : > { %v5814_v39 = vadd.f32 %v1183_v37, %v5711_v43 }
  0xfb   : > { %v1145_v41 = vpop.f32.mrf.mxu1 }
  0xfc   : > { %v1146_v42 = vadd.f32 %v1145_v41, %v1005_v34 }
  0xff   : > { %v1302_v22 = vpop.f32.mrf.mxu2 }
 0x100   : > { %v5816_v44 = vadd.f32 %v1302_v22, %v1146_v42  ;;  %v1008_v46 = vpop.f32.mrf.mxu0  ;;  %v1185_v3 = vpop.f32.mrf.mxu3 }
 0x101   : > { %v5819_v23 = vadd.f32 %v1185_v3, %v5721_v5 }
 0x103   : > { %v1148_v2 = vpop.f32.mrf.mxu1  ;;  %5020 = vmatmul.msk.bf16.gmra.mxu0 %vm334_vm1, %v5556_v49 }
 0x104   : > { %v1149_v29 = vadd.f32 %v1148_v2, %v1008_v46  ;;  %5052 = vmatmul.msk.bf16.gmra.mxu2 %vm334_vm1, %v5581_v8 }
 0x105   : > { %5004 = vmatmul.msk.bf16.gmra.mxu3 %vm334_vm1, %v5560_v51 }
 0x106   : > { %5036 = vmatmul.msk.bf16.gmra.mxu1 %vm334_vm1, %v5558_v50 }
 0x107   : > { %v1305_v43 = vpop.f32.mrf.mxu2 }
 0x108   : > { %v5829_v19 = vadd.f32 %v1305_v43, %v1149_v29  ;;  %v1010_v36 = vpop.f32.mrf.mxu0  ;;  %v1188_v5 = vpop.f32.mrf.mxu3 }
 0x109   : > { %v5832_v34 = vadd.f32 %v1188_v5, %v5741_v35 }
 0x10b   : > { %v1150_v2 = vpop.f32.mrf.mxu1 }
 0x10c   : > { %v1151_v37 = vadd.f32 %v1150_v2, %v1010_v36 }
 0x10f   : > { %v1307_v49 = vpop.f32.mrf.mxu2 }
 0x110   : > { %v5834_v41 = vadd.f32 %v1307_v49, %v1151_v37  ;;  %v1013_v42 = vpop.f32.mrf.mxu0  ;;  %v1190_v22 = vpop.f32.mrf.mxu3 }
 0x111   : > { %v5837_v50 = vadd.f32 %v1190_v22, %v5749_v11 }
 0x113   : > { %v1153_v46 = vpop.f32.mrf.mxu1  ;;  %5021 = vmatmul.msk.bf16.gmra.mxu0 %vm334_vm1, %v5577_v6 }
 0x114   : > { %v1154_v51 = vadd.f32 %v1153_v46, %v1013_v42  ;;  %5053 = vmatmul.msk.bf16.gmra.mxu2 %vm334_vm1, %v5602_v33 }
 0x115   : > { %5005 = vmatmul.msk.bf16.gmra.mxu3 %vm334_vm1, %v5581_v8 }
 0x116   : > { %5037 = vmatmul.msk.bf16.gmra.mxu1 %vm334_vm1, %v5579_v7 }
 0x117   : > { %v1310_v35 = vpop.f32.mrf.mxu2 }
 0x118   : > { %v5847_v3 = vadd.f32 %v1310_v35, %v1154_v51  ;;  %v1015_v29 = vpop.f32.mrf.mxu0  ;;  %v1193_v11 = vpop.f32.mrf.mxu3 }
 0x119   : > { %v5850_v43 = vadd.f32 %v1193_v11, %v5765_v9 }
 0x11b   : > { %v1155_v36 = vpop.f32.mrf.mxu1 }
 0x11c   : > { %v1156_v5 = vadd.f32 %v1155_v36, %v1015_v29 }
 0x11f   : > { %v1312_v6 = vpop.f32.mrf.mxu2 }
 0x120   : > { %v5852_v2 = vadd.f32 %v1312_v6, %v1156_v5  ;;  %v1018_v37 = vpop.f32.mrf.mxu0  ;;  %v1195_v49 = vpop.f32.mrf.mxu3 }
 0x121   : > { %v5855_v7 = vadd.f32 %v1195_v49, %v5777_v18 }
 0x123   : > { %v1158_v42 = vpop.f32.mrf.mxu1  ;;  %5022 = vmatmul.msk.bf16.gmra.mxu0 %vm334_vm1, %v5598_v31 }
 0x124   : > { %v1159_v8 = vadd.f32 %v1158_v42, %v1018_v37  ;;  %5054 = vmatmul.msk.bf16.gmra.mxu2 %vm334_vm1, %v5623_v56 }
 0x125   : > { %5006 = vmatmul.msk.bf16.gmra.mxu3 %vm334_vm1, %v5602_v33 }
 0x126   : > { %5038 = vmatmul.msk.bf16.gmra.mxu1 %vm334_vm1, %v5600_v32 }
 0x127   : > { %v1315_v9 = vpop.f32.mrf.mxu2 }
 0x128   : > { %v5865_v22 = vadd.f32 %v1315_v9, %v1159_v8  ;;  %v1020_v46 = vpop.f32.mrf.mxu0  ;;  %v1198_v18 = vpop.f32.mrf.mxu3 }
 0x129   : > { %v5868_v51 = vadd.f32 %v1198_v18, %v5797_v40 }
 0x12b   : > { %v1160_v35 = vpop.f32.mrf.mxu1 }
 0x12c   : > { %v1161_v29 = vadd.f32 %v1160_v35, %v1020_v46 }
 0x12f   : > { %v1317_v31 = vpop.f32.mrf.mxu2 }
 0x130   : > { %v5870_v11 = vadd.f32 %v1317_v31, %v1161_v29  ;;  %v1023_v36 = vpop.f32.mrf.mxu0  ;;  %v1200_v5 = vpop.f32.mrf.mxu3 }
 0x131   : > { %v5873_v32 = vadd.f32 %v1200_v5, %v5801_v1 }
 0x133   : > { %v1163_v6 = vpop.f32.mrf.mxu1  ;;  %5023 = vmatmul.msk.bf16.gmra.mxu0 %vm334_vm1, %v5619_v54 }
 0x134   : > { %v1164_v33 = vadd.f32 %v1163_v6, %v1023_v36  ;;  %5055 = vmatmul.msk.bf16.gmra.mxu2 %vm334_vm1, %v5644_v17 }
 0x135   : > { %5007 = vmatmul.msk.bf16.gmra.mxu3 %vm334_vm1, %v5623_v56 }
 0x136   : > { %5039 = vmatmul.msk.bf16.gmra.mxu1 %vm334_vm1, %v5621_v55 }
 0x137   : > { %v1320_v40 = vpop.f32.mrf.mxu2 }
 0x138   : > { %v5883_v37 = vadd.f32 %v1320_v40, %v1164_v33  ;;  %v1025_v49 = vpop.f32.mrf.mxu0  ;;  %v1340_v1 = vpop.f32.mrf.mxu3 }
 0x139   : > { %v5886_v42 = vadd.f32 %v1340_v1, %v5814_v39 }
 0x13b   : > { %v1165_v8 = vpop.f32.mrf.mxu1 }
 0x13c   : > { %v1166_v9 = vadd.f32 %v1165_v8, %v1025_v49 }
 0x13f   : > { %v1322_v54 = vpop.f32.mrf.mxu2 }
 0x140   : > { %v5888_v46 = vadd.f32 %v1322_v54, %v1166_v9  ;;  %v1028_v18 = vpop.f32.mrf.mxu0  ;;  %v1342_v35 = vpop.f32.mrf.mxu3 }
 0x141   : > { %v5891_v55 = vadd.f32 %v1342_v35, %v5819_v23 }
 0x143   : > { %v1168_v29 = vpop.f32.mrf.mxu1  ;;  %5024 = vmatmul.msk.bf16.gmra.mxu0 %vm334_vm1, %v5640_v15 }
 0x144   : > { %v1169_v56 = vadd.f32 %v1168_v29, %v1028_v18  ;;  %5056 = vmatmul.msk.bf16.gmra.mxu2 %vm334_vm1, %v5669_v52 }
 0x145   : > { %5008 = vmatmul.msk.bf16.gmra.mxu3 %vm334_vm1, %v5644_v17 }
 0x146   : > { %5040 = vmatmul.msk.bf16.gmra.mxu1 %vm334_vm1, %v5642_v16 }
 0x147   : > { %v1325_v39 = vpop.f32.mrf.mxu2 }
 0x148   : > { %v5901_v31 = vadd.f32 %v1325_v39, %v1169_v56  ;;  %v1030_v36 = vpop.f32.mrf.mxu0  ;;  %v1345_v23 = vpop.f32.mrf.mxu3 }
 0x149   : > { %v5904_v5 = vadd.f32 %v1345_v23, %v5832_v34 }
 0x14b   : > { %v1170_v6 = vpop.f32.mrf.mxu1 }
 0x14c   : > { %v1171_v33 = vadd.f32 %v1170_v6, %v1030_v36 }
 0x14f   : > { %v1327_v15 = vpop.f32.mrf.mxu2 }
 0x150   : > { %v5906_v40 = vadd.f32 %v1327_v15, %v1171_v33  ;;  %v1033_v49 = vpop.f32.mrf.mxu0  ;;  %v1347_v1 = vpop.f32.mrf.mxu3  ;;  %v2980_v15 = vld [vmem:[%s7340_s6] sm:$0xf] }
 0x151   : > { %v5909_v16 = vadd.f32 %v1347_v1, %v5837_v50  ;;  %v3188_v1 = vsel %vm3046_vm4, %v2980_v15, 0 }
 0x152   : > { %3197 = vmatpush.bf16.msra.mxu2 %v3188_v1 }
 0x153   : > { %v1173_v8 = vpop.f32.mrf.mxu1  ;;  %5025 = vmatmul.msk.bf16.gmra.mxu0 %vm334_vm1, %v5665_v47 }
 0x154   : > { %v1174_v17 = vadd.f32 %v1173_v8, %v1033_v49  ;;  %5057 = vmatmul.msk.bf16.gmra.mxu2 %vm334_vm1, %v5696_v30 }
 0x155   : > { %5009 = vmatmul.msk.bf16.gmra.mxu3 %vm334_vm1, %v5669_v52 }
 0x156   : > { %5041 = vmatmul.msk.bf16.gmra.mxu1 %vm334_vm1, %v5667_v48 }
 0x157   : > { %v1330_v34 = vpop.f32.mrf.mxu2 }
 0x158   : > { %v5919_v9 = vadd.f32 %v1330_v34, %v1174_v17  ;;  %v1035_v54 = vpop.f32.mrf.mxu0  ;;  %v1350_v50 = vpop.f32.mrf.mxu3 }
 0x159   : > { %v5922_v18 = vadd.f32 %v1350_v50, %v5850_v43 }
 0x15b   : > { %v1175_v35 = vpop.f32.mrf.mxu1 }
 0x15c   : > { %v1176_v29 = vadd.f32 %v1175_v35, %v1035_v54  ;;  %v2997_v54 = vld [vmem:[%s7340_s6 + $0x4] sm:$0xf] }
 0x15f   : > { %v1332_v47 = vpop.f32.mrf.mxu2 }
 0x160   : > { %v5924_v56 = vadd.f32 %v1332_v47, %v1176_v29  ;;  %v1038_v39 = vpop.f32.mrf.mxu0  ;;  %v1352_v36 = vpop.f32.mrf.mxu3 }
 0x161   : > { %v5927_v48 = vadd.f32 %v1352_v36, %v5855_v7 }
 0x163   : > { %v1178_v23 = vpop.f32.mrf.mxu1  ;;  %5026 = vmatmul.msk.bf16.gmra.mxu0 %vm334_vm1, %v5690_v26 }
 0x164   : > { %v1179_v52 = vadd.f32 %v1178_v23, %v1038_v39  ;;  %5058 = vmatmul.msk.bf16.gmra.mxu2 %vm334_vm1, %v5727_v14 }
 0x165   : > { %5010 = vmatmul.msk.bf16.gmra.mxu3 %vm334_vm1, %v5696_v30 }
 0x166   : > { %5042 = vmatmul.msk.bf16.gmra.mxu1 %vm334_vm1, %v5692_v27 }
 0x167   : > { %v1335_v43 = vpop.f32.mrf.mxu2 }
 0x168   : > { %v5937_v6 = vadd.f32 %v1335_v43, %v1179_v52  ;;  %v1040_v33 = vpop.f32.mrf.mxu0  ;;  %v1355_v7 = vpop.f32.mrf.mxu3 }
 0x169   : > { %v5943_v26 = vadd.f32 %v1355_v7, %v5868_v51  ;;  %v3048_v51 = vsel %vm3046_vm4, %v2997_v54, 0  ;;  %v809_v54 = vld [vmem:[#allocation2 + $0x128] sm:$0xff] }
 0x16a   : > { %3057 = vmatpush.bf16.msra.mxu1 %v3048_v51 }
 0x16b   : > { %v1180_v49 = vpop.f32.mrf.mxu1 }
 0x16c   : > { %v1181_v27 = vadd.f32 %v1180_v49, %v1040_v33 }
 0x16f   : > { %v1337_v8 = vpop.f32.mrf.mxu2 }
 0x170   : > { %v5946_v30 = vadd.f32 %v1337_v8, %v1181_v27  ;;  %v1662_v17 = vpop.f32.mrf.mxu0  ;;  %v1357_v34 = vpop.f32.mrf.mxu3 }
 0x171   : > { %v5952_v50 = vadd.f32 %v1357_v34, %v5873_v32  ;;  %v808_v34 = vld [vmem:[#allocation2 + $0x120] sm:$0xff] }
 0x173   : > { %v1855_v35 = vpop.f32.mrf.mxu1  ;;  %5027 = vmatmul.msk.bf16.gmra.mxu0 %vm334_vm1, %v5723_v10 }
 0x174   : > { %5059 = vmatmul.msk.bf16.gmra.mxu2 %vm334_vm1, %v5751_v62 }
 0x175   : > { %5011 = vmatmul.msk.bf16.gmra.mxu3 %vm334_vm1, %v5727_v14 }
 0x176   : > { %5043 = vmatmul.msk.bf16.gmra.mxu1 %vm334_vm1, %v5725_v12 }
 0x177   : > { %v2044_v29 = vpop.f32.mrf.mxu2 }
 0x178   : > { %v1664_v47 = vpop.f32.mrf.mxu0  ;;  %v1473_v32 = vpop.f32.mrf.mxu3 }
 0x179   : > { %v1553_v39 = vadd.f32 %v1473_v32, %v5694_v28 }
 0x17b   : > { %v1857_v36 = vpop.f32.mrf.mxu1  ;;  %v1742_v23 = vadd.f32 %v1662_v17, %v1553_v39 }
 0x17d   : > { %v1935_v52 = vadd.f32 %v1855_v35, %v1742_v23 }
 0x17f   : > { %v2046_v43 = vpop.f32.mrf.mxu2  ;;  %v5964_v33 = vadd.f32 %v2044_v29, %v1935_v52 }
 0x180   : > { %v1667_v10 = vpop.f32.mrf.mxu0  ;;  %v1475_v7 = vpop.f32.mrf.mxu3 }
 0x181   : > { %v1554_v15 = vadd.f32 %v1475_v7, %v5717_v61 }
 0x183   : > { %v1860_v49 = vpop.f32.mrf.mxu1  ;;  %5028 = vmatmul.msk.bf16.gmra.mxu0 %vm334_vm1, %v5743_v57  ;;  %v1743_v12 = vadd.f32 %v1664_v47, %v1554_v15  ;;  %v745_v15 = vld [vmem:[#allocation2 + $0x121] sm:$0xff] }
 0x184   : > { %5060 = vmatmul.msk.bf16.gmra.mxu2 %vm334_vm1, %v5779_v13 }
 0x185   : > { %v1936_v28 = vadd.f32 %v1857_v36, %v1743_v12  ;;  %5012 = vmatmul.msk.bf16.gmra.mxu3 %vm334_vm1, %v5751_v62  ;;  %v810_v12 = vld [vmem:[#allocation2 + $0x138] sm:$0xff] }
 0x186   : > { %5044 = vmatmul.msk.bf16.gmra.mxu1 %vm334_vm1, %v5747_v59  ;;  %v1977_v59 = vpack.c.bf16 %v809_v54, %v808_v34 }
 0x187   : > { %v2049_v14 = vpop.f32.mrf.mxu2  ;;  %v5975_v1 = vadd.f32 %v2046_v43, %v1936_v28  ;;  %v811_v28 = vld [vmem:[#allocation2 + $0x140] sm:$0xff] }
 0x188   : > { %v1669_v27 = vpop.f32.mrf.mxu0  ;;  %v1478_v61 = vpop.f32.mrf.mxu3 }
 0x189   : > { %v1555_v8 = vadd.f32 %v1478_v61, %v5739_v25 }
 0x18b   : > { %v1862_v17 = vpop.f32.mrf.mxu1  ;;  %v1744_v57 = vadd.f32 %v1667_v10, %v1555_v8 }
 0x18d   : > { %v1937_v35 = vadd.f32 %v1860_v49, %v1744_v57  ;;  %v746_v49 = vld [vmem:[#allocation2 + $0x129] sm:$0xff] }
 0x18e   : > { %v5991_v8 = vpack.c.bf16 %v746_v49, %v745_v15  ;;  %v813_v15 = vld [vmem:[#allocation2 + $0x158] sm:$0xff] }
 0x18f   : > { %v2051_v51 = vpop.f32.mrf.mxu2  ;;  %v5978_v29 = vadd.f32 %v2049_v14, %v1937_v35 }
 0x190   : > { %v1672_v47 = vpop.f32.mrf.mxu0  ;;  %v1480_v32 = vpop.f32.mrf.mxu3 }
 0x191   : > { %v1556_v62 = vadd.f32 %v1480_v32, %v5745_v58 }
 0x193   : > { %v1865_v39 = vpop.f32.mrf.mxu1  ;;  %5029 = vmatmul.msk.bf16.gmra.mxu0 %vm334_vm1, %v5770_v53  ;;  %v1745_v36 = vadd.f32 %v1669_v27, %v1556_v62  ;;  %v777_v27 = vld [vmem:[#allocation2 + $0x122] sm:$0xff] }
 0x194   : > { %5061 = vmatmul.msk.bf16.gmra.mxu2 %vm334_vm1, %v1977_v59 }
 0x195   : > { %v1938_v25 = vadd.f32 %v1862_v17, %v1745_v36  ;;  %5013 = vmatmul.msk.bf16.gmra.mxu3 %vm334_vm1, %v5779_v13  ;;  %v1978_v17 = vpack.c.bf16 %v811_v28, %v810_v12 }
 0x196   : > { %5045 = vmatmul.msk.bf16.gmra.mxu1 %vm334_vm1, %v5774_v63  ;;  %v778_v63 = vld [vmem:[#allocation2 + $0x12a] sm:$0xff] }
 0x197   : > { %v2054_v23 = vpop.f32.mrf.mxu2  ;;  %v5988_v52 = vadd.f32 %v2051_v51, %v1938_v25  ;;  %v5995_v54 = vpack.c.bf16 %v778_v63, %v777_v27  ;;  %v456_v63 = vld [vmem:[%s5388_s20 + $0xf0] sm:$0xff] }
 0x198   : > { %v1674_v43 = vpop.f32.mrf.mxu0  ;;  %v1483_v10 = vpop.f32.mrf.mxu3 }
 0x199   : > { %v1557_v58 = vadd.f32 %v1483_v10, %v5763_v4 }
 0x19b   : > { %v1867_v7 = vpop.f32.mrf.mxu1  ;;  %v1746_v53 = vadd.f32 %v1672_v47, %v1557_v58  ;;  %v812_v58 = vld [vmem:[#allocation2 + $0x150] sm:$0xff] }
 0x19c   : > { %v1979_v12 = vpack.c.bf16 %v813_v15, %v812_v58  ;;  %v750_v15 = vld [vmem:[#allocation2 + $0x159] sm:$0xff] }
 0x19d   : > { %v1939_v14 = vadd.f32 %v1865_v39, %v1746_v53 }
 0x19f   : > { %v2056_v61 = vpop.f32.mrf.mxu2  ;;  %v5993_v13 = vadd.f32 %v2054_v23, %v1939_v14  ;;  %v747_v23 = vld [vmem:[#allocation2 + $0x139] sm:$0xff] }
 0x1a0   : > { %v1677_v57 = vpop.f32.mrf.mxu0  ;;  %v1485_v34 = vpop.f32.mrf.mxu3 }
 0x1a1   : > { %v1558_v4 = vadd.f32 %v1485_v34, %v5772_v60  ;;  %v5280_v34 = vld [vmem:[%s7335_s1] ss:$0 sm:$0xff] }
 0x1a3   : > { %v1870_v35 = vpop.f32.mrf.mxu1  ;;  %5030 = vmatmul.msk.bf16.gmra.mxu0 %vm334_vm1, %v5991_v8  ;;  %v1747_v51 = vadd.f32 %v1674_v43, %v1558_v4  ;;  %v748_v43 = vld [vmem:[#allocation2 + $0x141] sm:$0xff]  ;;  %v492_v4 = vmul.f32 %v5280_v34, %v456_v63 }
 0x1a4   : > { %5062 = vmatmul.msk.bf16.gmra.mxu2 %vm334_vm1, %v1978_v17 }
 0x1a5   : > { %v1940_v47 = vadd.f32 %v1867_v7, %v1747_v51  ;;  %5014 = vmatmul.msk.bf16.gmra.mxu3 %vm334_vm1, %v1977_v59  ;;  %v6007_v7 = vpack.c.bf16 %v748_v43, %v747_v23 }
 0x1a6   : > { %5046 = vmatmul.msk.bf16.gmra.mxu1 %vm334_vm1, %v5995_v54 }
 0x1a7   : > { %v2059_v32 = vpop.f32.mrf.mxu2  ;;  %v6004_v62 = vadd.f32 %v2056_v61, %v1940_v47 }
 0x1a8   : > { %v1679_v39 = vpop.f32.mrf.mxu0  ;;  %v1488_v36 = vpop.f32.mrf.mxu3 }
 0x1a9   : > { %v1559_v60 = vadd.f32 %v1488_v36, %v5795_v38 }
 0x1ab   : > { %v1872_v25 = vpop.f32.mrf.mxu1  ;;  %v1748_v10 = vadd.f32 %v1677_v57, %v1559_v60  ;;  %v457_v57 = vld [vmem:[%s5388_s20 + $0xf8] sm:$0xff] }
 0x1ad   : > { %v1941_v53 = vadd.f32 %v1870_v35, %v1748_v10  ;;  %v493_v35 = vmul.f32 %v5280_v34, %v457_v57 }
 0x1af   : > { %v2061_v49 = vpop.f32.mrf.mxu2  ;;  %v6009_v59 = vadd.f32 %v2059_v32, %v1941_v53  ;;  %v814_v53 = vld [vmem:[#allocation2 + $0x168] sm:$0xff] }
 0x1b0   : > { %v1682_v28 = vpop.f32.mrf.mxu0  ;;  %v1490_v14 = vpop.f32.mrf.mxu3 }
 0x1b1   : > { %v1560_v27 = vadd.f32 %v1490_v14, %v5799_v45  ;;  %v5281_v45 = vld [vmem:[%s7336_s2] ss:$0 sm:$0xff]  ;;  %v815_v14 = vld [vmem:[#allocation2 + $0x170] sm:$0xff] }
 0x1b2   : > { %v528_v47 = vadd.f32 %v5281_v45, %v492_v4  ;;  %v1980_v57 = vpack.c.bf16 %v815_v14, %v814_v53 }
 0x1b3   : > { %v1875_v38 = vpop.f32.mrf.mxu1  ;;  %5031 = vmatmul.msk.bf16.gmra.mxu0 %vm334_vm1, %v6007_v7  ;;  %v1749_v61 = vadd.f32 %v1679_v39, %v1560_v27  ;;  %v529_v39 = vadd.f32 %v5281_v45, %v493_v35 }
 0x1b4   : > { %5063 = vmatmul.msk.bf16.gmra.mxu2 %vm334_vm1, %v1979_v12  ;;  %v560_v60 = vmax.f32 %v528_v47, 0.0 }
 0x1b5   : > { %v1942_v51 = vadd.f32 %v1872_v25, %v1749_v61  ;;  %5015 = vmatmul.msk.bf16.gmra.mxu3 %vm334_vm1, %v1978_v17  ;;  %v561_v43 = vmax.f32 %v529_v39, 0.0  ;;  %v749_v17 = vld [vmem:[#allocation2 + $0x151] sm:$0xff] }
 0x1b6   : > { %5047 = vmatmul.msk.bf16.gmra.mxu1 %vm334_vm1, %v5729_v20  ;;  %593 = vst.msk [vmem:[#allocation2 + $0x181] sm:$0xff] %vm334_vm1, %v560_v60  ;;  %v6035_v63 = vpack.c.bf16 %v750_v15, %v749_v17  ;;  %v752_v60 = vld [vmem:[#allocation2 + $0x171] sm:$0xff] }
 0x1b7   : > { %v2064_v32 = vpop.f32.mrf.mxu2  ;;  %v6026_v36 = vadd.f32 %v2061_v49, %v1942_v51  ;;  %594 = vst.msk [vmem:[#allocation2 + $0x189] sm:$0xff] %vm334_vm1, %v561_v43 }
 0x1b8   : > { %v1684_v23 = vpop.f32.mrf.mxu0  ;;  %v1493_v10 = vpop.f32.mrf.mxu3 }
 0x1b9   : > { %v1561_v58 = vadd.f32 %v1493_v10, %v5811_v24 }
 0x1bb   : > { %v6029_v20 = vpop.f32.mrf.mxu1  ;;  %v1750_v25 = vadd.f32 %v1682_v28, %v1561_v58 }
 0x1bd   : > { %v1943_v27 = vadd.f32 %v1875_v38, %v1750_v25  ;;  %v816_v10 = vld [vmem:[#allocation2 + $0x180] sm:$0xff] }
 0x1bf   : > { %v6033_v49 = vpop.f32.mrf.mxu2  ;;  %v6037_v61 = vadd.f32 %v2064_v32, %v1943_v27 }
 0x1c0   : > { %v1687_v24 = vpop.f32.mrf.mxu0  ;;  %v1495_v34 = vpop.f32.mrf.mxu3 }
 0x1c1   : > { %v1562_v4 = vadd.f32 %v1495_v34, %v5816_v44  ;;  %v751_v44 = vld [vmem:[#allocation2 + $0x169] sm:$0xff] }
 0x1c2   : > { %v6053_v17 = vpack.c.bf16 %v752_v60, %v751_v44  ;;  %v786_v60 = vld [vmem:[#allocation2 + $0x18a] sm:$0xff] }
 0x1c3   : > { %v1880_v35 = vpop.f32.mrf.mxu1  ;;  %5032 = vmatmul.msk.bf16.gmra.mxu0 %vm334_vm1, %v6035_v63  ;;  %v6042_v28 = vadd.f32 %v1684_v23, %v1562_v4  ;;  %v817_v23 = vld [vmem:[#allocation2 + $0x188] sm:$0xff] }
 0x1c4   : > { %5064 = vmatmul.msk.bf16.gmra.mxu2 %vm334_vm1, %v1980_v57 }
 0x1c5   : > { %5016 = vmatmul.msk.bf16.gmra.mxu3 %vm334_vm1, %v1979_v12  ;;  %v1981_v12 = vpack.c.bf16 %v817_v23, %v816_v10 }
 0x1c6   : > { %5048 = vmatmul.msk.bf16.gmra.mxu1 %vm334_vm1, %v5753_v0 }
 0x1c7   : > { %v2069_v38 = vpop.f32.mrf.mxu2 }
 0x1c8   : > { %v1689_v51 = vpop.f32.mrf.mxu0  ;;  %v1498_v45 = vpop.f32.mrf.mxu3 }
 0x1c9   : > { %v1563_v47 = vadd.f32 %v1498_v45, %v5829_v19  ;;  %v754_v45 = vld [vmem:[#allocation2 + $0x189] sm:$0xff] }
 0x1cb   : > { %v6049_v32 = vpop.f32.mrf.mxu1  ;;  %v1752_v39 = vadd.f32 %v1687_v24, %v1563_v47  ;;  %v818_v47 = vld [vmem:[#allocation2 + $0x198] sm:$0xff] }
 0x1cd   : > { %v1945_v43 = vadd.f32 %v1880_v35, %v1752_v39  ;;  %v785_v39 = vld [vmem:[#allocation2 + $0x182] sm:$0xff] }
 0x1cf   : > { %v6051_v58 = vpop.f32.mrf.mxu2  ;;  %v6055_v0 = vadd.f32 %v2069_v38, %v1945_v43 }
 0x1d0   : > { %v1692_v25 = vpop.f32.mrf.mxu0  ;;  %v1500_v15 = vpop.f32.mrf.mxu3 }
 0x1d1   : > { %v1564_v53 = vadd.f32 %v1500_v15, %v5834_v41  ;;  %v753_v41 = vld [vmem:[#allocation2 + $0x181] sm:$0xff] }
 0x1d3   : > { %v1885_v19 = vpop.f32.mrf.mxu1  ;;  %5033 = vmatmul.msk.bf16.gmra.mxu0 %vm334_vm1, %v6053_v17  ;;  %v6060_v14 = vadd.f32 %v1689_v51, %v1564_v53  ;;  %v819_v51 = vld [vmem:[#allocation2 + $0x1a0] sm:$0xff] }
 0x1d4   : > { %5065 = vmatmul.msk.bf16.gmra.mxu2 %vm334_vm1, %v1981_v12  ;;  %v1982_v23 = vpack.c.bf16 %v819_v51, %v818_v47  ;;  %v853_v47 = vld [vmem:[#allocation2 + $0x3a] sm:$0xff] }
 0x1d5   : > { %5017 = vmatmul.msk.bf16.gmra.mxu3 %vm334_vm1, %v1980_v57 }
 0x1d6   : > { %5049 = vmatmul.msk.bf16.gmra.mxu1 %vm334_vm1, %v5781_v21  ;;  %v6071_v21 = vpack.c.bf16 %v754_v45, %v753_v41  ;;  %v852_v45 = vld [vmem:[#allocation2 + $0x32] sm:$0xff] }
 0x1d7   : > { %v2074_v27 = vpop.f32.mrf.mxu2 }
 0x1d8   : > { %v1694_v24 = vpop.f32.mrf.mxu0  ;;  %v1503_v34 = vpop.f32.mrf.mxu3 }
 0x1d9   : > { %v1565_v4 = vadd.f32 %v1503_v34, %v5847_v3  ;;  %v6075_v3 = vpack.c.bf16 %v786_v60, %v785_v39  ;;  %v2349_v60 = vpack.c.bf16 %v853_v47, %v852_v45  ;;  %v854_v45 = vld [vmem:[#allocation2 + $0x4a] sm:$0xff]  ;;  %v855_v47 = vld [vmem:[#allocation2 + $0x52] sm:$0xff] }
 0x1db   : > { %v6067_v35 = vpop.f32.mrf.mxu1  ;;  %v1754_v38 = vadd.f32 %v1692_v25, %v1565_v4 }
 0x1dc   : > { %7349 = vst [vmem:[#allocation4_spill] sm:$0xff] %v6067_v35 }
 0x1dd   : > { %v1947_v44 = vadd.f32 %v1885_v19, %v1754_v38 }
 0x1df   : > { %v6069_v10 = vpop.f32.mrf.mxu2  ;;  %v6073_v57 = vadd.f32 %v2074_v27, %v1947_v44  ;;  %v821_v44 = vld [vmem:[#allocation2 + $0x39] sm:$0xff] }
 0x1e0   : > { %7350 = vst [vmem:[#allocation5_spill] sm:$0xff] %v6069_v10  ;;  %v1697_v43 = vpop.f32.mrf.mxu0  ;;  %v1505_v15 = vpop.f32.mrf.mxu3 }
 0x1e1   : > { %v1566_v53 = vadd.f32 %v1505_v15, %v5852_v2 }
 0x1e3   : > { %v1890_v25 = vpop.f32.mrf.mxu1  ;;  %5034 = vmatmul.msk.bf16.gmra.mxu0 %vm334_vm1, %v6071_v21  ;;  %v6080_v19 = vadd.f32 %v1694_v24, %v1566_v53  ;;  %v820_v24 = vld [vmem:[#allocation2 + $0x31] sm:$0xff] }
 0x1e4   : > { %5066 = vmatmul.msk.bf16.gmra.mxu2 %vm334_vm1, %v1982_v23  ;;  %v2156_v10 = vpack.c.bf16 %v821_v44, %v820_v24  ;;  %v823_v24 = vld [vmem:[#allocation2 + $0x51] sm:$0xff] }
 0x1e5   : > { %5018 = vmatmul.msk.bf16.gmra.mxu3 %vm334_vm1, %v1981_v12 }
 0x1e6   : > { %5050 = vmatmul.msk.bf16.gmra.mxu1 %vm334_vm1, %v6075_v3 }
 0x1e7   : > { %v2079_v27 = vpop.f32.mrf.mxu2 }
 0x1e8   : > { %v1699_v34 = vpop.f32.mrf.mxu0  ;;  %v1508_v4 = vpop.f32.mrf.mxu3 }
 0x1e9   : > { %v1567_v41 = vadd.f32 %v1508_v4, %v5865_v22 }
 0x1eb   : > { %v6087_v38 = vpop.f32.mrf.mxu1  ;;  %v1756_v2 = vadd.f32 %v1697_v43, %v1567_v41 }
 0x1ec   : > { %7351 = vst [vmem:[#allocation6_spill] sm:$0xff] %v6087_v38 }
 0x1ed   : > { %v1949_v51 = vadd.f32 %v1890_v25, %v1756_v2 }
 0x1ef   : > { %v6089_v39 = vpop.f32.mrf.mxu2  ;;  %v6091_v23 = vadd.f32 %v2079_v27, %v1949_v51 }
 0x1f0   : > { %7352 = vst [vmem:[#allocation7_spill] sm:$0xff] %v6089_v39  ;;  %v1702_v15 = vpop.f32.mrf.mxu0  ;;  %v1510_v12 = vpop.f32.mrf.mxu3 }
 0x1f1   : > { %v1568_v53 = vadd.f32 %v1510_v12, %v5870_v11  ;;  %v822_v11 = vld [vmem:[#allocation2 + $0x49] sm:$0xff] }
 0x1f2   : > { %v2157_v39 = vpack.c.bf16 %v823_v24, %v822_v11  ;;  %v825_v11 = vld [vmem:[#allocation2 + $0x69] sm:$0xff] }
 0x1f3   : > { %v1895_v35 = vpop.f32.mrf.mxu1  ;;  %5083 = vmatmul.msk.bf16.vlgmr.msra.gmra.mxu0 %vm334_vm1, %v2349_v60  ;;  %v6095_v22 = vadd.f32 %v1699_v34, %v1568_v53  ;;  %v2350_v60 = vpack.c.bf16 %v855_v47, %v854_v45  ;;  %v856_v45 = vld [vmem:[#allocation2 + $0x62] sm:$0xff]  ;;  %v857_v47 = vld [vmem:[#allocation2 + $0x6a] sm:$0xff] }
 0x1f5   : > { %5067 = vmatmul.msk.bf16.vlgmr.msra.gmra.mxu3 %vm334_vm1, %v2156_v10 }
 0x1f7   : > { %v2084_v43 = vpop.f32.mrf.mxu2 }
 0x1f8   : > { %v1704_v25 = vpop.f32.mrf.mxu0  ;;  %v1513_v4 = vpop.f32.mrf.mxu3 }
 0x1f9   : > { %v1569_v41 = vadd.f32 %v1513_v4, %v5883_v37 }
 0x1fb   : > { %v6099_v2 = vpop.f32.mrf.mxu1  ;;  %v1758_v27 = vadd.f32 %v1702_v15, %v1569_v41 }
 0x1fc   : > { %7353 = vst [vmem:[#allocation8_spill] sm:$0xff] %v6099_v2 }
 0x1fd   : > { %v1951_v51 = vadd.f32 %v1895_v35, %v1758_v27 }
 0x1ff   : > { %v6101_v44 = vpop.f32.mrf.mxu2  ;;  %v6103_v34 = vadd.f32 %v2084_v43, %v1951_v51 }
 0x200   : > { %7354 = vst [vmem:[#allocation9_spill] sm:$0xff] %v6101_v44  ;;  %v1707_v12 = vpop.f32.mrf.mxu0  ;;  %v1515_v10 = vpop.f32.mrf.mxu3 }
 0x201   : > { %v1570_v53 = vadd.f32 %v1515_v10, %v5888_v46  ;;  %v824_v46 = vld [vmem:[#allocation2 + $0x61] sm:$0xff] }
 0x202   : > { %v2158_v44 = vpack.c.bf16 %v825_v11, %v824_v46  ;;  %v827_v46 = vld [vmem:[#allocation2 + $0x81] sm:$0xff] }
 0x203   : > { %v1900_v38 = vpop.f32.mrf.mxu1  ;;  %5084 = vmatmul.msk.bf16.gmra.mxu0 %vm334_vm1, %v2350_v60  ;;  %v6107_v37 = vadd.f32 %v1704_v25, %v1570_v53  ;;  %v2351_v60 = vpack.c.bf16 %v857_v47, %v856_v45  ;;  %v858_v45 = vld [vmem:[#allocation2 + $0x7a] sm:$0xff]  ;;  %v859_v47 = vld [vmem:[#allocation2 + $0x82] sm:$0xff] }
 0x205   : > { %5068 = vmatmul.msk.bf16.gmra.mxu3 %vm334_vm1, %v2157_v39 }
 0x207   : > { %v2089_v35 = vpop.f32.mrf.mxu2 }
 0x208   : > { %v1709_v15 = vpop.f32.mrf.mxu0  ;;  %v1518_v4 = vpop.f32.mrf.mxu3 }
 0x209   : > { %v1571_v41 = vadd.f32 %v1518_v4, %v5901_v31 }
 0x20b   : > { %v6111_v27 = vpop.f32.mrf.mxu1  ;;  %v1760_v43 = vadd.f32 %v1707_v12, %v1571_v41 }
 0x20c   : > { %7355 = vst [vmem:[#allocation10_spill] sm:$0xff] %v6111_v27 }
 0x20d   : > { %v1953_v51 = vadd.f32 %v1900_v38, %v1760_v43 }
 0x20f   : > { %v6113_v24 = vpop.f32.mrf.mxu2  ;;  %v6115_v25 = vadd.f32 %v2089_v35, %v1953_v51 }
 0x210   : > { %7356 = vst [vmem:[#allocation11_spill] sm:$0xff] %v6113_v24  ;;  %v1712_v10 = vpop.f32.mrf.mxu0  ;;  %v1520_v39 = vpop.f32.mrf.mxu3 }
 0x211   : > { %v1572_v53 = vadd.f32 %v1520_v39, %v5906_v40  ;;  %v826_v40 = vld [vmem:[#allocation2 + $0x79] sm:$0xff] }
 0x212   : > { %v2159_v24 = vpack.c.bf16 %v827_v46, %v826_v40  ;;  %v829_v40 = vld [vmem:[#allocation2 + $0x99] sm:$0xff] }
 0x213   : > { %v1905_v2 = vpop.f32.mrf.mxu1  ;;  %5085 = vmatmul.msk.bf16.gmra.mxu0 %vm334_vm1, %v2351_v60  ;;  %v6119_v31 = vadd.f32 %v1709_v15, %v1572_v53  ;;  %v2352_v60 = vpack.c.bf16 %v859_v47, %v858_v45  ;;  %v860_v45 = vld [vmem:[#allocation2 + $0x92] sm:$0xff]  ;;  %v861_v47 = vld [vmem:[#allocation2 + $0x9a] sm:$0xff] }
 0x215   : > { %5069 = vmatmul.msk.bf16.gmra.mxu3 %vm334_vm1, %v2158_v44 }
 0x217   : > { %v2094_v38 = vpop.f32.mrf.mxu2 }
 0x218   : > { %v1714_v12 = vpop.f32.mrf.mxu0  ;;  %v1523_v4 = vpop.f32.mrf.mxu3 }
 0x219   : > { %v1573_v41 = vadd.f32 %v1523_v4, %v5919_v9 }
 0x21b   : > { %v6123_v43 = vpop.f32.mrf.mxu1  ;;  %v1762_v35 = vadd.f32 %v1712_v10, %v1573_v41 }
 0x21c   : > { %7357 = vst [vmem:[#allocation12_spill] sm:$0xff] %v6123_v43 }
 0x21d   : > { %v1955_v51 = vadd.f32 %v1905_v2, %v1762_v35 }
 0x21f   : > { %v6125_v11 = vpop.f32.mrf.mxu2  ;;  %v6127_v15 = vadd.f32 %v2094_v38, %v1955_v51 }
 0x220   : > { %7358 = vst [vmem:[#allocation13_spill] sm:$0xff] %v6125_v11  ;;  %v1717_v39 = vpop.f32.mrf.mxu0  ;;  %v1525_v44 = vpop.f32.mrf.mxu3 }
 0x221   : > { %v1574_v53 = vadd.f32 %v1525_v44, %v5924_v56  ;;  %v828_v56 = vld [vmem:[#allocation2 + $0x91] sm:$0xff] }
 0x222   : > { %v2160_v11 = vpack.c.bf16 %v829_v40, %v828_v56  ;;  %v831_v56 = vld [vmem:[#allocation2 + $0xb1] sm:$0xff] }
 0x223   : > { %v1910_v27 = vpop.f32.mrf.mxu1  ;;  %5086 = vmatmul.msk.bf16.gmra.mxu0 %vm334_vm1, %v2352_v60  ;;  %v6131_v9 = vadd.f32 %v1714_v12, %v1574_v53  ;;  %v2353_v60 = vpack.c.bf16 %v861_v47, %v860_v45  ;;  %v862_v45 = vld [vmem:[#allocation2 + $0xaa] sm:$0xff]  ;;  %v863_v47 = vld [vmem:[#allocation2 + $0xb2] sm:$0xff] }
 0x225   : > { %5070 = vmatmul.msk.bf16.gmra.mxu3 %vm334_vm1, %v2159_v24 }
 0x227   : > { %v2099_v2 = vpop.f32.mrf.mxu2 }
 0x228   : > { %v1719_v10 = vpop.f32.mrf.mxu0  ;;  %v1528_v4 = vpop.f32.mrf.mxu3 }
 0x229   : > { %v1575_v41 = vadd.f32 %v1528_v4, %v5937_v6 }
 0x22b   : > { %v6135_v35 = vpop.f32.mrf.mxu1  ;;  %v1764_v38 = vadd.f32 %v1717_v39, %v1575_v41 }
 0x22c   : > { %7359 = vst [vmem:[#allocation14_spill] sm:$0xff] %v6135_v35 }
 0x22d   : > { %v1957_v51 = vadd.f32 %v1910_v27, %v1764_v38 }
 0x22f   : > { %v6137_v46 = vpop.f32.mrf.mxu2  ;;  %v6139_v12 = vadd.f32 %v2099_v2, %v1957_v51 }
 0x230   : > { %7360 = vst [vmem:[#allocation15_spill] sm:$0xff] %v6137_v46  ;;  %v1722_v44 = vpop.f32.mrf.mxu0  ;;  %v1530_v24 = vpop.f32.mrf.mxu3 }
 0x231   : > { %v1576_v53 = vadd.f32 %v1530_v24, %v5946_v30  ;;  %v830_v30 = vld [vmem:[#allocation2 + $0xa9] sm:$0xff] }
 0x232   : > { %v2161_v46 = vpack.c.bf16 %v831_v56, %v830_v30  ;;  %v833_v30 = vld [vmem:[#allocation2 + $0xc9] sm:$0xff] }
 0x233   : > { %v1915_v43 = vpop.f32.mrf.mxu1  ;;  %5087 = vmatmul.msk.bf16.gmra.mxu0 %vm334_vm1, %v2353_v60  ;;  %v6143_v6 = vadd.f32 %v1719_v10, %v1576_v53  ;;  %v2354_v60 = vpack.c.bf16 %v863_v47, %v862_v45  ;;  %v864_v45 = vld [vmem:[#allocation2 + $0xc2] sm:$0xff]  ;;  %v865_v47 = vld [vmem:[#allocation2 + $0xca] sm:$0xff] }
 0x235   : > { %5071 = vmatmul.msk.bf16.gmra.mxu3 %vm334_vm1, %v2160_v11 }
 0x237   : > { %v2104_v27 = vpop.f32.mrf.mxu2 }
 0x238   : > { %v1724_v39 = vpop.f32.mrf.mxu0  ;;  %v1533_v4 = vpop.f32.mrf.mxu3 }
 0x239   : > { %v1577_v41 = vadd.f32 %v1533_v4, %v5886_v42 }
 0x23b   : > { %v6147_v38 = vpop.f32.mrf.mxu1  ;;  %v1766_v2 = vadd.f32 %v1722_v44, %v1577_v41 }
 0x23d   : > { %v1959_v51 = vadd.f32 %v1915_v43, %v1766_v2 }
 0x23f   : > { %v6149_v40 = vpop.f32.mrf.mxu2  ;;  %v6151_v10 = vadd.f32 %v2104_v27, %v1959_v51 }
 0x240   : > { %7361 = vst [vmem:[#allocation16_spill] sm:$0xff] %v6149_v40  ;;  %v1727_v24 = vpop.f32.mrf.mxu0  ;;  %v1535_v11 = vpop.f32.mrf.mxu3 }
 0x241   : > { %v1578_v53 = vadd.f32 %v1535_v11, %v5891_v55  ;;  %v832_v55 = vld [vmem:[#allocation2 + $0xc1] sm:$0xff] }
 0x242   : > { %v2162_v40 = vpack.c.bf16 %v833_v30, %v832_v55 }
 0x243   : > { %v1920_v35 = vpop.f32.mrf.mxu1  ;;  %5088 = vmatmul.msk.bf16.gmra.mxu0 %vm334_vm1, %v2354_v60  ;;  %v6155_v42 = vadd.f32 %v1724_v39, %v1578_v53  ;;  %v2355_v60 = vpack.c.bf16 %v865_v47, %v864_v45  ;;  %v835_v47 = vld [vmem:[#allocation2 + $0xe1] sm:$0xff] }
 0x245   : > { %5072 = vmatmul.msk.bf16.gmra.mxu3 %vm334_vm1, %v2161_v46 }
 0x247   : > { %v2109_v43 = vpop.f32.mrf.mxu2 }
 0x248   : > { %v1729_v44 = vpop.f32.mrf.mxu0  ;;  %v1538_v4 = vpop.f32.mrf.mxu3 }
 0x249   : > { %v1579_v41 = vadd.f32 %v1538_v4, %v5904_v5 }
 0x24b   : > { %v1768_v2 = vadd.f32 %v1727_v24, %v1579_v41  ;;  %v6159_v27 = vpop.f32.mrf.mxu1 }
 0x24d   : > { %v1961_v51 = vadd.f32 %v1920_v35, %v1768_v2  ;;  %v7362_v2 = vmov 0.0  }
 0x24e   : > { %381 = vst.msk [vmem:[#allocation3] sm:$0xff] %vm380_vm5, %v7362_v2 }
 0x24f   : > { %v6161_v56 = vpop.f32.mrf.mxu2  ;;  %v6163_v39 = vadd.f32 %v2109_v43, %v1961_v51  ;;  %382 = vst.msk [vmem:[#allocation3 + $0x8] sm:$0xff] %vm380_vm5, %v7362_v2 }
 0x250   : > { %v1732_v11 = vpop.f32.mrf.mxu0  ;;  %v1540_v46 = vpop.f32.mrf.mxu3  ;;  %383 = vst.msk [vmem:[#allocation3 + $0x10] sm:$0xff] %vm380_vm5, %v7362_v2 }
 0x251   : > { %v1580_v53 = vadd.f32 %v1540_v46, %v5909_v16  ;;  %385 = vst.msk [vmem:[#allocation3 + $0x198] sm:$0xff] %vm380_vm5, %v7362_v2 }
 0x252   : > { %386 = vst.msk [vmem:[#allocation3 + $0x1a0] sm:$0xff] %vm380_vm5, %v7362_v2 }
 0x253   : > { %5089 = vmatmul.msk.bf16.gmra.mxu0 %vm334_vm1, %v2355_v60  ;;  %v6167_v5 = vadd.f32 %v1729_v44, %v1580_v53  ;;  %v1925_v24 = vpop.f32.mrf.mxu1  ;;  %v867_v44 = vld [vmem:[#allocation2 + $0xe2] sm:$0xff]  ;;  %387 = vst.msk [vmem:[#allocation3 + $0x1a8] sm:$0xff] %vm380_vm5, %v7362_v2 }
 0x254   : > { %389 = vst.msk [vmem:[#allocation3] sm:$0x1] %vm388_vm6, %v7362_v2 }
 0x255   : > { %5073 = vmatmul.msk.bf16.gmra.mxu3 %vm334_vm1, %v2162_v40  ;;  %v866_v40 = vld [vmem:[#allocation2 + $0xda] sm:$0xff]  ;;  %390 = vst.msk [vmem:[#allocation3 + $0x18] sm:$0x1] %vm388_vm6, %v7362_v2 }
 0x256   : > { %v2356_v51 = vpack.c.bf16 %v867_v44, %v866_v40  ;;  %391 = vst.msk [vmem:[#allocation3 + $0x30] sm:$0x1] %vm388_vm6, %v7362_v2  ;;  %v2707_v40 = vld [vmem:[#allocation3 + $0x1] sm:$0xff] }
 0x257   : > { %v2114_v35 = vpop.f32.mrf.mxu2  ;;  %392 = vst.msk [vmem:[#allocation3 + $0x48] sm:$0x1] %vm388_vm6, %v7362_v2  ;;  %v2708_v44 = vld [vmem:[#allocation3 + $0x9] sm:$0xff] }
 0x258   : > { %v1734_v4 = vpop.f32.mrf.mxu0  ;;  %v1543_v41 = vpop.f32.mrf.mxu3  ;;  %393 = vst.msk [vmem:[#allocation3 + $0x60] sm:$0x1] %vm388_vm6, %v7362_v2 }
 0x259   : > { %v1581_v43 = vadd.f32 %v1543_v41, %v5922_v18  ;;  %v834_v18 = vld [vmem:[#allocation2 + $0xd9] sm:$0xff]  ;;  %394 = vst.msk [vmem:[#allocation3 + $0x78] sm:$0x1] %vm388_vm6, %v7362_v2 }
 0x25a   : > { %v2163_v53 = vpack.c.bf16 %v835_v47, %v834_v18  ;;  %v2676_v41 = vld [vmem:[#allocation3 + $0x8] sm:$0xff]  ;;  %395 = vst.msk [vmem:[#allocation3 + $0x90] sm:$0x1] %vm388_vm6, %v7362_v2 }
 0x25b   : > { %v1770_v16 = vadd.f32 %v1732_v11, %v1581_v43  ;;  %v6187_v30 = vpop.f32.mrf.mxu1  ;;  %396 = vst.msk [vmem:[#allocation3 + $0xa8] sm:$0x1] %vm388_vm6, %v7362_v2 }
 0x25c   : > { %397 = vst.msk [vmem:[#allocation3 + $0xc0] sm:$0x1] %vm388_vm6, %v7362_v2 }
 0x25d   : > { %v1963_v45 = vadd.f32 %v1925_v24, %v1770_v16  ;;  %v2675_v16 = vld [vmem:[#allocation3] sm:$0xff]  ;;  %398 = vst.msk [vmem:[#allocation3 + $0xd8] sm:$0x1] %vm388_vm6, %v7362_v2 }
 0x25e   : > { %399 = vst.msk [vmem:[#allocation3 + $0xf0] sm:$0x1] %vm388_vm6, %v7362_v2 }
 0x25f   : > { %v6185_v55 = vadd.f32 %v2114_v35, %v1963_v45  ;;  %v6194_v24 = vpop.f32.mrf.mxu2  ;;  %v2981_v45 = vpack.c.bf16 %v2708_v44, %v2707_v40  ;;  %400 = vst.msk [vmem:[#allocation3 + $0x108] sm:$0x1] %vm388_vm6, %v7362_v2  ;;  %v836_v40 = vld [vmem:[#allocation2 + $0xf1] sm:$0xff]  ;;  %v837_v44 = vld [vmem:[#allocation2 + $0xf9] sm:$0xff] }
 0x260   : > { %v1737_v60 = vpop.f32.mrf.mxu0  ;;  %v1545_v11 = vpop.f32.mrf.mxu3  ;;  %401 = vst.msk [vmem:[#allocation3 + $0x120] sm:$0x1] %vm388_vm6, %v7362_v2 }
 0x261   : > { %v1582_v46 = vadd.f32 %v1545_v11, %v5927_v48  ;;  %v3295_v48 = vld [vmem:[%s7340_s6 + $0x8] sm:$0xf]  ;;  %5099 = vmatmul.msk.bf16.vlgmr.msra.gmra.mxu1 %vm380_vm5, %v2981_v45  ;;  %402 = vst.msk [vmem:[#allocation3 + $0x138] sm:$0x1] %vm388_vm6, %v7362_v2 }
 0x262   : > { %v3345_v43 = vsel %vm3046_vm4, %v3295_v48, 0  ;;  %v869_v48 = vld [vmem:[#allocation2 + $0xfa] sm:$0xff]  ;;  %403 = vst.msk [vmem:[#allocation3 + $0x150] sm:$0x1] %vm388_vm6, %v7362_v2 }
 0x263   : > { %5090 = vmatmul.msk.bf16.gmra.mxu0 %vm334_vm1, %v2356_v51  ;;  %v6199_v35 = vadd.f32 %v1734_v4, %v1582_v46  ;;  %v2964_v4 = vpack.c.bf16 %v2676_v41, %v2675_v16  ;;  %3354 = vmatpush.bf16.msrb.mxu3 %v3345_v43  ;;  %v1930_v11 = vpop.f32.mrf.mxu1  ;;  %v868_v46 = vld [vmem:[#allocation2 + $0xf2] sm:$0xff]  ;;  %v3484_v41 = vld [vmem:[%s7340_s6 + $0xc] sm:$0xf]  ;;  %404 = vst.msk [vmem:[#allocation3 + $0x168] sm:$0x1] %vm388_vm6, %v7362_v2 }
 0x264   : > { %v3534_v43 = vsel %vm3046_vm4, %v3484_v41, 0  ;;  %v3862_v16 = vld [vmem:[%s7340_s6 + $0x14] sm:$0xf]  ;;  %v2357_v45 = vpack.c.bf16 %v869_v48, %v868_v46  ;;  %405 = vst.msk [vmem:[#allocation3 + $0x180] sm:$0x1] %vm388_vm6, %v7362_v2 }
 0x265   : > { %5074 = vmatmul.msk.bf16.gmra.mxu3 %vm334_vm1, %v2163_v53  ;;  %5115 = vmatmul.msk.bf16.vlgmr.msra.gmra.mxu2 %vm380_vm5, %v2964_v4  ;;  %406 = vst.msk [vmem:[#allocation3 + $0x198] sm:$0x1] %vm388_vm6, %v7362_v2 }
 0x266   : > { %3543 = vmatpush.bf16.msrb.mxu0 %v3534_v43  ;;  %v2164_v43 = vpack.c.bf16 %v837_v44, %v836_v40  ;;  %408 = vst.msk [vmem:[#allocation3 + $0x11] sm:$0x7f] %vm407_vm7, %v7362_v2  ;;  %v871_v40 = vld [vmem:[#allocation2 + $0x112] sm:$0xff] }
 0x267   : > { %409 = vst.msk [vmem:[#allocation3 + $0x29] sm:$0x7f] %vm407_vm7, %v7362_v2 }
 0x268   : > { %v1739_v18 = vpop.f32.mrf.mxu0  ;;  %v1548_v47 = vpop.f32.mrf.mxu3  ;;  %410 = vst.msk [vmem:[#allocation3 + $0x41] sm:$0x7f] %vm407_vm7, %v7362_v2 }
 0x269   : > { %v1583_v51 = vadd.f32 %v1548_v47, %v5943_v26  ;;  %v2119_v26 = vpop.f32.mrf.mxu2  ;;  %411 = vst.msk [vmem:[#allocation3 + $0x59] sm:$0x7f] %vm407_vm7, %v7362_v2 }
 0x26a   : > { %412 = vst.msk [vmem:[#allocation3 + $0x71] sm:$0x7f] %vm407_vm7, %v7362_v2 }
 0x26b   : > { %v1772_v53 = vadd.f32 %v1737_v60, %v1583_v51  ;;  %v3912_v60 = vsel %vm3046_vm4, %v3862_v16, 0  ;;  %413 = vst.msk [vmem:[#allocation3 + $0x89] sm:$0x7f] %vm407_vm7, %v7362_v2 }
 0x26c   : > { %3921 = vmatpush.bf16.msrb.mxu2 %v3912_v60  ;;  %v6277_v60 = vld [vmem:[%s7339_s5] ss:$0 sm:$0xff]  ;;  %414 = vst.msk [vmem:[#allocation3 + $0xa1] sm:$0x7f] %vm407_vm7, %v7362_v2 }
 0x26d   : > { %v1965_v4 = vadd.f32 %v1930_v11, %v1772_v53  ;;  %v3673_v53 = vld [vmem:[%s7340_s6 + $0x10] sm:$0xf]  ;;  %415 = vst.msk [vmem:[#allocation3 + $0xb9] sm:$0x7f] %vm407_vm7, %v7362_v2 }
 0x26e   : > { %v3723_v16 = vsel %vm3046_vm4, %v3673_v53, 0  ;;  %416 = vst.msk [vmem:[#allocation3 + $0xd1] sm:$0x7f] %vm407_vm7, %v7362_v2 }
 0x26f   : > { %v6241_v47 = vadd.f32 %v2119_v26, %v1965_v4  ;;  %3732 = vmatpush.bf16.msrb.mxu1 %v3723_v16  ;;  %v6268_v26 = vld [vmem:[%s7338_s4] ss:$0 sm:$0xff]  ;;  %417 = vst.msk [vmem:[#allocation3 + $0xe9] sm:$0x7f] %vm407_vm7, %v7362_v2 }
 0x270   : > { %v2426_v51 = vpop.f32.mrf.mxu0  ;;  %v1550_v11 = vpop.f32.mrf.mxu3  ;;  %418 = vst.msk [vmem:[#allocation3 + $0x101] sm:$0x7f] %vm407_vm7, %v7362_v2 }
 0x271   : > { %v1584_v41 = vadd.f32 %v1550_v11, %v5952_v50  ;;  %419 = vst.msk [vmem:[#allocation3 + $0x119] sm:$0x7f] %vm407_vm7, %v7362_v2 }
 0x272   : > { %420 = vst.msk [vmem:[#allocation3 + $0x131] sm:$0x7f] %vm407_vm7, %v7362_v2 }
 0x273   : > { %5091 = vmatmul.msk.bf16.gmra.mxu0 %vm334_vm1, %v2357_v45  ;;  %v6253_v46 = vadd.f32 %v1739_v18, %v1584_v41  ;;  %v838_v45 = vld [vmem:[#allocation2 + $0x109] sm:$0xff]  ;;  %421 = vst.msk [vmem:[#allocation3 + $0x149] sm:$0x7f] %vm407_vm7, %v7362_v2 }
 0x274   : > { %422 = vst.msk [vmem:[#allocation3 + $0x161] sm:$0x7f] %vm407_vm7, %v7362_v2 }
 0x275   : > { %7363 = vst [vmem:[#allocation17_spill] sm:$0xff] %v6253_v46  ;;  %5075 = vmatmul.msk.bf16.gmra.mxu3 %vm334_vm1, %v2164_v43 }
 0x276   : > { %423 = vst.msk [vmem:[#allocation3 + $0x179] sm:$0x7f] %vm407_vm7, %v7362_v2 }
 0x277   : > { %424 = vst.msk [vmem:[#allocation3 + $0x191] sm:$0x7f] %vm407_vm7, %v7362_v2 }
 0x278   : > { %v2428_v50 = vpop.f32.mrf.mxu0  ;;  %v2237_v48 = vpop.f32.mrf.mxu3  ;;  %425 = vst.msk [vmem:[#allocation3 + $0x1a9] sm:$0x7f] %vm407_vm7, %v7362_v2 }
 0x279   : > { %v2317_v18 = vadd.f32 %v2237_v48, %v5964_v33  ;;  %v870_v33 = vld [vmem:[#allocation2 + $0x10a] sm:$0xff] }
 0x27a   : > { %v2358_v53 = vpack.c.bf16 %v871_v40, %v870_v33 }
 0x27b   : > { %v2506_v4 = vadd.f32 %v2426_v51, %v2317_v18  ;;  %v839_v51 = vld [vmem:[#allocation2 + $0x111] sm:$0xff] }
 0x27c   : > { %v2165_v18 = vpack.c.bf16 %v839_v51, %v838_v45 }
 0x27d   : > { %v2542_v44 = vmul.f32 %v6268_v26, %v2506_v4 }
 0x27f   : > { %v2578_v11 = vadd.f32 %v6277_v60, %v2542_v44 }
 0x280   : > { %v2431_v41 = vpop.f32.mrf.mxu0  ;;  %v2239_v43 = vpop.f32.mrf.mxu3 }
 0x281   : > { %v2610_v16 = vmax.f32 %v2578_v11, 0.0  ;;  %v2318_v48 = vadd.f32 %v2239_v43, %v5975_v1 }
 0x283   : > { %2643 = vst.msk [vmem:[#allocation3 + $0x19] sm:$0xff] %vm380_vm5, %v2610_v16  ;;  %5092 = vmatmul.msk.bf16.gmra.mxu0 %vm334_vm1, %v2358_v53  ;;  %v2507_v4 = vadd.f32 %v2428_v50, %v2318_v48 }
 0x285   : > { %v2543_v33 = vmul.f32 %v6268_v26, %v2507_v4  ;;  %5076 = vmatmul.msk.bf16.gmra.mxu3 %vm334_vm1, %v2165_v18 }
 0x287   : > { %v2579_v1 = vadd.f32 %v6277_v60, %v2543_v33 }
 0x288   : > { %v2433_v40 = vpop.f32.mrf.mxu0  ;;  %v2242_v50 = vpop.f32.mrf.mxu3 }
 0x289   : > { %v2611_v44 = vmax.f32 %v2579_v1, 0.0  ;;  %v2319_v45 = vadd.f32 %v2242_v50, %v5978_v29 }
 0x28a   : > { %v2709_v4 = vld [vmem:[#allocation3 + $0x19] sm:$0xff] }
 0x28b   : > { %2644 = vst.msk [vmem:[#allocation3 + $0x21] sm:$0xff] %vm380_vm5, %v2611_v44  ;;  %v2508_v51 = vadd.f32 %v2431_v41, %v2319_v45  ;;  %v2677_v2 = vld [vmem:[#allocation3 + $0x18] sm:$0xff] }
 0x28d   : > { %v2544_v11 = vmul.f32 %v6268_v26, %v2508_v51 }
 0x28f   : > { %v2580_v53 = vadd.f32 %v6277_v60, %v2544_v11  ;;  %v875_v11 = vld [vmem:[#allocation2 + $0x142] sm:$0xff] }
 0x290   : > { %v2436_v43 = vpop.f32.mrf.mxu0  ;;  %v2244_v16 = vpop.f32.mrf.mxu3 }
 0x291   : > { %v2612_v48 = vmax.f32 %v2580_v53, 0.0  ;;  %v2320_v18 = vadd.f32 %v2244_v16, %v5988_v52 }
 0x292   : > { %v2710_v33 = vld [vmem:[#allocation3 + $0x21] sm:$0xff] }
 0x293   : > { %v2678_v46 = vld [vmem:[#allocation3 + $0x20] sm:$0xff]  ;;  %2645 = vst.msk [vmem:[#allocation3 + $0x31] sm:$0xff] %vm380_vm5, %v2612_v48  ;;  %5093 = vmatmul.msk.bf16.gmra.mxu0 %vm334_vm1, %v5995_v54  ;;  %v2509_v29 = vadd.f32 %v2433_v40, %v2320_v18  ;;  %v2982_v41 = vpack.c.bf16 %v2710_v33, %v2709_v4  ;;  %v874_v40 = vld [vmem:[#allocation2 + $0x13a] sm:$0xff] }
 0x294   : > { %v6319_v1 = vpack.c.bf16 %v2678_v46, %v2677_v2  ;;  %v2360_v16 = vpack.c.bf16 %v875_v11, %v874_v40  ;;  %v876_v11 = vld [vmem:[#allocation2 + $0x152] sm:$0xff] }
 0x295   : > { %v2545_v50 = vmul.f32 %v6268_v26, %v2509_v29  ;;  %5077 = vmatmul.msk.bf16.gmra.mxu3 %vm334_vm1, %v5991_v8  ;;  %5100 = vmatmul.msk.bf16.gmra.mxu1 %vm380_vm5, %v2982_v41 }
 0x296   : > { %5116 = vmatmul.msk.bf16.gmra.mxu2 %vm380_vm5, %v6319_v1 }
 0x297   : > { %v2581_v52 = vadd.f32 %v6277_v60, %v2545_v50 }
 0x298   : > { %v2438_v44 = vpop.f32.mrf.mxu0  ;;  %v2247_v45 = vpop.f32.mrf.mxu3 }
 0x299   : > { %v2613_v51 = vmax.f32 %v2581_v52, 0.0  ;;  %v2321_v54 = vadd.f32 %v2247_v45, %v5993_v13 }
 0x29a   : > { %v2711_v2 = vld [vmem:[#allocation3 + $0x31] sm:$0xff] }
 0x29b   : > { %2646 = vst.msk [vmem:[#allocation3 + $0x39] sm:$0xff] %vm380_vm5, %v2613_v51  ;;  %v2510_v46 = vadd.f32 %v2436_v43, %v2321_v54  ;;  %v2679_v41 = vld [vmem:[#allocation3 + $0x30] sm:$0xff] }
 0x29d   : > { %v2546_v53 = vmul.f32 %v6268_v26, %v2510_v46 }
 0x29f   : > { %v2582_v8 = vadd.f32 %v6277_v60, %v2546_v53  ;;  %v877_v53 = vld [vmem:[#allocation2 + $0x15a] sm:$0xff] }
 0x2a0   : > { %v2441_v48 = vpop.f32.mrf.mxu0  ;;  %v2249_v18 = vpop.f32.mrf.mxu3 }
 0x2a1   : > { %v2614_v4 = vmax.f32 %v2582_v8, 0.0  ;;  %v2322_v33 = vadd.f32 %v2249_v18, %v6004_v62 }
 0x2a2   : > { %v2712_v29 = vld [vmem:[#allocation3 + $0x39] sm:$0xff] }
 0x2a3   : > { %v2680_v50 = vld [vmem:[#allocation3 + $0x38] sm:$0xff]  ;;  %2647 = vst.msk [vmem:[#allocation3 + $0x49] sm:$0xff] %vm380_vm5, %v2614_v4  ;;  %5094 = vmatmul.msk.bf16.gmra.mxu0 %vm334_vm1, %v2360_v16  ;;  %v2511_v13 = vadd.f32 %v2438_v44, %v2322_v33  ;;  %v2983_v43 = vpack.c.bf16 %v2712_v29, %v2711_v2  ;;  %v2361_v16 = vpack.c.bf16 %v877_v53, %v876_v11 }
 0x2a4   : > { %v6335_v52 = vpack.c.bf16 %v2680_v50, %v2679_v41  ;;  %v878_v11 = vld [vmem:[#allocation2 + $0x16a] sm:$0xff] }
 0x2a5   : > { %v2547_v45 = vmul.f32 %v6268_v26, %v2511_v13  ;;  %5078 = vmatmul.msk.bf16.gmra.mxu3 %vm334_vm1, %v6007_v7  ;;  %5101 = vmatmul.msk.bf16.gmra.mxu1 %vm380_vm5, %v2983_v43 }
 0x2a6   : > { %5117 = vmatmul.msk.bf16.gmra.mxu2 %vm380_vm5, %v6335_v52 }
 0x2a7   : > { %v2583_v62 = vadd.f32 %v6277_v60, %v2547_v45 }
 0x2a8   : > { %v2443_v51 = vpop.f32.mrf.mxu0  ;;  %v2252_v54 = vpop.f32.mrf.mxu3 }
 0x2a9   : > { %v2615_v46 = vmax.f32 %v2583_v62, 0.0  ;;  %v2323_v44 = vadd.f32 %v2252_v54, %v6009_v59 }
 0x2aa   : > { %v2713_v29 = vld [vmem:[#allocation3 + $0x49] sm:$0xff] }
 0x2ab   : > { %2648 = vst.msk [vmem:[#allocation3 + $0x51] sm:$0xff] %vm380_vm5, %v2615_v46  ;;  %v2512_v40 = vadd.f32 %v2441_v48, %v2323_v44  ;;  %v2681_v50 = vld [vmem:[#allocation3 + $0x48] sm:$0xff]  ;;  %v1944_v44 = vadd.f32 %v6029_v20, %v6042_v28 }
 0x2ad   : > { %v2548_v8 = vmul.f32 %v6268_v26, %v2512_v40 }
 0x2af   : > { %v2584_v7 = vadd.f32 %v6277_v60, %v2548_v8  ;;  %v2133_v8 = vadd.f32 %v6033_v49, %v1944_v44 }
 0x2b0   : > { %v2446_v18 = vpop.f32.mrf.mxu0  ;;  %v2254_v4 = vpop.f32.mrf.mxu3 }
 0x2b1   : > { %v2616_v33 = vmax.f32 %v2584_v7, 0.0  ;;  %v2324_v2 = vadd.f32 %v2254_v4, %v6026_v36 }
 0x2b2   : > { %v2714_v41 = vld [vmem:[#allocation3 + $0x51] sm:$0xff] }
 0x2b3   : > { %v2682_v13 = vld [vmem:[#allocation3 + $0x50] sm:$0xff]  ;;  %2649 = vst.msk [vmem:[#allocation3 + $0x61] sm:$0xff] %vm380_vm5, %v2616_v33  ;;  %5095 = vmatmul.msk.bf16.gmra.mxu0 %vm334_vm1, %v2361_v16  ;;  %v2513_v59 = vadd.f32 %v2443_v51, %v2324_v2  ;;  %v2984_v48 = vpack.c.bf16 %v2714_v41, %v2713_v29 }
 0x2b4   : > { %v6351_v43 = vpack.c.bf16 %v2682_v13, %v2681_v50 }
 0x2b5   : > { %v2549_v45 = vmul.f32 %v6268_v26, %v2513_v59  ;;  %5079 = vmatmul.msk.bf16.gmra.mxu3 %vm334_vm1, %v6035_v63  ;;  %5102 = vmatmul.msk.bf16.gmra.mxu1 %vm380_vm5, %v2984_v48  ;;  %v879_v63 = vld [vmem:[#allocation2 + $0x172] sm:$0xff] }
 0x2b6   : > { %5118 = vmatmul.msk.bf16.gmra.mxu2 %vm380_vm5, %v6351_v43  ;;  %v2362_v16 = vpack.c.bf16 %v879_v63, %v878_v11 }
 0x2b7   : > { %v2585_v36 = vadd.f32 %v6277_v60, %v2549_v45 }
 0x2b8   : > { %v2448_v62 = vpop.f32.mrf.mxu0  ;;  %v2257_v54 = vpop.f32.mrf.mxu3 }
 0x2b9   : > { %v2617_v46 = vmax.f32 %v2585_v36, 0.0  ;;  %v2325_v51 = vadd.f32 %v2257_v54, %v6037_v61  ;;  %v1946_v54 = vadd.f32 %v6049_v32, %v6060_v14 }
 0x2ba   : > { %v2715_v61 = vld [vmem:[#allocation3 + $0x61] sm:$0xff] }
 0x2bb   : > { %2650 = vst.msk [vmem:[#allocation3 + $0x69] sm:$0xff] %vm380_vm5, %v2617_v46  ;;  %v2514_v40 = vadd.f32 %v2446_v18, %v2325_v51  ;;  %v2683_v50 = vld [vmem:[#allocation3 + $0x60] sm:$0xff]  ;;  %v2135_v51 = vadd.f32 %v6051_v58, %v1946_v54 }
 0x2bd   : > { %v2550_v53 = vmul.f32 %v6268_v26, %v2514_v40 }
 0x2bf   : > { %v2586_v7 = vadd.f32 %v6277_v60, %v2550_v53 }
 0x2c0   : > { %v2451_v4 = vpop.f32.mrf.mxu0  ;;  %v2259_v33 = vpop.f32.mrf.mxu3 }
 0x2c1   : > { %v2618_v2 = vmax.f32 %v2586_v7, 0.0  ;;  %v2326_v29 = vadd.f32 %v2259_v33, %v2133_v8 }
 0x2c2   : > { %v2716_v41 = vld [vmem:[#allocation3 + $0x69] sm:$0xff] }
 0x2c3   : > { %v2684_v20 = vld [vmem:[#allocation3 + $0x68] sm:$0xff]  ;;  %2651 = vst.msk [vmem:[#allocation3 + $0x79] sm:$0xff] %vm380_vm5, %v2618_v2  ;;  %5096 = vmatmul.msk.bf16.gmra.mxu0 %vm334_vm1, %v2362_v16  ;;  %v2515_v28 = vadd.f32 %v2448_v62, %v2326_v29  ;;  %v2985_v18 = vpack.c.bf16 %v2716_v41, %v2715_v61  ;;  %v7364_v41 = vld [vmem:[#allocation4_spill] sm:$0xff] }
 0x2c4   : > { %v6369_v13 = vpack.c.bf16 %v2684_v20, %v2683_v50  ;;  %v1948_v50 = vadd.f32 %v7364_v41, %v6080_v19 }
 0x2c5   : > { %v2551_v49 = vmul.f32 %v6268_v26, %v2515_v28  ;;  %5080 = vmatmul.msk.bf16.gmra.mxu3 %vm334_vm1, %v6053_v17  ;;  %5103 = vmatmul.msk.bf16.gmra.mxu1 %vm380_vm5, %v2985_v18  ;;  %v882_v28 = vld [vmem:[#allocation2 + $0x19a] sm:$0xff] }
 0x2c6   : > { %5119 = vmatmul.msk.bf16.gmra.mxu2 %vm380_vm5, %v6369_v13 }
 0x2c7   : > { %v2587_v59 = vadd.f32 %v6277_v60, %v2551_v49  ;;  %v850_v49 = vld [vmem:[#allocation2 + $0x199] sm:$0xff] }
 0x2c8   : > { %v2453_v48 = vpop.f32.mrf.mxu0  ;;  %v2262_v45 = vpop.f32.mrf.mxu3 }
 0x2c9   : > { %v2619_v36 = vmax.f32 %v2587_v59, 0.0  ;;  %v2327_v62 = vadd.f32 %v2262_v45, %v6055_v0  ;;  %v851_v59 = vld [vmem:[#allocation2 + $0x1a1] sm:$0xff] }
 0x2ca   : > { %v2717_v8 = vld [vmem:[#allocation3 + $0x79] sm:$0xff] }
 0x2cb   : > { %2652 = vst.msk [vmem:[#allocation3 + $0x81] sm:$0xff] %vm380_vm5, %v2619_v36  ;;  %v2516_v46 = vadd.f32 %v2451_v4, %v2327_v62  ;;  %v2685_v16 = vld [vmem:[#allocation3 + $0x78] sm:$0xff] }
 0x2cd   : > { %v2552_v17 = vmul.f32 %v6268_v26, %v2516_v46 }
 0x2cf   : > { %v2588_v44 = vadd.f32 %v6277_v60, %v2552_v17 }
 0x2d0   : > { %v2456_v40 = vpop.f32.mrf.mxu0  ;;  %v2264_v11 = vpop.f32.mrf.mxu3 }
 0x2d1   : > { %v2620_v63 = vmax.f32 %v2588_v44, 0.0  ;;  %v2328_v53 = vadd.f32 %v2264_v11, %v2135_v51  ;;  %v2171_v51 = vpack.c.bf16 %v851_v59, %v850_v49  ;;  %v7367_v49 = vld [vmem:[#allocation7_spill] sm:$0xff] }
 0x2d2   : > { %v2718_v7 = vld [vmem:[#allocation3 + $0x81] sm:$0xff] }
 0x2d3   : > { %v2686_v0 = vld [vmem:[#allocation3 + $0x80] sm:$0xff]  ;;  %2653 = vst.msk [vmem:[#allocation3 + $0x91] sm:$0xff] %vm380_vm5, %v2620_v63  ;;  %5097 = vmatmul.msk.bf16.gmra.mxu0 %vm334_vm1, %v6075_v3  ;;  %v2517_v32 = vadd.f32 %v2453_v48, %v2328_v53  ;;  %v2986_v14 = vpack.c.bf16 %v2718_v7, %v2717_v8  ;;  %v7365_v48 = vld [vmem:[#allocation5_spill] sm:$0xff]  ;;  %v6404_v63 = vpop.f32.mrf.mxu1  ;;  %v6406_v53 = vpop.f32.mrf.mxu2 }
 0x2d4   : > { %v6388_v4 = vpack.c.bf16 %v2686_v0, %v2685_v16  ;;  %v2137_v45 = vadd.f32 %v7365_v48, %v1948_v50 }
 0x2d5   : > { %v2553_v58 = vmul.f32 %v6268_v26, %v2517_v32  ;;  %5081 = vmatmul.msk.bf16.gmra.mxu3 %vm334_vm1, %v6071_v21  ;;  %5104 = vmatmul.msk.bf16.gmra.mxu1 %vm380_vm5, %v2986_v14  ;;  %v883_v21 = vld [vmem:[#allocation2 + $0x1a2] sm:$0xff] }
 0x2d6   : > { %5120 = vmatmul.msk.bf16.gmra.mxu2 %vm380_vm5, %v6388_v4  ;;  %v2364_v62 = vpack.c.bf16 %v883_v21, %v882_v28  ;;  %v2739_v21 = vld [vmem:[#allocation3 + $0x2] sm:$0xff] }
 0x2d7   : > { %v2589_v33 = vadd.f32 %v6277_v60, %v2553_v58 }
 0x2d8   : > { %v2458_v2 = vpop.f32.mrf.mxu0  ;;  %v2267_v29 = vpop.f32.mrf.mxu3 }
 0x2d9   : > { %v2621_v61 = vmax.f32 %v2589_v33, 0.0  ;;  %v2329_v3 = vadd.f32 %v2267_v29, %v6073_v57 }
 0x2da   : > { %v2719_v19 = vld [vmem:[#allocation3 + $0x91] sm:$0xff] }
 0x2db   : > { %2654 = vst.msk [vmem:[#allocation3 + $0x99] sm:$0xff] %vm380_vm5, %v2621_v61  ;;  %v2518_v20 = vadd.f32 %v2456_v40, %v2329_v3  ;;  %v2687_v11 = vld [vmem:[#allocation3 + $0x90] sm:$0xff] }
 0x2dd   : > { %v2554_v18 = vmul.f32 %v6268_v26, %v2518_v20 }
 0x2de   : > { %v3059_v41 = vpop.f32.mrf.mxu1 }
 0x2df   : > { %v2590_v36 = vadd.f32 %v6277_v60, %v2554_v18  ;;  %v2740_v18 = vld [vmem:[#allocation3 + $0xa] sm:$0xff] }
 0x2e0   : > { %v2461_v54 = vpop.f32.mrf.mxu0  ;;  %v2269_v46 = vpop.f32.mrf.mxu3 }
 0x2e1   : > { %v2622_v57 = vmax.f32 %v2590_v36, 0.0  ;;  %v2330_v17 = vadd.f32 %v2269_v46, %v2137_v45  ;;  %v3279_v46 = vpack.c.bf16 %v2740_v18, %v2739_v21 }
 0x2e2   : > { %v2720_v44 = vld [vmem:[#allocation3 + $0x99] sm:$0xff] }
 0x2e3   : > { %v2688_v40 = vld [vmem:[#allocation3 + $0x98] sm:$0xff]  ;;  %2655 = vst.msk [vmem:[#allocation3 + $0xa9] sm:$0xff] %vm380_vm5, %v2622_v57  ;;  %5098 = vmatmul.msk.bf16.gmra.mxu0 %vm334_vm1, %v2364_v62  ;;  %v2519_v8 = vadd.f32 %v2458_v2, %v2330_v17  ;;  %v2987_v7 = vpack.c.bf16 %v2720_v44, %v2719_v19  ;;  %v7366_v2 = vld [vmem:[#allocation6_spill] sm:$0xff] }
 0x2e4   : > { %v6410_v16 = vpack.c.bf16 %v2688_v40, %v2687_v11  ;;  %v1950_v61 = vadd.f32 %v7366_v2, %v6095_v22 }
 0x2e5   : > { %v2555_v0 = vmul.f32 %v6268_v26, %v2519_v8  ;;  %5082 = vmatmul.msk.bf16.gmra.mxu3 %vm334_vm1, %v2171_v51  ;;  %5105 = vmatmul.msk.bf16.gmra.mxu1 %vm380_vm5, %v2987_v7 }
 0x2e6   : > { %5121 = vmatmul.msk.bf16.gmra.mxu2 %vm380_vm5, %v6410_v16  ;;  %v2139_v59 = vadd.f32 %v7367_v49, %v1950_v61 }
 0x2e7   : > { %v2591_v32 = vadd.f32 %v6277_v60, %v2555_v0 }
 0x2e8   : > { %v2463_v14 = vpop.f32.mrf.mxu0  ;;  %v2272_v58 = vpop.f32.mrf.mxu3 }
 0x2e9   : > { %v2623_v33 = vmax.f32 %v2591_v32, 0.0  ;;  %v2331_v29 = vadd.f32 %v2272_v58, %v6091_v23  ;;  %v3199_v50 = vpop.f32.mrf.mxu2  ;;  %v7368_v32 = vld [vmem:[#allocation8_spill] sm:$0xff] }
 0x2ea   : > { %v6422_v20 = vadd.f32 %v3199_v50, %v3059_v41  ;;  %v2721_v22 = vld [vmem:[#allocation3 + $0xa9] sm:$0xff] }
 0x2eb   : > { %2656 = vst.msk [vmem:[#allocation3 + $0xb1] sm:$0xff] %vm380_vm5, %v2623_v33  ;;  %v2520_v3 = vadd.f32 %v2461_v54, %v2331_v29  ;;  %v2689_v54 = vld [vmem:[#allocation3 + $0xa8] sm:$0xff]  ;;  %v7369_v29 = vld [vmem:[#allocation9_spill] sm:$0xff] }
 0x2ec   : > { %v2742_v41 = vld [vmem:[#allocation3 + $0x22] sm:$0xff] }
 0x2ed   : > { %v2556_v28 = vmul.f32 %v6268_v26, %v2520_v3  ;;  %v2741_v3 = vld [vmem:[#allocation3 + $0x1a] sm:$0xff] }
 0x2ef   : > { %v2592_v48 = vadd.f32 %v6277_v60, %v2556_v28 }
 0x2f0   : > { %v2466_v45 = vpop.f32.mrf.mxu0  ;;  %v2274_v23 = vpop.f32.mrf.mxu3 }
 0x2f1   : > { %v2624_v36 = vmax.f32 %v2592_v48, 0.0  ;;  %v2332_v62 = vadd.f32 %v2274_v23, %v2139_v59 }
 0x2f2   : > { %v2722_v57 = vld [vmem:[#allocation3 + $0xb1] sm:$0xff] }
 0x2f3   : > { %v2690_v17 = vld [vmem:[#allocation3 + $0xb0] sm:$0xff]  ;;  %2657 = vst.msk [vmem:[#allocation3 + $0xc1] sm:$0xff] %vm380_vm5, %v2624_v36  ;;  %5147 = vmatmul.msk.bf16.vlgmr.msrb.gmra.mxu0 %vm380_vm5, %v6319_v1  ;;  %v2521_v51 = vadd.f32 %v2463_v14, %v2332_v62  ;;  %v2988_v19 = vpack.c.bf16 %v2722_v57, %v2721_v22  ;;  %v1952_v14 = vadd.f32 %v7368_v32, %v6107_v37  ;;  %v2744_v32 = vld [vmem:[#allocation3 + $0x3a] sm:$0xff] }
 0x2f4   : > { %v6430_v44 = vpack.c.bf16 %v2690_v17, %v2689_v54  ;;  %v6445_v37 = vpack.c.bf16 %v2742_v41, %v2741_v3  ;;  %v6463_v17 = vpop.f32.mrf.mxu1 }
 0x2f5   : > { %v2557_v11 = vmul.f32 %v6268_v26, %v2521_v51  ;;  %5106 = vmatmul.msk.bf16.gmra.mxu1 %vm380_vm5, %v2988_v19  ;;  %5131 = vmatmul.msk.bf16.vlgmr.msrb.gmra.mxu3 %vm380_vm5, %v3279_v46  ;;  %v2141_v2 = vadd.f32 %v7369_v29, %v1952_v14  ;;  %v7370_v51 = vld [vmem:[#allocation10_spill] sm:$0xff] }
 0x2f6   : > { %5122 = vmatmul.msk.bf16.gmra.mxu2 %vm380_vm5, %v6430_v44  ;;  %v1954_v19 = vadd.f32 %v7370_v51, %v6119_v31 }
 0x2f7   : > { %v2593_v40 = vadd.f32 %v6277_v60, %v2557_v11 }
 0x2f8   : > { %v2468_v8 = vpop.f32.mrf.mxu0  ;;  %v2277_v7 = vpop.f32.mrf.mxu3 }
 0x2f9   : > { %v2625_v0 = vmax.f32 %v2593_v40, 0.0  ;;  %v2333_v1 = vadd.f32 %v2277_v7, %v6103_v34 }
 0x2fa   : > { %v2723_v49 = vld [vmem:[#allocation3 + $0xc1] sm:$0xff] }
 0x2fb   : > { %2658 = vst.msk [vmem:[#allocation3 + $0xc9] sm:$0xff] %vm380_vm5, %v2625_v0  ;;  %v2522_v58 = vadd.f32 %v2466_v45, %v2333_v1  ;;  %v2691_v59 = vld [vmem:[#allocation3 + $0xc0] sm:$0xff]  ;;  %v2743_v1 = vld [vmem:[#allocation3 + $0x32] sm:$0xff] }
 0x2fd   : > { %v2558_v33 = vmul.f32 %v6268_v26, %v2522_v58 }
 0x2ff   : > { %v2594_v61 = vadd.f32 %v6277_v60, %v2558_v33  ;;  %v6471_v33 = vpop.f32.mrf.mxu2 }
 0x300   : > { %v2471_v50 = vpop.f32.mrf.mxu0  ;;  %v2279_v28 = vpop.f32.mrf.mxu3 }
 0x301   : > { %v2626_v21 = vmax.f32 %v2594_v61, 0.0  ;;  %v2334_v18 = vadd.f32 %v2279_v28, %v2141_v2 }
 0x302   : > { %v2724_v34 = vld [vmem:[#allocation3 + $0xc9] sm:$0xff] }
 0x303   : > { %v2692_v48 = vld [vmem:[#allocation3 + $0xc8] sm:$0xff]  ;;  %2659 = vst.msk [vmem:[#allocation3 + $0xd9] sm:$0xff] %vm380_vm5, %v2626_v21  ;;  %5148 = vmatmul.msk.bf16.gmra.mxu0 %vm380_vm5, %v6335_v52  ;;  %v2523_v45 = vadd.f32 %v2468_v8, %v2334_v18  ;;  %v6450_v23 = vpack.c.bf16 %v2724_v34, %v2723_v49 }
 0x304   : > { %v6452_v36 = vpack.c.bf16 %v2692_v48, %v2691_v59  ;;  %v7371_v8 = vld [vmem:[#allocation11_spill] sm:$0xff] }
 0x305   : > { %v2559_v62 = vmul.f32 %v6268_v26, %v2523_v45  ;;  %5107 = vmatmul.msk.bf16.gmra.mxu1 %vm380_vm5, %v6450_v23  ;;  %5132 = vmatmul.msk.bf16.gmra.mxu3 %vm380_vm5, %v6445_v37  ;;  %v2143_v7 = vadd.f32 %v7371_v8, %v1954_v19  ;;  %v7373_v19 = vld [vmem:[#allocation13_spill] sm:$0xff]  ;;  %v2745_v8 = vld [vmem:[#allocation3 + $0x4a] sm:$0xff] }
 0x306   : > { %5123 = vmatmul.msk.bf16.gmra.mxu2 %vm380_vm5, %v6452_v36 }
 0x307   : > { %v2595_v22 = vadd.f32 %v6277_v60, %v2559_v62 }
 0x308   : > { %v2473_v46 = vpop.f32.mrf.mxu0  ;;  %v2282_v52 = vpop.f32.mrf.mxu3 }
 0x309   : > { %v2627_v57 = vmax.f32 %v2595_v22, 0.0  ;;  %v2335_v54 = vadd.f32 %v2282_v52, %v6115_v25  ;;  %v7372_v52 = vld [vmem:[#allocation12_spill] sm:$0xff] }
 0x30a   : > { %v2725_v2 = vld [vmem:[#allocation3 + $0xd9] sm:$0xff] }
 0x30b   : > { %2660 = vst.msk [vmem:[#allocation3 + $0xe1] sm:$0xff] %vm380_vm5, %v2627_v57  ;;  %v2524_v11 = vadd.f32 %v2471_v50, %v2335_v54  ;;  %v2693_v3 = vld [vmem:[#allocation3 + $0xd8] sm:$0xff]  ;;  %v6473_v50 = vpack.c.bf16 %v2744_v32, %v2743_v1  ;;  %v1956_v57 = vadd.f32 %v7372_v52, %v6131_v9  ;;  %v7374_v52 = vld [vmem:[#allocation14_spill] sm:$0xff] }
 0x30d   : > { %v2560_v40 = vmul.f32 %v6268_v26, %v2524_v11  ;;  %v2145_v11 = vadd.f32 %v7373_v19, %v1956_v57  ;;  %v1958_v57 = vadd.f32 %v7374_v52, %v6143_v6  ;;  %v7375_v19 = vld [vmem:[#allocation15_spill] sm:$0xff] }
 0x30f   : > { %v2596_v0 = vadd.f32 %v6277_v60, %v2560_v40 }
 0x310   : > { %v2476_v14 = vpop.f32.mrf.mxu0  ;;  %v2284_v58 = vpop.f32.mrf.mxu3 }
 0x311   : > { %v2628_v25 = vmax.f32 %v2596_v0, 0.0  ;;  %v2336_v29 = vadd.f32 %v2284_v58, %v2143_v7  ;;  %v2746_v7 = vld [vmem:[#allocation3 + $0x52] sm:$0xff] }
 0x312   : > { %v3064_v61 = vpop.f32.mrf.mxu1  ;;  %v2726_v31 = vld [vmem:[#allocation3 + $0xe1] sm:$0xff] }
 0x313   : > { %v2694_v41 = vld [vmem:[#allocation3 + $0xe0] sm:$0xff]  ;;  %2661 = vst.msk [vmem:[#allocation3 + $0xf1] sm:$0xff] %vm380_vm5, %v2628_v25  ;;  %5149 = vmatmul.msk.bf16.gmra.mxu0 %vm380_vm5, %v6351_v43  ;;  %v2525_v28 = vadd.f32 %v2473_v46, %v2336_v29  ;;  %v6478_v21 = vpack.c.bf16 %v2726_v31, %v2725_v2  ;;  %v6501_v31 = vpack.c.bf16 %v2746_v7, %v2745_v8  ;;  %v2748_v7 = vld [vmem:[#allocation3 + $0x6a] sm:$0xff] }
 0x314   : > { %v6480_v18 = vpack.c.bf16 %v2694_v41, %v2693_v3  ;;  %v2747_v8 = vld [vmem:[#allocation3 + $0x62] sm:$0xff] }
 0x315   : > { %v2561_v49 = vmul.f32 %v6268_v26, %v2525_v28  ;;  %5108 = vmatmul.msk.bf16.gmra.mxu1 %vm380_vm5, %v6478_v21  ;;  %5133 = vmatmul.msk.bf16.gmra.mxu3 %vm380_vm5, %v6473_v50 }
 0x316   : > { %5124 = vmatmul.msk.bf16.gmra.mxu2 %vm380_vm5, %v6480_v18 }
 0x317   : > { %v2597_v34 = vadd.f32 %v6277_v60, %v2561_v49 }
 0x318   : > { %v2478_v59 = vpop.f32.mrf.mxu0  ;;  %v2287_v43 = vpop.f32.mrf.mxu3 }
 0x319   : > { %v2629_v48 = vmax.f32 %v2597_v34, 0.0  ;;  %v2337_v45 = vadd.f32 %v2287_v43, %v6127_v15  ;;  %v3204_v62 = vpop.f32.mrf.mxu2 }
 0x31a   : > { %v6491_v22 = vadd.f32 %v3204_v62, %v3064_v61  ;;  %v3066_v46 = vpop.f32.mrf.mxu1  ;;  %v2727_v25 = vld [vmem:[#allocation3 + $0xf1] sm:$0xff] }
 0x31b   : > { %2662 = vst.msk [vmem:[#allocation3 + $0xf9] sm:$0xff] %vm380_vm5, %v2629_v48  ;;  %v2526_v54 = vadd.f32 %v2476_v14, %v2337_v45  ;;  %v2695_v61 = vld [vmem:[#allocation3 + $0xf0] sm:$0xff] }
 0x31d   : > { %v2562_v51 = vmul.f32 %v6268_v26, %v2526_v54 }
 0x31f   : > { %v2598_v40 = vadd.f32 %v6277_v60, %v2562_v51 }
 0x320   : > { %v2481_v0 = vpop.f32.mrf.mxu0  ;;  %v2289_v15 = vpop.f32.mrf.mxu3 }
 0x321   : > { %v2630_v1 = vmax.f32 %v2598_v40, 0.0  ;;  %v2338_v32 = vadd.f32 %v2289_v15, %v2145_v11  ;;  %v3206_v58 = vpop.f32.mrf.mxu2  ;;  %v2147_v11 = vadd.f32 %v7375_v19, %v1958_v57 }
 0x322   : > { %v6499_v29 = vadd.f32 %v3206_v58, %v3066_v46  ;;  %v3069_v9 = vpop.f32.mrf.mxu1  ;;  %v2728_v2 = vld [vmem:[#allocation3 + $0xf9] sm:$0xff] }
 0x323   : > { %v2696_v14 = vld [vmem:[#allocation3 + $0xf8] sm:$0xff]  ;;  %2663 = vst.msk [vmem:[#allocation3 + $0x109] sm:$0xff] %vm380_vm5, %v2630_v1  ;;  %5150 = vmatmul.msk.bf16.gmra.mxu0 %vm380_vm5, %v6369_v13  ;;  %v2527_v3 = vadd.f32 %v2478_v59, %v2338_v32  ;;  %v6506_v41 = vpack.c.bf16 %v2728_v2, %v2727_v25 }
 0x324   : > { %v6508_v28 = vpack.c.bf16 %v2696_v14, %v2695_v61  ;;  %v6529_v14 = vpack.c.bf16 %v2748_v7, %v2747_v8  ;;  %v2749_v7 = vld [vmem:[#allocation3 + $0x7a] sm:$0xff] }
 0x325   : > { %v2563_v49 = vmul.f32 %v6268_v26, %v2527_v3  ;;  %5109 = vmatmul.msk.bf16.gmra.mxu1 %vm380_vm5, %v6506_v41  ;;  %5134 = vmatmul.msk.bf16.gmra.mxu3 %vm380_vm5, %v6501_v31 }
 0x326   : > { %5125 = vmatmul.msk.bf16.gmra.mxu2 %vm380_vm5, %v6508_v28 }
 0x327   : > { %v2599_v34 = vadd.f32 %v6277_v60, %v2563_v49 }
 0x328   : > { %v2483_v43 = vpop.f32.mrf.mxu0  ;;  %v2292_v13 = vpop.f32.mrf.mxu3 }
 0x329   : > { %v2631_v59 = vmax.f32 %v2599_v34, 0.0  ;;  %v2339_v48 = vadd.f32 %v2292_v13, %v6139_v12  ;;  %v3209_v45 = vpop.f32.mrf.mxu2 }
 0x32a   : > { %v6519_v62 = vadd.f32 %v3209_v45, %v3069_v9  ;;  %v3071_v46 = vpop.f32.mrf.mxu1  ;;  %v2729_v25 = vld [vmem:[#allocation3 + $0x109] sm:$0xff] }
 0x32b   : > { %2664 = vst.msk [vmem:[#allocation3 + $0x111] sm:$0xff] %vm380_vm5, %v2631_v59  ;;  %v2528_v54 = vadd.f32 %v2481_v0, %v2339_v48  ;;  %v2697_v61 = vld [vmem:[#allocation3 + $0x108] sm:$0xff] }
 0x32d   : > { %v2564_v51 = vmul.f32 %v6268_v26, %v2528_v54  ;;  %v1960_v54 = vadd.f32 %v6147_v38, %v6155_v42 }
 0x32f   : > { %v2600_v40 = vadd.f32 %v6277_v60, %v2564_v51 }
 0x330   : > { %v2486_v15 = vpop.f32.mrf.mxu0  ;;  %v2294_v12 = vpop.f32.mrf.mxu3 }
 0x331   : > { %v2632_v1 = vmax.f32 %v2600_v40, 0.0  ;;  %v2340_v32 = vadd.f32 %v2294_v12, %v2147_v11  ;;  %v3211_v58 = vpop.f32.mrf.mxu2  ;;  %v7376_v11 = vld [vmem:[#allocation16_spill] sm:$0xff]  ;;  %v2750_v12 = vld [vmem:[#allocation3 + $0x82] sm:$0xff] }
 0x332   : > { %v6527_v9 = vadd.f32 %v3211_v58, %v3071_v46  ;;  %v3074_v6 = vpop.f32.mrf.mxu1  ;;  %v2730_v2 = vld [vmem:[#allocation3 + $0x111] sm:$0xff]  ;;  %v2149_v40 = vadd.f32 %v7376_v11, %v1960_v54 }
 0x333   : > { %v2698_v0 = vld [vmem:[#allocation3 + $0x110] sm:$0xff]  ;;  %2665 = vst.msk [vmem:[#allocation3 + $0x121] sm:$0xff] %vm380_vm5, %v2632_v1  ;;  %5151 = vmatmul.msk.bf16.gmra.mxu0 %vm380_vm5, %v6388_v4  ;;  %v2529_v3 = vadd.f32 %v2483_v43, %v2340_v32  ;;  %v6534_v49 = vpack.c.bf16 %v2730_v2, %v2729_v25 }
 0x334   : > { %v6536_v34 = vpack.c.bf16 %v2698_v0, %v2697_v61  ;;  %v6557_v0 = vpack.c.bf16 %v2750_v12, %v2749_v7  ;;  %v2751_v12 = vld [vmem:[#allocation3 + $0x92] sm:$0xff] }
 0x335   : > { %v2565_v13 = vmul.f32 %v6268_v26, %v2529_v3  ;;  %5110 = vmatmul.msk.bf16.gmra.mxu1 %vm380_vm5, %v6534_v49  ;;  %5135 = vmatmul.msk.bf16.gmra.mxu3 %vm380_vm5, %v6529_v14 }
 0x336   : > { %5126 = vmatmul.msk.bf16.gmra.mxu2 %vm380_vm5, %v6536_v34 }
 0x337   : > { %v2601_v59 = vadd.f32 %v6277_v60, %v2565_v13 }
 0x338   : > { %v2488_v48 = vpop.f32.mrf.mxu0  ;;  %v2297_v4 = vpop.f32.mrf.mxu3 }
 0x339   : > { %v2633_v43 = vmax.f32 %v2601_v59, 0.0  ;;  %v2341_v45 = vadd.f32 %v2297_v4, %v6151_v10  ;;  %v3214_v46 = vpop.f32.mrf.mxu2 }
 0x33a   : > { %v6547_v52 = vadd.f32 %v3214_v46, %v3074_v6  ;;  %v3076_v57 = vpop.f32.mrf.mxu1  ;;  %v2731_v6 = vld [vmem:[#allocation3 + $0x121] sm:$0xff] }
 0x33b   : > { %2666 = vst.msk [vmem:[#allocation3 + $0x129] sm:$0xff] %vm380_vm5, %v2633_v43  ;;  %v2530_v51 = vadd.f32 %v2486_v15, %v2341_v45  ;;  %v2699_v61 = vld [vmem:[#allocation3 + $0x120] sm:$0xff] }
 0x33d   : > { %v2566_v19 = vmul.f32 %v6268_v26, %v2530_v51 }
 0x33f   : > { %v2602_v8 = vadd.f32 %v6277_v60, %v2566_v19  ;;  %v1962_v19 = vadd.f32 %v6159_v27, %v6167_v5 }
 0x340   : > { %v2491_v1 = vpop.f32.mrf.mxu0  ;;  %v2299_v10 = vpop.f32.mrf.mxu3 }
 0x341   : > { %v2634_v32 = vmax.f32 %v2602_v8, 0.0  ;;  %v2342_v58 = vadd.f32 %v2299_v10, %v2149_v40  ;;  %v3216_v25 = vpop.f32.mrf.mxu2  ;;  %v2151_v8 = vadd.f32 %v6161_v56, %v1962_v19  ;;  %v2752_v10 = vld [vmem:[#allocation3 + $0x9a] sm:$0xff] }
 0x342   : > { %v6555_v2 = vadd.f32 %v3216_v25, %v3076_v57  ;;  %v3079_v38 = vpop.f32.mrf.mxu1  ;;  %v2732_v42 = vld [vmem:[#allocation3 + $0x129] sm:$0xff] }
 0x343   : > { %v2700_v15 = vld [vmem:[#allocation3 + $0x128] sm:$0xff]  ;;  %2667 = vst.msk [vmem:[#allocation3 + $0x139] sm:$0xff] %vm380_vm5, %v2634_v32  ;;  %5152 = vmatmul.msk.bf16.gmra.mxu0 %vm380_vm5, %v6410_v16  ;;  %v2531_v3 = vadd.f32 %v2488_v48, %v2342_v58  ;;  %v6562_v13 = vpack.c.bf16 %v2732_v42, %v2731_v6 }
 0x344   : > { %v6564_v59 = vpack.c.bf16 %v2700_v15, %v2699_v61  ;;  %v6585_v15 = vpack.c.bf16 %v2752_v10, %v2751_v12  ;;  %v2753_v10 = vld [vmem:[#allocation3 + $0xaa] sm:$0xff] }
 0x345   : > { %v2567_v4 = vmul.f32 %v6268_v26, %v2531_v3  ;;  %5111 = vmatmul.msk.bf16.gmra.mxu1 %vm380_vm5, %v6562_v13  ;;  %5136 = vmatmul.msk.bf16.gmra.mxu3 %vm380_vm5, %v6557_v0 }
 0x346   : > { %5127 = vmatmul.msk.bf16.gmra.mxu2 %vm380_vm5, %v6564_v59 }
 0x347   : > { %v2603_v43 = vadd.f32 %v6277_v60, %v2567_v4 }
 0x348   : > { %v2493_v45 = vpop.f32.mrf.mxu0  ;;  %v2302_v16 = vpop.f32.mrf.mxu3 }
 0x349   : > { %v2635_v48 = vmax.f32 %v2603_v43, 0.0  ;;  %v2343_v46 = vadd.f32 %v2302_v16, %v6163_v39  ;;  %v3219_v57 = vpop.f32.mrf.mxu2 }
 0x34a   : > { %v6575_v54 = vadd.f32 %v3219_v57, %v3079_v38  ;;  %v3081_v51 = vpop.f32.mrf.mxu1  ;;  %v2733_v38 = vld [vmem:[#allocation3 + $0x139] sm:$0xff] }
 0x34b   : > { %2668 = vst.msk [vmem:[#allocation3 + $0x141] sm:$0xff] %vm380_vm5, %v2635_v48  ;;  %v2532_v11 = vadd.f32 %v2491_v1, %v2343_v46  ;;  %v2701_v61 = vld [vmem:[#allocation3 + $0x138] sm:$0xff] }
 0x34d   : > { %v2568_v40 = vmul.f32 %v6268_v26, %v2532_v11  ;;  %v1964_v11 = vadd.f32 %v6187_v30, %v6199_v35 }
 0x34f   : > { %v2604_v7 = vadd.f32 %v6277_v60, %v2568_v40 }
 0x350   : > { %v2496_v32 = vpop.f32.mrf.mxu0  ;;  %v2304_v39 = vpop.f32.mrf.mxu3 }
 0x351   : > { %v2636_v58 = vmax.f32 %v2604_v7, 0.0  ;;  %v2344_v25 = vadd.f32 %v2304_v39, %v2151_v8  ;;  %v3221_v6 = vpop.f32.mrf.mxu2  ;;  %v2153_v7 = vadd.f32 %v6194_v24, %v1964_v11  ;;  %v2754_v39 = vld [vmem:[#allocation3 + $0xb2] sm:$0xff] }
 0x352   : > { %v6583_v42 = vadd.f32 %v3221_v6, %v3081_v51  ;;  %v3084_v27 = vpop.f32.mrf.mxu1  ;;  %v2734_v5 = vld [vmem:[#allocation3 + $0x141] sm:$0xff] }
 0x353   : > { %v2702_v1 = vld [vmem:[#allocation3 + $0x140] sm:$0xff]  ;;  %2669 = vst.msk [vmem:[#allocation3 + $0x151] sm:$0xff] %vm380_vm5, %v2636_v58  ;;  %5153 = vmatmul.msk.bf16.gmra.mxu0 %vm380_vm5, %v6430_v44  ;;  %v2533_v56 = vadd.f32 %v2493_v45, %v2344_v25  ;;  %v6590_v3 = vpack.c.bf16 %v2734_v5, %v2733_v38 }
 0x354   : > { %v6592_v4 = vpack.c.bf16 %v2702_v1, %v2701_v61  ;;  %v6613_v1 = vpack.c.bf16 %v2754_v39, %v2753_v10  ;;  %v7377_v10 = vld [vmem:[#allocation17_spill] sm:$0xff] }
 0x355   : > { %v2569_v43 = vmul.f32 %v6268_v26, %v2533_v56  ;;  %5112 = vmatmul.msk.bf16.gmra.mxu1 %vm380_vm5, %v6590_v3  ;;  %5137 = vmatmul.msk.bf16.gmra.mxu3 %vm380_vm5, %v6585_v15  ;;  %v1966_v39 = vadd.f32 %v6404_v63, %v7377_v10  ;;  %v4429_v63 = vld [vmem:[%s7340_s6 + $0x20] sm:$0xf] }
 0x356   : > { %5128 = vmatmul.msk.bf16.gmra.mxu2 %vm380_vm5, %v6592_v4 }
 0x357   : > { %v2605_v16 = vadd.f32 %v6277_v60, %v2569_v43 }
 0x358   : > { %v2498_v48 = vpop.f32.mrf.mxu0  ;;  %v2307_v44 = vpop.f32.mrf.mxu3 }
 0x359   : > { %v2637_v45 = vmax.f32 %v2605_v16, 0.0  ;;  %v2345_v46 = vadd.f32 %v2307_v44, %v6185_v55  ;;  %v3224_v57 = vpop.f32.mrf.mxu2  ;;  %v4051_v16 = vld [vmem:[%s7340_s6 + $0x18] sm:$0xf] }
 0x35a   : > { %v6603_v51 = vadd.f32 %v3224_v57, %v3084_v27  ;;  %v3086_v19 = vpop.f32.mrf.mxu1  ;;  %v2735_v27 = vld [vmem:[#allocation3 + $0x151] sm:$0xff]  ;;  %v4101_v44 = vsel %vm3046_vm4, %v4051_v16, 0  ;;  %v4240_v57 = vld [vmem:[%s7340_s6 + $0x1c] sm:$0xf] }
 0x35b   : > { %2670 = vst.msk [vmem:[#allocation3 + $0x159] sm:$0xff] %vm380_vm5, %v2637_v45  ;;  %v2534_v40 = vadd.f32 %v2496_v32, %v2345_v46  ;;  %v2703_v61 = vld [vmem:[#allocation3 + $0x150] sm:$0xff]  ;;  %4110 = vmatpush.bf16.msra.mxu3 %v4101_v44 }
 0x35d   : > { %v2570_v8 = vmul.f32 %v6268_v26, %v2534_v40 }
 0x35f   : > { %v2606_v12 = vadd.f32 %v6277_v60, %v2570_v8  ;;  %v4290_v8 = vsel %vm3046_vm4, %v4240_v57, 0 }
 0x360   : > { %v2501_v58 = vpop.f32.mrf.mxu0  ;;  %v2309_v55 = vpop.f32.mrf.mxu3  ;;  %4299 = vmatpush.bf16.msra.mxu0 %v4290_v8 }
 0x361   : > { %v2638_v25 = vmax.f32 %v2606_v12, 0.0  ;;  %v2346_v6 = vadd.f32 %v2309_v55, %v2153_v7  ;;  %v3226_v38 = vpop.f32.mrf.mxu2 }
 0x362   : > { %v6611_v5 = vadd.f32 %v3226_v38, %v3086_v19  ;;  %v3089_v30 = vpop.f32.mrf.mxu1  ;;  %v2736_v35 = vld [vmem:[#allocation3 + $0x159] sm:$0xff]  ;;  %v5283_v38 = vld [vmem:[%s7339_s5] ss:$0 sm:$0xff] }
 0x363   : > { %v2704_v32 = vld [vmem:[#allocation3 + $0x158] sm:$0xff]  ;;  %2671 = vst.msk [vmem:[#allocation3 + $0x169] sm:$0xff] %vm380_vm5, %v2638_v25  ;;  %5154 = vmatmul.msk.bf16.gmra.mxu0 %vm380_vm5, %v6452_v36  ;;  %v2535_v24 = vadd.f32 %v2498_v48, %v2346_v6  ;;  %v6618_v56 = vpack.c.bf16 %v2736_v35, %v2735_v27  ;;  %v2155_v6 = vadd.f32 %v6406_v53, %v1966_v39  ;;  %v2756_v35 = vld [vmem:[#allocation3 + $0xca] sm:$0xff] }
 0x364   : > { %v6620_v43 = vpack.c.bf16 %v2704_v32, %v2703_v61 }
 0x365   : > { %v2571_v45 = vmul.f32 %v6268_v26, %v2535_v24  ;;  %5113 = vmatmul.msk.bf16.gmra.mxu1 %vm380_vm5, %v6618_v56  ;;  %5138 = vmatmul.msk.bf16.gmra.mxu3 %vm380_vm5, %v6613_v1  ;;  %v4686_v26 = vld [vmem:[%s7342_s8] sm:$0x3] }
 0x366   : > { %5129 = vmatmul.msk.bf16.gmra.mxu2 %vm380_vm5, %v6620_v43  ;;  %v4736_v7 = vsel %vm970_vm0, %v4686_v26, 0 }
 0x367   : > { %v2607_v36 = vadd.f32 %v6277_v60, %v2571_v45  ;;  %4745 = vmatpush.bf16.msra.mxu2 %v4736_v7  ;;  %v4479_v45 = vsel %vm3046_vm4, %v4429_v63, 0  ;;  %v2804_v63 = vld [vmem:[#allocation3 + $0x21] sm:$0xff] }
 0x368   : > { %v2503_v48 = vpop.f32.mrf.mxu0  ;;  %v2312_v46 = vpop.f32.mrf.mxu3  ;;  %4488 = vmatpush.bf16.msra.mxu1 %v4479_v45 }
 0x369   : > { %v2639_v19 = vmax.f32 %v2607_v36, 0.0  ;;  %v2347_v11 = vadd.f32 %v2312_v46, %v6241_v47  ;;  %v3229_v40 = vpop.f32.mrf.mxu2  ;;  %v5282_v47 = vld [vmem:[%s7338_s4] ss:$0 sm:$0xff] }
 0x36a   : > { %v6643_v12 = vadd.f32 %v3229_v40, %v3089_v30  ;;  %v3091_v60 = vpop.f32.mrf.mxu1  ;;  %v2755_v30 = vld [vmem:[#allocation3 + $0xc2] sm:$0xff] }
 0x36b   : > { %2672 = vst.msk [vmem:[#allocation3 + $0x171] sm:$0xff] %vm380_vm5, %v2639_v19  ;;  %v2536_v55 = vadd.f32 %v2501_v58, %v2347_v11  ;;  %v2737_v44 = vld [vmem:[#allocation3 + $0x169] sm:$0xff]  ;;  %v6661_v19 = vpack.c.bf16 %v2756_v35, %v2755_v30 }
 0x36c   : > { %v2705_v57 = vld [vmem:[#allocation3 + $0x168] sm:$0xff] }
 0x36d   : > { %v2572_v25 = vmul.f32 %v5282_v47, %v2536_v55 }
 0x36f   : > { %v2608_v27 = vadd.f32 %v5283_v38, %v2572_v25 }
 0x370   : > { %v3545_v61 = vpop.f32.mrf.mxu0  ;;  %v2314_v32 = vpop.f32.mrf.mxu3 }
 0x371   : > { %v2640_v58 = vmax.f32 %v2608_v27, 0.0  ;;  %v2348_v24 = vadd.f32 %v2314_v32, %v2155_v6  ;;  %v3231_v16 = vpop.f32.mrf.mxu2  ;;  %v3202_v27 = vadd.f32 %v6471_v33, %v6463_v17  ;;  %v2757_v32 = vld [vmem:[#allocation3 + $0xda] sm:$0xff] }
 0x372   : > { %v6659_v53 = vadd.f32 %v3231_v16, %v3091_v60  ;;  %v3094_v36 = vpop.f32.mrf.mxu1  ;;  %v2738_v46 = vld [vmem:[#allocation3 + $0x171] sm:$0xff] }
 0x373   : > { %v2706_v26 = vld [vmem:[#allocation3 + $0x170] sm:$0xff]  ;;  %2673 = vst.msk [vmem:[#allocation3 + $0x181] sm:$0xff] %vm380_vm5, %v2640_v58  ;;  %5155 = vmatmul.msk.bf16.gmra.mxu0 %vm380_vm5, %v6480_v18  ;;  %v2537_v11 = vadd.f32 %v2503_v48, %v2348_v24  ;;  %v6666_v40 = vpack.c.bf16 %v2738_v46, %v2737_v44  ;;  %v2803_v44 = vld [vmem:[#allocation3 + $0x19] sm:$0xff] }
 0x374   : > { %v6668_v8 = vpack.c.bf16 %v2706_v26, %v2705_v57 }
 0x375   : > { %7378 = vst [vmem:[#allocation4_spill] sm:$0xff] %v6666_v40  ;;  %v2573_v7 = vmul.f32 %v5282_v47, %v2537_v11  ;;  %5114 = vmatmul.msk.bf16.gmra.mxu1 %vm380_vm5, %v6666_v40  ;;  %5139 = vmatmul.msk.bf16.gmra.mxu3 %vm380_vm5, %v6661_v19 }
 0x376   : > { %5130 = vmatmul.msk.bf16.gmra.mxu2 %vm380_vm5, %v6668_v8 }
 0x377   : > { %v2609_v60 = vadd.f32 %v5283_v38, %v2573_v7  ;;  %v2758_v38 = vld [vmem:[#allocation3 + $0xe2] sm:$0xff] }
 0x378   : > { %v3547_v10 = vpop.f32.mrf.mxu0  ;;  %v3356_v39 = vpop.f32.mrf.mxu3  ;;  %v6688_v45 = vpack.c.bf16 %v2758_v38, %v2757_v32 }
 0x379   : > { %v2641_v55 = vmax.f32 %v2609_v60, 0.0  ;;  %v3234_v18 = vpop.f32.mrf.mxu2  ;;  %v3436_v48 = vadd.f32 %v3356_v39, %v6422_v20  ;;  %v2760_v39 = vld [vmem:[#allocation3 + $0xfa] sm:$0xff] }
 0x37a   : > { %v6677_v25 = vadd.f32 %v3234_v18, %v3094_v36  ;;  %v3096_v6 = vpop.f32.mrf.mxu1 }
 0x37b   : > { %2674 = vst.msk [vmem:[#allocation3 + $0x189] sm:$0xff] %vm380_vm5, %v2641_v55  ;;  %v6680_v47 = vadd.f32 %v3545_v61, %v3436_v48  ;;  %v3657_v61 = vpack.c.bf16 %v2804_v63, %v2803_v44  ;;  %v2806_v55 = vld [vmem:[#allocation3 + $0x39] sm:$0xff] }
 0x380   : > { %v3550_v30 = vpop.f32.mrf.mxu0  ;;  %v3358_v35 = vpop.f32.mrf.mxu3 }
 0x381   : > { %v3236_v58 = vpop.f32.mrf.mxu2  ;;  %v3437_v24 = vadd.f32 %v3358_v35, %v3202_v27  ;;  %v2805_v27 = vld [vmem:[#allocation3 + $0x31] sm:$0xff] }
 0x382   : > { %v6684_v16 = vadd.f32 %v3236_v58, %v3096_v6  ;;  %v3099_v20 = vpop.f32.mrf.mxu1  ;;  %v6709_v35 = vpack.c.bf16 %v2806_v55, %v2805_v27 }
 0x383   : > { %5156 = vmatmul.msk.bf16.gmra.mxu0 %vm380_vm5, %v6508_v28  ;;  %v6690_v36 = vadd.f32 %v3547_v10, %v3437_v24  ;;  %v2759_v10 = vld [vmem:[#allocation3 + $0xf2] sm:$0xff] }
 0x385   : > { %5140 = vmatmul.msk.bf16.gmra.mxu3 %vm380_vm5, %v6688_v45  ;;  %5163 = vmatmul.msk.bf16.vlgmr.msrb.gmra.mxu1 %vm380_vm5, %v3657_v61  ;;  %v2761_v61 = vld [vmem:[#allocation3 + $0x10a] sm:$0xff] }
 0x386   : > { %5179 = vmatmul.msk.bf16.vlgmr.msrb.gmra.mxu2 %vm380_vm5, %v6445_v37 }
 0x388   : > { %v3552_v17 = vpop.f32.mrf.mxu0  ;;  %v3361_v33 = vpop.f32.mrf.mxu3 }
 0x389   : > { %v3239_v46 = vpop.f32.mrf.mxu2  ;;  %v3438_v57 = vadd.f32 %v3361_v33, %v6491_v22  ;;  %v6707_v22 = vpack.c.bf16 %v2760_v39, %v2759_v10  ;;  %v2808_v33 = vld [vmem:[#allocation3 + $0x51] sm:$0xff] }
 0x38a   : > { %v6698_v26 = vadd.f32 %v3239_v46, %v3099_v20  ;;  %v3101_v28 = vpop.f32.mrf.mxu1 }
 0x38b   : > { %v6700_v11 = vadd.f32 %v3550_v30, %v3438_v57 }
 0x390   : > { %v3555_v7 = vpop.f32.mrf.mxu0  ;;  %v3363_v60 = vpop.f32.mrf.mxu3 }
 0x391   : > { %v3241_v18 = vpop.f32.mrf.mxu2  ;;  %v3439_v48 = vadd.f32 %v3363_v60, %v6499_v29  ;;  %v2807_v60 = vld [vmem:[#allocation3 + $0x49] sm:$0xff] }
 0x392   : > { %v6703_v6 = vadd.f32 %v3241_v18, %v3101_v28  ;;  %v3104_v37 = vpop.f32.mrf.mxu1  ;;  %v6731_v10 = vpack.c.bf16 %v2808_v33, %v2807_v60 }
 0x393   : > { %5157 = vmatmul.msk.bf16.gmra.mxu0 %vm380_vm5, %v6536_v34  ;;  %v6711_v30 = vadd.f32 %v3552_v17, %v3439_v48  ;;  %v2762_v17 = vld [vmem:[#allocation3 + $0x112] sm:$0xff] }
 0x395   : > { %5141 = vmatmul.msk.bf16.gmra.mxu3 %vm380_vm5, %v6707_v22  ;;  %5164 = vmatmul.msk.bf16.gmra.mxu1 %vm380_vm5, %v6709_v35 }
 0x396   : > { %5180 = vmatmul.msk.bf16.gmra.mxu2 %vm380_vm5, %v6473_v50 }
 0x398   : > { %v3557_v29 = vpop.f32.mrf.mxu0  ;;  %v3366_v32 = vpop.f32.mrf.mxu3 }
 0x399   : > { %v3244_v38 = vpop.f32.mrf.mxu2  ;;  %v3440_v34 = vadd.f32 %v3366_v32, %v6519_v62  ;;  %v6729_v62 = vpack.c.bf16 %v2762_v17, %v2761_v61  ;;  %v2763_v32 = vld [vmem:[#allocation3 + $0x122] sm:$0xff] }
 0x39a   : > { %v6720_v63 = vadd.f32 %v3244_v38, %v3104_v37  ;;  %v3106_v58 = vpop.f32.mrf.mxu1  ;;  %v2764_v38 = vld [vmem:[#allocation3 + $0x12a] sm:$0xff]  ;;  %v2809_v17 = vld [vmem:[#allocation3 + $0x61] sm:$0xff] }
 0x39b   : > { %v6722_v24 = vadd.f32 %v3555_v7, %v3440_v34  ;;  %v2810_v34 = vld [vmem:[#allocation3 + $0x69] sm:$0xff] }
 0x39c   : > { %v6753_v33 = vpack.c.bf16 %v2810_v34, %v2809_v17 }
 0x3a0   : > { %v3560_v20 = vpop.f32.mrf.mxu0  ;;  %v3368_v44 = vpop.f32.mrf.mxu3 }
 0x3a1   : > { %v3246_v46 = vpop.f32.mrf.mxu2  ;;  %v3441_v57 = vadd.f32 %v3368_v44, %v6527_v9 }
 0x3a2   : > { %v6725_v28 = vadd.f32 %v3246_v46, %v3106_v58  ;;  %v3109_v50 = vpop.f32.mrf.mxu1 }
 0x3a3   : > { %5158 = vmatmul.msk.bf16.gmra.mxu0 %vm380_vm5, %v6564_v59  ;;  %v6733_v7 = vadd.f32 %v3557_v29, %v3441_v57 }
 0x3a5   : > { %5142 = vmatmul.msk.bf16.gmra.mxu3 %vm380_vm5, %v6729_v62  ;;  %5165 = vmatmul.msk.bf16.gmra.mxu1 %vm380_vm5, %v6731_v10 }
 0x3a6   : > { %5181 = vmatmul.msk.bf16.gmra.mxu2 %vm380_vm5, %v6501_v31 }
 0x3a8   : > { %v3562_v9 = vpop.f32.mrf.mxu0  ;;  %v3371_v39 = vpop.f32.mrf.mxu3 }
 0x3a9   : > { %v3249_v55 = vpop.f32.mrf.mxu2  ;;  %v3442_v59 = vadd.f32 %v3371_v39, %v6547_v52  ;;  %v6751_v52 = vpack.c.bf16 %v2764_v38, %v2763_v32 }
 0x3aa   : > { %v6742_v18 = vadd.f32 %v3249_v55, %v3109_v50  ;;  %v3111_v48 = vpop.f32.mrf.mxu1 }
 0x3ab   : > { %v6744_v37 = vadd.f32 %v3560_v20, %v3442_v59  ;;  %v2765_v59 = vld [vmem:[#allocation3 + $0x13a] sm:$0xff] }
 0x3b0   : > { %v3565_v27 = vpop.f32.mrf.mxu0  ;;  %v3373_v29 = vpop.f32.mrf.mxu3 }
 0x3b1   : > { %v3251_v58 = vpop.f32.mrf.mxu2  ;;  %v3443_v44 = vadd.f32 %v3373_v29, %v6555_v2  ;;  %v2812_v29 = vld [vmem:[#allocation3 + $0x81] sm:$0xff] }
 0x3b2   : > { %v6747_v61 = vadd.f32 %v3251_v58, %v3111_v48  ;;  %v3114_v31 = vpop.f32.mrf.mxu1  ;;  %v2766_v48 = vld [vmem:[#allocation3 + $0x142] sm:$0xff]  ;;  %v2811_v58 = vld [vmem:[#allocation3 + $0x79] sm:$0xff] }
 0x3b3   : > { %5159 = vmatmul.msk.bf16.gmra.mxu0 %vm380_vm5, %v6592_v4  ;;  %v6755_v20 = vadd.f32 %v3562_v9, %v3443_v44  ;;  %v6775_v44 = vpack.c.bf16 %v2812_v29, %v2811_v58  ;;  %v2813_v58 = vld [vmem:[#allocation3 + $0x91] sm:$0xff] }
 0x3b5   : > { %5143 = vmatmul.msk.bf16.gmra.mxu3 %vm380_vm5, %v6751_v52  ;;  %5166 = vmatmul.msk.bf16.gmra.mxu1 %vm380_vm5, %v6753_v33 }
 0x3b6   : > { %5182 = vmatmul.msk.bf16.gmra.mxu2 %vm380_vm5, %v6529_v14 }
 0x3b8   : > { %v3567_v2 = vpop.f32.mrf.mxu0  ;;  %v3376_v46 = vpop.f32.mrf.mxu3 }
 0x3b9   : > { %v3254_v57 = vpop.f32.mrf.mxu2  ;;  %v3444_v4 = vadd.f32 %v3376_v46, %v6575_v54  ;;  %v6773_v54 = vpack.c.bf16 %v2766_v48, %v2765_v59  ;;  %v2768_v59 = vld [vmem:[#allocation3 + $0x15a] sm:$0xff] }
 0x3ba   : > { %v6764_v50 = vadd.f32 %v3254_v57, %v3114_v31  ;;  %v3116_v60 = vpop.f32.mrf.mxu1  ;;  %v2814_v48 = vld [vmem:[#allocation3 + $0x99] sm:$0xff] }
 0x3bb   : > { %v6766_v39 = vadd.f32 %v3565_v27, %v3444_v4 }
 0x3c0   : > { %v3570_v9 = vpop.f32.mrf.mxu0  ;;  %v3378_v55 = vpop.f32.mrf.mxu3 }
 0x3c1   : > { %v3256_v32 = vpop.f32.mrf.mxu2  ;;  %v3445_v38 = vadd.f32 %v3378_v55, %v6583_v42  ;;  %v2767_v55 = vld [vmem:[#allocation3 + $0x152] sm:$0xff] }
 0x3c2   : > { %v6769_v34 = vadd.f32 %v3256_v32, %v3116_v60  ;;  %v3119_v14 = vpop.f32.mrf.mxu1 }
 0x3c3   : > { %5160 = vmatmul.msk.bf16.gmra.mxu0 %vm380_vm5, %v6620_v43  ;;  %v6777_v27 = vadd.f32 %v3567_v2, %v3445_v38 }
 0x3c5   : > { %5144 = vmatmul.msk.bf16.gmra.mxu3 %vm380_vm5, %v6773_v54  ;;  %5167 = vmatmul.msk.bf16.gmra.mxu1 %vm380_vm5, %v6775_v44 }
 0x3c6   : > { %5183 = vmatmul.msk.bf16.gmra.mxu2 %vm380_vm5, %v6557_v0 }
 0x3c8   : > { %v3572_v42 = vpop.f32.mrf.mxu0  ;;  %v3381_v31 = vpop.f32.mrf.mxu3 }
 0x3c9   : > { %v3259_v17 = vpop.f32.mrf.mxu2  ;;  %v3446_v43 = vadd.f32 %v3381_v31, %v6603_v51  ;;  %v6795_v51 = vpack.c.bf16 %v2768_v59, %v2767_v55  ;;  %v2816_v55 = vld [vmem:[#allocation3 + $0xb1] sm:$0xff] }
 0x3ca   : > { %v6786_v46 = vadd.f32 %v3259_v17, %v3119_v14  ;;  %v3121_v57 = vpop.f32.mrf.mxu1  ;;  %v6797_v14 = vpack.c.bf16 %v2814_v48, %v2813_v58  ;;  %v2801_v48 = vld [vmem:[#allocation3 + $0x180] sm:$0xff]  ;;  %v2770_v58 = vld [vmem:[#allocation3 + $0x172] sm:$0xff] }
 0x3cb   : > { %v6788_v4 = vadd.f32 %v3570_v9, %v3446_v43  ;;  %7379 = vst [vmem:[#allocation5_spill] sm:$0xff] %v6795_v51 }
 0x3d0   : > { %v3575_v2 = vpop.f32.mrf.mxu0  ;;  %v3383_v60 = vpop.f32.mrf.mxu3 }
 0x3d1   : > { %v3261_v29 = vpop.f32.mrf.mxu2  ;;  %v3447_v32 = vadd.f32 %v3383_v60, %v6611_v5 }
 0x3d2   : > { %v6791_v38 = vadd.f32 %v3261_v29, %v3121_v57  ;;  %v3124_v0 = vpop.f32.mrf.mxu1 }
 0x3d3   : > { %5161 = vmatmul.msk.bf16.gmra.mxu0 %vm380_vm5, %v6668_v8  ;;  %v6799_v9 = vadd.f32 %v3572_v42, %v3447_v32  ;;  %v2802_v42 = vld [vmem:[#allocation3 + $0x188] sm:$0xff] }
 0x3d4   : > { %v2769_v32 = vld [vmem:[#allocation3 + $0x16a] sm:$0xff]  ;;  %v6812_v40 = vpack.c.bf16 %v2802_v42, %v2801_v48 }
 0x3d5   : > { %7380 = vst [vmem:[#allocation6_spill] sm:$0xff] %v6799_v9  ;;  %5145 = vmatmul.msk.bf16.gmra.mxu3 %vm380_vm5, %v6795_v51  ;;  %5168 = vmatmul.msk.bf16.gmra.mxu1 %vm380_vm5, %v6797_v14 }
 0x3d6   : > { %5184 = vmatmul.msk.bf16.gmra.mxu2 %vm380_vm5, %v6585_v15  ;;  %7381 = vst [vmem:[#allocation7_spill] sm:$0xff] %v6812_v40 }
 0x3d8   : > { %v3577_v5 = vpop.f32.mrf.mxu0  ;;  %v3386_v31 = vpop.f32.mrf.mxu3 }
 0x3d9   : > { %v3264_v17 = vpop.f32.mrf.mxu2  ;;  %v3448_v8 = vadd.f32 %v3386_v31, %v6643_v12 }
 0x3da   : > { %v6808_v43 = vadd.f32 %v3264_v17, %v3124_v0  ;;  %v3126_v57 = vpop.f32.mrf.mxu1  ;;  %v2815_v0 = vld [vmem:[#allocation3 + $0xa9] sm:$0xff] }
 0x3db   : > { %v6810_v60 = vadd.f32 %v3575_v2, %v3448_v8  ;;  %v6819_v2 = vpack.c.bf16 %v2770_v58, %v2769_v32  ;;  %v6821_v31 = vpack.c.bf16 %v2816_v55, %v2815_v0  ;;  %v2869_v32 = vld [vmem:[#allocation3 + $0x38] sm:$0xff] }
 0x3e0   : > { %v3580_v59 = vpop.f32.mrf.mxu0  ;;  %v3388_v29 = vpop.f32.mrf.mxu3 }
 0x3e1   : > { %v3266_v15 = vpop.f32.mrf.mxu2  ;;  %v3449_v9 = vadd.f32 %v3388_v29, %v6659_v53 }
 0x3e2   : > { %v6815_v51 = vadd.f32 %v3266_v15, %v3126_v57  ;;  %v3129_v12 = vpop.f32.mrf.mxu1 }
 0x3e3   : > { %5162 = vmatmul.msk.bf16.gmra.mxu0 %vm380_vm5, %v6812_v40  ;;  %v6823_v17 = vadd.f32 %v3577_v5, %v3449_v9 }
 0x3e5   : > { %7382 = vst [vmem:[#allocation8_spill] sm:$0xff] %v6823_v17  ;;  %5146 = vmatmul.msk.bf16.gmra.mxu3 %vm380_vm5, %v6819_v2  ;;  %5169 = vmatmul.msk.bf16.gmra.mxu1 %vm380_vm5, %v6821_v31 }
 0x3e6   : > { %5185 = vmatmul.msk.bf16.gmra.mxu2 %vm380_vm5, %v6613_v1  ;;  %v2868_v1 = vld [vmem:[#allocation3 + $0x30] sm:$0xff] }
 0x3e7   : > { %v4035_v17 = vpack.c.bf16 %v2869_v32, %v2868_v1 }
 0x3e8   : > { %v3582_v53 = vpop.f32.mrf.mxu0  ;;  %v3391_v8 = vpop.f32.mrf.mxu3 }
 0x3e9   : > { %v3269_v57 = vpop.f32.mrf.mxu2  ;;  %v3450_v42 = vadd.f32 %v3391_v8, %v6677_v25 }
 0x3ea   : > { %v6832_v48 = vadd.f32 %v3269_v57, %v3129_v12  ;;  %v3131_v55 = vpop.f32.mrf.mxu1 }
 0x3eb   : > { %v6834_v29 = vadd.f32 %v3580_v59, %v3450_v42 }
 0x3f0   : > { %v3585_v9 = vpop.f32.mrf.mxu0  ;;  %v3393_v5 = vpop.f32.mrf.mxu3 }
 0x3f1   : > { %v3271_v58 = vpop.f32.mrf.mxu2  ;;  %v3451_v15 = vadd.f32 %v3393_v5, %v6684_v16  ;;  %v2871_v5 = vld [vmem:[#allocation3 + $0x50] sm:$0xff] }
 0x3f2   : > { %v6837_v0 = vadd.f32 %v3271_v58, %v3131_v55  ;;  %v3134_v40 = vpop.f32.mrf.mxu1 }
 0x3f3   : > { %5211 = vmatmul.msk.bf16.vlgmr.msra.gmra.mxu0 %vm380_vm5, %v6709_v35  ;;  %v6841_v25 = vadd.f32 %v3582_v53, %v3451_v15 }
 0x3f5   : > { %5170 = vmatmul.msk.bf16.gmra.mxu1 %vm380_vm5, %v6450_v23  ;;  %5195 = vmatmul.msk.bf16.vlgmr.msra.gmra.mxu3 %vm380_vm5, %v4035_v17 }
 0x3f6   : > { %5186 = vmatmul.msk.bf16.gmra.mxu2 %vm380_vm5, %v6661_v19  ;;  %v2870_v19 = vld [vmem:[#allocation3 + $0x48] sm:$0xff] }
 0x3f8   : > { %v3587_v59 = vpop.f32.mrf.mxu0  ;;  %v3396_v16 = vpop.f32.mrf.mxu3 }
 0x3f9   : > { %v3274_v12 = vpop.f32.mrf.mxu2  ;;  %v3452_v8 = vadd.f32 %v3396_v16, %v6698_v26 }
 0x3fa   : > { %v6849_v57 = vadd.f32 %v3274_v12, %v3134_v40  ;;  %v3136_v42 = vpop.f32.mrf.mxu1  ;;  %v4036_v40 = vpack.c.bf16 %v2871_v5, %v2870_v19 }
 0x3fb   : > { %v6851_v35 = vadd.f32 %v3585_v9, %v3452_v8 }
 0x400   : > { %v3590_v53 = vpop.f32.mrf.mxu0  ;;  %v3398_v55 = vpop.f32.mrf.mxu3 }
 0x401   : > { %v3276_v32 = vpop.f32.mrf.mxu2  ;;  %v3453_v23 = vadd.f32 %v3398_v55, %v6703_v6 }
 0x402   : > { %v6854_v17 = vadd.f32 %v3276_v32, %v3136_v42  ;;  %v3734_v58 = vpop.f32.mrf.mxu1 }
 0x403   : > { %5212 = vmatmul.msk.bf16.gmra.mxu0 %vm380_vm5, %v6731_v10  ;;  %v3814_v26 = vadd.f32 %v3734_v58, %v6680_v47  ;;  %v6859_v15 = vadd.f32 %v3587_v59, %v3453_v23  ;;  %v2872_v23 = vld [vmem:[#allocation3 + $0x60] sm:$0xff] }
 0x405   : > { %5171 = vmatmul.msk.bf16.gmra.mxu1 %vm380_vm5, %v6478_v21  ;;  %5196 = vmatmul.msk.bf16.gmra.mxu3 %vm380_vm5, %v4036_v40  ;;  %v2873_v21 = vld [vmem:[#allocation3 + $0x68] sm:$0xff] }
 0x406   : > { %5187 = vmatmul.msk.bf16.gmra.mxu2 %vm380_vm5, %v6688_v45  ;;  %v4037_v58 = vpack.c.bf16 %v2873_v21, %v2872_v23 }
 0x408   : > { %v3592_v6 = vpop.f32.mrf.mxu0  ;;  %v3401_v9 = vpop.f32.mrf.mxu3 }
 0x409   : > { %v3454_v1 = vadd.f32 %v3401_v9, %v6720_v63  ;;  %v3923_v16 = vpop.f32.mrf.mxu2 }
 0x40a   : > { %v6867_v12 = vadd.f32 %v3923_v16, %v3814_v26  ;;  %v3736_v10 = vpop.f32.mrf.mxu1 }
 0x40b   : > { %v3815_v47 = vadd.f32 %v3736_v10, %v6690_v36  ;;  %v6870_v59 = vadd.f32 %v3590_v53, %v3454_v1 }
 0x410   : > { %v3595_v8 = vpop.f32.mrf.mxu0  ;;  %v3403_v42 = vpop.f32.mrf.mxu3 }
 0x411   : > { %v3455_v55 = vadd.f32 %v3403_v42, %v6725_v28  ;;  %v3925_v5 = vpop.f32.mrf.mxu2  ;;  %v2874_v42 = vld [vmem:[#allocation3 + $0x78] sm:$0xff] }
 0x412   : > { %v6873_v32 = vadd.f32 %v3925_v5, %v3815_v47  ;;  %v3739_v45 = vpop.f32.mrf.mxu1 }
 0x413   : > { %5213 = vmatmul.msk.bf16.gmra.mxu0 %vm380_vm5, %v6753_v33  ;;  %v3816_v63 = vadd.f32 %v3739_v45, %v6700_v11  ;;  %v6878_v19 = vadd.f32 %v3592_v6, %v3455_v55 }
 0x415   : > { %5172 = vmatmul.msk.bf16.gmra.mxu1 %vm380_vm5, %v6506_v41  ;;  %5197 = vmatmul.msk.bf16.gmra.mxu3 %vm380_vm5, %v4037_v58  ;;  %v2875_v41 = vld [vmem:[#allocation3 + $0x80] sm:$0xff] }
 0x416   : > { %5188 = vmatmul.msk.bf16.gmra.mxu2 %vm380_vm5, %v6707_v22  ;;  %v4038_v21 = vpack.c.bf16 %v2875_v41, %v2874_v42 }
 0x418   : > { %v3597_v36 = vpop.f32.mrf.mxu0  ;;  %v3406_v28 = vpop.f32.mrf.mxu3 }
 0x419   : > { %v3456_v53 = vadd.f32 %v3406_v28, %v6742_v18  ;;  %v3928_v26 = vpop.f32.mrf.mxu2 }
 0x41a   : > { %v6886_v40 = vadd.f32 %v3928_v26, %v3816_v63  ;;  %v3741_v33 = vpop.f32.mrf.mxu1  ;;  %v2876_v26 = vld [vmem:[#allocation3 + $0x90] sm:$0xff] }
 0x41b   : > { %v3817_v11 = vadd.f32 %v3741_v33, %v6711_v30  ;;  %v6889_v6 = vadd.f32 %v3595_v8, %v3456_v53 }
 0x420   : > { %v3600_v9 = vpop.f32.mrf.mxu0  ;;  %v3408_v1 = vpop.f32.mrf.mxu3 }
 0x421   : > { %v3457_v16 = vadd.f32 %v3408_v1, %v6747_v61  ;;  %v3930_v10 = vpop.f32.mrf.mxu2 }
 0x422   : > { %v6892_v47 = vadd.f32 %v3930_v10, %v3817_v11  ;;  %v3744_v22 = vpop.f32.mrf.mxu1 }
 0x423   : > { %5214 = vmatmul.msk.bf16.gmra.mxu0 %vm380_vm5, %v6775_v44  ;;  %v3818_v18 = vadd.f32 %v3744_v22, %v6722_v24  ;;  %v6897_v55 = vadd.f32 %v3597_v36, %v3457_v16 }
 0x425   : > { %5173 = vmatmul.msk.bf16.gmra.mxu1 %vm380_vm5, %v6534_v49  ;;  %5198 = vmatmul.msk.bf16.gmra.mxu3 %vm380_vm5, %v4038_v21  ;;  %v2877_v49 = vld [vmem:[#allocation3 + $0x98] sm:$0xff] }
 0x426   : > { %5189 = vmatmul.msk.bf16.gmra.mxu2 %vm380_vm5, %v6729_v62  ;;  %v4039_v33 = vpack.c.bf16 %v2877_v49, %v2876_v26 }
 0x428   : > { %v3602_v30 = vpop.f32.mrf.mxu0  ;;  %v3411_v61 = vpop.f32.mrf.mxu3 }
 0x429   : > { %v3458_v8 = vadd.f32 %v3411_v61, %v6764_v50  ;;  %v3933_v5 = vpop.f32.mrf.mxu2 }
 0x42a   : > { %v6905_v45 = vadd.f32 %v3933_v5, %v3818_v18  ;;  %v3746_v44 = vpop.f32.mrf.mxu1 }
 0x42b   : > { %v3819_v24 = vadd.f32 %v3746_v44, %v6733_v7  ;;  %v6908_v23 = vadd.f32 %v3600_v9, %v3458_v8 }
 0x430   : > { %v3605_v63 = vpop.f32.mrf.mxu0  ;;  %v3413_v58 = vpop.f32.mrf.mxu3 }
 0x431   : > { %v3459_v36 = vadd.f32 %v3413_v58, %v6769_v34  ;;  %v3935_v28 = vpop.f32.mrf.mxu2  ;;  %v2913_v58 = vld [vmem:[#allocation3 + $0xc9] sm:$0xff] }
 0x432   : > { %v6911_v53 = vadd.f32 %v3935_v28, %v3819_v24  ;;  %v3749_v62 = vpop.f32.mrf.mxu1  ;;  %v2881_v28 = vld [vmem:[#allocation3 + $0xc8] sm:$0xff] }
 0x433   : > { %5215 = vmatmul.msk.bf16.gmra.mxu0 %vm380_vm5, %v6797_v14  ;;  %v3820_v50 = vadd.f32 %v3749_v62, %v6744_v37  ;;  %v6916_v11 = vadd.f32 %v3602_v30, %v3459_v36  ;;  %v2878_v30 = vld [vmem:[#allocation3 + $0xa8] sm:$0xff] }
 0x435   : > { %5174 = vmatmul.msk.bf16.gmra.mxu1 %vm380_vm5, %v6562_v13  ;;  %5199 = vmatmul.msk.bf16.gmra.mxu3 %vm380_vm5, %v4039_v33  ;;  %v2879_v13 = vld [vmem:[#allocation3 + $0xb0] sm:$0xff]  ;;  %v2880_v33 = vld [vmem:[#allocation3 + $0xc0] sm:$0xff] }
 0x436   : > { %5190 = vmatmul.msk.bf16.gmra.mxu2 %vm380_vm5, %v6751_v52  ;;  %v4040_v61 = vpack.c.bf16 %v2879_v13, %v2878_v30 }
 0x438   : > { %v3607_v7 = vpop.f32.mrf.mxu0  ;;  %v3416_v34 = vpop.f32.mrf.mxu3 }
 0x439   : > { %v3460_v9 = vadd.f32 %v3416_v34, %v6786_v46  ;;  %v3938_v1 = vpop.f32.mrf.mxu2 }
 0x43a   : > { %v6924_v41 = vadd.f32 %v3938_v1, %v3820_v50  ;;  %v3751_v14 = vpop.f32.mrf.mxu1 }
 0x43b   : > { %v3821_v37 = vadd.f32 %v3751_v14, %v6755_v20  ;;  %v6927_v16 = vadd.f32 %v3605_v63, %v3460_v9  ;;  %v7383_v9 = vld [vmem:[#allocation5_spill] sm:$0xff] }
 0x440   : > { %v3610_v10 = vpop.f32.mrf.mxu0  ;;  %v3418_v22 = vpop.f32.mrf.mxu3 }
 0x441   : > { %v3461_v42 = vadd.f32 %v3418_v22, %v6791_v38  ;;  %v3940_v18 = vpop.f32.mrf.mxu2 }
 0x442   : > { %v6930_v21 = vadd.f32 %v3940_v18, %v3821_v37  ;;  %v3754_v52 = vpop.f32.mrf.mxu1  ;;  %v2915_v18 = vld [vmem:[#allocation3 + $0xe1] sm:$0xff] }
 0x443   : > { %5216 = vmatmul.msk.bf16.gmra.mxu0 %vm380_vm5, %v6821_v31  ;;  %v3822_v46 = vadd.f32 %v3754_v52, %v6766_v39  ;;  %v6935_v8 = vadd.f32 %v3607_v7, %v3461_v42 }
 0x445   : > { %5175 = vmatmul.msk.bf16.gmra.mxu1 %vm380_vm5, %v6590_v3  ;;  %5200 = vmatmul.msk.bf16.gmra.mxu3 %vm380_vm5, %v4040_v61  ;;  %v2912_v3 = vld [vmem:[#allocation3 + $0xc1] sm:$0xff] }
 0x446   : > { %5191 = vmatmul.msk.bf16.gmra.mxu2 %vm380_vm5, %v6773_v54  ;;  %v4230_v62 = vpack.c.bf16 %v2913_v58, %v2912_v3 }
 0x448   : > { %v3612_v20 = vpop.f32.mrf.mxu0  ;;  %v3421_v38 = vpop.f32.mrf.mxu3 }
 0x449   : > { %v3462_v5 = vadd.f32 %v3421_v38, %v6808_v43  ;;  %v3943_v44 = vpop.f32.mrf.mxu2 }
 0x44a   : > { %v6943_v24 = vadd.f32 %v3943_v44, %v3822_v46  ;;  %v3756_v31 = vpop.f32.mrf.mxu1  ;;  %v2883_v46 = vld [vmem:[#allocation3 + $0xe0] sm:$0xff]  ;;  %v2882_v44 = vld [vmem:[#allocation3 + $0xd8] sm:$0xff] }
 0x44b   : > { %v3823_v39 = vadd.f32 %v3756_v31, %v6777_v27  ;;  %v6946_v63 = vadd.f32 %v3610_v10, %v3462_v5  ;;  %v4041_v27 = vpack.c.bf16 %v2881_v28, %v2880_v33  ;;  %v2917_v33 = vld [vmem:[#allocation3 + $0xf9] sm:$0xff] }
 0x450   : > { %v3615_v49 = vpop.f32.mrf.mxu0  ;;  %v3423_v36 = vpop.f32.mrf.mxu3 }
 0x451   : > { %v3463_v54 = vadd.f32 %v3423_v36, %v6815_v51  ;;  %v3945_v26 = vpop.f32.mrf.mxu2 }
 0x452   : > { %v6949_v50 = vadd.f32 %v3945_v26, %v3823_v39  ;;  %v3759_v43 = vpop.f32.mrf.mxu1  ;;  %v4042_v39 = vpack.c.bf16 %v2883_v46, %v2882_v44 }
 0x453   : > { %5217 = vmatmul.msk.bf16.gmra.mxu0 %vm380_vm5, %v4230_v62  ;;  %v3824_v7 = vadd.f32 %v3759_v43, %v6788_v4  ;;  %v6953_v34 = vadd.f32 %v3612_v20, %v3463_v54  ;;  %v7384_v4 = vld [vmem:[#allocation6_spill] sm:$0xff] }
 0x455   : > { %5176 = vmatmul.msk.bf16.gmra.mxu1 %vm380_vm5, %v6618_v56  ;;  %5201 = vmatmul.msk.bf16.gmra.mxu3 %vm380_vm5, %v4041_v27  ;;  %v2914_v56 = vld [vmem:[#allocation3 + $0xd9] sm:$0xff]  ;;  %v2916_v27 = vld [vmem:[#allocation3 + $0xf1] sm:$0xff] }
 0x456   : > { %5192 = vmatmul.msk.bf16.gmra.mxu2 %vm380_vm5, %v7383_v9  ;;  %v4231_v61 = vpack.c.bf16 %v2915_v18, %v2914_v56  ;;  %v2833_v18 = vld [vmem:[#allocation3 + $0x181] sm:$0xff]  ;;  %v2884_v56 = vld [vmem:[#allocation3 + $0xf0] sm:$0xff] }
 0x458   : > { %v3617_v51 = vpop.f32.mrf.mxu0  ;;  %v3426_v1 = vpop.f32.mrf.mxu3 }
 0x459   : > { %v3464_v14 = vadd.f32 %v3426_v1, %v6832_v48  ;;  %v3948_v37 = vpop.f32.mrf.mxu2  ;;  %v2885_v1 = vld [vmem:[#allocation3 + $0xf8] sm:$0xff] }
 0x45a   : > { %v6961_v10 = vadd.f32 %v3948_v37, %v3824_v7  ;;  %v3761_v22 = vpop.f32.mrf.mxu1  ;;  %v4043_v46 = vpack.c.bf16 %v2885_v1, %v2884_v56 }
 0x45b   : > { %v3825_v13 = vadd.f32 %v3761_v22, %v7384_v4  ;;  %v6964_v42 = vadd.f32 %v3615_v49, %v3464_v14  ;;  %v7385_v49 = vld [vmem:[#allocation4_spill] sm:$0xff]  ;;  %v4232_v14 = vpack.c.bf16 %v2917_v33, %v2916_v27  ;;  %v2865_v22 = vld [vmem:[#allocation3 + $0x182] sm:$0xff]  ;;  %v2933_v27 = vld [vmem:[#allocation3 + $0x3a] sm:$0xff] }
 0x45c   : > { %v2887_v33 = vld [vmem:[#allocation3 + $0x110] sm:$0xff] }
 0x460   : > { %v3620_v52 = vpop.f32.mrf.mxu0  ;;  %v3428_v30 = vpop.f32.mrf.mxu3 }
 0x461   : > { %v3465_v20 = vadd.f32 %v3428_v30, %v6837_v0  ;;  %v3950_v38 = vpop.f32.mrf.mxu2 }
 0x462   : > { %v6967_v5 = vadd.f32 %v3950_v38, %v3825_v13  ;;  %v3764_v48 = vpop.f32.mrf.mxu1 }
 0x463   : > { %5218 = vmatmul.msk.bf16.gmra.mxu0 %vm380_vm5, %v4231_v61  ;;  %v3826_v31 = vadd.f32 %v3764_v48, %v6810_v60  ;;  %v6971_v58 = vadd.f32 %v3617_v51, %v3465_v20  ;;  %v7386_v60 = vld [vmem:[#allocation8_spill] sm:$0xff] }
 0x464   : > { %v2834_v51 = vld [vmem:[#allocation3 + $0x189] sm:$0xff] }
 0x465   : > { %5177 = vmatmul.msk.bf16.gmra.mxu1 %vm380_vm5, %v7385_v49  ;;  %5202 = vmatmul.msk.bf16.gmra.mxu3 %vm380_vm5, %v4042_v39  ;;  %v6989_v30 = vpack.c.bf16 %v2834_v51, %v2833_v18 }
 0x466   : > { %5193 = vmatmul.msk.bf16.gmra.mxu2 %vm380_vm5, %v6819_v2 }
 0x468   : > { %v3622_v0 = vpop.f32.mrf.mxu0  ;;  %v3431_v3 = vpop.f32.mrf.mxu3 }
 0x469   : > { %v3466_v36 = vadd.f32 %v3431_v3, %v6849_v57  ;;  %v3953_v28 = vpop.f32.mrf.mxu2  ;;  %v2866_v57 = vld [vmem:[#allocation3 + $0x18a] sm:$0xff]  ;;  %v2932_v3 = vld [vmem:[#allocation3 + $0x32] sm:$0xff] }
 0x46a   : > { %v6979_v62 = vadd.f32 %v3953_v28, %v3826_v31  ;;  %v3766_v54 = vpop.f32.mrf.mxu1  ;;  %v4639_v28 = vld [vmem:[%s5388_s20 + $0x8] sm:$0xff] }
 0x46b   : > { %v3827_v26 = vadd.f32 %v3766_v54, %v7386_v60  ;;  %v6982_v43 = vadd.f32 %v3620_v52, %v3466_v36  ;;  %v4638_v36 = vld [vmem:[%s5388_s20] sm:$0xff] }
 0x46c   : > { %v2918_v60 = vld [vmem:[#allocation3 + $0x109] sm:$0xff] }
 0x470   : > { %v4301_v7 = vpop.f32.mrf.mxu0  ;;  %v3433_v9 = vpop.f32.mrf.mxu3 }
 0x471   : > { %v3467_v2 = vadd.f32 %v3433_v9, %v6854_v17  ;;  %v3955_v37 = vpop.f32.mrf.mxu2  ;;  %v6993_v17 = vpack.c.bf16 %v2866_v57, %v2865_v22  ;;  %v4413_v22 = vpack.c.bf16 %v2933_v27, %v2932_v3  ;;  %v2889_v3 = vld [vmem:[#allocation3 + $0x128] sm:$0xff]  ;;  %v2888_v27 = vld [vmem:[#allocation3 + $0x120] sm:$0xff] }
 0x472   : > { %v6985_v4 = vadd.f32 %v3955_v37, %v3827_v26  ;;  %v3769_v13 = vpop.f32.mrf.mxu1 }
 0x473   : > { %5219 = vmatmul.msk.bf16.gmra.mxu0 %vm380_vm5, %v4232_v14  ;;  %v3828_v52 = vadd.f32 %v3769_v13, %v6834_v29  ;;  %v6991_v61 = vadd.f32 %v3622_v0, %v3467_v2  ;;  %v2919_v0 = vld [vmem:[#allocation3 + $0x111] sm:$0xff]  ;;  %v2886_v2 = vld [vmem:[#allocation3 + $0x108] sm:$0xff] }
 0x474   : > { %v4233_v9 = vpack.c.bf16 %v2919_v0, %v2918_v60  ;;  %v4044_v37 = vpack.c.bf16 %v2887_v33, %v2886_v2 }
 0x475   : > { %5178 = vmatmul.msk.bf16.gmra.mxu1 %vm380_vm5, %v6989_v30  ;;  %5203 = vmatmul.msk.bf16.gmra.mxu3 %vm380_vm5, %v4043_v46 }
 0x476   : > { %5194 = vmatmul.msk.bf16.gmra.mxu2 %vm380_vm5, %v6993_v17 }
 0x478   : > { %v4303_v20 = vpop.f32.mrf.mxu0  ;;  %v4112_v38 = vpop.f32.mrf.mxu3 }
 0x479   : > { %v3958_v29 = vpop.f32.mrf.mxu2  ;;  %v4192_v48 = vadd.f32 %v4112_v38, %v6867_v12 }
 0x47a   : > { %v7001_v44 = vadd.f32 %v3958_v29, %v3828_v52  ;;  %v3771_v31 = vpop.f32.mrf.mxu1  ;;  %v2934_v29 = vld [vmem:[#allocation3 + $0x4a] sm:$0xff] }
 0x47b   : > { %v3829_v39 = vadd.f32 %v3771_v31, %v6841_v25  ;;  %v7004_v49 = vadd.f32 %v4301_v7, %v4192_v48  ;;  %v4670_v25 = vpack.c.bf16 %v4639_v28, %v4638_v36  ;;  %v4640_v48 = vld [vmem:[%s5388_s20 + $0x10] sm:$0xff]  ;;  %v4641_v31 = vld [vmem:[%s5388_s20 + $0x18] sm:$0xff]  ;;  %v2935_v36 = vld [vmem:[#allocation3 + $0x52] sm:$0xff] }
 0x480   : > { %v4306_v54 = vpop.f32.mrf.mxu0  ;;  %v4114_v26 = vpop.f32.mrf.mxu3 }
 0x481   : > { %v3960_v51 = vpop.f32.mrf.mxu2  ;;  %v4193_v12 = vadd.f32 %v4114_v26, %v6873_v32 }
 0x482   : > { %v7009_v1 = vadd.f32 %v3960_v51, %v3829_v39  ;;  %v3774_v14 = vpop.f32.mrf.mxu1  ;;  %v2920_v39 = vld [vmem:[#allocation3 + $0x121] sm:$0xff]  ;;  %v4414_v51 = vpack.c.bf16 %v2935_v36, %v2934_v29  ;;  %v2890_v36 = vld [vmem:[#allocation3 + $0x138] sm:$0xff] }
 0x483   : > { %5220 = vmatmul.msk.bf16.gmra.mxu0 %vm380_vm5, %v4233_v9  ;;  %v3830_v7 = vadd.f32 %v3774_v14, %v6851_v35  ;;  %v7013_v57 = vadd.f32 %v4303_v20, %v4193_v12  ;;  %v2921_v20 = vld [vmem:[#allocation3 + $0x129] sm:$0xff]  ;;  %v4671_v9 = vpack.c.bf16 %v4641_v31, %v4640_v48  ;;  %v2891_v29 = vld [vmem:[#allocation3 + $0x140] sm:$0xff] }
 0x484   : > { %v4234_v28 = vpack.c.bf16 %v2921_v20, %v2920_v39  ;;  %v2937_v48 = vld [vmem:[#allocation3 + $0x6a] sm:$0xff] }
 0x485   : > { %5204 = vmatmul.msk.bf16.gmra.mxu3 %vm380_vm5, %v4044_v37  ;;  %5227 = vmatmul.msk.bf16.vlgmr.msra.gmra.mxu1 %vm380_vm5, %v4413_v22 }
 0x486   : > { %5243 = vmatmul.msk.bf16.vlgmr.msra.gmra.mxu2 %vm334_vm1, %v4670_v25 }
 0x488   : > { %v4117_v32 = vpop.f32.mrf.mxu3  ;;  %v4308_v56 = vpop.f32.mrf.mxu0 }
 0x489   : > { %v3963_v13 = vpop.f32.mrf.mxu2  ;;  %v4194_v18 = vadd.f32 %v4117_v32, %v6886_v40 }
 0x48a   : > { %v7019_v52 = vadd.f32 %v3963_v13, %v3830_v7  ;;  %v3776_v35 = vpop.f32.mrf.mxu1  ;;  %v2923_v13 = vld [vmem:[#allocation3 + $0x141] sm:$0xff] }
 0x48b   : > { %v3831_v46 = vadd.f32 %v3776_v35, %v6859_v15  ;;  %v7022_v38 = vadd.f32 %v4306_v54, %v4194_v18  ;;  %v4045_v54 = vpack.c.bf16 %v2889_v3, %v2888_v27  ;;  %v2936_v18 = vld [vmem:[#allocation3 + $0x62] sm:$0xff]  ;;  %v4643_v35 = vld [vmem:[%s5388_s20 + $0x28] sm:$0xff] }
 0x490   : > { %v4119_v0 = vpop.f32.mrf.mxu3  ;;  %v4311_v14 = vpop.f32.mrf.mxu0 }
 0x491   : > { %v3965_v60 = vpop.f32.mrf.mxu2  ;;  %v4195_v40 = vadd.f32 %v4119_v0, %v6892_v47 }
 0x492   : > { %v7027_v26 = vadd.f32 %v3965_v60, %v3831_v46  ;;  %v3779_v33 = vpop.f32.mrf.mxu1  ;;  %v2922_v46 = vld [vmem:[#allocation3 + $0x139] sm:$0xff]  ;;  %v4046_v60 = vpack.c.bf16 %v2891_v29, %v2890_v36 }
 0x493   : > { %5221 = vmatmul.msk.bf16.gmra.mxu0 %vm380_vm5, %v4234_v28  ;;  %v3832_v15 = vadd.f32 %v3779_v33, %v6870_v59  ;;  %v7031_v12 = vadd.f32 %v4308_v56, %v4195_v40  ;;  %v4642_v56 = vld [vmem:[%s5388_s20 + $0x20] sm:$0xff]  ;;  %v4235_v31 = vpack.c.bf16 %v2923_v13, %v2922_v46  ;;  %v4415_v40 = vpack.c.bf16 %v2937_v48, %v2936_v18  ;;  %v2893_v13 = vld [vmem:[#allocation3 + $0x158] sm:$0xff]  ;;  %v2939_v18 = vld [vmem:[#allocation3 + $0x82] sm:$0xff] }
 0x494   : > { %v2892_v48 = vld [vmem:[#allocation3 + $0x150] sm:$0xff] }
 0x495   : > { %5205 = vmatmul.msk.bf16.gmra.mxu3 %vm380_vm5, %v4045_v54  ;;  %5228 = vmatmul.msk.bf16.gmra.mxu1 %vm380_vm5, %v4414_v51 }
 0x496   : > { %5244 = vmatmul.msk.bf16.gmra.mxu2 %vm334_vm1, %v4671_v9 }
 0x498   : > { %v4122_v47 = vpop.f32.mrf.mxu3  ;;  %v4313_v32 = vpop.f32.mrf.mxu0 }
 0x499   : > { %v3968_v2 = vpop.f32.mrf.mxu2  ;;  %v4196_v25 = vadd.f32 %v4122_v47, %v6905_v45  ;;  %v2925_v47 = vld [vmem:[#allocation3 + $0x159] sm:$0xff] }
 0x49a   : > { %v7037_v7 = vadd.f32 %v3968_v2, %v3832_v15  ;;  %v3781_v59 = vpop.f32.mrf.mxu1  ;;  %v2938_v2 = vld [vmem:[#allocation3 + $0x7a] sm:$0xff] }
 0x49b   : > { %v3833_v37 = vadd.f32 %v3781_v59, %v6878_v19  ;;  %v7040_v22 = vadd.f32 %v4311_v14, %v4196_v25  ;;  %v4672_v19 = vpack.c.bf16 %v4643_v35, %v4642_v56  ;;  %v4644_v25 = vld [vmem:[%s5388_s20 + $0x30] sm:$0xff]  ;;  %v4645_v59 = vld [vmem:[%s5388_s20 + $0x38] sm:$0xff] }
 0x4a0   : > { %v4124_v20 = vpop.f32.mrf.mxu3 }
 0x4a1   : > { %v3970_v39 = vpop.f32.mrf.mxu2  ;;  %v4197_v45 = vadd.f32 %v4124_v20, %v6911_v53  ;;  %v4316_v53 = vpop.f32.mrf.mxu0 }
 0x4a2   : > { %v7045_v0 = vadd.f32 %v3970_v39, %v3833_v37  ;;  %v3784_v3 = vpop.f32.mrf.mxu1  ;;  %v2924_v37 = vld [vmem:[#allocation3 + $0x151] sm:$0xff]  ;;  %v4047_v39 = vpack.c.bf16 %v2893_v13, %v2892_v48 }
 0x4a3   : > { %5222 = vmatmul.msk.bf16.gmra.mxu0 %vm380_vm5, %v4235_v31  ;;  %v3834_v28 = vadd.f32 %v3784_v3, %v6889_v6  ;;  %v7049_v33 = vadd.f32 %v4313_v32, %v4197_v45  ;;  %v4236_v56 = vpack.c.bf16 %v2925_v47, %v2924_v37  ;;  %v4416_v45 = vpack.c.bf16 %v2939_v18, %v2938_v2  ;;  %v2943_v48 = vld [vmem:[#allocation3 + $0xb2] sm:$0xff] }
 0x4a5   : > { %5206 = vmatmul.msk.bf16.gmra.mxu3 %vm380_vm5, %v4046_v60  ;;  %5229 = vmatmul.msk.bf16.gmra.mxu1 %vm380_vm5, %v4415_v40  ;;  %v2927_v60 = vld [vmem:[#allocation3 + $0x171] sm:$0xff] }
 0x4a6   : > { %5245 = vmatmul.msk.bf16.gmra.mxu2 %vm334_vm1, %v4672_v19  ;;  %v2940_v40 = vld [vmem:[#allocation3 + $0x92] sm:$0xff] }
 0x4a8   : > { %v4127_v27 = vpop.f32.mrf.mxu3 }
 0x4a9   : > { %v3973_v9 = vpop.f32.mrf.mxu2  ;;  %v4198_v15 = vadd.f32 %v4127_v27, %v6924_v41  ;;  %v4318_v41 = vpop.f32.mrf.mxu0  ;;  %v2926_v27 = vld [vmem:[#allocation3 + $0x169] sm:$0xff] }
 0x4aa   : > { %v7055_v54 = vadd.f32 %v3973_v9, %v3834_v28  ;;  %v3786_v6 = vpop.f32.mrf.mxu1  ;;  %v2895_v9 = vld [vmem:[#allocation3 + $0x170] sm:$0xff] }
 0x4ab   : > { %v3835_v51 = vadd.f32 %v3786_v6, %v6897_v55  ;;  %v7058_v14 = vadd.f32 %v4316_v53, %v4198_v15  ;;  %v4673_v55 = vpack.c.bf16 %v4645_v59, %v4644_v25  ;;  %v4646_v53 = vld [vmem:[%s5388_s20 + $0x40] sm:$0xff]  ;;  %v2941_v15 = vld [vmem:[#allocation3 + $0x9a] sm:$0xff]  ;;  %v4237_v6 = vpack.c.bf16 %v2927_v60, %v2926_v27  ;;  %v2894_v25 = vld [vmem:[#allocation3 + $0x168] sm:$0xff] }
 0x4ac   : > { %v4048_v37 = vpack.c.bf16 %v2895_v9, %v2894_v25  ;;  %v2898_v27 = vld [vmem:[#allocation3 + $0x198] sm:$0xff]  ;;  %v4650_v9 = vld [vmem:[%s5388_s20 + $0x60] sm:$0xff] }
 0x4b0   : > { %v4129_v32 = vpop.f32.mrf.mxu3 }
 0x4b1   : > { %v3975_v35 = vpop.f32.mrf.mxu2  ;;  %v4199_v46 = vadd.f32 %v4129_v32, %v6930_v21  ;;  %v4417_v32 = vpack.c.bf16 %v2941_v15, %v2940_v40 }
 0x4b2   : > { %v7063_v20 = vadd.f32 %v3975_v35, %v3835_v51  ;;  %v3789_v29 = vpop.f32.mrf.mxu1 }
 0x4b3   : > { %5223 = vmatmul.msk.bf16.gmra.mxu0 %vm380_vm5, %v4236_v56  ;;  %v3836_v31 = vadd.f32 %v3789_v29, %v6908_v23  ;;  %v7067_v3 = vadd.f32 %v4318_v41, %v4199_v46  ;;  %v4647_v23 = vld [vmem:[%s5388_s20 + $0x48] sm:$0xff]  ;;  %v4648_v46 = vld [vmem:[%s5388_s20 + $0x50] sm:$0xff]  ;;  %v4649_v41 = vld [vmem:[%s5388_s20 + $0x58] sm:$0xff] }
 0x4b4   : > { %v4674_v59 = vpack.c.bf16 %v4647_v23, %v4646_v53  ;;  %v2942_v29 = vld [vmem:[#allocation3 + $0xaa] sm:$0xff]  ;;  %v2930_v53 = vld [vmem:[#allocation3 + $0x199] sm:$0xff]  ;;  %v2931_v23 = vld [vmem:[#allocation3 + $0x1a1] sm:$0xff] }
 0x4b5   : > { %5207 = vmatmul.msk.bf16.gmra.mxu3 %vm380_vm5, %v4047_v39  ;;  %5230 = vmatmul.msk.bf16.gmra.mxu1 %vm380_vm5, %v4416_v45  ;;  %v4675_v39 = vpack.c.bf16 %v4649_v41, %v4648_v46  ;;  %v4239_v15 = vpack.c.bf16 %v2931_v23, %v2930_v53  ;;  %v4652_v41 = vld [vmem:[%s5388_s20 + $0x70] sm:$0xff]  ;;  %v4654_v53 = vld [vmem:[%s5388_s20 + $0x80] sm:$0xff]  ;;  %v4655_v23 = vld [vmem:[%s5388_s20 + $0x88] sm:$0xff] }
 0x4b6   : > { %5246 = vmatmul.msk.bf16.gmra.mxu2 %vm334_vm1, %v4673_v55 }
 0x4b9   : > { %v3978_v21 = vpop.f32.mrf.mxu2 }
 0x4ba   : > { %v7072_v36 = vadd.f32 %v3978_v21, %v3836_v31  ;;  %v3791_v19 = vpop.f32.mrf.mxu1  ;;  %v4418_v21 = vpack.c.bf16 %v2943_v48, %v2942_v29  ;;  %v4653_v29 = vld [vmem:[%s5388_s20 + $0x78] sm:$0xff] }
 0x4bb   : > { %v3837_v28 = vadd.f32 %v3791_v19, %v6916_v11  ;;  %v7387_v19 = vld [vmem:[#allocation7_spill] sm:$0xff] }
 0x4bc   : > { %v2947_v48 = vld [vmem:[#allocation3 + $0xe2] sm:$0xff] }
 0x4c1   : > { %v3980_v51 = vpop.f32.mrf.mxu2 }
 0x4c2   : > { %v7077_v47 = vadd.f32 %v3980_v51, %v3837_v28  ;;  %v3794_v2 = vpop.f32.mrf.mxu1  ;;  %v2945_v51 = vld [vmem:[#allocation3 + $0xca] sm:$0xff] }
 0x4c3   : > { %5224 = vmatmul.msk.bf16.gmra.mxu0 %vm380_vm5, %v4237_v6  ;;  %v3838_v11 = vadd.f32 %v3794_v2, %v6927_v16  ;;  %v2944_v6 = vld [vmem:[#allocation3 + $0xc2] sm:$0xff] }
 0x4c5   : > { %5208 = vmatmul.msk.bf16.gmra.mxu3 %vm380_vm5, %v4048_v37  ;;  %5231 = vmatmul.msk.bf16.gmra.mxu1 %vm380_vm5, %v4417_v32 }
 0x4c6   : > { %5247 = vmatmul.msk.bf16.gmra.mxu2 %vm334_vm1, %v4674_v59 }
 0x4c9   : > { %v3983_v13 = vpop.f32.mrf.mxu2 }
 0x4ca   : > { %v7084_v18 = vadd.f32 %v3983_v13, %v3838_v11  ;;  %v3796_v56 = vpop.f32.mrf.mxu1 }
 0x4cb   : > { %v3839_v35 = vadd.f32 %v3796_v56, %v6935_v8 }
 0x4d1   : > { %v3985_v55 = vpop.f32.mrf.mxu2 }
 0x4d2   : > { %v7089_v16 = vadd.f32 %v3985_v55, %v3839_v35  ;;  %v3799_v31 = vpop.f32.mrf.mxu1 }
 0x4d3   : > { %5225 = vmatmul.msk.bf16.gmra.mxu0 %vm380_vm5, %v6989_v30  ;;  %v3840_v45 = vadd.f32 %v3799_v31, %v6946_v63  ;;  %v2899_v30 = vld [vmem:[#allocation3 + $0x1a0] sm:$0xff]  ;;  %v4651_v63 = vld [vmem:[%s5388_s20 + $0x68] sm:$0xff] }
 0x4d4   : > { %v4050_v25 = vpack.c.bf16 %v2899_v30, %v2898_v27  ;;  %v4676_v37 = vpack.c.bf16 %v4651_v63, %v4650_v9  ;;  %v2948_v27 = vld [vmem:[#allocation3 + $0xf2] sm:$0xff]  ;;  %v2949_v30 = vld [vmem:[#allocation3 + $0xfa] sm:$0xff] }
 0x4d5   : > { %5209 = vmatmul.msk.bf16.gmra.mxu3 %vm380_vm5, %v7387_v19  ;;  %5232 = vmatmul.msk.bf16.gmra.mxu1 %vm380_vm5, %v4418_v21 }
 0x4d6   : > { %5248 = vmatmul.msk.bf16.gmra.mxu2 %vm334_vm1, %v4675_v39 }
 0x4d9   : > { %v3988_v8 = vpop.f32.mrf.mxu2 }
 0x4da   : > { %v7098_v28 = vadd.f32 %v3988_v8, %v3840_v45  ;;  %v3801_v60 = vpop.f32.mrf.mxu1  ;;  %v4677_v45 = vpack.c.bf16 %v4653_v29, %v4652_v41  ;;  %v2951_v41 = vld [vmem:[#allocation3 + $0x112] sm:$0xff] }
 0x4db   : > { %v3841_v40 = vadd.f32 %v3801_v60, %v6953_v34  ;;  %v4419_v34 = vpack.c.bf16 %v2945_v51, %v2944_v6  ;;  %v4421_v6 = vpack.c.bf16 %v2949_v30, %v2948_v27  ;;  %v4658_v27 = vld [vmem:[%s5388_s20 + $0xa0] sm:$0xff] }
 0x4e1   : > { %v3990_v2 = vpop.f32.mrf.mxu2 }
 0x4e2   : > { %v7103_v59 = vadd.f32 %v3990_v2, %v3841_v40  ;;  %v3804_v11 = vpop.f32.mrf.mxu1  ;;  %v7131_v2 = vld [vmem:[%s7341_s7] ss:$0 sm:$0xff] }
 0x4e3   : > { %v3842_v32 = vadd.f32 %v3804_v11, %v6964_v42  ;;  %5226 = vmatmul.msk.bf16.gmra.mxu0 %vm380_vm5, %v4239_v15  ;;  %v2946_v42 = vld [vmem:[#allocation3 + $0xda] sm:$0xff]  ;;  %v4678_v15 = vpack.c.bf16 %v4655_v23, %v4654_v53 }
 0x4e4   : > { %v4420_v19 = vpack.c.bf16 %v2947_v48, %v2946_v42 }
 0x4e5   : > { %5210 = vmatmul.msk.bf16.gmra.mxu3 %vm380_vm5, %v4050_v25  ;;  %5233 = vmatmul.msk.bf16.gmra.mxu1 %vm380_vm5, %v4419_v34  ;;  %v4656_v34 = vld [vmem:[%s5388_s20 + $0x90] sm:$0xff] }
 0x4e6   : > { %5249 = vmatmul.msk.bf16.gmra.mxu2 %vm334_vm1, %v4676_v37 }
 0x4e9   : > { %v3993_v13 = vpop.f32.mrf.mxu2 }
 0x4ea   : > { %v7110_v56 = vadd.f32 %v3993_v13, %v3842_v32  ;;  %v3806_v35 = vpop.f32.mrf.mxu1  ;;  %v7146_v32 = vpop.f32.mrf.mxu3  ;;  %v4657_v13 = vld [vmem:[%s5388_s20 + $0x98] sm:$0xff] }
 0x4eb   : > { %v3843_v46 = vadd.f32 %v3806_v35, %v6971_v58 }
 0x4f1   : > { %v3995_v55 = vpop.f32.mrf.mxu2 }
 0x4f2   : > { %v7115_v31 = vadd.f32 %v3995_v55, %v3843_v46  ;;  %v3809_v39 = vpop.f32.mrf.mxu1  ;;  %v2950_v46 = vld [vmem:[#allocation3 + $0x10a] sm:$0xff]  ;;  %v4679_v55 = vpack.c.bf16 %v4657_v13, %v4656_v34 }
 0x4f3   : > { %v3844_v21 = vadd.f32 %v3809_v39, %v6982_v43  ;;  %v7151_v39 = vpop.f32.mrf.mxu0 }
 0x4f5   : > { %5234 = vmatmul.msk.bf16.gmra.mxu1 %vm380_vm5, %v4420_v19 }
 0x4f6   : > { %5250 = vmatmul.msk.bf16.gmra.mxu2 %vm334_vm1, %v4677_v45  ;;  %v4422_v45 = vpack.c.bf16 %v2951_v41, %v2950_v46 }
 0x4f9   : > { %v3998_v8 = vpop.f32.mrf.mxu2 }
 0x4fa   : > { %v7120_v58 = vadd.f32 %v3998_v8, %v3844_v21  ;;  %v3811_v60 = vpop.f32.mrf.mxu1  ;;  %v7158_v21 = vpop.f32.mrf.mxu3 }
 0x4fb   : > { %v3845_v40 = vadd.f32 %v3811_v60, %v6991_v61  ;;  %v7164_v23 = vpop.f32.mrf.mxu0 }
 0x501   : > { %v4000_v9 = vpop.f32.mrf.mxu2 }
 0x502   : > { %v7125_v63 = vadd.f32 %v4000_v9, %v3845_v40  ;;  %v4490_v43 = vpop.f32.mrf.mxu1  ;;  %v2952_v9 = vld [vmem:[#allocation3 + $0x122] sm:$0xff] }
 0x503   : > { %v4570_v51 = vadd.f32 %v4490_v43, %v7004_v49  ;;  %v2953_v43 = vld [vmem:[#allocation3 + $0x12a] sm:$0xff] }
 0x505   : > { %5235 = vmatmul.msk.bf16.gmra.mxu1 %vm380_vm5, %v4421_v6  ;;  %v4606_v61 = vadd.f32 %v7131_v2, %v4570_v51 }
 0x506   : > { %5251 = vmatmul.msk.bf16.gmra.mxu2 %vm334_vm1, %v4678_v15  ;;  %v7169_v15 = vpop.f32.mrf.mxu3 }
 0x509   : > { %v4747_v25 = vpop.f32.mrf.mxu2 }
 0x50a   : > { %v4827_v49 = vadd.f32 %v4747_v25, %v4606_v61  ;;  %v4492_v11 = vpop.f32.mrf.mxu1 }
 0x50b   : > { %v4571_v37 = vadd.f32 %v4492_v11, %v7013_v57  ;;  %v7176_v11 = vpop.f32.mrf.mxu0 }
 0x50c   : > { %4859 = vst.msk [vmem:[%s7141_s22] sm:$0xff] %vm380_vm5, %v4827_v49  ;;  %v4423_v49 = vpack.c.bf16 %v2953_v43, %v2952_v9 }
 0x50d   : > { %v4607_v35 = vadd.f32 %v7131_v2, %v4571_v37 }
 0x50e   : > { %v7179_v46 = vpop.f32.mrf.mxu3 }
 0x511   : > { %v4749_v29 = vpop.f32.mrf.mxu2 }
 0x512   : > { %v4828_v42 = vadd.f32 %v4749_v29, %v4607_v35  ;;  %v4495_v48 = vpop.f32.mrf.mxu1  ;;  %v4660_v29 = vld [vmem:[%s5388_s20 + $0xb0] sm:$0xff] }
 0x513   : > { %v4572_v57 = vadd.f32 %v4495_v48, %v7022_v38  ;;  %v4659_v38 = vld [vmem:[%s5388_s20 + $0xa8] sm:$0xff] }
 0x514   : > { %4860 = vst.msk [vmem:[%s7141_s22 + $0x8] sm:$0xff] %vm380_vm5, %v4828_v42  ;;  %v4680_v25 = vpack.c.bf16 %v4659_v38, %v4658_v27  ;;  %v2954_v48 = vld [vmem:[#allocation3 + $0x13a] sm:$0xff] }
 0x515   : > { %5236 = vmatmul.msk.bf16.gmra.mxu1 %vm380_vm5, %v4422_v45  ;;  %v4608_v19 = vadd.f32 %v7131_v2, %v4572_v57  ;;  %v7187_v45 = vpop.f32.mrf.mxu0 }
 0x516   : > { %5252 = vmatmul.msk.bf16.gmra.mxu2 %vm334_vm1, %v4679_v55  ;;  %v2955_v55 = vld [vmem:[#allocation3 + $0x142] sm:$0xff] }
 0x519   : > { %v4752_v8 = vpop.f32.mrf.mxu2 }
 0x51a   : > { %v4829_v60 = vadd.f32 %v4752_v8, %v4608_v19  ;;  %v4497_v40 = vpop.f32.mrf.mxu1 }
 0x51b   : > { %v4573_v53 = vadd.f32 %v4497_v40, %v7031_v12  ;;  %v4424_v40 = vpack.c.bf16 %v2955_v55, %v2954_v48 }
 0x51c   : > { %4861 = vst.msk [vmem:[%s7141_s22 + $0x10] sm:$0xff] %vm380_vm5, %v4829_v60 }
 0x51d   : > { %v4609_v30 = vadd.f32 %v7131_v2, %v4573_v53  ;;  %v7192_v53 = vpop.f32.mrf.mxu3  ;;  %v7197_v43 = vpop.f32.mrf.mxu0 }
 0x521   : > { %v4754_v6 = vpop.f32.mrf.mxu2 }
 0x522   : > { %v4830_v51 = vadd.f32 %v4754_v6, %v4609_v30  ;;  %v4500_v61 = vpop.f32.mrf.mxu1 }
 0x523   : > { %v4574_v12 = vadd.f32 %v4500_v61, %v7040_v22  ;;  %v4661_v22 = vld [vmem:[%s5388_s20 + $0xb8] sm:$0xff]  ;;  %v4662_v61 = vld [vmem:[%s5388_s20 + $0xc0] sm:$0xff] }
 0x524   : > { %4862 = vst.msk [vmem:[%s7141_s22 + $0x18] sm:$0xff] %vm380_vm5, %v4830_v51  ;;  %v4681_v60 = vpack.c.bf16 %v4661_v22, %v4660_v29 }
 0x525   : > { %5237 = vmatmul.msk.bf16.gmra.mxu1 %vm380_vm5, %v4423_v49  ;;  %v4610_v37 = vadd.f32 %v7131_v2, %v4574_v12  ;;  %v7204_v51 = vpop.f32.mrf.mxu3  ;;  %v2956_v12 = vld [vmem:[#allocation3 + $0x152] sm:$0xff] }
 0x526   : > { %5253 = vmatmul.msk.bf16.gmra.mxu2 %vm334_vm1, %v4680_v25  ;;  %v4663_v25 = vld [vmem:[%s5388_s20 + $0xc8] sm:$0xff] }
 0x527   : > { %v4682_v29 = vpack.c.bf16 %v4663_v25, %v4662_v61 }
 0x529   : > { %v4757_v34 = vpop.f32.mrf.mxu2 }
 0x52a   : > { %v4831_v13 = vadd.f32 %v4757_v34, %v4610_v37  ;;  %v4502_v35 = vpop.f32.mrf.mxu1  ;;  %v2957_v37 = vld [vmem:[#allocation3 + $0x15a] sm:$0xff] }
 0x52b   : > { %v4575_v41 = vadd.f32 %v4502_v35, %v7049_v33  ;;  %v4425_v22 = vpack.c.bf16 %v2957_v37, %v2956_v12 }
 0x52c   : > { %4863 = vst.msk [vmem:[%s7141_s22 + $0x20] sm:$0xff] %vm380_vm5, %v4831_v13 }
 0x52d   : > { %v4611_v42 = vadd.f32 %v7131_v2, %v4575_v41 }
 0x531   : > { %v4759_v57 = vpop.f32.mrf.mxu2 }
 0x532   : > { %v4832_v19 = vadd.f32 %v4759_v57, %v4611_v42  ;;  %v4505_v8 = vpop.f32.mrf.mxu1 }
 0x533   : > { %v4576_v33 = vadd.f32 %v4505_v8, %v7058_v14  ;;  %v4200_v14 = vadd.f32 %v7146_v32, %v6943_v24  ;;  %v4201_v32 = vadd.f32 %v7158_v21, %v6949_v50  ;;  %v4665_v50 = vld [vmem:[%s5388_s20 + $0xd8] sm:$0xff] }
 0x534   : > { %4864 = vst.msk [vmem:[%s7141_s22 + $0x28] sm:$0xff] %vm380_vm5, %v4832_v19 }
 0x535   : > { %5238 = vmatmul.msk.bf16.gmra.mxu1 %vm380_vm5, %v4424_v40  ;;  %v4612_v27 = vadd.f32 %v7131_v2, %v4576_v33  ;;  %v4389_v35 = vadd.f32 %v7151_v39, %v4200_v14  ;;  %v4147_v39 = vpop.f32.mrf.mxu3  ;;  %v4390_v57 = vadd.f32 %v7164_v23, %v4201_v32  ;;  %v4664_v33 = vld [vmem:[%s5388_s20 + $0xd0] sm:$0xff] }
 0x536   : > { %5254 = vmatmul.msk.bf16.gmra.mxu2 %vm334_vm1, %v4681_v60  ;;  %v4202_v60 = vadd.f32 %v7169_v15, %v6961_v10  ;;  %v4683_v14 = vpack.c.bf16 %v4665_v50, %v4664_v33  ;;  %v4203_v15 = vadd.f32 %v7179_v46, %v6967_v5  ;;  %v4667_v5 = vld [vmem:[%s5388_s20 + $0xe8] sm:$0xff] }
 0x539   : > { %v4762_v38 = vpop.f32.mrf.mxu2 }
 0x53a   : > { %v4833_v30 = vadd.f32 %v4762_v38, %v4612_v27  ;;  %v4507_v9 = vpop.f32.mrf.mxu1  ;;  %v2958_v27 = vld [vmem:[#allocation3 + $0x16a] sm:$0xff]  ;;  %v2959_v38 = vld [vmem:[#allocation3 + $0x172] sm:$0xff] }
 0x53b   : > { %v4577_v6 = vadd.f32 %v4507_v9, %v7067_v3  ;;  %v4333_v3 = vpop.f32.mrf.mxu0  ;;  %v4426_v25 = vpack.c.bf16 %v2959_v38, %v2958_v27  ;;  %v2962_v27 = vld [vmem:[#allocation3 + $0x19a] sm:$0xff]  ;;  %v2963_v38 = vld [vmem:[#allocation3 + $0x1a2] sm:$0xff] }
 0x53c   : > { %4865 = vst.msk [vmem:[%s7141_s22 + $0x30] sm:$0xff] %vm380_vm5, %v4833_v30 }
 0x53d   : > { %v4613_v49 = vadd.f32 %v7131_v2, %v4577_v6  ;;  %v4391_v6 = vadd.f32 %v7176_v11, %v4202_v60  ;;  %v4149_v61 = vpop.f32.mrf.mxu3 }
 0x541   : > { %v4764_v34 = vpop.f32.mrf.mxu2 }
 0x542   : > { %v4834_v13 = vadd.f32 %v4764_v34, %v4613_v49  ;;  %v4510_v41 = vpop.f32.mrf.mxu1  ;;  %v4392_v34 = vadd.f32 %v7187_v45, %v4203_v15 }
 0x543   : > { %v4578_v24 = vadd.f32 %v4510_v41, %v4389_v35  ;;  %v4336_v40 = vpop.f32.mrf.mxu0 }
 0x544   : > { %4866 = vst.msk [vmem:[%s7141_s22 + $0x38] sm:$0xff] %vm380_vm5, %v4834_v13 }
 0x545   : > { %5239 = vmatmul.msk.bf16.gmra.mxu1 %vm380_vm5, %v4425_v22  ;;  %v4614_v42 = vadd.f32 %v7131_v2, %v4578_v24  ;;  %v4152_v41 = vpop.f32.mrf.mxu3  ;;  %v4666_v22 = vld [vmem:[%s5388_s20 + $0xe0] sm:$0xff] }
 0x546   : > { %5255 = vmatmul.msk.bf16.gmra.mxu2 %vm334_vm1, %v4682_v29  ;;  %v4204_v29 = vadd.f32 %v7192_v53, %v6979_v62  ;;  %v4205_v62 = vadd.f32 %v7204_v51, %v6985_v4  ;;  %v4669_v4 = vld [vmem:[%s5388_s20 + $0xf8] sm:$0xff] }
 0x548   : > { %v4394_v60 = vadd.f32 %v4333_v3, %v4205_v62 }
 0x549   : > { %v4767_v48 = vpop.f32.mrf.mxu2 }
 0x54a   : > { %v4835_v55 = vadd.f32 %v4767_v48, %v4614_v42  ;;  %v4512_v19 = vpop.f32.mrf.mxu1  ;;  %v4393_v42 = vadd.f32 %v7197_v43, %v4204_v29  ;;  %v4208_v29 = vadd.f32 %v4152_v41, %v7019_v52 }
 0x54b   : > { %v4579_v8 = vadd.f32 %v4512_v19, %v4390_v57  ;;  %v4338_v11 = vpop.f32.mrf.mxu0 }
 0x54c   : > { %4867 = vst.msk [vmem:[%s7141_s22 + $0x40] sm:$0xff] %vm380_vm5, %v4835_v55  ;;  %v4684_v55 = vpack.c.bf16 %v4667_v5, %v4666_v22 }
 0x54d   : > { %v4615_v21 = vadd.f32 %v7131_v2, %v4579_v8  ;;  %v4154_v53 = vpop.f32.mrf.mxu3 }
 0x551   : > { %v4769_v30 = vpop.f32.mrf.mxu2 }
 0x552   : > { %v4836_v9 = vadd.f32 %v4769_v30, %v4615_v21  ;;  %v4515_v23 = vpop.f32.mrf.mxu1  ;;  %v4668_v30 = vld [vmem:[%s5388_s20 + $0xf0] sm:$0xff] }
 0x553   : > { %v4580_v10 = vadd.f32 %v4515_v23, %v4391_v6  ;;  %v4341_v45 = vpop.f32.mrf.mxu0  ;;  %v4428_v23 = vpack.c.bf16 %v2963_v38, %v2962_v27 }
 0x554   : > { %4868 = vst.msk [vmem:[%s7141_s22 + $0x48] sm:$0xff] %vm380_vm5, %v4836_v9 }
 0x555   : > { %5240 = vmatmul.msk.bf16.gmra.mxu1 %vm380_vm5, %v4426_v25  ;;  %v4616_v49 = vadd.f32 %v7131_v2, %v4580_v10  ;;  %v4157_v9 = vpop.f32.mrf.mxu3  ;;  %v4685_v10 = vpack.c.bf16 %v4669_v4, %v4668_v30 }
 0x556   : > { %5256 = vmatmul.msk.bf16.gmra.mxu2 %vm334_vm1, %v4683_v14 }
 0x559   : > { %v4772_v12 = vpop.f32.mrf.mxu2 }
 0x55a   : > { %v4837_v37 = vadd.f32 %v4772_v12, %v4616_v49  ;;  %v4517_v13 = vpop.f32.mrf.mxu1 }
 0x55b   : > { %v4581_v35 = vadd.f32 %v4517_v13, %v4392_v34  ;;  %v4343_v21 = vpop.f32.mrf.mxu0 }
 0x55c   : > { %4869 = vst.msk [vmem:[%s7141_s22 + $0x50] sm:$0xff] %vm380_vm5, %v4837_v37 }
 0x55d   : > { %v4617_v46 = vadd.f32 %v7131_v2, %v4581_v35 }
 0x561   : > { %v4774_v24 = vpop.f32.mrf.mxu2 }
 0x562   : > { %v4838_v32 = vadd.f32 %v4774_v24, %v4617_v46  ;;  %v4520_v48 = vpop.f32.mrf.mxu1  ;;  %v4397_v46 = vadd.f32 %v4341_v45, %v4208_v29  ;;  %v4210_v45 = vadd.f32 %v4157_v9, %v7037_v7 }
 0x563   : > { %v4582_v57 = vadd.f32 %v4520_v48, %v4393_v42 }
 0x564   : > { %4870 = vst.msk [vmem:[%s7141_s22 + $0x58] sm:$0xff] %vm380_vm5, %v4838_v32 }
 0x565   : > { %5241 = vmatmul.msk.bf16.gmra.mxu1 %vm380_vm5, %v6993_v17  ;;  %v4618_v19 = vadd.f32 %v7131_v2, %v4582_v57  ;;  %v4206_v17 = vadd.f32 %v4147_v39, %v7001_v44  ;;  %v4207_v44 = vadd.f32 %v4149_v61, %v7009_v1  ;;  %v4346_v39 = vpop.f32.mrf.mxu0 }
 0x566   : > { %5257 = vmatmul.msk.bf16.gmra.mxu2 %vm334_vm1, %v4684_v55 }
 0x567   : > { %v4395_v3 = vadd.f32 %v4336_v40, %v4206_v17  ;;  %v4396_v34 = vadd.f32 %v4338_v11, %v4207_v44  ;;  %v4159_v40 = vpop.f32.mrf.mxu3  ;;  %v4209_v11 = vadd.f32 %v4154_v53, %v7027_v26  ;;  %v4399_v26 = vadd.f32 %v4346_v39, %v4210_v45 }
 0x569   : > { %v4777_v43 = vpop.f32.mrf.mxu2  ;;  %v4398_v52 = vadd.f32 %v4343_v21, %v4209_v11  ;;  %v4211_v21 = vadd.f32 %v4159_v40, %v7045_v0 }
 0x56a   : > { %v4839_v8 = vadd.f32 %v4777_v43, %v4618_v19  ;;  %v4522_v33 = vpop.f32.mrf.mxu1 }
 0x56b   : > { %v4583_v50 = vadd.f32 %v4522_v33, %v4394_v60 }
 0x56c   : > { %4871 = vst.msk [vmem:[%s7141_s22 + $0x60] sm:$0xff] %vm380_vm5, %v4839_v8 }
 0x56d   : > { %v4619_v51 = vadd.f32 %v7131_v2, %v4583_v50  ;;  %v4348_v1 = vpop.f32.mrf.mxu0 }
 0x56e   : > { %v4400_v4 = vadd.f32 %v4348_v1, %v4211_v21 }
 0x56f   : > { %v4162_v42 = vpop.f32.mrf.mxu3 }
 0x571   : > { %v4779_v6 = vpop.f32.mrf.mxu2 }
 0x572   : > { %v4840_v14 = vadd.f32 %v4779_v6, %v4619_v51  ;;  %v4525_v25 = vpop.f32.mrf.mxu1  ;;  %v4212_v6 = vadd.f32 %v4162_v42, %v7055_v54 }
 0x573   : > { %v4584_v15 = vadd.f32 %v4525_v25, %v4395_v3 }
 0x574   : > { %4872 = vst.msk [vmem:[%s7141_s22 + $0x68] sm:$0xff] %vm380_vm5, %v4840_v14 }
 0x575   : > { %5242 = vmatmul.msk.bf16.gmra.mxu1 %vm380_vm5, %v4428_v23  ;;  %v4620_v49 = vadd.f32 %v7131_v2, %v4584_v15  ;;  %v4351_v62 = vpop.f32.mrf.mxu0 }
 0x576   : > { %5258 = vmatmul.msk.bf16.gmra.mxu2 %vm334_vm1, %v4685_v10  ;;  %v4401_v0 = vadd.f32 %v4351_v62, %v4212_v6 }
 0x577   : > { %v4164_v43 = vpop.f32.mrf.mxu3 }
 0x578   : > { %v4213_v39 = vadd.f32 %v4164_v43, %v7063_v20 }
 0x579   : > { %v4782_v12 = vpop.f32.mrf.mxu2 }
 0x57a   : > { %v4841_v37 = vadd.f32 %v4782_v12, %v4620_v49  ;;  %v4527_v13 = vpop.f32.mrf.mxu1 }
 0x57b   : > { %v4585_v35 = vadd.f32 %v4527_v13, %v4396_v34 }
 0x57c   : > { %4873 = vst.msk [vmem:[%s7141_s22 + $0x70] sm:$0xff] %vm380_vm5, %v4841_v37 }
 0x57d   : > { %v4621_v22 = vadd.f32 %v7131_v2, %v4585_v35  ;;  %v4353_v17 = vpop.f32.mrf.mxu0 }
 0x57e   : > { %v4402_v34 = vadd.f32 %v4353_v17, %v4213_v39 }
 0x57f   : > { %v4167_v38 = vpop.f32.mrf.mxu3 }
 0x580   : > { %v4214_v29 = vadd.f32 %v4167_v38, %v7072_v36 }
 0x581   : > { %v4784_v61 = vpop.f32.mrf.mxu2 }
 0x582   : > { %v4842_v5 = vadd.f32 %v4784_v61, %v4621_v22  ;;  %v4530_v24 = vpop.f32.mrf.mxu1 }
 0x583   : > { %v4586_v32 = vadd.f32 %v4530_v24, %v4397_v46 }
 0x584   : > { %4874 = vst.msk [vmem:[%s7141_s22 + $0x78] sm:$0xff] %vm380_vm5, %v4842_v5 }
 0x585   : > { %v4622_v48 = vadd.f32 %v7131_v2, %v4586_v32  ;;  %v4356_v23 = vpop.f32.mrf.mxu0 }
 0x586   : > { %v4403_v20 = vadd.f32 %v4356_v23, %v4214_v29 }
 0x587   : > { %v4169_v15 = vpop.f32.mrf.mxu3 }
 0x588   : > { %v4215_v32 = vadd.f32 %v4169_v15, %v7077_v47 }
 0x589   : > { %v4787_v55 = vpop.f32.mrf.mxu2 }
 0x58a   : > { %v4843_v57 = vadd.f32 %v4787_v55, %v4622_v48  ;;  %v4532_v41 = vpop.f32.mrf.mxu1 }
 0x58b   : > { %v4587_v19 = vadd.f32 %v4532_v41, %v4398_v52 }
 0x58c   : > { %4875 = vst.msk [vmem:[%s7141_s22 + $0x80] sm:$0xff] %vm380_vm5, %v4843_v57 }
 0x58d   : > { %v4623_v8 = vadd.f32 %v7131_v2, %v4587_v19  ;;  %v4358_v12 = vpop.f32.mrf.mxu0 }
 0x58e   : > { %v4404_v36 = vadd.f32 %v4358_v12, %v4215_v32 }
 0x58f   : > { %v4172_v35 = vpop.f32.mrf.mxu3 }
 0x590   : > { %v4216_v62 = vadd.f32 %v4172_v35, %v7084_v18 }
 0x591   : > { %v4789_v60 = vpop.f32.mrf.mxu2 }
 0x592   : > { %v4844_v33 = vadd.f32 %v4789_v60, %v4623_v8  ;;  %v4535_v53 = vpop.f32.mrf.mxu1 }
 0x593   : > { %v4588_v50 = vadd.f32 %v4535_v53, %v4399_v26 }
 0x594   : > { %4876 = vst.msk [vmem:[%s7141_s22 + $0x88] sm:$0xff] %vm380_vm5, %v4844_v33 }
 0x595   : > { %v4624_v27 = vadd.f32 %v7131_v2, %v4588_v50  ;;  %v4361_v46 = vpop.f32.mrf.mxu0 }
 0x596   : > { %v4405_v8 = vadd.f32 %v4361_v46, %v4216_v62 }
 0x597   : > { %v4174_v42 = vpop.f32.mrf.mxu3 }
 0x598   : > { %v4217_v26 = vadd.f32 %v4174_v42, %v7089_v16 }
 0x599   : > { %v4792_v30 = vpop.f32.mrf.mxu2 }
 0x59a   : > { %v4845_v7 = vadd.f32 %v4792_v30, %v4624_v27  ;;  %v4537_v51 = vpop.f32.mrf.mxu1 }
 0x59b   : > { %v4589_v9 = vadd.f32 %v4537_v51, %v4400_v4 }
 0x59c   : > { %4877 = vst.msk [vmem:[%s7141_s22 + $0x90] sm:$0xff] %vm380_vm5, %v4845_v7 }
 0x59d   : > { %v4625_v14 = vadd.f32 %v7131_v2, %v4589_v9  ;;  %v4363_v41 = vpop.f32.mrf.mxu0 }
 0x59e   : > { %v4406_v18 = vadd.f32 %v4363_v41, %v4217_v26 }
 0x59f   : > { %v4177_v45 = vpop.f32.mrf.mxu3 }
 0x5a0   : > { %v4218_v7 = vadd.f32 %v4177_v45, %v7098_v28 }
 0x5a1   : > { %v4794_v3 = vpop.f32.mrf.mxu2 }
 0x5a2   : > { %v4846_v25 = vadd.f32 %v4794_v3, %v4625_v14  ;;  %v4540_v10 = vpop.f32.mrf.mxu1 }
 0x5a3   : > { %v4590_v44 = vadd.f32 %v4540_v10, %v4401_v0 }
 0x5a4   : > { %4878 = vst.msk [vmem:[%s7141_s22 + $0x98] sm:$0xff] %vm380_vm5, %v4846_v25 }
 0x5a5   : > { %v4626_v49 = vadd.f32 %v7131_v2, %v4590_v44  ;;  %v4366_v53 = vpop.f32.mrf.mxu0 }
 0x5a6   : > { %v4407_v6 = vadd.f32 %v4366_v53, %v4218_v7 }
 0x5a7   : > { %v4179_v38 = vpop.f32.mrf.mxu3 }
 0x5a8   : > { %v4219_v25 = vadd.f32 %v4179_v38, %v7103_v59 }
 0x5a9   : > { %v4797_v37 = vpop.f32.mrf.mxu2 }
 0x5aa   : > { %v4847_v54 = vadd.f32 %v4797_v37, %v4626_v49  ;;  %v4542_v13 = vpop.f32.mrf.mxu1 }
 0x5ab   : > { %v4591_v40 = vadd.f32 %v4542_v13, %v4402_v34 }
 0x5ac   : > { %4879 = vst.msk [vmem:[%s7141_s22 + $0xa0] sm:$0xff] %vm380_vm5, %v4847_v54 }
 0x5ad   : > { %v4627_v22 = vadd.f32 %v7131_v2, %v4591_v40  ;;  %v4368_v51 = vpop.f32.mrf.mxu0 }
 0x5ae   : > { %v4408_v28 = vadd.f32 %v4368_v51, %v4219_v25 }
 0x5af   : > { %v4182_v3 = vpop.f32.mrf.mxu3 }
 0x5b0   : > { %v4220_v12 = vadd.f32 %v4182_v3, %v7110_v56 }
 0x5b1   : > { %v4799_v1 = vpop.f32.mrf.mxu2 }
 0x5b2   : > { %v4848_v61 = vadd.f32 %v4799_v1, %v4627_v22  ;;  %v4545_v5 = vpop.f32.mrf.mxu1 }
 0x5b3   : > { %v4592_v24 = vadd.f32 %v4545_v5, %v4403_v20 }
 0x5b4   : > { %4880 = vst.msk [vmem:[%s7141_s22 + $0xa8] sm:$0xff] %vm380_vm5, %v4848_v61 }
 0x5b5   : > { %v4628_v11 = vadd.f32 %v7131_v2, %v4592_v24  ;;  %v4371_v39 = vpop.f32.mrf.mxu0 }
 0x5b6   : > { %v4409_v59 = vadd.f32 %v4371_v39, %v4220_v12 }
 0x5b7   : > { %v4184_v37 = vpop.f32.mrf.mxu3 }
 0x5b8   : > { %v4221_v22 = vadd.f32 %v4184_v37, %v7115_v31 }
 0x5b9   : > { %v4802_v48 = vpop.f32.mrf.mxu2 }
 0x5ba   : > { %v4849_v55 = vadd.f32 %v4802_v48, %v4628_v11  ;;  %v4547_v57 = vpop.f32.mrf.mxu1 }
 0x5bb   : > { %v4593_v52 = vadd.f32 %v4547_v57, %v4404_v36 }
 0x5bc   : > { %4881 = vst.msk [vmem:[%s7141_s22 + $0xb0] sm:$0xff] %vm380_vm5, %v4849_v55 }
 0x5bd   : > { %v4629_v19 = vadd.f32 %v7131_v2, %v4593_v52  ;;  %v4373_v29 = vpop.f32.mrf.mxu0 }
 0x5be   : > { %v4410_v5 = vadd.f32 %v4373_v29, %v4221_v22 }
 0x5bf   : > { %v4187_v61 = vpop.f32.mrf.mxu3 }
 0x5c0   : > { %v4222_v42 = vadd.f32 %v4187_v61, %v7120_v58 }
 0x5c1   : > { %v4804_v43 = vpop.f32.mrf.mxu2 }
 0x5c2   : > { %v4850_v47 = vadd.f32 %v4804_v43, %v4629_v19  ;;  %v4550_v60 = vpop.f32.mrf.mxu1 }
 0x5c3   : > { %v4594_v33 = vadd.f32 %v4550_v60, %v4405_v8 }
 0x5c4   : > { %4882 = vst.msk [vmem:[%s7141_s22 + $0xb8] sm:$0xff] %vm380_vm5, %v4850_v47 }
 0x5c5   : > { %v4630_v50 = vadd.f32 %v7131_v2, %v4594_v33  ;;  %v4376_v32 = vpop.f32.mrf.mxu0 }
 0x5c6   : > { %v4411_v55 = vadd.f32 %v4376_v32, %v4222_v42 }
 0x5c7   : > { %v4189_v57 = vpop.f32.mrf.mxu3 }
 0x5c8   : > { %v4223_v41 = vadd.f32 %v4189_v57, %v7125_v63 }
 0x5c9   : > { %v4807_v17 = vpop.f32.mrf.mxu2 }
 0x5ca   : > { %v4851_v21 = vadd.f32 %v4807_v17, %v4630_v50  ;;  %v4552_v27 = vpop.f32.mrf.mxu1 }
 0x5cb   : > { %v4595_v30 = vadd.f32 %v4552_v27, %v4406_v18 }
 0x5cc   : > { %4883 = vst.msk [vmem:[%s7141_s22 + $0xc0] sm:$0xff] %vm380_vm5, %v4851_v21 }
 0x5cd   : > { %v4631_v4 = vadd.f32 %v7131_v2, %v4595_v30  ;;  %v4378_v62 = vpop.f32.mrf.mxu0 }
 0x5ce   : > { %v4412_v43 = vadd.f32 %v4378_v62, %v4223_v41 }
 0x5d1   : > { %v4809_v9 = vpop.f32.mrf.mxu2 }
 0x5d2   : > { %v4852_v16 = vadd.f32 %v4809_v9, %v4631_v4  ;;  %v4555_v23 = vpop.f32.mrf.mxu1 }
 0x5d3   : > { %v4596_v14 = vadd.f32 %v4555_v23, %v4407_v6 }
 0x5d4   : > { %4884 = vst.msk [vmem:[%s7141_s22 + $0xc8] sm:$0xff] %vm380_vm5, %v4852_v16 }
 0x5d5   : > { %v4632_v0 = vadd.f32 %v7131_v2, %v4596_v14 }
 0x5d9   : > { %v4812_v10 = vpop.f32.mrf.mxu2 }
 0x5da   : > { %v4853_v15 = vadd.f32 %v4812_v10, %v4632_v0  ;;  %v4557_v44 = vpop.f32.mrf.mxu1 }
 0x5db   : > { %v4597_v49 = vadd.f32 %v4557_v44, %v4408_v28 }
 0x5dc   : > { %4885 = vst.msk [vmem:[%s7141_s22 + $0xd0] sm:$0xff] %vm380_vm5, %v4853_v15 }
 0x5dd   : > { %v4633_v54 = vadd.f32 %v7131_v2, %v4597_v49 }
 0x5e1   : > { %v4814_v34 = vpop.f32.mrf.mxu2 }
 0x5e2   : > { %v4854_v13 = vadd.f32 %v4814_v34, %v4633_v54  ;;  %v4560_v40 = vpop.f32.mrf.mxu1 }
 0x5e3   : > { %v4598_v35 = vadd.f32 %v4560_v40, %v4409_v59 }
 0x5e4   : > { %4886 = vst.msk [vmem:[%s7141_s22 + $0xd8] sm:$0xff] %vm380_vm5, %v4854_v13 }
 0x5e5   : > { %v4634_v1 = vadd.f32 %v7131_v2, %v4598_v35 }
 0x5e9   : > { %v4817_v20 = vpop.f32.mrf.mxu2 }
 0x5ea   : > { %v4855_v56 = vadd.f32 %v4817_v20, %v4634_v1  ;;  %v4562_v46 = vpop.f32.mrf.mxu1 }
 0x5eb   : > { %v4599_v24 = vadd.f32 %v4562_v46, %v4410_v5 }
 0x5ec   : > { %4887 = vst.msk [vmem:[%s7141_s22 + $0xe0] sm:$0xff] %vm380_vm5, %v4855_v56 }
 0x5ed   : > { %v4635_v11 = vadd.f32 %v7131_v2, %v4599_v24 }
 0x5f1   : > { %v4819_v48 = vpop.f32.mrf.mxu2 }
 0x5f2   : > { %v4856_v31 = vadd.f32 %v4819_v48, %v4635_v11  ;;  %v4565_v36 = vpop.f32.mrf.mxu1 }
 0x5f3   : > { %v4600_v52 = vadd.f32 %v4565_v36, %v4411_v55 }
 0x5f4   : > { %4888 = vst.msk [vmem:[%s7141_s22 + $0xe8] sm:$0xff] %vm380_vm5, %v4856_v31 }
 0x5f5   : > { %v4636_v19 = vadd.f32 %v7131_v2, %v4600_v52 }
 0x5f9   : > { %v4822_v45 = vpop.f32.mrf.mxu2 }
 0x5fa   : > { %v4857_v58 = vadd.f32 %v4822_v45, %v4636_v19  ;;  %v4567_v47 = vpop.f32.mrf.mxu1 }
 0x5fb   : > { %v4601_v8 = vadd.f32 %v4567_v47, %v4412_v43 }
 0x5fc   : > { %4889 = vst.msk [vmem:[%s7141_s22 + $0xf0] sm:$0xff] %vm380_vm5, %v4857_v58 }
 0x5fd   : > { %v4637_v60 = vadd.f32 %v7131_v2, %v4601_v8 }
 0x601   : > { %v4824_v33 = vpop.f32.mrf.mxu2 }
 0x602   : > { %v4858_v26 = vadd.f32 %v4824_v33, %v4637_v60 }
 0x604   : > { %4890 = vst.msk [vmem:[%s7141_s22 + $0xf8] sm:$0xff] %vm380_vm5, %v4858_v26 }
 0x605 PF: > { %s19_s30 = sadd.s32 1, %s5290_s30  }
 0x606   : > { %p16_p4 = scmp.ge.s32.totalorder %s19_s30, 4  }
 0x608   :  { %18 = sbr.rel (!%p16_p4) target bundleno = 1 (0x1), region = 92 }

</bundles_post_ra>
